<compile_context>
chip_gen: v7x
topology: tpu7x:2x2x1
jax: 0.10.0
libtpu: 0.0.40
codegen_flags: <defaults>
</compile_context>

<pallas_src>
import jax
import jax.numpy as jnp
import numpy as np
from jax.experimental import pallas as pl
from jax.experimental.pallas import tpu as pltpu

_LANE = 128
_SUBLANE = 8


def _round_up(x, m):
    return (x + m - 1) // m * m


def _sclstm_kernel(x_ref, d0_ref, w_x_ref, b_x_ref, w_h_ref, w_dc_ref,
                   w_out_ref, b_out_ref, out_ref,
                   xproj_scr, h_acc_scr, h_scr, c_scr, d_scr):
    BP, TS, I = x_ref.shape
    HP, V = w_out_ref.shape
    DP = w_dc_ref.shape[0]
    P = w_x_ref.shape[1]            # 4*HP + DP
    cdt = w_x_ref.dtype             # compute dtype for MXU operands (bf16)

    @pl.when(pl.program_id(0) == 0)
    def _init():
        h_scr[...] = jnp.zeros_like(h_scr)
        c_scr[...] = jnp.zeros_like(c_scr)
        d_scr[...] = d0_ref[...]

    # (1) Input-side projection for the whole chunk in one batched MXU pass.
    #     All biases (b_w + b_h per gate, b_wr + b_hr for the reading gate) are folded
    #     into b_x, so nothing is re-broadcast inside the serial loop.
    xflat = x_ref[...].reshape(BP * TS, I).astype(cdt)
    xproj = jnp.dot(xflat, w_x_ref[...],
                    preferred_element_type=jnp.float32) + b_x_ref[...]
    xproj_scr[...] = xproj.reshape(BP, TS, P)

    h = h_scr[...]
    c = c_scr[...]
    d = d_scr[...]

    # (2) Serial SC-LSTM recurrence, statically unrolled over the chunk.
    #     Gate slices are lane-aligned (HP, DP are multiples of 128); padded lanes of
    #     h/c/d stay exactly zero, so the padding never leaks into real outputs.
    for s in range(TS):
        xp = xproj_scr[:, pl.ds(s, 1), :].reshape(BP, P)
        pre = xp + jnp.dot(h.astype(cdt), w_h_ref[...],
                           preferred_element_type=jnp.float32)        # (BP, P)
        gate_i = jax.nn.sigmoid(pre[:, 0 * HP:1 * HP])
        gate_f = jax.nn.sigmoid(pre[:, 1 * HP:2 * HP])
        gate_o = jax.nn.sigmoid(pre[:, 2 * HP:3 * HP])
        c_hat = jnp.tanh(pre[:, 3 * HP:4 * HP])
        gate_r = jax.nn.sigmoid(pre[:, 4 * HP:4 * HP + DP])

        d = gate_r * d
        c = gate_f * c + gate_i * c_hat + jnp.tanh(
            jnp.dot(d.astype(cdt), w_dc_ref[...],
                    preferred_element_type=jnp.float32))
        h = gate_o * jnp.tanh(c)
        h_acc_scr[:, pl.ds(s, 1), :] = h[:, None, :]

    h_scr[...] = h
    c_scr[...] = c
    d_scr[...] = d

    # (3) Deferred output projection: one (BP*TS, HP) @ (HP, V) MXU pass per chunk,
    #     written directly in (B, T, V) order.
    hflat = h_acc_scr[...].reshape(BP * TS, HP).astype(cdt)
    logits = jnp.dot(hflat, w_out_ref[...],
                     preferred_element_type=jnp.float32) + b_out_ref[...]
    out_ref[...] = logits.reshape(BP, TS, V).astype(out_ref.dtype)


def _pack_params(params, input_size, hidden_size, d_size, output_size, compute_dtype):
    """Fuse + lane-pad the SC-LSTM weights.

    Layout of the fused projection (width P = 4*HP + DP, HP/DP = 128-padded H/D):
      cols [k*HP, k*HP+H)        : gate k of W_w / W_h (k = i, f, o, c_hat)
      cols [4*HP, 4*HP+D)        : W_wr / W_hr (reading gate)
    Padded columns/rows are zero, so the math is exactly equivalent.
    """
    H, D, I, V = hidden_size, d_size, input_size, output_size
    HP = _round_up(H, _LANE)
    DP = _round_up(D, _LANE)
    P = 4 * HP + DP

    w_x = jnp.zeros((I, P), jnp.float32)
    w_h = jnp.zeros((HP, P), jnp.float32)
    b_x = jnp.zeros((1, P), jnp.float32)
    for k in range(4):
        w_x = w_x.at[:, k * HP:k * HP + H].set(params["w_w"][:, k * H:(k + 1) * H])
        w_h = w_h.at[:H, k * HP:k * HP + H].set(params["w_h"][:, k * H:(k + 1) * H])
        b_x = b_x.at[:, k * HP:k * HP + H].set(
            params["b_w"][:, k * H:(k + 1) * H] + params["b_h"][:, k * H:(k + 1) * H])
    w_x = w_x.at[:, 4 * HP:4 * HP + D].set(params["w_wr"])
    w_h = w_h.at[:H, 4 * HP:4 * HP + D].set(params["w_hr"])
    b_x = b_x.at[:, 4 * HP:4 * HP + D].set(params["b_wr"] + params["b_hr"])

    w_dc = jnp.zeros((DP, HP), jnp.float32).at[:D, :H].set(params["w_dc"])
    w_out = jnp.zeros((HP, V), jnp.float32).at[:H, :].set(params["w_out"])

    return dict(
        w_x=w_x.astype(compute_dtype),
        b_x=b_x,                                   # biases stay f32
        w_h=w_h.astype(compute_dtype),
        w_dc=w_dc.astype(compute_dtype),
        w_out=w_out.astype(compute_dtype),
        b_out=params["b_out"].astype(jnp.float32),
    )


def sclstm_forward(input_var, feats_var, params, hidden_size, *,
                   chunk=8, compute_dtype=jnp.bfloat16):
    """input_var: (B, T, I) f32, feats_var: (B, D) f32 -> logits (B, T, V) f32."""
    B, T, I = input_var.shape
    D = feats_var.shape[1]
    V = params["w_out"].shape[1]
    H = hidden_size

    HP = _round_up(H, _LANE)
    DP = _round_up(D, _LANE)
    P = 4 * HP + DP
    BP = _round_up(B, _SUBLANE)          # pad batch to the f32 sublane tile
    TS = max(1, int(chunk))
    T_pad = _round_up(T, TS)

    packed = _pack_params(params, I, H, D, V, compute_dtype)

    # Zero-pad batch/time; padded rows compute finite garbage that is sliced away.
    x = jnp.zeros((BP, T_pad, I), jnp.float32).at[:B, :T, :].set(input_var)
    d0 = jnp.zeros((BP, DP), jnp.float32).at[:B, :D].set(feats_var)

    def _full(shape):
        zeros = (0,) * len(shape)
        return pl.BlockSpec(shape, lambda c, _z=zeros: _z)

    grid_spec = pltpu.PrefetchScalarGridSpec(
        num_scalar_prefetch=0,
        grid=(T_pad // TS,),
        in_specs=[
            pl.BlockSpec((BP, TS, I), lambda c: (0, c, 0)),   # x chunk (B, TS, I)
            _full((BP, DP)),                                  # d_0 (padded feats)
            _full((I, P)),                                    # W_w | W_wr (gate-padded)
            _full((1, P)),                                    # b_w+b_h | b_wr+b_hr
            _full((HP, P)),                                   # W_h | W_hr
            _full((DP, HP)),                                  # W_dc
            _full((HP, V)),                                   # W_out
            _full((1, V)),                                    # b_out
        ],
        out_specs=pl.BlockSpec((BP, TS, V), lambda c: (0, c, 0)),
        scratch_shapes=[
            pltpu.VMEM((BP, TS, P), jnp.float32),    # chunk x-projection
            pltpu.VMEM((BP, TS, HP), jnp.float32),   # chunk hidden accumulator
            pltpu.VMEM((BP, HP), jnp.float32),       # h state (carried across chunks)
            pltpu.VMEM((BP, HP), jnp.float32),       # c state
            pltpu.VMEM((BP, DP), jnp.float32),       # d state
        ],
    )

    out = pl.pallas_call(
        _sclstm_kernel,
        out_shape=jax.ShapeDtypeStruct((BP, T_pad, V), jnp.float32),
        grid_spec=grid_spec,
        compiler_params=pltpu.CompilerParams(
            dimension_semantics=("arbitrary",)),   # time recurrence is serial
    )(x, d0, packed["w_x"], packed["b_x"], packed["w_h"], packed["w_dc"],
      packed["w_out"], packed["b_out"])

    return out[:B, :T, :]


def _ref_forward(input_var, feats_var, params, hidden_size, compute_dtype=jnp.bfloat16):
    """Pure-JAX reference (lax.scan) with the same bf16-operand / f32-accumulate scheme."""
    B, T, I = input_var.shape
    H = hidden_size
    cdt = compute_dtype
    f32 = jnp.float32
    w_w = params["w_w"].astype(cdt)
    w_h = params["w_h"].astype(cdt)
    w_wr = params["w_wr"].astype(cdt)
    w_hr = params["w_hr"].astype(cdt)
    w_dc = params["w_dc"].astype(cdt)
    w_out = params["w_out"].astype(cdt)

    def step(carry, x_t):
        h, c, d = carry
        pre = (jnp.dot(x_t.astype(cdt), w_w, preferred_element_type=f32) + params["b_w"]
               + jnp.dot(h.astype(cdt), w_h, preferred_element_type=f32) + params["b_h"])
        gi = jax.nn.sigmoid(pre[:, 0 * H:1 * H])
        gf = jax.nn.sigmoid(pre[:, 1 * H:2 * H])
        go = jax.nn.sigmoid(pre[:, 2 * H:3 * H])
        ch = jnp.tanh(pre[:, 3 * H:4 * H])
        gr = jax.nn.sigmoid(
            jnp.dot(x_t.astype(cdt), w_wr, preferred_element_type=f32) + params["b_wr"]
            + jnp.dot(h.astype(cdt), w_hr, preferred_element_type=f32) + params["b_hr"])
        d_new = gr * d
        c_new = gf * c + gi * ch + jnp.tanh(
            jnp.dot(d_new.astype(cdt), w_dc, preferred_element_type=f32))
        h_new = go * jnp.tanh(c_new)
        logits = jnp.dot(h_new.astype(cdt), w_out,
                         preferred_element_type=f32) + params["b_out"]
        return (h_new, c_new, d_new), logits

    h0 = jnp.zeros((B, H), f32)
    c0 = jnp.zeros((B, H), f32)
    x_tm = jnp.transpose(input_var, (1, 0, 2))
    _, out_tm = jax.lax.scan(step, (h0, c0, feats_var), x_tm)
    return jnp.transpose(out_tm, (1, 0, 2))


def init_params(key, input_size, output_size, hidden_size, d_size):
    """Deterministic PyTorch-style uniform(-1/sqrt(fan_in), 1/sqrt(fan_in)) init."""
    def linear(k, fan_in, fan_out, bias=True):
        bound = 1.0 / np.sqrt(fan_in)
        kw, kb = jax.random.split(k)
        w = jax.random.uniform(kw, (fan_in, fan_out), jnp.float32, -bound, bound)
        if not bias:
            return w, None
        b = jax.random.uniform(kb, (1, fan_out), jnp.float32, -bound, bound)
        return w, b

    ks = jax.random.split(key, 6)
    w_w, b_w = linear(ks[0], input_size, 4 * hidden_size)
    w_h, b_h = linear(ks[1], hidden_size, 4 * hidden_size)
    w_wr, b_wr = linear(ks[2], input_size, d_size)
    w_hr, b_hr = linear(ks[3], hidden_size, d_size)
    w_dc, _ = linear(ks[4], d_size, hidden_size, bias=False)
    w_out, b_out = linear(ks[5], hidden_size, output_size)
    return dict(w_w=w_w, b_w=b_w, w_h=w_h, b_h=b_h,
                w_wr=w_wr, b_wr=b_wr, w_hr=w_hr, b_hr=b_hr,
                w_dc=w_dc, w_out=w_out, b_out=b_out)


if __name__ == "__main__":
    # Small shapes consistent with LMDeep(dec_type='sclstm', input_size, output_size,
    # hidden_size, d_size, n_layer=1); T=16 with chunk=8 exercises cross-chunk state carry.
    B, T = 4, 16
    INPUT_SIZE, OUTPUT_SIZE, HIDDEN_SIZE, D_SIZE = 40, 40, 32, 16

    key = jax.random.PRNGKey(0)
    k_in, k_feat, k_par = jax.random.split(key, 3)

    # teacher-forced word inputs (one-hot) and dialogue-act feature vector
    ids = jax.random.randint(k_in, (B, T), 0, INPUT_SIZE)
    input_var = jax.nn.one_hot(ids, INPUT_SIZE, dtype=jnp.float32)            # (B, T, I)
    feats_var = (jax.random.uniform(k_feat, (B, D_SIZE)) > 0.5).astype(jnp.float32)  # (B, D)

    params = init_params(k_par, INPUT_SIZE, OUTPUT_SIZE, HIDDEN_SIZE, D_SIZE)

    out = sclstm_forward(input_var, feats_var, params, HIDDEN_SIZE, chunk=8)
    out = jax.block_until_ready(out)

    ref = _ref_forward(input_var, feats_var, params, HIDDEN_SIZE)
    np.testing.assert_allclose(np.asarray(out), np.asarray(ref), atol=2e-3, rtol=2e-3)

    print("KERNEL_OK")
</pallas_src>

<mosaic_0001>
module attributes {stable_mosaic.version = 11 : i64} {
  func.func @_sclstm_kernel(%arg0: i32, %arg1: memref<8x8x40xf32, #tpu.memory_space<vmem>>, %arg2: memref<8x128xf32, #tpu.memory_space<vmem>>, %arg3: memref<40x640xbf16, #tpu.memory_space<vmem>>, %arg4: memref<1x640xf32, #tpu.memory_space<vmem>>, %arg5: memref<128x640xbf16, #tpu.memory_space<vmem>>, %arg6: memref<128x128xbf16, #tpu.memory_space<vmem>>, %arg7: memref<128x40xbf16, #tpu.memory_space<vmem>>, %arg8: memref<1x40xf32, #tpu.memory_space<vmem>>, %arg9: memref<8x8x40xf32, #tpu.memory_space<vmem>>, %arg10: memref<8x8x640xf32, #tpu.memory_space<vmem>>, %arg11: memref<8x8x128xf32, #tpu.memory_space<vmem>>, %arg12: memref<8x128xf32, #tpu.memory_space<vmem>>, %arg13: memref<8x128xf32, #tpu.memory_space<vmem>>, %arg14: memref<8x128xf32, #tpu.memory_space<vmem>>) attributes {dimension_semantics = [#tpu.dimension_semantics<arbitrary>], iteration_bounds = array<i64: 2>, scalar_prefetch = 0 : i64, scratch_operands = 5 : i64, tpu.core_type = #tpu.core_type<tc>, window_params = [{transform_indices = @transform_0, window_bounds = array<i64: 8, 8, 40>}, {pipeline_mode = #tpu.pipeline_mode<synchronous>, transform_indices = @transform_1, window_bounds = array<i64: 8, 128>}, {pipeline_mode = #tpu.pipeline_mode<synchronous>, transform_indices = @transform_2, window_bounds = array<i64: 40, 640>}, {pipeline_mode = #tpu.pipeline_mode<synchronous>, transform_indices = @transform_3, window_bounds = array<i64: 1, 640>}, {pipeline_mode = #tpu.pipeline_mode<synchronous>, transform_indices = @transform_4, window_bounds = array<i64: 128, 640>}, {pipeline_mode = #tpu.pipeline_mode<synchronous>, transform_indices = @transform_5, window_bounds = array<i64: 128, 128>}, {pipeline_mode = #tpu.pipeline_mode<synchronous>, transform_indices = @transform_6, window_bounds = array<i64: 128, 40>}, {pipeline_mode = #tpu.pipeline_mode<synchronous>, transform_indices = @transform_7, window_bounds = array<i64: 1, 40>}, {transform_indices = @transform_8, window_bounds = array<i64: 8, 8, 40>}]} {
    %c0_i32 = arith.constant 0 : i32
    %0 = arith.cmpi eq, %arg0, %c0_i32 : i32
    %1 = arith.extui %0 : i1 to i32
    %c0_i32_0 = arith.constant 0 : i32
    %2 = arith.cmpi ne, %1, %c0_i32_0 : i32
    scf.if %2 {
      %cst_154 = arith.constant 0.000000e+00 : f32
      %389 = vector.broadcast %cst_154 : f32 to vector<8x128xf32>
      %c0_155 = arith.constant 0 : index
      %c0_156 = arith.constant 0 : index
      %390 = vector.load %arg12[%c0_155, %c0_156] : memref<8x128xf32, #tpu.memory_space<vmem>>, vector<8x128xf32>
      tpu.vector_store %arg12[%c0_155, %c0_156], %389 {strides = array<i32>} : memref<8x128xf32, #tpu.memory_space<vmem>>, vector<8x128xf32>,
      %cst_157 = arith.constant 0.000000e+00 : f32
      %391 = vector.broadcast %cst_157 : f32 to vector<8x128xf32>
      %c0_158 = arith.constant 0 : index
      %c0_159 = arith.constant 0 : index
      %392 = vector.load %arg13[%c0_158, %c0_159] : memref<8x128xf32, #tpu.memory_space<vmem>>, vector<8x128xf32>
      tpu.vector_store %arg13[%c0_158, %c0_159], %391 {strides = array<i32>} : memref<8x128xf32, #tpu.memory_space<vmem>>, vector<8x128xf32>,
      %c0_160 = arith.constant 0 : index
      %c0_161 = arith.constant 0 : index
      %393 = vector.load %arg2[%c0_160, %c0_161] : memref<8x128xf32, #tpu.memory_space<vmem>>, vector<8x128xf32>
      %c0_162 = arith.constant 0 : index
      %c0_163 = arith.constant 0 : index
      %394 = vector.load %arg14[%c0_162, %c0_163] : memref<8x128xf32, #tpu.memory_space<vmem>>, vector<8x128xf32>
      tpu.vector_store %arg14[%c0_162, %c0_163], %393 {strides = array<i32>} : memref<8x128xf32, #tpu.memory_space<vmem>>, vector<8x128xf32>,
    } else {
    }
    %c0 = arith.constant 0 : index
    %c0_1 = arith.constant 0 : index
    %c0_2 = arith.constant 0 : index
    %3 = vector.load %arg1[%c0, %c0_1, %c0_2] : memref<8x8x40xf32, #tpu.memory_space<vmem>>, vector<8x8x40xf32>
    %4 = vector.shape_cast %3 : vector<8x8x40xf32> to vector<64x40xf32>
    %5 = arith.truncf %4 : vector<64x40xf32> to vector<64x40xbf16>
    %c0_3 = arith.constant 0 : index
    %c0_4 = arith.constant 0 : index
    %6 = vector.load %arg3[%c0_3, %c0_4] : memref<40x640xbf16, #tpu.memory_space<vmem>>, vector<40x640xbf16>
    %cst = arith.constant dense<0.000000e+00> : vector<64x640xf32>
    %7 = tpu.matmul %5, %6, %cst {dimension_numbers = #tpu.dot_dimension_numbers<[1], [0], [0], [1], [0, 0, 1, 1], [], []>} : vector<64x40xbf16>, vector<40x640xbf16>, vector<64x640xf32> -> vector<64x640xf32>
    %c0_5 = arith.constant 0 : index
    %c0_6 = arith.constant 0 : index
    %8 = vector.load %arg4[%c0_5, %c0_6] : memref<1x640xf32, #tpu.memory_space<vmem>>, vector<1x640xf32>
    %9 = vector.broadcast %8 : vector<1x640xf32> to vector<64x640xf32>
    %10 = arith.addf %7, %9 : vector<64x640xf32>
    %11 = vector.shape_cast %10 : vector<64x640xf32> to vector<8x8x640xf32>
    %c0_7 = arith.constant 0 : index
    %c0_8 = arith.constant 0 : index
    %c0_9 = arith.constant 0 : index
    %12 = vector.load %arg10[%c0_7, %c0_8, %c0_9] : memref<8x8x640xf32, #tpu.memory_space<vmem>>, vector<8x8x640xf32>
    tpu.vector_store %arg10[%c0_7, %c0_8, %c0_9], %11 {strides = array<i32>} : memref<8x8x640xf32, #tpu.memory_space<vmem>>, vector<8x8x640xf32>,
    %c0_10 = arith.constant 0 : index
    %c0_11 = arith.constant 0 : index
    %13 = vector.load %arg12[%c0_10, %c0_11] : memref<8x128xf32, #tpu.memory_space<vmem>>, vector<8x128xf32>
    %c0_12 = arith.constant 0 : index
    %c0_13 = arith.constant 0 : index
    %14 = vector.load %arg13[%c0_12, %c0_13] : memref<8x128xf32, #tpu.memory_space<vmem>>, vector<8x128xf32>
    %c0_14 = arith.constant 0 : index
    %c0_15 = arith.constant 0 : index
    %15 = vector.load %arg14[%c0_14, %c0_15] : memref<8x128xf32, #tpu.memory_space<vmem>>, vector<8x128xf32>
    %c0_16 = arith.constant 0 : index
    %c0_17 = arith.constant 0 : index
    %c0_18 = arith.constant 0 : index
    %16 = vector.load %arg10[%c0_16, %c0_17, %c0_18] : memref<8x8x640xf32, #tpu.memory_space<vmem>>, vector<8x1x640xf32>
    %17 = vector.shape_cast %16 : vector<8x1x640xf32> to vector<8x640xf32>
    %18 = arith.truncf %13 : vector<8x128xf32> to vector<8x128xbf16>
    %c0_19 = arith.constant 0 : index
    %c0_20 = arith.constant 0 : index
    %19 = vector.load %arg5[%c0_19, %c0_20] : memref<128x640xbf16, #tpu.memory_space<vmem>>, vector<128x640xbf16>
    %cst_21 = arith.constant dense<0.000000e+00> : vector<8x640xf32>
    %20 = tpu.matmul %18, %19, %cst_21 {dimension_numbers = #tpu.dot_dimension_numbers<[1], [0], [0], [1], [0, 0, 1, 1], [], []>} : vector<8x128xbf16>, vector<128x640xbf16>, vector<8x640xf32> -> vector<8x640xf32>
    %21 = arith.addf %17, %20 : vector<8x640xf32>
    %22 = vector.extract_strided_slice %21 {offsets = [0, 0], sizes = [8, 128], strides = [1, 1]} : vector<8x640xf32> to vector<8x128xf32>
    %23 = arith.negf %22 : vector<8x128xf32>
    %24 = math.exp %23 : vector<8x128xf32>
    %cst_22 = arith.constant 1.000000e+00 : f32
    %25 = vector.broadcast %cst_22 : f32 to vector<8x128xf32>
    %26 = arith.addf %25, %24 : vector<8x128xf32>
    %27 = arith.divf %25, %26 : vector<8x128xf32>
    %28 = vector.extract_strided_slice %21 {offsets = [0, 128], sizes = [8, 128], strides = [1, 1]} : vector<8x640xf32> to vector<8x128xf32>
    %29 = arith.negf %28 : vector<8x128xf32>
    %30 = math.exp %29 : vector<8x128xf32>
    %cst_23 = arith.constant 1.000000e+00 : f32
    %31 = vector.broadcast %cst_23 : f32 to vector<8x128xf32>
    %32 = arith.addf %31, %30 : vector<8x128xf32>
    %33 = arith.divf %31, %32 : vector<8x128xf32>
    %34 = vector.extract_strided_slice %21 {offsets = [0, 256], sizes = [8, 128], strides = [1, 1]} : vector<8x640xf32> to vector<8x128xf32>
    %35 = arith.negf %34 : vector<8x128xf32>
    %36 = math.exp %35 : vector<8x128xf32>
    %cst_24 = arith.constant 1.000000e+00 : f32
    %37 = vector.broadcast %cst_24 : f32 to vector<8x128xf32>
    %38 = arith.addf %37, %36 : vector<8x128xf32>
    %39 = arith.divf %37, %38 : vector<8x128xf32>
    %40 = vector.extract_strided_slice %21 {offsets = [0, 384], sizes = [8, 128], strides = [1, 1]} : vector<8x640xf32> to vector<8x128xf32>
    %41 = math.tanh %40 : vector<8x128xf32>
    %42 = vector.extract_strided_slice %21 {offsets = [0, 512], sizes = [8, 128], strides = [1, 1]} : vector<8x640xf32> to vector<8x128xf32>
    %43 = arith.negf %42 : vector<8x128xf32>
    %44 = math.exp %43 : vector<8x128xf32>
    %cst_25 = arith.constant 1.000000e+00 : f32
    %45 = vector.broadcast %cst_25 : f32 to vector<8x128xf32>
    %46 = arith.addf %45, %44 : vector<8x128xf32>
    %47 = arith.divf %45, %46 : vector<8x128xf32>
    %48 = arith.mulf %47, %15 : vector<8x128xf32>
    %49 = arith.mulf %33, %14 : vector<8x128xf32>
    %50 = arith.mulf %27, %41 : vector<8x128xf32>
    %51 = arith.addf %49, %50 : vector<8x128xf32>
    %52 = arith.truncf %48 : vector<8x128xf32> to vector<8x128xbf16>
    %c0_26 = arith.constant 0 : index
    %c0_27 = arith.constant 0 : index
    %53 = vector.load %arg6[%c0_26, %c0_27] : memref<128x128xbf16, #tpu.memory_space<vmem>>, vector<128x128xbf16>
    %cst_28 = arith.constant dense<0.000000e+00> : vector<8x128xf32>
    %54 = tpu.matmul %52, %53, %cst_28 {dimension_numbers = #tpu.dot_dimension_numbers<[1], [0], [0], [1], [0, 0, 1, 1], [], []>} : vector<8x128xbf16>, vector<128x128xbf16>, vector<8x128xf32> -> vector<8x128xf32>
    %55 = math.tanh %54 : vector<8x128xf32>
    %56 = arith.addf %51, %55 : vector<8x128xf32>
    %57 = math.tanh %56 : vector<8x128xf32>
    %58 = arith.mulf %39, %57 : vector<8x128xf32>
    %59 = vector.shape_cast %58 : vector<8x128xf32> to vector<8x1x128xf32>
    %c0_29 = arith.constant 0 : index
    %c0_30 = arith.constant 0 : index
    %c0_31 = arith.constant 0 : index
    %60 = vector.load %arg11[%c0_29, %c0_30, %c0_31] : memref<8x8x128xf32, #tpu.memory_space<vmem>>, vector<8x1x128xf32>
    tpu.vector_store %arg11[%c0_29, %c0_30, %c0_31], %59 {strides = array<i32>} : memref<8x8x128xf32, #tpu.memory_space<vmem>>, vector<8x1x128xf32>,
    %c0_32 = arith.constant 0 : index
    %c1 = arith.constant 1 : index
    %c0_33 = arith.constant 0 : index
    %61 = vector.load %arg10[%c0_32, %c1, %c0_33] : memref<8x8x640xf32, #tpu.memory_space<vmem>>, vector<8x1x640xf32>
    %62 = vector.shape_cast %61 : vector<8x1x640xf32> to vector<8x640xf32>
    %63 = arith.truncf %58 : vector<8x128xf32> to vector<8x128xbf16>
    %c0_34 = arith.constant 0 : index
    %c0_35 = arith.constant 0 : index
    %64 = vector.load %arg5[%c0_34, %c0_35] : memref<128x640xbf16, #tpu.memory_space<vmem>>, vector<128x640xbf16>
    %cst_36 = arith.constant dense<0.000000e+00> : vector<8x640xf32>
    %65 = tpu.matmul %63, %64, %cst_36 {dimension_numbers = #tpu.dot_dimension_numbers<[1], [0], [0], [1], [0, 0, 1, 1], [], []>} : vector<8x128xbf16>, vector<128x640xbf16>, vector<8x640xf32> -> vector<8x640xf32>
    %66 = arith.addf %62, %65 : vector<8x640xf32>
    %67 = vector.extract_strided_slice %66 {offsets = [0, 0], sizes = [8, 128], strides = [1, 1]} : vector<8x640xf32> to vector<8x128xf32>
    %68 = arith.negf %67 : vector<8x128xf32>
    %69 = math.exp %68 : vector<8x128xf32>
    %cst_37 = arith.constant 1.000000e+00 : f32
    %70 = vector.broadcast %cst_37 : f32 to vector<8x128xf32>
    %71 = arith.addf %70, %69 : vector<8x128xf32>
    %72 = arith.divf %70, %71 : vector<8x128xf32>
    %73 = vector.extract_strided_slice %66 {offsets = [0, 128], sizes = [8, 128], strides = [1, 1]} : vector<8x640xf32> to vector<8x128xf32>
    %74 = arith.negf %73 : vector<8x128xf32>
    %75 = math.exp %74 : vector<8x128xf32>
    %cst_38 = arith.constant 1.000000e+00 : f32
    %76 = vector.broadcast %cst_38 : f32 to vector<8x128xf32>
    %77 = arith.addf %76, %75 : vector<8x128xf32>
    %78 = arith.divf %76, %77 : vector<8x128xf32>
    %79 = vector.extract_strided_slice %66 {offsets = [0, 256], sizes = [8, 128], strides = [1, 1]} : vector<8x640xf32> to vector<8x128xf32>
    %80 = arith.negf %79 : vector<8x128xf32>
    %81 = math.exp %80 : vector<8x128xf32>
    %cst_39 = arith.constant 1.000000e+00 : f32
    %82 = vector.broadcast %cst_39 : f32 to vector<8x128xf32>
    %83 = arith.addf %82, %81 : vector<8x128xf32>
    %84 = arith.divf %82, %83 : vector<8x128xf32>
    %85 = vector.extract_strided_slice %66 {offsets = [0, 384], sizes = [8, 128], strides = [1, 1]} : vector<8x640xf32> to vector<8x128xf32>
    %86 = math.tanh %85 : vector<8x128xf32>
    %87 = vector.extract_strided_slice %66 {offsets = [0, 512], sizes = [8, 128], strides = [1, 1]} : vector<8x640xf32> to vector<8x128xf32>
    %88 = arith.negf %87 : vector<8x128xf32>
    %89 = math.exp %88 : vector<8x128xf32>
    %cst_40 = arith.constant 1.000000e+00 : f32
    %90 = vector.broadcast %cst_40 : f32 to vector<8x128xf32>
    %91 = arith.addf %90, %89 : vector<8x128xf32>
    %92 = arith.divf %90, %91 : vector<8x128xf32>
    %93 = arith.mulf %92, %48 : vector<8x128xf32>
    %94 = arith.mulf %78, %56 : vector<8x128xf32>
    %95 = arith.mulf %72, %86 : vector<8x128xf32>
    %96 = arith.addf %94, %95 : vector<8x128xf32>
    %97 = arith.truncf %93 : vector<8x128xf32> to vector<8x128xbf16>
    %c0_41 = arith.constant 0 : index
    %c0_42 = arith.constant 0 : index
    %98 = vector.load %arg6[%c0_41, %c0_42] : memref<128x128xbf16, #tpu.memory_space<vmem>>, vector<128x128xbf16>
    %cst_43 = arith.constant dense<0.000000e+00> : vector<8x128xf32>
    %99 = tpu.matmul %97, %98, %cst_43 {dimension_numbers = #tpu.dot_dimension_numbers<[1], [0], [0], [1], [0, 0, 1, 1], [], []>} : vector<8x128xbf16>, vector<128x128xbf16>, vector<8x128xf32> -> vector<8x128xf32>
    %100 = math.tanh %99 : vector<8x128xf32>
    %101 = arith.addf %96, %100 : vector<8x128xf32>
    %102 = math.tanh %101 : vector<8x128xf32>
    %103 = arith.mulf %84, %102 : vector<8x128xf32>
    %104 = vector.shape_cast %103 : vector<8x128xf32> to vector<8x1x128xf32>
    %c0_44 = arith.constant 0 : index
    %c1_45 = arith.constant 1 : index
    %c0_46 = arith.constant 0 : index
    %105 = vector.load %arg11[%c0_44, %c1_45, %c0_46] : memref<8x8x128xf32, #tpu.memory_space<vmem>>, vector<8x1x128xf32>
    tpu.vector_store %arg11[%c0_44, %c1_45, %c0_46], %104 {strides = array<i32>} : memref<8x8x128xf32, #tpu.memory_space<vmem>>, vector<8x1x128xf32>,
    %c0_47 = arith.constant 0 : index
    %c2 = arith.constant 2 : index
    %c0_48 = arith.constant 0 : index
    %106 = vector.load %arg10[%c0_47, %c2, %c0_48] : memref<8x8x640xf32, #tpu.memory_space<vmem>>, vector<8x1x640xf32>
    %107 = vector.shape_cast %106 : vector<8x1x640xf32> to vector<8x640xf32>
    %108 = arith.truncf %103 : vector<8x128xf32> to vector<8x128xbf16>
    %c0_49 = arith.constant 0 : index
    %c0_50 = arith.constant 0 : index
    %109 = vector.load %arg5[%c0_49, %c0_50] : memref<128x640xbf16, #tpu.memory_space<vmem>>, vector<128x640xbf16>
    %cst_51 = arith.constant dense<0.000000e+00> : vector<8x640xf32>
    %110 = tpu.matmul %108, %109, %cst_51 {dimension_numbers = #tpu.dot_dimension_numbers<[1], [0], [0], [1], [0, 0, 1, 1], [], []>} : vector<8x128xbf16>, vector<128x640xbf16>, vector<8x640xf32> -> vector<8x640xf32>
    %111 = arith.addf %107, %110 : vector<8x640xf32>
    %112 = vector.extract_strided_slice %111 {offsets = [0, 0], sizes = [8, 128], strides = [1, 1]} : vector<8x640xf32> to vector<8x128xf32>
    %113 = arith.negf %112 : vector<8x128xf32>
    %114 = math.exp %113 : vector<8x128xf32>
    %cst_52 = arith.constant 1.000000e+00 : f32
    %115 = vector.broadcast %cst_52 : f32 to vector<8x128xf32>
    %116 = arith.addf %115, %114 : vector<8x128xf32>
    %117 = arith.divf %115, %116 : vector<8x128xf32>
    %118 = vector.extract_strided_slice %111 {offsets = [0, 128], sizes = [8, 128], strides = [1, 1]} : vector<8x640xf32> to vector<8x128xf32>
    %119 = arith.negf %118 : vector<8x128xf32>
    %120 = math.exp %119 : vector<8x128xf32>
    %cst_53 = arith.constant 1.000000e+00 : f32
    %121 = vector.broadcast %cst_53 : f32 to vector<8x128xf32>
    %122 = arith.addf %121, %120 : vector<8x128xf32>
    %123 = arith.divf %121, %122 : vector<8x128xf32>
    %124 = vector.extract_strided_slice %111 {offsets = [0, 256], sizes = [8, 128], strides = [1, 1]} : vector<8x640xf32> to vector<8x128xf32>
    %125 = arith.negf %124 : vector<8x128xf32>
    %126 = math.exp %125 : vector<8x128xf32>
    %cst_54 = arith.constant 1.000000e+00 : f32
    %127 = vector.broadcast %cst_54 : f32 to vector<8x128xf32>
    %128 = arith.addf %127, %126 : vector<8x128xf32>
    %129 = arith.divf %127, %128 : vector<8x128xf32>
    %130 = vector.extract_strided_slice %111 {offsets = [0, 384], sizes = [8, 128], strides = [1, 1]} : vector<8x640xf32> to vector<8x128xf32>
    %131 = math.tanh %130 : vector<8x128xf32>
    %132 = vector.extract_strided_slice %111 {offsets = [0, 512], sizes = [8, 128], strides = [1, 1]} : vector<8x640xf32> to vector<8x128xf32>
    %133 = arith.negf %132 : vector<8x128xf32>
    %134 = math.exp %133 : vector<8x128xf32>
    %cst_55 = arith.constant 1.000000e+00 : f32
    %135 = vector.broadcast %cst_55 : f32 to vector<8x128xf32>
    %136 = arith.addf %135, %134 : vector<8x128xf32>
    %137 = arith.divf %135, %136 : vector<8x128xf32>
    %138 = arith.mulf %137, %93 : vector<8x128xf32>
    %139 = arith.mulf %123, %101 : vector<8x128xf32>
    %140 = arith.mulf %117, %131 : vector<8x128xf32>
    %141 = arith.addf %139, %140 : vector<8x128xf32>
    %142 = arith.truncf %138 : vector<8x128xf32> to vector<8x128xbf16>
    %c0_56 = arith.constant 0 : index
    %c0_57 = arith.constant 0 : index
    %143 = vector.load %arg6[%c0_56, %c0_57] : memref<128x128xbf16, #tpu.memory_space<vmem>>, vector<128x128xbf16>
    %cst_58 = arith.constant dense<0.000000e+00> : vector<8x128xf32>
    %144 = tpu.matmul %142, %143, %cst_58 {dimension_numbers = #tpu.dot_dimension_numbers<[1], [0], [0], [1], [0, 0, 1, 1], [], []>} : vector<8x128xbf16>, vector<128x128xbf16>, vector<8x128xf32> -> vector<8x128xf32>
    %145 = math.tanh %144 : vector<8x128xf32>
    %146 = arith.addf %141, %145 : vector<8x128xf32>
    %147 = math.tanh %146 : vector<8x128xf32>
    %148 = arith.mulf %129, %147 : vector<8x128xf32>
    %149 = vector.shape_cast %148 : vector<8x128xf32> to vector<8x1x128xf32>
    %c0_59 = arith.constant 0 : index
    %c2_60 = arith.constant 2 : index
    %c0_61 = arith.constant 0 : index
    %150 = vector.load %arg11[%c0_59, %c2_60, %c0_61] : memref<8x8x128xf32, #tpu.memory_space<vmem>>, vector<8x1x128xf32>
    tpu.vector_store %arg11[%c0_59, %c2_60, %c0_61], %149 {strides = array<i32>} : memref<8x8x128xf32, #tpu.memory_space<vmem>>, vector<8x1x128xf32>,
    %c0_62 = arith.constant 0 : index
    %c3 = arith.constant 3 : index
    %c0_63 = arith.constant 0 : index
    %151 = vector.load %arg10[%c0_62, %c3, %c0_63] : memref<8x8x640xf32, #tpu.memory_space<vmem>>, vector<8x1x640xf32>
    %152 = vector.shape_cast %151 : vector<8x1x640xf32> to vector<8x640xf32>
    %153 = arith.truncf %148 : vector<8x128xf32> to vector<8x128xbf16>
    %c0_64 = arith.constant 0 : index
    %c0_65 = arith.constant 0 : index
    %154 = vector.load %arg5[%c0_64, %c0_65] : memref<128x640xbf16, #tpu.memory_space<vmem>>, vector<128x640xbf16>
    %cst_66 = arith.constant dense<0.000000e+00> : vector<8x640xf32>
    %155 = tpu.matmul %153, %154, %cst_66 {dimension_numbers = #tpu.dot_dimension_numbers<[1], [0], [0], [1], [0, 0, 1, 1], [], []>} : vector<8x128xbf16>, vector<128x640xbf16>, vector<8x640xf32> -> vector<8x640xf32>
    %156 = arith.addf %152, %155 : vector<8x640xf32>
    %157 = vector.extract_strided_slice %156 {offsets = [0, 0], sizes = [8, 128], strides = [1, 1]} : vector<8x640xf32> to vector<8x128xf32>
    %158 = arith.negf %157 : vector<8x128xf32>
    %159 = math.exp %158 : vector<8x128xf32>
    %cst_67 = arith.constant 1.000000e+00 : f32
    %160 = vector.broadcast %cst_67 : f32 to vector<8x128xf32>
    %161 = arith.addf %160, %159 : vector<8x128xf32>
    %162 = arith.divf %160, %161 : vector<8x128xf32>
    %163 = vector.extract_strided_slice %156 {offsets = [0, 128], sizes = [8, 128], strides = [1, 1]} : vector<8x640xf32> to vector<8x128xf32>
    %164 = arith.negf %163 : vector<8x128xf32>
    %165 = math.exp %164 : vector<8x128xf32>
    %cst_68 = arith.constant 1.000000e+00 : f32
    %166 = vector.broadcast %cst_68 : f32 to vector<8x128xf32>
    %167 = arith.addf %166, %165 : vector<8x128xf32>
    %168 = arith.divf %166, %167 : vector<8x128xf32>
    %169 = vector.extract_strided_slice %156 {offsets = [0, 256], sizes = [8, 128], strides = [1, 1]} : vector<8x640xf32> to vector<8x128xf32>
    %170 = arith.negf %169 : vector<8x128xf32>
    %171 = math.exp %170 : vector<8x128xf32>
    %cst_69 = arith.constant 1.000000e+00 : f32
    %172 = vector.broadcast %cst_69 : f32 to vector<8x128xf32>
    %173 = arith.addf %172, %171 : vector<8x128xf32>
    %174 = arith.divf %172, %173 : vector<8x128xf32>
    %175 = vector.extract_strided_slice %156 {offsets = [0, 384], sizes = [8, 128], strides = [1, 1]} : vector<8x640xf32> to vector<8x128xf32>
    %176 = math.tanh %175 : vector<8x128xf32>
    %177 = vector.extract_strided_slice %156 {offsets = [0, 512], sizes = [8, 128], strides = [1, 1]} : vector<8x640xf32> to vector<8x128xf32>
    %178 = arith.negf %177 : vector<8x128xf32>
    %179 = math.exp %178 : vector<8x128xf32>
    %cst_70 = arith.constant 1.000000e+00 : f32
    %180 = vector.broadcast %cst_70 : f32 to vector<8x128xf32>
    %181 = arith.addf %180, %179 : vector<8x128xf32>
    %182 = arith.divf %180, %181 : vector<8x128xf32>
    %183 = arith.mulf %182, %138 : vector<8x128xf32>
    %184 = arith.mulf %168, %146 : vector<8x128xf32>
    %185 = arith.mulf %162, %176 : vector<8x128xf32>
    %186 = arith.addf %184, %185 : vector<8x128xf32>
    %187 = arith.truncf %183 : vector<8x128xf32> to vector<8x128xbf16>
    %c0_71 = arith.constant 0 : index
    %c0_72 = arith.constant 0 : index
    %188 = vector.load %arg6[%c0_71, %c0_72] : memref<128x128xbf16, #tpu.memory_space<vmem>>, vector<128x128xbf16>
    %cst_73 = arith.constant dense<0.000000e+00> : vector<8x128xf32>
    %189 = tpu.matmul %187, %188, %cst_73 {dimension_numbers = #tpu.dot_dimension_numbers<[1], [0], [0], [1], [0, 0, 1, 1], [], []>} : vector<8x128xbf16>, vector<128x128xbf16>, vector<8x128xf32> -> vector<8x128xf32>
    %190 = math.tanh %189 : vector<8x128xf32>
    %191 = arith.addf %186, %190 : vector<8x128xf32>
    %192 = math.tanh %191 : vector<8x128xf32>
    %193 = arith.mulf %174, %192 : vector<8x128xf32>
    %194 = vector.shape_cast %193 : vector<8x128xf32> to vector<8x1x128xf32>
    %c0_74 = arith.constant 0 : index
    %c3_75 = arith.constant 3 : index
    %c0_76 = arith.constant 0 : index
    %195 = vector.load %arg11[%c0_74, %c3_75, %c0_76] : memref<8x8x128xf32, #tpu.memory_space<vmem>>, vector<8x1x128xf32>
    tpu.vector_store %arg11[%c0_74, %c3_75, %c0_76], %194 {strides = array<i32>} : memref<8x8x128xf32, #tpu.memory_space<vmem>>, vector<8x1x128xf32>,
    %c0_77 = arith.constant 0 : index
    %c4 = arith.constant 4 : index
    %c0_78 = arith.constant 0 : index
    %196 = vector.load %arg10[%c0_77, %c4, %c0_78] : memref<8x8x640xf32, #tpu.memory_space<vmem>>, vector<8x1x640xf32>
    %197 = vector.shape_cast %196 : vector<8x1x640xf32> to vector<8x640xf32>
    %198 = arith.truncf %193 : vector<8x128xf32> to vector<8x128xbf16>
    %c0_79 = arith.constant 0 : index
    %c0_80 = arith.constant 0 : index
    %199 = vector.load %arg5[%c0_79, %c0_80] : memref<128x640xbf16, #tpu.memory_space<vmem>>, vector<128x640xbf16>
    %cst_81 = arith.constant dense<0.000000e+00> : vector<8x640xf32>
    %200 = tpu.matmul %198, %199, %cst_81 {dimension_numbers = #tpu.dot_dimension_numbers<[1], [0], [0], [1], [0, 0, 1, 1], [], []>} : vector<8x128xbf16>, vector<128x640xbf16>, vector<8x640xf32> -> vector<8x640xf32>
    %201 = arith.addf %197, %200 : vector<8x640xf32>
    %202 = vector.extract_strided_slice %201 {offsets = [0, 0], sizes = [8, 128], strides = [1, 1]} : vector<8x640xf32> to vector<8x128xf32>
    %203 = arith.negf %202 : vector<8x128xf32>
    %204 = math.exp %203 : vector<8x128xf32>
    %cst_82 = arith.constant 1.000000e+00 : f32
    %205 = vector.broadcast %cst_82 : f32 to vector<8x128xf32>
    %206 = arith.addf %205, %204 : vector<8x128xf32>
    %207 = arith.divf %205, %206 : vector<8x128xf32>
    %208 = vector.extract_strided_slice %201 {offsets = [0, 128], sizes = [8, 128], strides = [1, 1]} : vector<8x640xf32> to vector<8x128xf32>
    %209 = arith.negf %208 : vector<8x128xf32>
    %210 = math.exp %209 : vector<8x128xf32>
    %cst_83 = arith.constant 1.000000e+00 : f32
    %211 = vector.broadcast %cst_83 : f32 to vector<8x128xf32>
    %212 = arith.addf %211, %210 : vector<8x128xf32>
    %213 = arith.divf %211, %212 : vector<8x128xf32>
    %214 = vector.extract_strided_slice %201 {offsets = [0, 256], sizes = [8, 128], strides = [1, 1]} : vector<8x640xf32> to vector<8x128xf32>
    %215 = arith.negf %214 : vector<8x128xf32>
    %216 = math.exp %215 : vector<8x128xf32>
    %cst_84 = arith.constant 1.000000e+00 : f32
    %217 = vector.broadcast %cst_84 : f32 to vector<8x128xf32>
    %218 = arith.addf %217, %216 : vector<8x128xf32>
    %219 = arith.divf %217, %218 : vector<8x128xf32>
    %220 = vector.extract_strided_slice %201 {offsets = [0, 384], sizes = [8, 128], strides = [1, 1]} : vector<8x640xf32> to vector<8x128xf32>
    %221 = math.tanh %220 : vector<8x128xf32>
    %222 = vector.extract_strided_slice %201 {offsets = [0, 512], sizes = [8, 128], strides = [1, 1]} : vector<8x640xf32> to vector<8x128xf32>
    %223 = arith.negf %222 : vector<8x128xf32>
    %224 = math.exp %223 : vector<8x128xf32>
    %cst_85 = arith.constant 1.000000e+00 : f32
    %225 = vector.broadcast %cst_85 : f32 to vector<8x128xf32>
    %226 = arith.addf %225, %224 : vector<8x128xf32>
    %227 = arith.divf %225, %226 : vector<8x128xf32>
    %228 = arith.mulf %227, %183 : vector<8x128xf32>
    %229 = arith.mulf %213, %191 : vector<8x128xf32>
    %230 = arith.mulf %207, %221 : vector<8x128xf32>
    %231 = arith.addf %229, %230 : vector<8x128xf32>
    %232 = arith.truncf %228 : vector<8x128xf32> to vector<8x128xbf16>
    %c0_86 = arith.constant 0 : index
    %c0_87 = arith.constant 0 : index
    %233 = vector.load %arg6[%c0_86, %c0_87] : memref<128x128xbf16, #tpu.memory_space<vmem>>, vector<128x128xbf16>
    %cst_88 = arith.constant dense<0.000000e+00> : vector<8x128xf32>
    %234 = tpu.matmul %232, %233, %cst_88 {dimension_numbers = #tpu.dot_dimension_numbers<[1], [0], [0], [1], [0, 0, 1, 1], [], []>} : vector<8x128xbf16>, vector<128x128xbf16>, vector<8x128xf32> -> vector<8x128xf32>
    %235 = math.tanh %234 : vector<8x128xf32>
    %236 = arith.addf %231, %235 : vector<8x128xf32>
    %237 = math.tanh %236 : vector<8x128xf32>
    %238 = arith.mulf %219, %237 : vector<8x128xf32>
    %239 = vector.shape_cast %238 : vector<8x128xf32> to vector<8x1x128xf32>
    %c0_89 = arith.constant 0 : index
    %c4_90 = arith.constant 4 : index
    %c0_91 = arith.constant 0 : index
    %240 = vector.load %arg11[%c0_89, %c4_90, %c0_91] : memref<8x8x128xf32, #tpu.memory_space<vmem>>, vector<8x1x128xf32>
    tpu.vector_store %arg11[%c0_89, %c4_90, %c0_91], %239 {strides = array<i32>} : memref<8x8x128xf32, #tpu.memory_space<vmem>>, vector<8x1x128xf32>,
    %c0_92 = arith.constant 0 : index
    %c5 = arith.constant 5 : index
    %c0_93 = arith.constant 0 : index
    %241 = vector.load %arg10[%c0_92, %c5, %c0_93] : memref<8x8x640xf32, #tpu.memory_space<vmem>>, vector<8x1x640xf32>
    %242 = vector.shape_cast %241 : vector<8x1x640xf32> to vector<8x640xf32>
    %243 = arith.truncf %238 : vector<8x128xf32> to vector<8x128xbf16>
    %c0_94 = arith.constant 0 : index
    %c0_95 = arith.constant 0 : index
    %244 = vector.load %arg5[%c0_94, %c0_95] : memref<128x640xbf16, #tpu.memory_space<vmem>>, vector<128x640xbf16>
    %cst_96 = arith.constant dense<0.000000e+00> : vector<8x640xf32>
    %245 = tpu.matmul %243, %244, %cst_96 {dimension_numbers = #tpu.dot_dimension_numbers<[1], [0], [0], [1], [0, 0, 1, 1], [], []>} : vector<8x128xbf16>, vector<128x640xbf16>, vector<8x640xf32> -> vector<8x640xf32>
    %246 = arith.addf %242, %245 : vector<8x640xf32>
    %247 = vector.extract_strided_slice %246 {offsets = [0, 0], sizes = [8, 128], strides = [1, 1]} : vector<8x640xf32> to vector<8x128xf32>
    %248 = arith.negf %247 : vector<8x128xf32>
    %249 = math.exp %248 : vector<8x128xf32>
    %cst_97 = arith.constant 1.000000e+00 : f32
    %250 = vector.broadcast %cst_97 : f32 to vector<8x128xf32>
    %251 = arith.addf %250, %249 : vector<8x128xf32>
    %252 = arith.divf %250, %251 : vector<8x128xf32>
    %253 = vector.extract_strided_slice %246 {offsets = [0, 128], sizes = [8, 128], strides = [1, 1]} : vector<8x640xf32> to vector<8x128xf32>
    %254 = arith.negf %253 : vector<8x128xf32>
    %255 = math.exp %254 : vector<8x128xf32>
    %cst_98 = arith.constant 1.000000e+00 : f32
    %256 = vector.broadcast %cst_98 : f32 to vector<8x128xf32>
    %257 = arith.addf %256, %255 : vector<8x128xf32>
    %258 = arith.divf %256, %257 : vector<8x128xf32>
    %259 = vector.extract_strided_slice %246 {offsets = [0, 256], sizes = [8, 128], strides = [1, 1]} : vector<8x640xf32> to vector<8x128xf32>
    %260 = arith.negf %259 : vector<8x128xf32>
    %261 = math.exp %260 : vector<8x128xf32>
    %cst_99 = arith.constant 1.000000e+00 : f32
    %262 = vector.broadcast %cst_99 : f32 to vector<8x128xf32>
    %263 = arith.addf %262, %261 : vector<8x128xf32>
    %264 = arith.divf %262, %263 : vector<8x128xf32>
    %265 = vector.extract_strided_slice %246 {offsets = [0, 384], sizes = [8, 128], strides = [1, 1]} : vector<8x640xf32> to vector<8x128xf32>
    %266 = math.tanh %265 : vector<8x128xf32>
    %267 = vector.extract_strided_slice %246 {offsets = [0, 512], sizes = [8, 128], strides = [1, 1]} : vector<8x640xf32> to vector<8x128xf32>
    %268 = arith.negf %267 : vector<8x128xf32>
    %269 = math.exp %268 : vector<8x128xf32>
    %cst_100 = arith.constant 1.000000e+00 : f32
    %270 = vector.broadcast %cst_100 : f32 to vector<8x128xf32>
    %271 = arith.addf %270, %269 : vector<8x128xf32>
    %272 = arith.divf %270, %271 : vector<8x128xf32>
    %273 = arith.mulf %272, %228 : vector<8x128xf32>
    %274 = arith.mulf %258, %236 : vector<8x128xf32>
    %275 = arith.mulf %252, %266 : vector<8x128xf32>
    %276 = arith.addf %274, %275 : vector<8x128xf32>
    %277 = arith.truncf %273 : vector<8x128xf32> to vector<8x128xbf16>
    %c0_101 = arith.constant 0 : index
    %c0_102 = arith.constant 0 : index
    %278 = vector.load %arg6[%c0_101, %c0_102] : memref<128x128xbf16, #tpu.memory_space<vmem>>, vector<128x128xbf16>
    %cst_103 = arith.constant dense<0.000000e+00> : vector<8x128xf32>
    %279 = tpu.matmul %277, %278, %cst_103 {dimension_numbers = #tpu.dot_dimension_numbers<[1], [0], [0], [1], [0, 0, 1, 1], [], []>} : vector<8x128xbf16>, vector<128x128xbf16>, vector<8x128xf32> -> vector<8x128xf32>
    %280 = math.tanh %279 : vector<8x128xf32>
    %281 = arith.addf %276, %280 : vector<8x128xf32>
    %282 = math.tanh %281 : vector<8x128xf32>
    %283 = arith.mulf %264, %282 : vector<8x128xf32>
    %284 = vector.shape_cast %283 : vector<8x128xf32> to vector<8x1x128xf32>
    %c0_104 = arith.constant 0 : index
    %c5_105 = arith.constant 5 : index
    %c0_106 = arith.constant 0 : index
    %285 = vector.load %arg11[%c0_104, %c5_105, %c0_106] : memref<8x8x128xf32, #tpu.memory_space<vmem>>, vector<8x1x128xf32>
    tpu.vector_store %arg11[%c0_104, %c5_105, %c0_106], %284 {strides = array<i32>} : memref<8x8x128xf32, #tpu.memory_space<vmem>>, vector<8x1x128xf32>,
    %c0_107 = arith.constant 0 : index
    %c6 = arith.constant 6 : index
    %c0_108 = arith.constant 0 : index
    %286 = vector.load %arg10[%c0_107, %c6, %c0_108] : memref<8x8x640xf32, #tpu.memory_space<vmem>>, vector<8x1x640xf32>
    %287 = vector.shape_cast %286 : vector<8x1x640xf32> to vector<8x640xf32>
    %288 = arith.truncf %283 : vector<8x128xf32> to vector<8x128xbf16>
    %c0_109 = arith.constant 0 : index
    %c0_110 = arith.constant 0 : index
    %289 = vector.load %arg5[%c0_109, %c0_110] : memref<128x640xbf16, #tpu.memory_space<vmem>>, vector<128x640xbf16>
    %cst_111 = arith.constant dense<0.000000e+00> : vector<8x640xf32>
    %290 = tpu.matmul %288, %289, %cst_111 {dimension_numbers = #tpu.dot_dimension_numbers<[1], [0], [0], [1], [0, 0, 1, 1], [], []>} : vector<8x128xbf16>, vector<128x640xbf16>, vector<8x640xf32> -> vector<8x640xf32>
    %291 = arith.addf %287, %290 : vector<8x640xf32>
    %292 = vector.extract_strided_slice %291 {offsets = [0, 0], sizes = [8, 128], strides = [1, 1]} : vector<8x640xf32> to vector<8x128xf32>
    %293 = arith.negf %292 : vector<8x128xf32>
    %294 = math.exp %293 : vector<8x128xf32>
    %cst_112 = arith.constant 1.000000e+00 : f32
    %295 = vector.broadcast %cst_112 : f32 to vector<8x128xf32>
    %296 = arith.addf %295, %294 : vector<8x128xf32>
    %297 = arith.divf %295, %296 : vector<8x128xf32>
    %298 = vector.extract_strided_slice %291 {offsets = [0, 128], sizes = [8, 128], strides = [1, 1]} : vector<8x640xf32> to vector<8x128xf32>
    %299 = arith.negf %298 : vector<8x128xf32>
    %300 = math.exp %299 : vector<8x128xf32>
    %cst_113 = arith.constant 1.000000e+00 : f32
    %301 = vector.broadcast %cst_113 : f32 to vector<8x128xf32>
    %302 = arith.addf %301, %300 : vector<8x128xf32>
    %303 = arith.divf %301, %302 : vector<8x128xf32>
    %304 = vector.extract_strided_slice %291 {offsets = [0, 256], sizes = [8, 128], strides = [1, 1]} : vector<8x640xf32> to vector<8x128xf32>
    %305 = arith.negf %304 : vector<8x128xf32>
    %306 = math.exp %305 : vector<8x128xf32>
    %cst_114 = arith.constant 1.000000e+00 : f32
    %307 = vector.broadcast %cst_114 : f32 to vector<8x128xf32>
    %308 = arith.addf %307, %306 : vector<8x128xf32>
    %309 = arith.divf %307, %308 : vector<8x128xf32>
    %310 = vector.extract_strided_slice %291 {offsets = [0, 384], sizes = [8, 128], strides = [1, 1]} : vector<8x640xf32> to vector<8x128xf32>
    %311 = math.tanh %310 : vector<8x128xf32>
    %312 = vector.extract_strided_slice %291 {offsets = [0, 512], sizes = [8, 128], strides = [1, 1]} : vector<8x640xf32> to vector<8x128xf32>
    %313 = arith.negf %312 : vector<8x128xf32>
    %314 = math.exp %313 : vector<8x128xf32>
    %cst_115 = arith.constant 1.000000e+00 : f32
    %315 = vector.broadcast %cst_115 : f32 to vector<8x128xf32>
    %316 = arith.addf %315, %314 : vector<8x128xf32>
    %317 = arith.divf %315, %316 : vector<8x128xf32>
    %318 = arith.mulf %317, %273 : vector<8x128xf32>
    %319 = arith.mulf %303, %281 : vector<8x128xf32>
    %320 = arith.mulf %297, %311 : vector<8x128xf32>
    %321 = arith.addf %319, %320 : vector<8x128xf32>
    %322 = arith.truncf %318 : vector<8x128xf32> to vector<8x128xbf16>
    %c0_116 = arith.constant 0 : index
    %c0_117 = arith.constant 0 : index
    %323 = vector.load %arg6[%c0_116, %c0_117] : memref<128x128xbf16, #tpu.memory_space<vmem>>, vector<128x128xbf16>
    %cst_118 = arith.constant dense<0.000000e+00> : vector<8x128xf32>
    %324 = tpu.matmul %322, %323, %cst_118 {dimension_numbers = #tpu.dot_dimension_numbers<[1], [0], [0], [1], [0, 0, 1, 1], [], []>} : vector<8x128xbf16>, vector<128x128xbf16>, vector<8x128xf32> -> vector<8x128xf32>
    %325 = math.tanh %324 : vector<8x128xf32>
    %326 = arith.addf %321, %325 : vector<8x128xf32>
    %327 = math.tanh %326 : vector<8x128xf32>
    %328 = arith.mulf %309, %327 : vector<8x128xf32>
    %329 = vector.shape_cast %328 : vector<8x128xf32> to vector<8x1x128xf32>
    %c0_119 = arith.constant 0 : index
    %c6_120 = arith.constant 6 : index
    %c0_121 = arith.constant 0 : index
    %330 = vector.load %arg11[%c0_119, %c6_120, %c0_121] : memref<8x8x128xf32, #tpu.memory_space<vmem>>, vector<8x1x128xf32>
    tpu.vector_store %arg11[%c0_119, %c6_120, %c0_121], %329 {strides = array<i32>} : memref<8x8x128xf32, #tpu.memory_space<vmem>>, vector<8x1x128xf32>,
    %c0_122 = arith.constant 0 : index
    %c7 = arith.constant 7 : index
    %c0_123 = arith.constant 0 : index
    %331 = vector.load %arg10[%c0_122, %c7, %c0_123] : memref<8x8x640xf32, #tpu.memory_space<vmem>>, vector<8x1x640xf32>
    %332 = vector.shape_cast %331 : vector<8x1x640xf32> to vector<8x640xf32>
    %333 = arith.truncf %328 : vector<8x128xf32> to vector<8x128xbf16>
    %c0_124 = arith.constant 0 : index
    %c0_125 = arith.constant 0 : index
    %334 = vector.load %arg5[%c0_124, %c0_125] : memref<128x640xbf16, #tpu.memory_space<vmem>>, vector<128x640xbf16>
    %cst_126 = arith.constant dense<0.000000e+00> : vector<8x640xf32>
    %335 = tpu.matmul %333, %334, %cst_126 {dimension_numbers = #tpu.dot_dimension_numbers<[1], [0], [0], [1], [0, 0, 1, 1], [], []>} : vector<8x128xbf16>, vector<128x640xbf16>, vector<8x640xf32> -> vector<8x640xf32>
    %336 = arith.addf %332, %335 : vector<8x640xf32>
    %337 = vector.extract_strided_slice %336 {offsets = [0, 0], sizes = [8, 128], strides = [1, 1]} : vector<8x640xf32> to vector<8x128xf32>
    %338 = arith.negf %337 : vector<8x128xf32>
    %339 = math.exp %338 : vector<8x128xf32>
    %cst_127 = arith.constant 1.000000e+00 : f32
    %340 = vector.broadcast %cst_127 : f32 to vector<8x128xf32>
    %341 = arith.addf %340, %339 : vector<8x128xf32>
    %342 = arith.divf %340, %341 : vector<8x128xf32>
    %343 = vector.extract_strided_slice %336 {offsets = [0, 128], sizes = [8, 128], strides = [1, 1]} : vector<8x640xf32> to vector<8x128xf32>
    %344 = arith.negf %343 : vector<8x128xf32>
    %345 = math.exp %344 : vector<8x128xf32>
    %cst_128 = arith.constant 1.000000e+00 : f32
    %346 = vector.broadcast %cst_128 : f32 to vector<8x128xf32>
    %347 = arith.addf %346, %345 : vector<8x128xf32>
    %348 = arith.divf %346, %347 : vector<8x128xf32>
    %349 = vector.extract_strided_slice %336 {offsets = [0, 256], sizes = [8, 128], strides = [1, 1]} : vector<8x640xf32> to vector<8x128xf32>
    %350 = arith.negf %349 : vector<8x128xf32>
    %351 = math.exp %350 : vector<8x128xf32>
    %cst_129 = arith.constant 1.000000e+00 : f32
    %352 = vector.broadcast %cst_129 : f32 to vector<8x128xf32>
    %353 = arith.addf %352, %351 : vector<8x128xf32>
    %354 = arith.divf %352, %353 : vector<8x128xf32>
    %355 = vector.extract_strided_slice %336 {offsets = [0, 384], sizes = [8, 128], strides = [1, 1]} : vector<8x640xf32> to vector<8x128xf32>
    %356 = math.tanh %355 : vector<8x128xf32>
    %357 = vector.extract_strided_slice %336 {offsets = [0, 512], sizes = [8, 128], strides = [1, 1]} : vector<8x640xf32> to vector<8x128xf32>
    %358 = arith.negf %357 : vector<8x128xf32>
    %359 = math.exp %358 : vector<8x128xf32>
    %cst_130 = arith.constant 1.000000e+00 : f32
    %360 = vector.broadcast %cst_130 : f32 to vector<8x128xf32>
    %361 = arith.addf %360, %359 : vector<8x128xf32>
    %362 = arith.divf %360, %361 : vector<8x128xf32>
    %363 = arith.mulf %362, %318 : vector<8x128xf32>
    %364 = arith.mulf %348, %326 : vector<8x128xf32>
    %365 = arith.mulf %342, %356 : vector<8x128xf32>
    %366 = arith.addf %364, %365 : vector<8x128xf32>
    %367 = arith.truncf %363 : vector<8x128xf32> to vector<8x128xbf16>
    %c0_131 = arith.constant 0 : index
    %c0_132 = arith.constant 0 : index
    %368 = vector.load %arg6[%c0_131, %c0_132] : memref<128x128xbf16, #tpu.memory_space<vmem>>, vector<128x128xbf16>
    %cst_133 = arith.constant dense<0.000000e+00> : vector<8x128xf32>
    %369 = tpu.matmul %367, %368, %cst_133 {dimension_numbers = #tpu.dot_dimension_numbers<[1], [0], [0], [1], [0, 0, 1, 1], [], []>} : vector<8x128xbf16>, vector<128x128xbf16>, vector<8x128xf32> -> vector<8x128xf32>
    %370 = math.tanh %369 : vector<8x128xf32>
    %371 = arith.addf %366, %370 : vector<8x128xf32>
    %372 = math.tanh %371 : vector<8x128xf32>
    %373 = arith.mulf %354, %372 : vector<8x128xf32>
    %374 = vector.shape_cast %373 : vector<8x128xf32> to vector<8x1x128xf32>
    %c0_134 = arith.constant 0 : index
    %c7_135 = arith.constant 7 : index
    %c0_136 = arith.constant 0 : index
    %375 = vector.load %arg11[%c0_134, %c7_135, %c0_136] : memref<8x8x128xf32, #tpu.memory_space<vmem>>, vector<8x1x128xf32>
    tpu.vector_store %arg11[%c0_134, %c7_135, %c0_136], %374 {strides = array<i32>} : memref<8x8x128xf32, #tpu.memory_space<vmem>>, vector<8x1x128xf32>,
    %c0_137 = arith.constant 0 : index
    %c0_138 = arith.constant 0 : index
    %376 = vector.load %arg12[%c0_137, %c0_138] : memref<8x128xf32, #tpu.memory_space<vmem>>, vector<8x128xf32>
    tpu.vector_store %arg12[%c0_137, %c0_138], %373 {strides = array<i32>} : memref<8x128xf32, #tpu.memory_space<vmem>>, vector<8x128xf32>,
    %c0_139 = arith.constant 0 : index
    %c0_140 = arith.constant 0 : index
    %377 = vector.load %arg13[%c0_139, %c0_140] : memref<8x128xf32, #tpu.memory_space<vmem>>, vector<8x128xf32>
    tpu.vector_store %arg13[%c0_139, %c0_140], %371 {strides = array<i32>} : memref<8x128xf32, #tpu.memory_space<vmem>>, vector<8x128xf32>,
    %c0_141 = arith.constant 0 : index
    %c0_142 = arith.constant 0 : index
    %378 = vector.load %arg14[%c0_141, %c0_142] : memref<8x128xf32, #tpu.memory_space<vmem>>, vector<8x128xf32>
    tpu.vector_store %arg14[%c0_141, %c0_142], %363 {strides = array<i32>} : memref<8x128xf32, #tpu.memory_space<vmem>>, vector<8x128xf32>,
    %c0_143 = arith.constant 0 : index
    %c0_144 = arith.constant 0 : index
    %c0_145 = arith.constant 0 : index
    %379 = vector.load %arg11[%c0_143, %c0_144, %c0_145] : memref<8x8x128xf32, #tpu.memory_space<vmem>>, vector<8x8x128xf32>
    %380 = vector.shape_cast %379 : vector<8x8x128xf32> to vector<64x128xf32>
    %381 = arith.truncf %380 : vector<64x128xf32> to vector<64x128xbf16>
    %c0_146 = arith.constant 0 : index
    %c0_147 = arith.constant 0 : index
    %382 = vector.load %arg7[%c0_146, %c0_147] : memref<128x40xbf16, #tpu.memory_space<vmem>>, vector<128x40xbf16>
    %cst_148 = arith.constant dense<0.000000e+00> : vector<64x40xf32>
    %383 = tpu.matmul %381, %382, %cst_148 {dimension_numbers = #tpu.dot_dimension_numbers<[1], [0], [0], [1], [0, 0, 1, 1], [], []>} : vector<64x128xbf16>, vector<128x40xbf16>, vector<64x40xf32> -> vector<64x40xf32>
    %c0_149 = arith.constant 0 : index
    %c0_150 = arith.constant 0 : index
    %384 = vector.load %arg8[%c0_149, %c0_150] : memref<1x40xf32, #tpu.memory_space<vmem>>, vector<1x40xf32>
    %385 = vector.broadcast %384 : vector<1x40xf32> to vector<64x40xf32>
    %386 = arith.addf %383, %385 : vector<64x40xf32>
    %387 = vector.shape_cast %386 : vector<64x40xf32> to vector<8x8x40xf32>
    %c0_151 = arith.constant 0 : index
    %c0_152 = arith.constant 0 : index
    %c0_153 = arith.constant 0 : index
    %388 = vector.load %arg9[%c0_151, %c0_152, %c0_153] : memref<8x8x40xf32, #tpu.memory_space<vmem>>, vector<8x8x40xf32>
    tpu.vector_store %arg9[%c0_151, %c0_152, %c0_153], %387 {strides = array<i32>} : memref<8x8x40xf32, #tpu.memory_space<vmem>>, vector<8x8x40xf32>,
    return
  }
  func.func @transform_0(%arg0: i32) -> (i32, i32, i32) {
    %c0_i32 = arith.constant 0 : i32
    %c0_i32_0 = arith.constant 0 : i32
    %c0_i32_1 = arith.constant 0 : i32
    return %c0_i32, %arg0, %c0_i32_0 : i32, i32, i32
  }
  func.func @transform_1(%arg0: i32) -> (i32, i32) {
    %c0_i32 = arith.constant 0 : i32
    %c0_i32_0 = arith.constant 0 : i32
    %c0_i32_1 = arith.constant 0 : i32
    return %c0_i32, %c0_i32_0 : i32, i32
  }
  func.func @transform_2(%arg0: i32) -> (i32, i32) {
    %c0_i32 = arith.constant 0 : i32
    %c0_i32_0 = arith.constant 0 : i32
    %c0_i32_1 = arith.constant 0 : i32
    return %c0_i32, %c0_i32_0 : i32, i32
  }
  func.func @transform_3(%arg0: i32) -> (i32, i32) {
    %c0_i32 = arith.constant 0 : i32
    %c0_i32_0 = arith.constant 0 : i32
    %c0_i32_1 = arith.constant 0 : i32
    return %c0_i32, %c0_i32_0 : i32, i32
  }
  func.func @transform_4(%arg0: i32) -> (i32, i32) {
    %c0_i32 = arith.constant 0 : i32
    %c0_i32_0 = arith.constant 0 : i32
    %c0_i32_1 = arith.constant 0 : i32
    return %c0_i32, %c0_i32_0 : i32, i32
  }
  func.func @transform_5(%arg0: i32) -> (i32, i32) {
    %c0_i32 = arith.constant 0 : i32
    %c0_i32_0 = arith.constant 0 : i32
    %c0_i32_1 = arith.constant 0 : i32
    return %c0_i32, %c0_i32_0 : i32, i32
  }
  func.func @transform_6(%arg0: i32) -> (i32, i32) {
    %c0_i32 = arith.constant 0 : i32
    %c0_i32_0 = arith.constant 0 : i32
    %c0_i32_1 = arith.constant 0 : i32
    return %c0_i32, %c0_i32_0 : i32, i32
  }
  func.func @transform_7(%arg0: i32) -> (i32, i32) {
    %c0_i32 = arith.constant 0 : i32
    %c0_i32_0 = arith.constant 0 : i32
    %c0_i32_1 = arith.constant 0 : i32
    return %c0_i32, %c0_i32_0 : i32, i32
  }
  func.func @transform_8(%arg0: i32) -> (i32, i32, i32) {
    %c0_i32 = arith.constant 0 : i32
    %c0_i32_0 = arith.constant 0 : i32
    %c0_i32_1 = arith.constant 0 : i32
    return %c0_i32, %arg0, %c0_i32_0 : i32, i32, i32
  }
}

</mosaic_0001>

<bundles_post_ra>
// kernel: tpu_custom_call.1
= control target key start
LH: loop header
LB: loop body
LE: loop exit
PB: predicated region body
PF: predicated region fallthrough
CT: control target
= control target key end

     0   :  { %13 = vsyncpa [#allocation8], 0  ;;  %s15885_s0 = inlined_call_operand.hbm [shape: f32[8,16,40], index: 0, kind: input, shape index: {}]   ;;  %s15886_s1 = inlined_call_operand.vmem [shape: f32[8,128], index: 1, kind: input, shape index: {}]   ;;  %s15887_s2 = inlined_call_operand.hbm [shape: bf16[40,640], index: 2, kind: input, shape index: {}]   ;;  %s15888_s3 = inlined_call_operand.vmem [shape: f32[1,640], index: 3, kind: input, shape index: {}]   ;;  %s15889_s4 = inlined_call_operand.hbm [shape: bf16[128,640], index: 4, kind: input, shape index: {}]   ;;  %s15890_s5 = inlined_call_operand.vmem [shape: bf16[128,128], index: 5, kind: input, shape index: {}]   ;;  %s15891_s6 = inlined_call_operand.vmem [shape: bf16[128,40], index: 6, kind: input, shape index: {}]   ;;  %s15892_s7 = inlined_call_operand.vmem [shape: f32[1,40], index: 7, kind: input, shape index: {}]   ;;  %s15893_s8 = inlined_call_operand.hbm [shape: f32[8,16,40], index: 8, kind: output, shape index: {}]  }
   0x1   :  { %15 = vsyncpa [#allocation8 + $0x1], 0 }
   0x2   :  { %16 = vsyncpa [#allocation11], 0 }
   0x3   :  { %17 = vsyncpa [#allocation9], 0 }
   0x4   :  { %19 = vsyncpa [#allocation9 + $0x1], 0  ;;  %s13654_s27 = smov 0   ;;  %s13656_s28 = smov 0  }
   0x5   :  { %s13658_s29 = smov 0   ;;  %s13660_s30 = smov 0  }
   0x6 LB: > { %s13675_s9 = sadd.s32 4294967295, %s13590_s30   ;;  %s10300_s10 = sadd.s32 4294967294, %s13590_s30   ;;  %s13590_s30 = sphi %s13660_s30, %s15924_s30   ;;  %s13586_s29 = sphi %s13658_s29, %s15928_s29   ;;  %s13582_s28 = sphi %s13656_s28, %s15927_s28   ;;  %s13578_s27 = sphi %s13654_s27, %s15926_s27  }
   0x7   : > { %s13679_s11 = sadd.s32 1, %s13590_s30   ;;  %s32_s12 = sadd.s32 1, %s13586_s29 }
   0x8   : > { %15902 = sst [smem:[#allocation17_spill]] %s13679_s11  ;;  %s29_s13 = ssub.s32 %s13590_s30, %s13679_s11 }
   0x9   : > { %p39_p0 = scmp.ne.s32.totalorder %s13586_s29, %s13582_s28  ;;  %p30_p1 = scmp.eq.s32.totalorder %s29_s13, 0 }
   0xa   : > { %p40_p2 = scmp.eq.s32.totalorder %s13590_s30, 0  ;;  %p45_p3 = scmp.ne.s32.totalorder %s13582_s28, %s13578_s27 }
   0xb   : > { %p15894_p4 = scmp.eq.s32.totalorder %s13675_s9, 0  ;;  %p216_p7 = scmp.eq.s32.totalorder %s13675_s9, 1 }
   0xc   : > { %s13691_s14 = scalar_select %p30_p1, %s13586_s29, %s32_s12  }
   0xd   : > { %p13693_p5 = por %p40_p2, %p39_p0  ;;  %p13699_p6 = por %p15894_p4, %p45_p3 }
   0xe   : > { %15903 = sst [smem:[#allocation18_spill]] %s13691_s14  ;;  %p222_p8 = scmp.eq.s32.totalorder %s10300_s10, 1 }
   0xf   : > { %s15904_s15 = scalar_select %p13693_p5, 1, 0 }
  0x10   : > { %s15905_s16 = scalar_select %p13699_p6, 1, 0 }
  0x11   : > { %p10301_p9 = scmp.ge.s32.totalorder %s13590_s30, 1  ;;  %p229_p10 = scmp.lt.s32.totalorder %s13590_s30, 3 }
  0x12   : > { %p13706_p11 = por %p216_p7, %p39_p0  ;;  %p13710_p12 = por %p222_p8, %p45_p3 }
  0x13   : > { %p13714_p13 = pnand %p10301_p9, %p229_p10  ;;  %s13592_s20 = smov [#allocation10]  }
  0x14   : > { %s15906_s17 = scalar_select %p13706_p11, 1, 0 }
  0x15   : > { %s15907_s18 = scalar_select %p13710_p12, 1, 0 }
  0x16   : > { %s15909_s19 = scalar_select %p13714_p13, 1, 0 }
  0x17   : > { %15908 = sst [smem:[#allocation19_spill]] %s15907_s18  ;;  %p11529_p2 = pneg %p13714_p13 }
  0x18   : > { %s244_s21 = sshll.u32 %s13592_s20, 4  ;;  %s13593_s23 = smov [#allocation12]   ;;  %s245_s21 = int_to_ptr.vmem [resolvable:$true] %s244_s21 }
  0x19   : > { %p13723_p0 = pnand %p11529_p2, %p15894_p4  ;;  %s260_s24 = sshll.u32 %s13593_s23, 4  ;;  %s261_s24 = int_to_ptr.vmem [resolvable:$true] %s260_s24 }
  0x1a   : > { %s13434_s10 = scalar_lea.hbm %s15887_s2, 1600 }
  0x1b   : > { %p13435_p8 = scmp.ne.s32.totalorder %s15887_s2, %s13434_s10  ;;  %p13436_p9 = pneg %p13723_p0 }
  0x1c   : > { %p13441_p3 = scmp.lt.u32.totalorder %s13434_s10, %s15887_s2 }
  0x1d   : > { %p13437_p10 = pnand %p13436_p9, %p13435_p8 }
  0x1f   : > { %p13438_p2 = pneg %p13437_p10 }
  0x21   : > { %p13443_p1 = pnand %p13441_p3, %p13438_p2 }
  0x23   : > { %13446 = shalt.err (!%p13443_p1)
}
  0x24   : > { %s13447_s23 = scalar_lea.vmem %s245_s21, 1600  ;;  %p13455_p11 = scmp.lt.s32.totalorder %s245_s21, %s245_s21 }
  0x25   : > { %p13448_p4 = scmp.ne.s32.totalorder %s245_s21, %s13447_s23  ;;  %p13456_p6 = scmp.lt.s32.totalorder %s13447_s23, %s13447_s23 }
  0x27   : > { %p13450_p7 = pnand %p13448_p4, %p13436_p9  ;;  %p13457_p13 = por %p13456_p6, %p13455_p11 }
  0x29   : > { %p13451_p12 = pneg %p13450_p7 }
  0x2b   : > { %p13458_p5 = pnand %p13457_p13, %p13451_p12 }
  0x2d   : > { %13461 = shalt.err (!%p13458_p5)
}
  0x2e   : > { %s13594_s25 = smov 320   ;;  %s13595_s14 = smov 20  }
  0x2f   : > { %11532 = dma.hbm_to_vmem [thread:$0]  (!%p13723_p0), %s15887_s2, 1600, %s245_s21, [#allocation11], %s13594_s25, %s13594_s25, %s13595_s14  }
  0x30   : > { %p15911_p1 = scmp.ne.s32.totalorder %s15904_s15, 0  ;;  %p15912_p3 = scmp.lt.s32.totalorder %s13590_s30, 2 }
  0x31   : > { %s13462_s23 = scalar_lea.hbm %s15889_s4, 5120 }
  0x32   : > { %p13755_p4 = pnand %p15912_p3, %p15911_p1  ;;  %p13463_p5 = scmp.ne.s32.totalorder %s15889_s4, %s13462_s23 }
  0x33   : > { %p13469_p12 = scmp.lt.u32.totalorder %s13462_s23, %s15889_s4 }
  0x34   : > { %s15913_s12 = scalar_select %p13755_p4, 1, 0 }
  0x35   : > { %p13465_p6 = pnand %p13463_p5, %p13436_p9 }
  0x37   : > { %p13466_p11 = pneg %p13465_p6 }
  0x39   : > { %p13471_p13 = pnand %p13469_p12, %p13466_p11 }
  0x3b   : > { %13474 = shalt.err (!%p13471_p13)
}
  0x3c   : > { %s13475_s26 = scalar_lea.vmem %s261_s24, 5120  ;;  %p13483_p2 = scmp.lt.s32.totalorder %s261_s24, %s261_s24 }
  0x3d   : > { %p13476_p7 = scmp.ne.s32.totalorder %s261_s24, %s13475_s26  ;;  %p13484_p1 = scmp.lt.s32.totalorder %s13475_s26, %s13475_s26 }
  0x3f   : > { %p13478_p8 = pnand %p13476_p7, %p13436_p9  ;;  %p13485_p3 = por %p13484_p1, %p13483_p2 }
  0x41   : > { %p13479_p10 = pneg %p13478_p8 }
  0x43   : > { %p13486_p4 = pnand %p13485_p3, %p13479_p10 }
  0x45   : > { %13489 = shalt.err (!%p13486_p4)
}
  0x46   : > { %11535 = dma.hbm_to_vmem [thread:$0]  (!%p13723_p0), %s15889_s4, 5120, %s261_s24, [#allocation11], %s13594_s25, %s13594_s25, %s13595_s14  }
  0x47   : > { %s283_s10 = sand.u32 1, %s13586_s29   ;;  %s10306_s20 = sshll.u32 %s13590_s30, 7 }
  0x48   : > { %s10305_s13 = sshll.u32 %s283_s10, 6  ;;  %s13784_s15 = scalar_lea.hbm %s15885_s0, %s10306_s20 }
  0x49   : > { %s287_s22 = scalar_lea.vmem [#allocation7], %s10305_s13  ;;  %s13788_s11 = scalar_lea.sflag [#allocation8], %s283_s10 }
  0x4a   : > { %s293_s26 = sshll.u32 %s287_s22, 4  ;;  %s13490_s18 = scalar_lea.hbm %s13784_s15, 1024  ;;  %s13786_s26 = int_to_ptr.vmem [resolvable:$true] %s293_s26 }
  0x4b   : > { %p13491_p0 = scmp.ne.s32.totalorder %s13784_s15, %s13490_s18  ;;  %p15914_p9 = scmp.ne.s32.totalorder %s15913_s12, 0 }
  0x4c   : > { %s13495_s14 = scalar_lea.hbm %s15885_s0, 2048  ;;  %p13496_p11 = scmp.lt.u32.totalorder %s13784_s15, %s15885_s0 }
  0x4d   : > { %p13492_p4 = pneg %p15914_p9  ;;  %p13497_p12 = scmp.lt.u32.totalorder %s13495_s14, %s13490_s18 }
  0x4e   : > { %p13499_p7 = scmp.lt.u32.totalorder %s13490_s18, %s13784_s15 }
  0x4f   : > { %p13493_p5 = pnand %p13492_p4, %p13491_p0  ;;  %p13498_p13 = por %p13497_p12, %p13496_p11 }
  0x51   : > { %p13494_p6 = pneg %p13493_p5  ;;  %p13500_p8 = por %p13499_p7, %p13498_p13 }
  0x53   : > { %p13501_p10 = pnand %p13500_p8, %p13494_p6 }
  0x55   : > { %13504 = shalt.err (!%p13501_p10)
}
  0x56   : > { %s13505_s10 = scalar_lea.vmem %s13786_s26, 1024  ;;  %s13596_s13 = smov [#allocation7]  }
  0x57   : > { %p13506_p2 = scmp.ne.s32.totalorder %s13786_s26, %s13505_s10  ;;  %s13510_s21 = sshll.u32 %s13596_s13, 4  ;;  %s13511_s21 = int_to_ptr.vmem [resolvable:$false] %s13510_s21 }
  0x58   : > { %s13512_s22 = scalar_lea.vmem %s13511_s21, 2048  ;;  %p13513_p0 = scmp.lt.s32.totalorder %s13786_s26, %s13511_s21 }
  0x59   : > { %p13508_p1 = pnand %p13506_p2, %p13492_p4  ;;  %p13514_p5 = scmp.lt.s32.totalorder %s13512_s22, %s13505_s10 }
  0x5b   : > { %p13509_p3 = pneg %p13508_p1  ;;  %p13515_p11 = por %p13514_p5, %p13513_p0 }
  0x5d   : > { %p13516_p12 = pnand %p13515_p11, %p13509_p3 }
  0x5f   : > { %13519 = shalt.err (!%p13516_p12)
}
  0x60   : > { %s13597_s18 = smov 256   ;;  %s13598_s24 = smov 128  }
  0x61   : > { %s13599_s25 = smov 8   ;;  %p15915_p4 = scmp.ne.s32.totalorder %s15909_s19, 0 }
  0x62   : > { %11539 = dma.hbm_to_vmem [thread:$0]  (!%p15914_p9), %s13784_s15, 1024, %s13786_s26, %s13788_s11, %s13597_s18, %s13598_s24, %s13599_s25  }
  0x63   : > { %305 = sbr.rel (%p15915_p4) target bundleno = 4879 (0x130f), region = 52  ;;  %s13819_s14 = sand.u32 (!%p15915_p4), 1, %s13582_s28  }
  0x64   : > { %s10308_s20 = sshll.u32 (!%p15915_p4), %s13819_s14, 6  ;;  %s308_s23 = scalar_lea.sflag (!%p15915_p4), [#allocation8], %s13819_s14 }
  0x65   : > { %s13823_s10 = scalar_lea.vmem (!%p15915_p4), [#allocation7], %s10308_s20  ;;  %p15916_p6 = scmp.ne.s32.totalorder (!%p15915_p4), %s15905_s16, 0 }
  0x6a   : > { %13565 = dma.done.wait (%p15916_p6), %s308_s23, 1024  }
  0x6b   : > { %13567 = vsyncadd (%p15916_p6), %s308_s23, 4294966272  ;;  %p15917_p9 = scmp.eq.s32.totalorder %s13675_s9, 0 }
  0x6d   : > { %13569 = dma.done.wait (%p15917_p9), [#allocation11], 6720   ;;  %p15918_p13 = pmov %p15917_p9 }
  0x6e   : > { %s13833_s19 = scalar_lea.vmem [#allocation13], %s10308_s20  ;;  %p15919_p7 = scmp.ne.s32.totalorder %s13675_s9, 0 }
  0x6f   : > { %13571 = vsyncadd (%p15918_p13), [#allocation11], 4294960576  ;;  %v359_v0 = vld [vmem:[%s15886_s1] sm:$0xff] (!%p15919_p7)  ;;  %v13600_v1 = vmov (!%p15919_p7), 0.0  }
  0x70   : > { %356 = sbr.rel (%p15919_p7) target bundleno = 119 (0x77), region = 68  ;;  %357 = vst [vmem:[#allocation4] sm:$0xff] (!%p15919_p7), %v13600_v1  ;;  %358 = vst [vmem:[#allocation5] sm:$0xff] (!%p15919_p7), %v13600_v1 }
  0x71   : > { %360 = vst [vmem:[#allocation6] sm:$0xff] (!%p15919_p7), %v359_v0 }
  0x77 PF: > { %v11597_v2 = vld [vmem:[#allocation10 + $0x4] ss:$20 sps:$4 sm:$0xff]   ;;  %v11599_v3 = vld [vmem:[#allocation10 + $0xc] ss:$20 sps:$4 sm:$0xff]   ;;  %v13601_v4 = vmov 0   ;;  %v385_v11 = vld [vmem:[#allocation10 + $0x50] sm:$0xff] }
  0x78   : > { %541 = vmatprep.mubr.bf16.mxu0 %v13601_v4  ;;  %614 = vmatprep.mubr.bf16.mxu1 %v13601_v4  ;;  %v11601_v5 = vld [vmem:[#allocation10] ss:$20 sps:$4 sm:$0xff]   ;;  %v11602_v6 = vld [vmem:[#allocation10 + $0x8] ss:$20 sps:$4 sm:$0xff]   ;;  %v11608_v10 = vld [vmem:[#allocation10 + $0x30] ss:$20 sps:$4 sm:$0xff]   ;;  %v10324_v13 = vcombine.high %v385_v11, %v385_v11  ;;  %v10323_v15 = vcombine.low %v385_v11, %v385_v11 }
  0x79   : > { %509 = vmatprep.subr.bf16.mxu0 %v11597_v2  ;;  %582 = vmatprep.subr.bf16.mxu1 %v11599_v3  ;;  %v11603_v7 = vld [vmem:[#allocation10 + $0x2c] ss:$20 sps:$4 sm:$0xff]   ;;  %v11605_v8 = vld [vmem:[#allocation10 + $0x34] ss:$20 sps:$4 sm:$0xff]   ;;  %vm493_vm0 = vcmask 1043456   ;;  %v386_v12 = vld [vmem:[#allocation10 + $0x58] sm:$0xff] }
  0x7a   : > { %510 = vmatpush1.bf16.msra.mxu0 %v11601_v5  ;;  %583 = vmatpush1.bf16.msra.mxu1 %v11602_v6  ;;  %v11607_v9 = vld [vmem:[#allocation10 + $0x28] ss:$20 sps:$4 sm:$0xff]   ;;  %v10326_v14 = vcombine.high %v386_v12, %v386_v12  ;;  %v10325_v16 = vcombine.low %v386_v12, %v386_v12  ;;  %v361_v17 = vld [vmem:[%s13823_s10] sm:$0xff]  ;;  %v495_v20 = vsel %vm493_vm0, %v10323_v15, 0  ;;  %vm480_vm1 = vcmask 326656   ;;  %v363_v28 = vld [vmem:[%s13823_s10 + $0x10] sm:$0xff] }
  0x7b   : > { %511 = vmatprep.subr.bf16.mxu0 %v11603_v7  ;;  %584 = vmatprep.subr.bf16.mxu1 %v11605_v8  ;;  %v362_v18 = vld [vmem:[%s13823_s10 + $0x8] sm:$0xff]  ;;  %v11613_v19 = vld [vmem:[#allocation10 + $0x10] ss:$20 sps:$4 sm:$0xff]   ;;  %v364_v29 = vld [vmem:[%s13823_s10 + $0x18] sm:$0xff]  ;;  %v13602_v57 = vmov 0.0   ;;  %vm13603_vm2 = vmmov 0   ;;  %v390_v15 = vlaneseq }
  0x7c   : > { %v501_v21 = vsel %vm493_vm0, %v10325_v16, 0  ;;  %v11616_v22 = vld [vmem:[#allocation12 + $0x4] ss:$20 sps:$4 sm:$0xff]   ;;  %v13848_v23 = vpack.c.bf16 %v362_v18, %v361_v17  ;;  %v11614_v24 = vld [vmem:[#allocation12] ss:$20 sps:$4 sm:$0xff]   ;;  %v370_v32 = vpack.c.bf16 %v364_v29, %v363_v28  ;;  %v367_v45 = vld [vmem:[%s13823_s10 + $0x30] sm:$0xff] }
  0x7d   : > { %v11619_v25 = vld [vmem:[#allocation12 + $0x2c] ss:$20 sps:$4 sm:$0xff]   ;;  %v11623_v26 = vld [vmem:[#allocation10 + $0x38] ss:$20 sps:$4 sm:$0xff]   ;;  %v11633_v31 = vld [vmem:[#allocation10 + $0x60] ss:$0 sps:$4 sm:$0xff]  }
  0x7e   : > { %512 = vmatpush1.bf16.msra.mxu0 %v11607_v9  ;;  %585 = vmatpush1.bf16.msra.mxu1 %v11608_v10  ;;  %v11617_v27 = vld [vmem:[#allocation12 + $0x28] ss:$20 sps:$4 sm:$0xff]   ;;  %v11620_v33 = vld [vmem:[#allocation12 + $0x50] ss:$20 sps:$4 sm:$0xff]   ;;  %v11624_v35 = vld [vmem:[#allocation12 + $0x78] ss:$20 sps:$4 sm:$0xff]  }
  0x7f   : > { %10328 = vmatprep.subr.msk.bf16.mxu0 %vm493_vm0, %v10324_v13  ;;  %10333 = vmatprep.subr.msk.bf16.mxu1 %vm493_vm0, %v10326_v14  ;;  %v11622_v30 = vld [vmem:[#allocation12 + $0x54] ss:$20 sps:$4 sm:$0xff]   ;;  %v11626_v34 = vld [vmem:[#allocation12 + $0x7c] ss:$20 sps:$4 sm:$0xff]   ;;  %v507_v37 = vsel %vm493_vm0, %v11633_v31, 0  ;;  %v13900_v16 = vshrl.u32 %v390_v15, 7 }
  0x80   : > { %v365_v36 = vld [vmem:[%s13823_s10 + $0x20] sm:$0xff]  ;;  %v366_v39 = vld [vmem:[%s13823_s10 + $0x28] sm:$0xff]  ;;  %v368_v46 = vld [vmem:[%s13823_s10 + $0x38] sm:$0xff]  ;;  %vm1772_vm3 = vcmask 1041409   ;;  %vm1775_vm4 = vcmask 1042434   ;;  %vm1778_vm5 = vcmask 1043459  }
  0x81   : > { %v11642_v38 = vld [vmem:[#allocation12 + $0xc] ss:$20 sps:$4 sm:$0xff]   ;;  %v11629_v40 = vld [vmem:[#allocation12 + $0xa4] ss:$20 sps:$4 sm:$0xff]   ;;  %v371_v41 = vpack.c.bf16 %v366_v39, %v365_v36  ;;  %v11630_v44 = vld [vmem:[#allocation12 + $0xc8] ss:$20 sps:$4 sm:$0xff]   ;;  %v372_v48 = vpack.c.bf16 %v368_v46, %v367_v45 }
  0x82   : > { %514 = vmatpush1.bf16.msra.mxu0 %v495_v20  ;;  %587 = vmatpush1.bf16.msra.mxu1 %v501_v21  ;;  %v11627_v42 = vld [vmem:[#allocation12 + $0xa0] ss:$20 sps:$4 sm:$0xff]   ;;  %v11634_v49 = vld [vmem:[#allocation12 + $0xf0] ss:$20 sps:$4 sm:$0xff]   ;;  %v11637_v51 = vld [vmem:[#allocation12 + $0x118] ss:$20 sps:$4 sm:$0xff]  }
  0x83   : > { %11158 = vmatprep.subr.bf16.mxu0 %v11613_v19  ;;  %1051 = vmatprep.subr.bf16.mxu1 %v11616_v22  ;;  %v11632_v43 = vld [vmem:[#allocation12 + $0xcc] ss:$20 sps:$4 sm:$0xff]   ;;  %v11636_v47 = vld [vmem:[#allocation12 + $0xf4] ss:$20 sps:$4 sm:$0xff]   ;;  %v11639_v50 = vld [vmem:[#allocation12 + $0x11c] ss:$20 sps:$4 sm:$0xff]  }
  0x84   : > { %v760_v52 = vld [vmem:[#allocation4] sm:$0xff]  ;;  %v11647_v59 = vld [vmem:[#allocation12 + $0x38] ss:$20 sps:$4 sm:$0xff]   ;;  %v11650_v60 = vld [vmem:[#allocation12 + $0x5c] ss:$20 sps:$4 sm:$0xff]   ;;  %v392_v17 = vsub.s32 0, %v13900_v16 }
  0x85   : > { %10329 = vmatmul.mubr.msk.bf16.vlgmr.msra.gmra.mrb[0].mxu0 %vm480_vm1, %v13848_v23  ;;  %10334 = vmatmul.mubr.msk.bf16.vlgmr.msra.gmra.mrb[0].mxu1 %vm480_vm1, %v13848_v23  ;;  %v11640_v53 = vld [vmem:[#allocation12 + $0x8] ss:$20 sps:$4 sm:$0xff]   ;;  %v11643_v54 = vld [vmem:[#allocation12 + $0x10] ss:$20 sps:$4 sm:$0xff]   ;;  %v13877_v55 = vpack.c.bf16 %v760_v52, %v760_v52  ;;  %v11648_v61 = vld [vmem:[#allocation12 + $0x58] ss:$20 sps:$4 sm:$0xff]  }
  0x86   : > { %11159 = vmatpush3.bf16.msra.mxu0 %v11613_v19  ;;  %1052 = vmatpush1.bf16.msra.mxu1 %v11614_v24  ;;  %v11646_v56 = vld [vmem:[#allocation12 + $0x34] ss:$20 sps:$4 sm:$0xff]   ;;  %v11644_v58 = vld [vmem:[#allocation12 + $0x30] ss:$20 sps:$4 sm:$0xff]   ;;  %v11658_v2 = vld [vmem:[#allocation12 + $0xac] ss:$20 sps:$4 sm:$0xff]  }
  0x87   : > { %1053 = vmatprep.subr.bf16.mxu1 %v11619_v25  ;;  %551 = vmatprep.mubr.bf16.mxu0 %v13601_v4  ;;  %v11651_v62 = vld [vmem:[#allocation12 + $0x60] ss:$20 sps:$4 sm:$0xff]   ;;  %v11654_v63 = vld [vmem:[#allocation12 + $0x84] ss:$20 sps:$4 sm:$0xff]   ;;  %v11655_v1 = vld [vmem:[#allocation12 + $0x88] ss:$20 sps:$4 sm:$0xff]  }
  0x88   : > { %624 = vmatprep.mubr.bf16.mxu1 %v13601_v4  ;;  %11160 = vmatprep.subr.bf16.mxu0 %v11623_v26  ;;  %v11652_v0 = vld [vmem:[#allocation12 + $0x80] ss:$20 sps:$4 sm:$0xff]   ;;  %v11656_v3 = vld [vmem:[#allocation12 + $0xa8] ss:$20 sps:$4 sm:$0xff]   ;;  %v11659_v5 = vld [vmem:[#allocation12 + $0xb0] ss:$20 sps:$4 sm:$0xff]  }
  0x89   : > { %v11662_v6 = vld [vmem:[#allocation12 + $0xd4] ss:$20 sps:$4 sm:$0xff]   ;;  %v11660_v7 = vld [vmem:[#allocation12 + $0xd0] ss:$20 sps:$4 sm:$0xff]   ;;  %v11663_v8 = vld [vmem:[#allocation12 + $0xd8] ss:$20 sps:$4 sm:$0xff]  }
  0x8a   : > { %1054 = vmatpush1.bf16.msra.mxu1 %v11617_v27  ;;  %11161 = vmatpush3.bf16.msra.mxu0 %v11623_v26  ;;  %v11666_v9 = vld [vmem:[#allocation12 + $0xfc] ss:$20 sps:$4 sm:$0xff]   ;;  %v11664_v10 = vld [vmem:[#allocation12 + $0xf8] ss:$20 sps:$4 sm:$0xff]   ;;  %v11667_v11 = vld [vmem:[#allocation12 + $0x100] ss:$20 sps:$4 sm:$0xff]  }
  0x8b   : > { %1055 = vmatprep.subr.bf16.mxu1 %v11622_v30  ;;  %11516 = vmatprep.subr.msk.bf16.mxu0 %vm493_vm0, %v11633_v31  ;;  %v11670_v12 = vld [vmem:[#allocation12 + $0x124] ss:$20 sps:$4 sm:$0xff]   ;;  %v11668_v13 = vld [vmem:[#allocation12 + $0x120] ss:$20 sps:$4 sm:$0xff]   ;;  %v11671_v14 = vld [vmem:[#allocation12 + $0x128] ss:$20 sps:$4 sm:$0xff]  }
  0x8c   : > { %v400_v18 = vsub.s32 2, %v13900_v16  ;;  %v13907_v19 = vld [vmem:[%s15888_s3] sm:$0x1f]  ;;  %v396_v20 = vsub.s32 1, %v13900_v16  ;;  %v404_v21 = vsub.s32 3, %v13900_v16  ;;  %vm1781_vm6 = vcmask 1044484  }
  0x8d   : > { %10330 = vmatmul.mubr.msk.bf16.gmra.mrb[4].mxu0 %vm480_vm1, %v370_v32  ;;  %10335 = vmatmul.mubr.msk.bf16.gmra.mrb[4].mxu1 %vm480_vm1, %v370_v32  ;;  %v13912_v22 = vrot.slane %v13907_v19, %v392_v17  ;;  %vm1784_vm7 = vcmask 1045509   ;;  %vm1787_vm8 = vcmask 1046534   ;;  %vm1790_vm9 = vcmask 1047559   ;;  %s10992_s25 = sshll.u32 %s13675_s9, 7  ;;  %s10208_s20 = sshll.u32 %s13833_s19, 4  ;;  %s15835_s20 = int_to_ptr.vmem [resolvable:$true] %s10208_s20 }
  0x8e   : > { %1056 = vmatpush1.bf16.msra.mxu1 %v11620_v33  ;;  %561 = vmatprep.mubr.bf16.mxu0 %v13601_v4  ;;  %v13918_v24 = vrot.slane %v13907_v19, %v396_v20  ;;  %v13921_v25 = vrot.slane %v13907_v19, %v404_v21  ;;  %v408_v21 = vsub.s32 4, %v13900_v16  ;;  %s15831_s12 = scalar_lea.hbm %s15893_s8, %s10992_s25  ;;  %s10196_s9 = scalar_lea.sflag [#allocation9], %s13819_s14 }
  0x8f   : > { %1057 = vmatprep.subr.bf16.mxu1 %v11626_v34  ;;  %634 = vmatprep.mubr.bf16.mxu1 %v13601_v4  ;;  %s13520_s15 = scalar_lea.vmem %s15835_s20, 1024  ;;  %p15920_p10 = scmp.ne.s32.totalorder %s15906_s17, 0 }
  0x90   : > { %11163 = vmatpush3.bf16.msra.mxu0 %v507_v37  ;;  %p13521_p8 = scmp.ne.s32.totalorder %s15835_s20, %s13520_s15  ;;  %s13605_s16 = smov [#allocation13]  }
  0x91   : > { %1092 = vmatprep.subr.bf16.mxu0 %v11642_v38  ;;  %s13524_s26 = sshll.u32 %s13605_s16, 4  ;;  %s13525_s26 = int_to_ptr.vmem [resolvable:$false] %s13524_s26 }
  0x92   : > { %1058 = vmatpush1.bf16.msra.mxu1 %v11624_v35  ;;  %p13522_p2 = pnand %p13521_p8, %p15920_p10  ;;  %s13526_s11 = scalar_lea.vmem %s13525_s26, 2048 }
  0x93   : > { %1059 = vmatprep.subr.bf16.mxu1 %v11629_v40  ;;  %p13527_p3 = scmp.lt.s32.totalorder %s15835_s20, %s13525_s26  ;;  %p13528_p0 = scmp.lt.s32.totalorder %s13526_s11, %s13520_s15 }
  0x94   : > { %p13523_p1 = pneg %p13522_p2 }
  0x95   : > { %10331 = vmatmul.mubr.msk.bf16.gmra.mrb[8].mxu0 %vm480_vm1, %v371_v41  ;;  %10336 = vmatmul.mubr.msk.bf16.gmra.mrb[8].mxu1 %vm480_vm1, %v371_v41  ;;  %p13529_p5 = por %p13528_p0, %p13527_p3 }
  0x96   : > { %1060 = vmatpush1.bf16.msra.mxu1 %v11627_v42  ;;  %571 = vmatprep.mubr.bf16.mxu0 %v13601_v4 }
  0x97   : > { %1061 = vmatprep.subr.bf16.mxu1 %v11632_v43  ;;  %644 = vmatprep.mubr.bf16.mxu1 %v13601_v4  ;;  %p13530_p11 = pnand %p13529_p5, %p13523_p1 }
  0x9a   : > { %1062 = vmatpush1.bf16.msra.mxu1 %v11630_v44 }
  0x9b   : > { %1063 = vmatprep.subr.bf16.mxu1 %v11636_v47 }
  0x9d   : > { %10332 = vmatmul.mubr.msk.bf16.gmra.mrb[12].mxu0 %vm480_vm1, %v372_v48  ;;  %10337 = vmatmul.mubr.msk.bf16.gmra.mrb[12].mxu1 %vm480_vm1, %v372_v48 }
  0x9e   : > { %1064 = vmatpush1.bf16.msra.mxu1 %v11634_v49  ;;  %11164 = vmatprep.mubr.msk.bf16.mxu0 %vm480_vm1, %v13848_v23  ;;  %v13915_v23 = vrot.slane %v13907_v19, %v400_v18 }
  0x9f   : > { %1065 = vmatprep.subr.bf16.mxu1 %v11639_v50  ;;  %1083 = vmatprep.mubr.bf16.mxu1 %v13601_v4 }
  0xa2   : > { %1066 = vmatpush1.bf16.msra.mxu1 %v11637_v51 }
  0xa3   : > { %11172 = vmatprep.subr.bf16.mxu1 %v13602_v57 }
  0xa5   : > { %11165 = vmatmul.mubr.msk.bf16.vlgmr.msra.gmra.mrb[16].mxu0 %vm480_vm1, %v370_v32  ;;  %1084 = vmatmul.mubr.bf16.vlgmr.msra.gmra.mrb[16].mxu1 %v13877_v55 }
  0xa6   : > { %1093 = vmatpush1.bf16.msra.mxu0 %v11640_v53  ;;  %11173 = vmatpush3.bf16.msra.mxu1 %v11643_v54 }
  0xa7   : > { %1094 = vmatprep.subr.bf16.mxu0 %v11646_v56  ;;  %11174 = vmatprep.subr.bf16.mxu1 %v13602_v57 }
  0xa8   : > { %11168 = vmatprep.mubr.msk.bf16.mxu0 %vm480_vm1, %v371_v41  ;;  %11188 = vmatprep.mubr.msk.bf16.mxu1 %vm13603_vm2, %v13602_v57 }
  0xaa   : > { %1095 = vmatpush1.bf16.msra.mxu0 %v11644_v58  ;;  %11175 = vmatpush3.bf16.msra.mxu1 %v11647_v59 }
  0xab   : > { %1096 = vmatprep.subr.bf16.mxu0 %v11650_v60  ;;  %11176 = vmatprep.subr.bf16.mxu1 %v13602_v57 }
  0xad   : > { %11169 = vmatmul.mubr.msk.bf16.gmra.mrb[20].mxu0 %vm480_vm1, %v372_v48 }
  0xae   : > { %1097 = vmatpush1.bf16.msra.mxu0 %v11648_v61  ;;  %11177 = vmatpush3.bf16.msra.mxu1 %v11651_v62 }
  0xaf   : > { %1098 = vmatprep.subr.bf16.mxu0 %v11654_v63  ;;  %11178 = vmatprep.subr.bf16.mxu1 %v13602_v57 }
  0xb0   : > { %1124 = vmatprep.mubr.bf16.mxu0 %v13601_v4 }
  0xb2   : > { %1099 = vmatpush1.bf16.msra.mxu0 %v11652_v0  ;;  %11179 = vmatpush3.bf16.msra.mxu1 %v11655_v1 }
  0xb3   : > { %1100 = vmatprep.subr.bf16.mxu0 %v11658_v2  ;;  %11180 = vmatprep.subr.bf16.mxu1 %v13602_v57 }
  0xb6   : > { %1101 = vmatpush1.bf16.msra.mxu0 %v11656_v3  ;;  %11181 = vmatpush3.bf16.msra.mxu1 %v11659_v5 }
  0xb7   : > { %1102 = vmatprep.subr.bf16.mxu0 %v11662_v6  ;;  %11182 = vmatprep.subr.bf16.mxu1 %v13602_v57 }
  0xba   : > { %1103 = vmatpush1.bf16.msra.mxu0 %v11660_v7  ;;  %11183 = vmatpush3.bf16.msra.mxu1 %v11663_v8 }
  0xbb   : > { %1104 = vmatprep.subr.bf16.mxu0 %v11666_v9  ;;  %11184 = vmatprep.subr.bf16.mxu1 %v13602_v57 }
  0xbe   : > { %1105 = vmatpush1.bf16.msra.mxu0 %v11664_v10  ;;  %11185 = vmatpush3.bf16.msra.mxu1 %v11667_v11 }
  0xbf   : > { %1106 = vmatprep.subr.bf16.mxu0 %v11670_v12  ;;  %11186 = vmatprep.subr.bf16.mxu1 %v13602_v57  ;;  %v11672_v12 = vld [vmem:[%s15890_s5] sm:$0xff]  }
  0xc2   : > { %1107 = vmatpush1.bf16.msra.mxu0 %v11668_v13  ;;  %11187 = vmatpush3.bf16.msra.mxu1 %v11671_v14 }
  0xc3   : > { %11192 = vmatprep.subr.bf16.mxu0 %v13602_v57 }
  0xc5   : > { %1125 = vmatmul.mubr.bf16.vlgmr.msra.gmra.mrb[24].mxu0 %v13877_v55  ;;  %11189 = vmatmul.mubr.bf16.vlgmr.msra.gmra.mrb[20].mxu1 %v13877_v55 }
  0xc6   : > { %11208 = vmatprep.mubr.msk.bf16.mxu0 %vm13603_vm2, %v13602_v57  ;;  %2333 = vmatprep.mubr.bf16.mxu1 %v13601_v4 }
  0xc7   : > { %11193 = vmatpush3.bf16.msra.mxu0 %v11672_v12 }
  0xc8   : > { %11194 = vmatprep.subr.bf16.mxu0 %v13602_v57 }
 0x158   : > { %v543_v26 = vpop.f32.mrb[0].mxu0  ;;  %v616_v27 = vpop.f32.mrb[0].mxu1 }
 0x159   : > { %v544_v28 = vadd.f32 %v543_v26, %v13912_v22  ;;  %v617_v29 = vadd.f32 %v616_v27, %v13915_v23  ;;  %v545_v30 = vpop.f32.mrb[1].mxu0  ;;  %v618_v31 = vpop.f32.mrb[1].mxu1 }
 0x15a   : > { %v546_v32 = vadd.f32 %v545_v30, %v13918_v24  ;;  %v619_v33 = vadd.f32 %v618_v31, %v13921_v25  ;;  %v547_v34 = vpop.f32.mrb[2].mxu0  ;;  %v620_v35 = vpop.f32.mrb[2].mxu1  ;;  %v11673_v30 = vld [vmem:[%s15890_s5 + $0x8] sm:$0xff]  }
 0x15b   : > { %720 = vst [vmem:[#allocation2] sm:$0xff] %v544_v28  ;;  %722 = vst [vmem:[#allocation2 + $0x10] sm:$0xff] %v617_v29  ;;  %v548_v36 = vadd.f32 %v547_v34, %v13912_v22  ;;  %v621_v37 = vadd.f32 %v620_v35, %v13915_v23  ;;  %v549_v38 = vpop.f32.mrb[3].mxu0  ;;  %v622_v39 = vpop.f32.mrb[3].mxu1  ;;  %11195 = vmatpush3.bf16.msra.mxu0 %v11673_v30 }
 0x15c   : > { %721 = vst [vmem:[#allocation2 + $0x8] sm:$0xff] %v546_v32  ;;  %723 = vst [vmem:[#allocation2 + $0x18] sm:$0xff] %v619_v33  ;;  %v550_v40 = vadd.f32 %v549_v38, %v13918_v24  ;;  %v623_v41 = vadd.f32 %v622_v39, %v13921_v25  ;;  %v409_v38 = vrot.slane %v13907_v19, %v408_v21  ;;  %11196 = vmatprep.subr.bf16.mxu0 %v13602_v57 }
 0x15d   : > { %725 = vst [vmem:[#allocation2 + $0x28] sm:$0xff] %v548_v36  ;;  %727 = vst [vmem:[#allocation2 + $0x38] sm:$0xff] %v621_v37  ;;  %v11674_v37 = vld [vmem:[%s15890_s5 + $0x10] sm:$0xff]  }
 0x15e   : > { %726 = vst [vmem:[#allocation2 + $0x30] sm:$0xff] %v550_v40  ;;  %728 = vst [vmem:[#allocation2 + $0x40] sm:$0xff] %v623_v41 }
 0x15f   : > { %11197 = vmatpush3.bf16.msra.mxu0 %v11674_v37 }
 0x160   : > { %v553_v42 = vpop.f32.mrb[4].mxu0  ;;  %v626_v43 = vpop.f32.mrb[4].mxu1  ;;  %11198 = vmatprep.subr.bf16.mxu0 %v13602_v57 }
 0x161   : > { %v554_v44 = vadd.f32 %v553_v42, %v13912_v22  ;;  %v627_v45 = vadd.f32 %v626_v43, %v13915_v23  ;;  %v555_v46 = vpop.f32.mrb[5].mxu0  ;;  %v628_v47 = vpop.f32.mrb[5].mxu1 }
 0x162   : > { %v556_v48 = vadd.f32 %v555_v46, %v13918_v24  ;;  %v629_v49 = vadd.f32 %v628_v47, %v13921_v25  ;;  %v557_v50 = vpop.f32.mrb[6].mxu0  ;;  %v630_v51 = vpop.f32.mrb[6].mxu1 }
 0x163   : > { %730 = vst [vmem:[#allocation2 + $0x50] sm:$0xff] %v554_v44  ;;  %732 = vst [vmem:[#allocation2 + $0x60] sm:$0xff] %v627_v45  ;;  %v558_v52 = vadd.f32 %v557_v50, %v13912_v22  ;;  %v631_v53 = vadd.f32 %v630_v51, %v13915_v23  ;;  %v559_v54 = vpop.f32.mrb[7].mxu0  ;;  %v632_v55 = vpop.f32.mrb[7].mxu1  ;;  %v11677_v51 = vld [vmem:[%s15890_s5 + $0x28] sm:$0xff]  }
 0x164   : > { %731 = vst [vmem:[#allocation2 + $0x58] sm:$0xff] %v556_v48  ;;  %733 = vst [vmem:[#allocation2 + $0x68] sm:$0xff] %v629_v49  ;;  %v560_v56 = vadd.f32 %v559_v54, %v13918_v24  ;;  %v633_v58 = vadd.f32 %v632_v55, %v13921_v25  ;;  %v11676_v49 = vld [vmem:[%s15890_s5 + $0x20] sm:$0xff]  }
 0x165   : > { %735 = vst [vmem:[#allocation2 + $0x78] sm:$0xff] %v558_v52  ;;  %737 = vst [vmem:[#allocation2 + $0x88] sm:$0xff] %v631_v53 }
 0x166   : > { %736 = vst [vmem:[#allocation2 + $0x80] sm:$0xff] %v560_v56  ;;  %738 = vst [vmem:[#allocation2 + $0x90] sm:$0xff] %v633_v58 }
 0x168   : > { %v563_v59 = vpop.f32.mrb[8].mxu0  ;;  %v636_v60 = vpop.f32.mrb[8].mxu1 }
 0x169   : > { %v564_v61 = vadd.f32 %v563_v59, %v13912_v22  ;;  %v637_v62 = vadd.f32 %v636_v60, %v13915_v23  ;;  %v565_v63 = vpop.f32.mrb[9].mxu0  ;;  %v638_v0 = vpop.f32.mrb[9].mxu1  ;;  %v11678_v60 = vld [vmem:[%s15890_s5 + $0x30] sm:$0xff]  }
 0x16a   : > { %v566_v1 = vadd.f32 %v565_v63, %v13918_v24  ;;  %v639_v2 = vadd.f32 %v638_v0, %v13921_v25  ;;  %v567_v3 = vpop.f32.mrb[10].mxu0  ;;  %v640_v5 = vpop.f32.mrb[10].mxu1 }
 0x16b   : > { %740 = vst [vmem:[#allocation2 + $0xa0] sm:$0xff] %v564_v61  ;;  %742 = vst [vmem:[#allocation2 + $0xb0] sm:$0xff] %v637_v62  ;;  %v568_v6 = vadd.f32 %v567_v3, %v13912_v22  ;;  %v641_v7 = vadd.f32 %v640_v5, %v13915_v23  ;;  %v569_v8 = vpop.f32.mrb[11].mxu0  ;;  %v642_v9 = vpop.f32.mrb[11].mxu1  ;;  %v11679_v61 = vld [vmem:[%s15890_s5 + $0x38] sm:$0xff]  }
 0x16c   : > { %741 = vst [vmem:[#allocation2 + $0xa8] sm:$0xff] %v566_v1  ;;  %743 = vst [vmem:[#allocation2 + $0xb8] sm:$0xff] %v639_v2  ;;  %v570_v10 = vadd.f32 %v569_v8, %v13918_v24  ;;  %v643_v11 = vadd.f32 %v642_v9, %v13921_v25  ;;  %v13604_v62 = vmov 1966171168  }
 0x16d   : > { %745 = vst [vmem:[#allocation2 + $0xc8] sm:$0xff] %v568_v6  ;;  %747 = vst [vmem:[#allocation2 + $0xd8] sm:$0xff] %v641_v7  ;;  %v1184_v63 = vunpack.c.l.s4 %v13604_v62 }
 0x16e   : > { %746 = vst [vmem:[#allocation2 + $0xd0] sm:$0xff] %v570_v10  ;;  %748 = vst [vmem:[#allocation2 + $0xe0] sm:$0xff] %v643_v11 }
 0x16f   : > { %v1185_v0 = vunpack.c.0.s8 %v1184_v63 }
 0x170   : > { %v573_v13 = vpop.f32.mrb[12].mxu0  ;;  %v646_v14 = vpop.f32.mrb[12].mxu1 }
 0x171   : > { %v574_v15 = vadd.f32 %v573_v13, %v13912_v22  ;;  %v647_v17 = vadd.f32 %v646_v14, %v13915_v23  ;;  %v575_v18 = vpop.f32.mrb[13].mxu0  ;;  %v648_v20 = vpop.f32.mrb[13].mxu1  ;;  %v13993_v1 = vsub.s32 %v1185_v0, %v13900_v16 }
 0x172   : > { %v576_v26 = vadd.f32 %v575_v18, %v13918_v24  ;;  %v649_v27 = vadd.f32 %v648_v20, %v13921_v25  ;;  %v577_v28 = vpop.f32.mrb[14].mxu0  ;;  %v650_v29 = vpop.f32.mrb[14].mxu1 }
 0x173   : > { %750 = vst [vmem:[#allocation2 + $0xf0] sm:$0xff] %v574_v15  ;;  %752 = vst [vmem:[#allocation2 + $0x100] sm:$0xff] %v647_v17  ;;  %v578_v31 = vadd.f32 %v577_v28, %v13912_v22  ;;  %v651_v32 = vadd.f32 %v650_v29, %v13915_v23  ;;  %v579_v33 = vpop.f32.mrb[15].mxu0  ;;  %v652_v34 = vpop.f32.mrb[15].mxu1 }
 0x174   : > { %751 = vst [vmem:[#allocation2 + $0xf8] sm:$0xff] %v576_v26  ;;  %753 = vst [vmem:[#allocation2 + $0x108] sm:$0xff] %v649_v27  ;;  %v580_v35 = vadd.f32 %v579_v33, %v13918_v24  ;;  %v653_v36 = vadd.f32 %v652_v34, %v13921_v25  ;;  %v11675_v24 = vld [vmem:[%s15890_s5 + $0x18] sm:$0xff]  }
 0x175   : > { %755 = vst [vmem:[#allocation2 + $0x118] sm:$0xff] %v578_v31  ;;  %757 = vst [vmem:[#allocation2 + $0x128] sm:$0xff] %v651_v32  ;;  %11199 = vmatpush3.bf16.msra.mxu0 %v11675_v24  ;;  %v783_v62 = vld [vmem:[#allocation2 + $0xc8] ss:$8 sm:$0xf] }
 0x176   : > { %756 = vst [vmem:[#allocation2 + $0x120] sm:$0xff] %v580_v35  ;;  %758 = vst [vmem:[#allocation2 + $0x130] sm:$0xff] %v653_v36  ;;  %11200 = vmatprep.subr.bf16.mxu0 %v13602_v57 }
 0x178   : > { %v11166_v22 = vpop.f32.mrb[16].mxu0  ;;  %v13968_v23 = vpop.f32.mrb[16].mxu1 }
 0x179   : > { %v698_v25 = vadd.f32 %v11166_v22, %v409_v38  ;;  %v689_v39 = vpop.f32.mrb[17].mxu0  ;;  %v1087_v40 = vpop.f32.mrb[17].mxu1  ;;  %11201 = vmatpush3.bf16.msra.mxu0 %v11676_v49 }
 0x17a   : > { %v690_v41 = vadd.f32 %v689_v39, %v409_v38  ;;  %v11167_v42 = vpop.f32.mrb[18].mxu0  ;;  %v1178_v19 = vcombine.low %v13968_v23, %v1087_v40  ;;  %v1179_v43 = vcombine.high %v13968_v23, %v1087_v40  ;;  %v1089_v44 = vpop.f32.mrb[18].mxu1  ;;  %11202 = vmatprep.subr.bf16.mxu0 %v13602_v57 }
 0x17b   : > { %734 = vst [vmem:[#allocation2 + $0x70] sm:$0xff] %v698_v25  ;;  %v701_v45 = vadd.f32 %v11167_v42, %v409_v38  ;;  %v692_v46 = vpop.f32.mrb[19].mxu0  ;;  %v1090_v47 = vpop.f32.mrb[19].mxu1  ;;  %v763_v44 = vld [vmem:[#allocation2] ss:$8 sm:$0xf] }
 0x17c   : > { %724 = vst [vmem:[#allocation2 + $0x20] sm:$0xff] %v690_v41  ;;  %v693_v48 = vadd.f32 %v692_v46, %v409_v38  ;;  %v1189_v18 = vrot.slane %v1178_v19, %v13993_v1  ;;  %v1196_v16 = vrot.slane %v1179_v43, %v13993_v1  ;;  %v767_v47 = vld [vmem:[#allocation2 + $0x28] ss:$8 sm:$0xf] }
 0x17d   : > { %739 = vst [vmem:[#allocation2 + $0x98] sm:$0xff] %v701_v45  ;;  %11203 = vmatpush3.bf16.msra.mxu0 %v11677_v51 }
 0x17e   : > { %729 = vst [vmem:[#allocation2 + $0x48] sm:$0xff] %v693_v48  ;;  %11204 = vmatprep.subr.bf16.mxu0 %v13602_v57 }
 0x180   : > { %v11170_v50 = vpop.f32.mrb[20].mxu0 }
 0x181   : > { %v714_v52 = vadd.f32 %v11170_v50, %v409_v38  ;;  %v705_v53 = vpop.f32.mrb[21].mxu0  ;;  %11205 = vmatpush3.bf16.msra.mxu0 %v11678_v60  ;;  %v771_v50 = vld [vmem:[#allocation2 + $0x50] ss:$8 sm:$0xf] }
 0x182   : > { %v706_v54 = vadd.f32 %v705_v53, %v409_v38  ;;  %v11171_v55 = vpop.f32.mrb[22].mxu0  ;;  %11206 = vmatprep.subr.bf16.mxu0 %v13602_v57  ;;  %v772_v45 = vld [vmem:[#allocation2 + $0x50] ss:$8 sm:$0x10] }
 0x183   : > { %754 = vst [vmem:[#allocation2 + $0x110] sm:$0xff] %v714_v52  ;;  %v717_v56 = vadd.f32 %v11171_v55, %v409_v38  ;;  %v708_v58 = vpop.f32.mrb[23].mxu0  ;;  %v764_v19 = vld [vmem:[#allocation2] ss:$8 sm:$0x10]  ;;  %v773_v52 = vor.u32 %v772_v45, %v771_v50 }
 0x184   : > { %744 = vst [vmem:[#allocation2 + $0xc0] sm:$0xff] %v706_v54  ;;  %v709_v59 = vadd.f32 %v708_v58, %v409_v38  ;;  %v765_v46 = vor.u32 %v764_v19, %v763_v44  ;;  %v776_v48 = vld [vmem:[#allocation2 + $0x78] ss:$8 sm:$0x10] }
 0x185   : > { %759 = vst [vmem:[#allocation2 + $0x138] sm:$0xff] %v717_v56  ;;  %11207 = vmatpush3.bf16.msra.mxu0 %v11679_v61  ;;  %v768_v43 = vld [vmem:[#allocation2 + $0x28] ss:$8 sm:$0x10] }
 0x186   : > { %749 = vst [vmem:[#allocation2 + $0xe8] sm:$0xff] %v709_v59  ;;  %v769_v49 = vor.u32 %v768_v43, %v767_v47  ;;  %v775_v53 = vld [vmem:[#allocation2 + $0x78] ss:$8 sm:$0xf] }
 0x187   : > { %v777_v56 = vor.u32 %v776_v48, %v775_v53  ;;  %v779_v58 = vld [vmem:[#allocation2 + $0xa0] ss:$8 sm:$0xf] }
 0x18a   : > { %v788_v59 = vld [vmem:[#allocation2 + $0xf0] ss:$8 sm:$0x10] }
 0x18b   : > { %v780_v51 = vld [vmem:[#allocation2 + $0xa0] ss:$8 sm:$0x10] }
 0x18c   : > { %v781_v61 = vor.u32 %v780_v51, %v779_v58  ;;  %v792_v63 = vld [vmem:[#allocation2 + $0x118] ss:$8 sm:$0x10] }
 0x18d   : > { %v784_v54 = vld [vmem:[#allocation2 + $0xc8] ss:$8 sm:$0x10] }
 0x198   : > { %v1126_v2 = vpop.f32.mrb[24].mxu0  ;;  %v1167_v3 = vpop.f32.mrb[20].mxu1 }
 0x199   : > { %v1128_v5 = vpop.f32.mrb[25].mxu0  ;;  %v1182_v6 = vcombine.high %v1167_v3, %v1167_v3  ;;  %v1217_v7 = vrot.slane %v1167_v3, %v13993_v1  ;;  %v11190_v8 = vpop.f32.mrb[21].mxu1  ;;  %v787_v3 = vld [vmem:[#allocation2 + $0xf0] ss:$8 sm:$0xf] }
 0x19a   : > { %v1180_v9 = vcombine.low %v1126_v2, %v1128_v5  ;;  %v1181_v10 = vcombine.high %v1126_v2, %v1128_v5  ;;  %v1130_v11 = vpop.f32.mrb[26].mxu0  ;;  %v1170_v12 = vpop.f32.mrb[22].mxu1  ;;  %v785_v2 = vor.u32 %v784_v54, %v783_v62 }
 0x19b   : > { %v1224_v13 = vrot.slane %v1182_v6, %v13993_v1  ;;  %v1229_v14 = vcombine.high %v1217_v7, %v1217_v7  ;;  %v1131_v15 = vpop.f32.mrb[27].mxu0  ;;  %v11191_v17 = vpop.f32.mrb[23].mxu1  ;;  %v1265_v32 = vrot.slane %v1217_v7, %v13993_v1  ;;  %v789_v6 = vor.u32 %v788_v59, %v787_v3  ;;  %v791_v7 = vld [vmem:[#allocation2 + $0x118] ss:$8 sm:$0xf] }
 0x19c   : > { %v1203_v20 = vrot.slane %v1180_v9, %v13993_v1  ;;  %v1210_v21 = vrot.slane %v1181_v10, %v13993_v1  ;;  %v793_v10 = vor.u32 %v792_v63, %v791_v7 }
 0x19d   : > { %v1230_v26 = vcombine.high %v1224_v13, %v1224_v13  ;;  %v1272_v27 = vrot.slane %v1224_v13, %v13993_v1  ;;  %v1279_v33 = vrot.slane %v1229_v14, %v13993_v1 }
 0x19e   : > { %v1225_v28 = vcombine.low %v1189_v18, %v1203_v20  ;;  %v1226_v29 = vcombine.high %v1189_v18, %v1203_v20  ;;  %v1227_v30 = vcombine.low %v1196_v16, %v1210_v21  ;;  %v1228_v31 = vcombine.high %v1196_v16, %v1210_v21 }
 0x19f   : > { %v1286_v34 = vrot.slane %v1230_v26, %v13993_v1 }
 0x1a0   : > { %v1244_v35 = vrot.slane %v1227_v30, %v13993_v1  ;;  %v1251_v36 = vrot.slane %v1226_v29, %v13993_v1  ;;  %v1258_v37 = vrot.slane %v1228_v31, %v13993_v1  ;;  %v1237_v38 = vrot.slane %v1225_v28, %v13993_v1 }
 0x1a2   : > { %v1287_v22 = vcombine.low %v1237_v38, %v1265_v32  ;;  %v1288_v23 = vcombine.high %v1237_v38, %v1265_v32  ;;  %v1289_v24 = vcombine.low %v1244_v35, %v1272_v27  ;;  %v1290_v25 = vcombine.high %v1244_v35, %v1272_v27 }
 0x1a3   : > { %v1291_v39 = vcombine.low %v1251_v36, %v1279_v33  ;;  %v1292_v40 = vcombine.high %v1251_v36, %v1279_v33  ;;  %v1293_v41 = vcombine.low %v1258_v37, %v1286_v34  ;;  %v1294_v42 = vcombine.high %v1258_v37, %v1286_v34  ;;  %v762_v34 = vld [vmem:[#allocation6] sm:$0xff] }
 0x1a4   : > { %v14009_v55 = vadd.f32 %v1287_v22, %v765_v46  ;;  %v14013_v0 = vadd.f32 %v1288_v23, %v773_v52  ;;  %v14017_v8 = vadd.f32 %v1289_v24, %v781_v61  ;;  %v14023_v13 = vadd.f32 %v1290_v25, %v789_v6 }
 0x1a5   : > { %v14011_v60 = vadd.f32 %v1291_v39, %v769_v49  ;;  %v14015_v5 = vadd.f32 %v1292_v40, %v777_v56  ;;  %v14020_v11 = vadd.f32 %v1293_v41, %v785_v2  ;;  %v14026_v15 = vadd.f32 %v1294_v42, %v793_v10 }
 0x1a6   : > { %v1519_v9 = vrot.slane %v14009_v55, 4  ;;  %v1521_v14 = vrot.slane %v14013_v0, 4  ;;  %v1523_v18 = vrot.slane %v14017_v8, 4  ;;  %v1525_v26 = vrot.slane %v14023_v13, 4 }
 0x1a7   : > { %v1520_v12 = vrot.slane %v14011_v60, 4  ;;  %v1522_v17 = vrot.slane %v14015_v5, 4  ;;  %v1524_v20 = vrot.slane %v14020_v11, 4  ;;  %v1526_v28 = vrot.slane %v14026_v15, 4 }
 0x1a8   : > { %v10406_v16 = vmul.f32 -1.442695, %v1519_v9  ;;  %v10408_v27 = vmul.f32 -1.442695, %v1521_v14  ;;  %v10410_v30 = vmul.f32 -1.442695, %v1523_v18  ;;  %v1584_v38 = vcombine.high %v762_v34, %v762_v34 }
 0x1a9   : > { %v10407_v21 = vmul.f32 -1.442695, %v1520_v12  ;;  %v10409_v29 = vmul.f32 -1.442695, %v1522_v17  ;;  %v10411_v31 = vmul.f32 -1.442695, %v1524_v20  ;;  %v1591_v22 = vrot.slane %v762_v34, %v13993_v1 }
 0x1aa   : > { %12138 = vpow2.f32 %v10406_v16  ;;  %v10412_v32 = vmul.f32 -1.442695, %v1525_v26  ;;  %v10413_v33 = vmul.f32 -1.442695, %v1526_v28  ;;  %v1598_v43 = vrot.slane %v1584_v38, %v13993_v1 }
 0x1ab   : > { %12140 = vpow2.f32 %v10407_v21  ;;  %v1599_v44 = vcombine.high %v1591_v22, %v1591_v22  ;;  %v1607_v50 = vrot.slane %v1591_v22, %v13993_v1 }
 0x1ac   : > { %12142 = vpow2.f32 %v10408_v27  ;;  %v1600_v51 = vcombine.high %v1598_v43, %v1598_v43  ;;  %v1614_v53 = vrot.slane %v1598_v43, %v13993_v1 }
 0x1ad   : > { %12144 = vpow2.f32 %v10409_v29  ;;  %v1621_v52 = vrot.slane %v1599_v44, %v13993_v1  ;;  %v1629_v54 = vcombine.high %v1607_v50, %v1607_v50 }
 0x1ae   : > { %12146 = vpow2.f32 %v10410_v30  ;;  %v1628_v58 = vrot.slane %v1600_v51, %v13993_v1  ;;  %v1630_v6 = vcombine.high %v1614_v53, %v1614_v53 }
 0x1af   : > { %12148 = vpow2.f32 %v10411_v31  ;;  %v1631_v59 = vcombine.high %v1621_v52, %v1621_v52 }
 0x1b0   : > { %12150 = vpow2.f32 %v10412_v32  ;;  %v1632_v12 = vcombine.high %v1628_v58, %v1628_v58 }
 0x1b1   : > { %12152 = vpow2.f32 %v10413_v33 }
 0x1b4   : > { %v12139_v35 = vpop.eup %12138 }
 0x1b5   : > { %v12141_v36 = vpop.eup %12140  ;;  %v1559_v37 = vadd.f32 1.0, %v12139_v35 }
 0x1b6   : > { %v12143_v23 = vpop.eup %12142  ;;  %v1560_v24 = vadd.f32 1.0, %v12141_v36 }
 0x1b7   : > { %v12145_v25 = vpop.eup %12144  ;;  %v1561_v39 = vadd.f32 1.0, %v12143_v23  ;;  %12154 = vrcp.f32 %v1559_v37 }
 0x1b8   : > { %v12147_v40 = vpop.eup %12146  ;;  %v1562_v41 = vadd.f32 1.0, %v12145_v25  ;;  %12156 = vrcp.f32 %v1560_v24 }
 0x1b9   : > { %v12149_v42 = vpop.eup %12148  ;;  %v1563_v19 = vadd.f32 1.0, %v12147_v40  ;;  %12158 = vrcp.f32 %v1561_v39 }
 0x1ba   : > { %v12151_v45 = vpop.eup %12150  ;;  %v1564_v46 = vadd.f32 1.0, %v12149_v42  ;;  %12160 = vrcp.f32 %v1562_v41 }
 0x1bb   : > { %v12153_v47 = vpop.eup %12152  ;;  %v1565_v48 = vadd.f32 1.0, %v12151_v45  ;;  %12162 = vrcp.f32 %v1563_v19 }
 0x1bc   : > { %12164 = vrcp.f32 %v1564_v46  ;;  %v1566_v49 = vadd.f32 1.0, %v12153_v47 }
 0x1bd   : > { %12166 = vrcp.f32 %v1565_v48 }
 0x1be   : > { %12168 = vrcp.f32 %v1566_v49 }
 0x1c1   : > { %v12155_v56 = vpop.eup %12154 }
 0x1c2   : > { %v12157_v61 = vpop.eup %12156  ;;  %v14039_v62 = vmul.f32 %v12155_v56, %v1607_v50  ;;  %v11687_v56 = vld [vmem:[#allocation12 + $0xc] ss:$20 sps:$4 sm:$0xff]  }
 0x1c3   : > { %v12159_v63 = vpop.eup %12158  ;;  %v14041_v2 = vmul.f32 %v12157_v61, %v1621_v52  ;;  %2342 = vmatprep.subr.bf16.mxu0 %v11687_v56  ;;  %v11688_v61 = vld [vmem:[#allocation12 + $0x28] ss:$20 sps:$4 sm:$0xff]  }
 0x1c4   : > { %v12161_v3 = vpop.eup %12160  ;;  %v14043_v7 = vmul.f32 %v12159_v63, %v1629_v54  ;;  %v1731_v9 = vpack.c.bf16 %v14039_v62, %v14039_v62  ;;  %v11682_v54 = vld [vmem:[#allocation12] ss:$20 sps:$4 sm:$0xff]  }
 0x1c5   : > { %v12163_v10 = vpop.eup %12162  ;;  %v14047_v14 = vmul.f32 %v12161_v3, %v1631_v59  ;;  %v1732_v17 = vpack.c.bf16 %v14041_v2, %v14041_v2  ;;  %v11690_v59 = vld [vmem:[#allocation12 + $0x2c] ss:$20 sps:$4 sm:$0xff]   ;;  %v11693_v63 = vld [vmem:[#allocation12 + $0x34] ss:$20 sps:$4 sm:$0xff]   ;;  %v11691_v3 = vld [vmem:[#allocation12 + $0x30] ss:$20 sps:$4 sm:$0xff]  }
 0x1c6   : > { %v12165_v18 = vpop.eup %12164  ;;  %v14051_v16 = vmul.f32 %v12163_v10, %v1614_v53  ;;  %v1733_v20 = vpack.c.bf16 %v14043_v7, %v14043_v7  ;;  %v1763_v32 = vunpack.c.l.b16 %v1731_v9  ;;  %v11684_v53 = vld [vmem:[#allocation12 + $0x4] ss:$20 sps:$4 sm:$0xff]   ;;  %v11696_v9 = vld [vmem:[#allocation12 + $0x54] ss:$20 sps:$4 sm:$0xff]  }
 0x1c7   : > { %v12167_v21 = vpop.eup %12166  ;;  %v14055_v26 = vmul.f32 %v12165_v18, %v1628_v58  ;;  %v1734_v27 = vpack.c.bf16 %v14047_v14, %v14047_v14  ;;  %v1764_v28 = vunpack.c.l.b16 %v1732_v17  ;;  %2301 = vmatprep.subr.bf16.mxu1 %v11684_v53  ;;  %v11685_v58 = vld [vmem:[#allocation12 + $0x8] ss:$20 sps:$4 sm:$0xff]   ;;  %v11697_v10 = vld [vmem:[#allocation12 + $0x58] ss:$20 sps:$4 sm:$0xff]   ;;  %v1371_v53 = vrot.slane %v14017_v8, 1 }
 0x1c8   : > { %v12169_v29 = vpop.eup %12168  ;;  %v14059_v30 = vmul.f32 %v12167_v21, %v1630_v6  ;;  %v1735_v31 = vpack.c.bf16 %v14051_v16, %v14051_v16  ;;  %v1765_v33 = vunpack.c.l.b16 %v1733_v20  ;;  %2302 = vmatpush1.bf16.msra.mxu1 %v11682_v54  ;;  %v11694_v6 = vld [vmem:[#allocation12 + $0x50] ss:$20 sps:$4 sm:$0xff]   ;;  %v11700_v20 = vld [vmem:[#allocation12 + $0x78] ss:$20 sps:$4 sm:$0xff]   ;;  %v11703_v21 = vld [vmem:[#allocation12 + $0x80] ss:$20 sps:$4 sm:$0xff]  }
 0x1c9   : > { %v14063_v34 = vmul.f32 %v12169_v29, %v1632_v12  ;;  %v1736_v35 = vpack.c.bf16 %v14055_v26, %v14055_v26  ;;  %v1766_v36 = vunpack.c.l.b16 %v1734_v27  ;;  %v1771_v37 = vrot.slane %v1764_v28, 7  ;;  %2303 = vmatprep.subr.bf16.mxu1 %v11690_v59  ;;  %v11699_v12 = vld [vmem:[#allocation12 + $0x5c] ss:$20 sps:$4 sm:$0xff]   ;;  %v11705_v18 = vld [vmem:[#allocation12 + $0x84] ss:$20 sps:$4 sm:$0xff]  }
 0x1ca   : > { %v1737_v38 = vpack.c.bf16 %v14059_v30, %v14059_v30  ;;  %v1767_v22 = vunpack.c.l.b16 %v1735_v31  ;;  %v1774_v23 = vrot.slane %v1765_v33, 6  ;;  %v11702_v17 = vld [vmem:[#allocation12 + $0x7c] ss:$20 sps:$4 sm:$0xff]   ;;  %v11708_v27 = vld [vmem:[#allocation12 + $0xa4] ss:$20 sps:$4 sm:$0xff]  }
 0x1cb   : > { %v1738_v24 = vpack.c.bf16 %v14063_v34, %v14063_v34  ;;  %v1768_v25 = vunpack.c.l.b16 %v1736_v35  ;;  %v1773_v39 = vsel %vm1772_vm3, %v1771_v37, %v1763_v32  ;;  %v1777_v40 = vrot.slane %v1766_v36, 5  ;;  %v11711_v28 = vld [vmem:[#allocation12 + $0xac] ss:$20 sps:$4 sm:$0xff]   ;;  %v11709_v31 = vld [vmem:[#allocation12 + $0xa8] ss:$20 sps:$4 sm:$0xff]  }
 0x1cc   : > { %v1769_v41 = vunpack.c.l.b16 %v1737_v38  ;;  %v1776_v42 = vsel %vm1775_vm4, %v1774_v23, %v1773_v39  ;;  %v1780_v19 = vrot.slane %v1767_v22, 4  ;;  %2304 = vmatpush1.bf16.msra.mxu1 %v11688_v61  ;;  %v11706_v29 = vld [vmem:[#allocation12 + $0xa0] ss:$20 sps:$4 sm:$0xff]   ;;  %v11712_v35 = vld [vmem:[#allocation12 + $0xc8] ss:$20 sps:$4 sm:$0xff]  }
 0x1cd   : > { %v1770_v43 = vunpack.c.l.b16 %v1738_v24  ;;  %v1779_v44 = vsel %vm1778_vm5, %v1777_v40, %v1776_v42  ;;  %v1783_v45 = vrot.slane %v1768_v25, 3  ;;  %2305 = vmatprep.subr.bf16.mxu1 %v11696_v9  ;;  %v11714_v32 = vld [vmem:[#allocation12 + $0xcc] ss:$20 sps:$4 sm:$0xff]   ;;  %v11717_v33 = vld [vmem:[#allocation12 + $0xd4] ss:$20 sps:$4 sm:$0xff]  }
 0x1ce   : > { %v1782_v46 = vsel %vm1781_vm6, %v1780_v19, %v1779_v44  ;;  %v1786_v47 = vrot.slane %v1769_v41, 2  ;;  %v11715_v36 = vld [vmem:[#allocation12 + $0xd0] ss:$20 sps:$4 sm:$0xff]   ;;  %v11720_v37 = vld [vmem:[#allocation12 + $0xf4] ss:$20 sps:$4 sm:$0xff]  }
 0x1cf   : > { %v1785_v48 = vsel %vm1784_vm7, %v1783_v45, %v1782_v46  ;;  %v1789_v49 = vrot.slane %v1770_v43, 1  ;;  %v11723_v38 = vld [vmem:[#allocation12 + $0xfc] ss:$20 sps:$4 sm:$0xff]   ;;  %v11721_v23 = vld [vmem:[#allocation12 + $0xf8] ss:$20 sps:$4 sm:$0xff]   ;;  %v1367_v45 = vrot.slane %v14009_v55, 1 }
 0x1d0   : > { %v1788_v50 = vsel %vm1787_vm8, %v1786_v47, %v1785_v48  ;;  %2306 = vmatpush1.bf16.msra.mxu1 %v11694_v6  ;;  %v11718_v22 = vld [vmem:[#allocation12 + $0xf0] ss:$20 sps:$4 sm:$0xff]   ;;  %v11724_v39 = vld [vmem:[#allocation12 + $0x118] ss:$20 sps:$4 sm:$0xff]   ;;  %v11727_v40 = vld [vmem:[#allocation12 + $0x120] ss:$20 sps:$4 sm:$0xff]  }
 0x1d1   : > { %v1791_v51 = vsel %vm1790_vm9, %v1789_v49, %v1788_v50  ;;  %2307 = vmatprep.subr.bf16.mxu1 %v11702_v17  ;;  %v11726_v24 = vld [vmem:[#allocation12 + $0x11c] ss:$20 sps:$4 sm:$0xff]   ;;  %v11729_v25 = vld [vmem:[#allocation12 + $0x124] ss:$20 sps:$4 sm:$0xff]   ;;  %v10382_v41 = vmul.f32 -1.442695, %v14009_v55 }
 0x1d2   : > { %v1792_v52 = vpack.c.b16 %v1791_v51, %v1791_v51  ;;  %v10383_v42 = vmul.f32 -1.442695, %v14011_v60  ;;  %v10384_v19 = vmul.f32 -1.442695, %v14013_v0  ;;  %v10385_v43 = vmul.f32 -1.442695, %v14015_v5 }
 0x1d3   : > { %12170 = vpow2.f32 %v10382_v41  ;;  %v10386_v44 = vmul.f32 -1.442695, %v14017_v8  ;;  %v10387_v46 = vmul.f32 -1.442695, %v14020_v11  ;;  %v10388_v47 = vmul.f32 -1.442695, %v14023_v13 }
 0x1d4   : > { %11209 = vmatmul.mubr.bf16.vlgmr.msra.gmra.mrb[28].mxu0 %v1792_v52  ;;  %2308 = vmatpush1.bf16.msra.mxu1 %v11700_v20  ;;  %12172 = vpow2.f32 %v10383_v42  ;;  %v1368_v48 = vrot.slane %v14011_v60, 1  ;;  %v10389_v49 = vmul.f32 -1.442695, %v14026_v15  ;;  %v1369_v50 = vrot.slane %v14013_v0, 1 }
 0x1d5   : > { %2374 = vmatprep.mubr.bf16.mxu0 %v13601_v4  ;;  %2343 = vmatpush1.bf16.msra.mxu0 %v11685_v58  ;;  %12174 = vpow2.f32 %v10384_v19  ;;  %v1370_v51 = vrot.slane %v14015_v5, 1  ;;  %v10390_v52 = vmul.f32 -1.442695, %v1367_v45  ;;  %v1373_v17 = vrot.slane %v14023_v13, 1 }
 0x1d6   : > { %2344 = vmatprep.subr.bf16.mxu0 %v11693_v63  ;;  %2309 = vmatprep.subr.bf16.mxu1 %v11708_v27  ;;  %12176 = vpow2.f32 %v10385_v43  ;;  %v10391_v54 = vmul.f32 -1.442695, %v1368_v48  ;;  %v10392_v58 = vmul.f32 -1.442695, %v1369_v50  ;;  %v1374_v20 = vrot.slane %v14026_v15, 1 }
 0x1d7   : > { %12178 = vpow2.f32 %v10386_v44  ;;  %v10393_v61 = vmul.f32 -1.442695, %v1370_v51  ;;  %v1432_v44 = vrot.slane %v14011_v60, 2  ;;  %v1434_v50 = vrot.slane %v14015_v5, 2 }
 0x1d8   : > { %2310 = vmatpush1.bf16.msra.mxu1 %v11706_v29  ;;  %12180 = vpow2.f32 %v10387_v46 }
 0x1d9   : > { %2345 = vmatpush1.bf16.msra.mxu0 %v11691_v3  ;;  %2311 = vmatprep.subr.bf16.mxu1 %v11714_v32  ;;  %12182 = vpow2.f32 %v10388_v47  ;;  %v10394_v3 = vmul.f32 -1.442695, %v1371_v53  ;;  %v1433_v47 = vrot.slane %v14013_v0, 2  ;;  %v1435_v53 = vrot.slane %v14017_v8, 2 }
 0x1da   : > { %2346 = vmatprep.subr.bf16.mxu0 %v11699_v12  ;;  %12184 = vpow2.f32 %v10389_v49 }
 0x1db   : > { %12186 = vpow2.f32 %v10390_v52 }
 0x1dc   : > { %2312 = vmatpush1.bf16.msra.mxu1 %v11712_v35  ;;  %12188 = vpow2.f32 %v10391_v54 }
 0x1dd   : > { %2347 = vmatpush1.bf16.msra.mxu0 %v11697_v10  ;;  %2313 = vmatprep.subr.bf16.mxu1 %v11720_v37  ;;  %v12171_v56 = vpop.eup %12170  ;;  %v1372_v10 = vrot.slane %v14020_v11, 1  ;;  %12190 = vpow2.f32 %v10392_v58 }
 0x1de   : > { %2348 = vmatprep.subr.bf16.mxu0 %v11705_v18  ;;  %v12173_v59 = vpop.eup %12172  ;;  %v1335_v9 = vadd.f32 1.0, %v12171_v56  ;;  %12192 = vpow2.f32 %v10393_v61  ;;  %v10399_v56 = vmul.f32 -1.442695, %v1432_v44 }
 0x1df   : > { %v12175_v63 = vpop.eup %12174  ;;  %v1336_v12 = vadd.f32 1.0, %v12173_v59  ;;  %12194 = vpow2.f32 %v10394_v3  ;;  %v10400_v59 = vmul.f32 -1.442695, %v1433_v47 }
 0x1e0   : > { %2314 = vmatpush1.bf16.msra.mxu1 %v11718_v22  ;;  %v12177_v6 = vpop.eup %12176  ;;  %v1337_v18 = vadd.f32 1.0, %v12175_v63  ;;  %12196 = vrcp.f32 %v1335_v9  ;;  %v1431_v22 = vrot.slane %v14009_v55, 2  ;;  %v10401_v63 = vmul.f32 -1.442695, %v1434_v50 }
 0x1e1   : > { %2349 = vmatpush1.bf16.msra.mxu0 %v11703_v21  ;;  %2315 = vmatprep.subr.bf16.mxu1 %v11726_v24  ;;  %v1338_v21 = vadd.f32 1.0, %v12177_v6  ;;  %v12179_v27 = vpop.eup %12178  ;;  %12198 = vrcp.f32 %v1336_v12  ;;  %v1436_v6 = vrot.slane %v14020_v11, 2  ;;  %v10402_v9 = vmul.f32 -1.442695, %v1435_v53 }
 0x1e2   : > { %2350 = vmatprep.subr.bf16.mxu0 %v11711_v28  ;;  %v10395_v28 = vmul.f32 -1.442695, %v1372_v10  ;;  %v12181_v29 = vpop.eup %12180  ;;  %12200 = vrcp.f32 %v1337_v18  ;;  %v10398_v42 = vmul.f32 -1.442695, %v1431_v22  ;;  %v1500_v53 = vrot.slane %v14020_v11, 3 }
 0x1e3   : > { %v12183_v32 = vpop.eup %12182  ;;  %12202 = vrcp.f32 %v1338_v21  ;;  %v1438_v21 = vrot.slane %v14026_v15, 2 }
 0x1e4   : > { %2316 = vmatpush1.bf16.msra.mxu1 %v11724_v39  ;;  %v12185_v35 = vpop.eup %12184  ;;  %12204 = vpow2.f32 %v10395_v28 }
 0x1e5   : > { %2351 = vmatpush1.bf16.msra.mxu0 %v11709_v31  ;;  %11212 = vmatprep.subr.bf16.mxu1 %v13602_v57  ;;  %v10396_v31 = vmul.f32 -1.442695, %v1373_v17  ;;  %v12187_v37 = vpop.eup %12186  ;;  %v1437_v17 = vrot.slane %v14023_v13, 2 }
 0x1e6   : > { %2352 = vmatprep.subr.bf16.mxu0 %v11717_v33  ;;  %v10397_v33 = vmul.f32 -1.442695, %v1374_v20  ;;  %v12189_v24 = vpop.eup %12188 }
 0x1e7   : > { %12206 = vpow2.f32 %v10396_v31  ;;  %v12191_v39 = vpop.eup %12190  ;;  %v1408_v43 = vadd.f32 1.0, %v12189_v24 }
 0x1e8   : > { %12208 = vpow2.f32 %v10397_v33  ;;  %v12193_v41 = vpop.eup %12192  ;;  %v1409_v46 = vadd.f32 1.0, %v12191_v39 }
 0x1e9   : > { %2353 = vmatpush1.bf16.msra.mxu0 %v11715_v36  ;;  %v1339_v36 = vadd.f32 1.0, %v12179_v27  ;;  %v12195_v19 = vpop.eup %12194  ;;  %v1410_v49 = vadd.f32 1.0, %v12193_v41  ;;  %v761_v27 = vld [vmem:[#allocation5] sm:$0xff] }
 0x1ea   : > { %2354 = vmatprep.subr.bf16.mxu0 %v11723_v38  ;;  %v1340_v38 = vadd.f32 1.0, %v12181_v29  ;;  %v14099_v45 = vpop.eup %12196  ;;  %v1411_v52 = vadd.f32 1.0, %v12195_v19  ;;  %v1657_v39 = vrot.slane %v761_v27, %v13993_v1 }
 0x1eb   : > { %12210 = vrcp.f32 %v1339_v36  ;;  %v14102_v48 = vpop.eup %12198  ;;  %v1650_v36 = vcombine.high %v761_v27, %v761_v27 }
 0x1ec   : > { %12212 = vrcp.f32 %v1340_v38  ;;  %v14105_v51 = vpop.eup %12200  ;;  %v10405_v38 = vmul.f32 -1.442695, %v1438_v21  ;;  %v1665_v47 = vcombine.high %v1657_v39, %v1657_v39 }
 0x1ed   : > { %2355 = vmatpush1.bf16.msra.mxu0 %v11721_v23  ;;  %v1341_v23 = vadd.f32 1.0, %v12183_v32  ;;  %v14108_v54 = vpop.eup %12202  ;;  %v10403_v32 = vmul.f32 -1.442695, %v1436_v6 }
 0x1ee   : > { %2356 = vmatprep.subr.bf16.mxu0 %v11729_v25  ;;  %v1342_v25 = vadd.f32 1.0, %v12185_v35  ;;  %v12205_v58 = vpop.eup %12204  ;;  %v10404_v35 = vmul.f32 -1.442695, %v1437_v17 }
 0x1ef   : > { %12214 = vrcp.f32 %v1341_v23  ;;  %v1412_v12 = vadd.f32 1.0, %v12205_v58  ;;  %v1495_v23 = vrot.slane %v14009_v55, 3  ;;  %v1498_v55 = vrot.slane %v14015_v5, 3 }
 0x1f0   : > { %12216 = vrcp.f32 %v1342_v25  ;;  %v1496_v25 = vrot.slane %v14011_v60, 3  ;;  %v1501_v58 = vrot.slane %v14023_v13, 3 }
 0x1f1   : > { %2357 = vmatpush1.bf16.msra.mxu0 %v11727_v40  ;;  %v1407_v40 = vadd.f32 1.0, %v12187_v37  ;;  %v12207_v61 = vpop.eup %12206 }
 0x1f2   : > { %11232 = vmatprep.subr.bf16.mxu0 %v13602_v57  ;;  %v12209_v3 = vpop.eup %12208  ;;  %v1413_v20 = vadd.f32 1.0, %v12207_v61  ;;  %v1673_v61 = vrot.slane %v1657_v39, %v13993_v1 }
 0x1f3   : > { %12218 = vrcp.f32 %v1407_v40  ;;  %v1414_v29 = vadd.f32 1.0, %v12209_v3 }
 0x1f4   : > { %12220 = vpow2.f32 %v10398_v42  ;;  %v1664_v42 = vrot.slane %v1650_v36, %v13993_v1 }
 0x1f5   : > { %12222 = vrcp.f32 %v1408_v43  ;;  %v14111_v10 = vpop.eup %12210  ;;  %v1497_v43 = vrot.slane %v14013_v0, 3 }
 0x1f6   : > { %12224 = vrcp.f32 %v1409_v46  ;;  %v14114_v18 = vpop.eup %12212  ;;  %v1666_v50 = vcombine.high %v1664_v42, %v1664_v42  ;;  %v1680_v11 = vrot.slane %v1664_v42, %v13993_v1 }
 0x1f7   : > { %12226 = vrcp.f32 %v1410_v49  ;;  %v1499_v49 = vrot.slane %v14017_v8, 3  ;;  %v1502_v8 = vrot.slane %v14026_v15, 3 }
 0x1f8   : > { %12228 = vrcp.f32 %v1411_v52 }
 0x1f9   : > { %12230 = vpow2.f32 %v10399_v56  ;;  %v14117_v28 = vpop.eup %12214 }
 0x1fa   : > { %12232 = vpow2.f32 %v10400_v59  ;;  %v14119_v31 = vpop.eup %12216 }
 0x1fb   : > { %12234 = vpow2.f32 %v10401_v63  ;;  %v1687_v63 = vrot.slane %v1665_v47, %v13993_v1 }
 0x1fc   : > { %12236 = vpow2.f32 %v10402_v9  ;;  %v1694_v9 = vrot.slane %v1666_v50, %v13993_v1 }
 0x1fd   : > { %v14121_v33 = vpop.eup %12218  ;;  %12238 = vrcp.f32 %v1412_v12  ;;  %v1697_v36 = vcombine.high %v1687_v63, %v1687_v63 }
 0x1fe   : > { %v12221_v37 = vpop.eup %12220  ;;  %12240 = vrcp.f32 %v1413_v20  ;;  %v1707_v42 = vmul.f32 %v14121_v33, %v1673_v61 }
 0x1ff   : > { %v14123_v22 = vpop.eup %12222  ;;  %12242 = vrcp.f32 %v1414_v29  ;;  %v1471_v41 = vadd.f32 1.0, %v12221_v37 }
 0x200   : > { %v14126_v24 = vpop.eup %12224  ;;  %12244 = vpow2.f32 %v10403_v32 }
 0x201   : > { %v14130_v40 = vpop.eup %12226  ;;  %12246 = vpow2.f32 %v10404_v35  ;;  %v1695_v35 = vcombine.high %v1673_v61, %v1673_v61 }
 0x202   : > { %v12229_v19 = vpop.eup %12228  ;;  %12248 = vpow2.f32 %v10405_v38  ;;  %v1696_v38 = vcombine.high %v1680_v11, %v1680_v11 }
 0x203   : > { %v12231_v44 = vpop.eup %12230  ;;  %12250 = vtanh.f32 %v1495_v23  ;;  %v1698_v23 = vcombine.high %v1694_v9, %v1694_v9  ;;  %v1711_v47 = vmul.f32 %v12229_v19, %v1680_v11 }
 0x204   : > { %v12233_v46 = vpop.eup %12232  ;;  %12252 = vtanh.f32 %v1496_v25  ;;  %v1472_v5 = vadd.f32 1.0, %v12231_v44 }
 0x205   : > { %v12235_v60 = vpop.eup %12234  ;;  %12254 = vrcp.f32 %v1471_v41  ;;  %v1473_v17 = vadd.f32 1.0, %v12233_v46  ;;  %v1710_v46 = vmul.f32 %v14130_v40, %v1697_v36 }
 0x206   : > { %v12237_v52 = vpop.eup %12236  ;;  %12256 = vtanh.f32 %v1497_v43  ;;  %v1474_v27 = vadd.f32 1.0, %v12235_v60  ;;  %v1708_v43 = vmul.f32 %v14123_v22, %v1687_v63 }
 0x207   : > { %v12239_v56 = vpop.eup %12238  ;;  %12258 = vtanh.f32 %v1498_v55  ;;  %v1475_v32 = vadd.f32 1.0, %v12237_v52  ;;  %v1709_v55 = vmul.f32 %v14126_v24, %v1695_v35 }
 0x208   : > { %v12241_v59 = vpop.eup %12240 }
 0x209   : > { %v12243_v6 = vpop.eup %12242  ;;  %v1713_v50 = vmul.f32 %v12241_v59, %v1696_v38 }
 0x20a   : > { %v12245_v13 = vpop.eup %12244  ;;  %v1714_v52 = vmul.f32 %v12243_v6, %v1698_v23 }
 0x20b   : > { %v12247_v21 = vpop.eup %12246  ;;  %v1476_v15 = vadd.f32 1.0, %v12245_v13 }
 0x20c   : > { %v12249_v29 = vpop.eup %12248  ;;  %v1477_v41 = vadd.f32 1.0, %v12247_v21 }
 0x20d   : > { %v12251_v37 = vpop.eup %12250  ;;  %v1478_v22 = vadd.f32 1.0, %v12249_v29 }
 0x20e   : > { %v12253_v25 = vpop.eup %12252 }
 0x20f   : > { %v14143_v39 = vpop.eup %12254 }
 0x210   : > { %v12257_v44 = vpop.eup %12256 }
 0x211   : > { %v12259_v60 = vpop.eup %12258  ;;  %v1717_v33 = vmul.f32 %v12257_v44, %v14105_v51 }
 0x212   : > { %v1718_v24 = vmul.f32 %v12259_v60, %v14108_v54 }
 0x2a7   : > { %v1876_v0 = vpop.f32.mrb[28].mxu0 }
 0x2a8   : > { %12260 = vtanh.f32 %v1876_v0  ;;  %v11210_v3 = vpop.f32.mrb[29].mxu0  ;;  %v1716_v0 = vmul.f32 %v12253_v25, %v14102_v48 }
 0x2a9   : > { %12262 = vtanh.f32 %v1499_v49  ;;  %v1879_v12 = vpop.f32.mrb[30].mxu0  ;;  %v1712_v49 = vmul.f32 %v12239_v56, %v1694_v9  ;;  %v1725_v3 = vadd.f32 %v1717_v33, %v1709_v55 }
 0x2aa   : > { %12264 = vtanh.f32 %v1500_v53  ;;  %v11211_v20 = vpop.f32.mrb[31].mxu0  ;;  %v1724_v63 = vadd.f32 %v1716_v0, %v1708_v43 }
 0x2ab   : > { %12266 = vtanh.f32 %v1501_v58  ;;  %v1715_v58 = vmul.f32 %v12251_v37, %v14099_v45  ;;  %v1726_v45 = vadd.f32 %v1718_v24, %v1710_v46 }
 0x2ac   : > { %12268 = vrcp.f32 %v1472_v5 }
 0x2ad   : > { %12270 = vtanh.f32 %v1502_v8  ;;  %v1723_v59 = vadd.f32 %v1715_v58, %v1707_v42 }
 0x2ae   : > { %12272 = vrcp.f32 %v1473_v17 }
 0x2af   : > { %12274 = vrcp.f32 %v1474_v27 }
 0x2b0   : > { %12276 = vrcp.f32 %v1475_v32 }
 0x2b1   : > { %12278 = vrcp.f32 %v1476_v15 }
 0x2b2   : > { %v12261_v53 = vpop.eup %12260  ;;  %12280 = vrcp.f32 %v1477_v41 }
 0x2b3   : > { %v12263_v5 = vpop.eup %12262  ;;  %v1884_v61 = vcombine.high %v12261_v53, %v12261_v53  ;;  %v1891_v40 = vrot.slane %v12261_v53, %v13993_v1  ;;  %12282 = vrcp.f32 %v1478_v22 }
 0x2b4   : > { %v12265_v19 = vpop.eup %12264  ;;  %v1719_v56 = vmul.f32 %v12263_v5, %v14111_v10 }
 0x2b5   : > { %v12267_v6 = vpop.eup %12266  ;;  %v1898_v48 = vrot.slane %v1884_v61, %v13993_v1  ;;  %v1899_v8 = vcombine.high %v1891_v40, %v1891_v40  ;;  %v1907_v51 = vrot.slane %v1891_v40, %v13993_v1  ;;  %v1720_v9 = vmul.f32 %v12265_v19, %v14114_v18 }
 0x2b6   : > { %v12269_v11 = vpop.eup %12268  ;;  %v1721_v54 = vmul.f32 %v12267_v6, %v14117_v28  ;;  %v1727_v12 = vadd.f32 %v1719_v56, %v1711_v47 }
 0x2b7   : > { %v12271_v13 = vpop.eup %12270  ;;  %v1900_v17 = vcombine.high %v1898_v48, %v1898_v48  ;;  %v1914_v10 = vrot.slane %v1898_v48, %v13993_v1  ;;  %v1921_v20 = vrot.slane %v1899_v8, %v13993_v1  ;;  %v1929_v21 = vcombine.high %v1907_v51, %v1907_v51 }
 0x2b8   : > { %v12273_v27 = vpop.eup %12272  ;;  %v1722_v29 = vmul.f32 %v12271_v13, %v14119_v31  ;;  %v1728_v32 = vadd.f32 %v1720_v9, %v1712_v49  ;;  %v1729_v35 = vadd.f32 %v1721_v54, %v1713_v50  ;;  %v14162_v36 = vadd.f32 %v1907_v51, %v1723_v59 }
 0x2b9   : > { %v12275_v37 = vpop.eup %12274  ;;  %v1928_v18 = vrot.slane %v1900_v17, %v13993_v1  ;;  %v1930_v28 = vcombine.high %v1914_v10, %v1914_v10  ;;  %v1931_v15 = vcombine.high %v1921_v20, %v1921_v20  ;;  %v14165_v38 = vadd.f32 %v1921_v20, %v1724_v63 }
 0x2ba   : > { %v12277_v23 = vpop.eup %12276  ;;  %v1730_v25 = vadd.f32 %v1722_v29, %v1714_v52  ;;  %v14167_v41 = vadd.f32 %v1929_v21, %v1725_v3  ;;  %v14169_v42 = vadd.f32 %v1914_v10, %v1727_v12  ;;  %12284 = vtanh.f32 %v14162_v36 }
 0x2bb   : > { %v12279_v31 = vpop.eup %12278  ;;  %v1932_v43 = vcombine.high %v1928_v18, %v1928_v18  ;;  %v14172_v44 = vadd.f32 %v1931_v15, %v1726_v45  ;;  %v14174_v55 = vadd.f32 %v1928_v18, %v1728_v32  ;;  %v14176_v46 = vadd.f32 %v1930_v28, %v1729_v35 }
 0x2bc   : > { %12286 = vtanh.f32 %v14165_v38  ;;  %v12281_v47 = vpop.eup %12280 }
 0x2bd   : > { %v14179_v60 = vadd.f32 %v1932_v43, %v1730_v25  ;;  %12288 = vtanh.f32 %v14167_v41  ;;  %v12283_v49 = vpop.eup %12282 }
 0x2be   : > { %12290 = vtanh.f32 %v14172_v44 }
 0x2bf   : > { %12292 = vtanh.f32 %v14169_v42 }
 0x2c0   : > { %12294 = vtanh.f32 %v14174_v55 }
 0x2c1   : > { %12296 = vtanh.f32 %v14176_v46 }
 0x2c2   : > { %12298 = vtanh.f32 %v14179_v60 }
 0x2c4   : > { %v12285_v50 = vpop.eup %12284 }
 0x2c5   : > { %v1957_v52 = vmul.f32 %v12285_v50, %v14143_v39 }
 0x2c6   : > { %v12287_v53 = vpop.eup %12286 }
 0x2c7   : > { %v12289_v58 = vpop.eup %12288  ;;  %v1958_v0 = vmul.f32 %v12287_v53, %v12269_v11  ;;  %1965 = vst [vmem:[#allocation3] sm:$0x1] %v1957_v52  ;;  %v2005_v5 = vpack.c.bf16 %v1957_v52, %v1957_v52  ;;  %v11730_v52 = vld [vmem:[#allocation12 + $0x10] ss:$20 sps:$4 sm:$0xff]  }
 0x2c8   : > { %v12291_v33 = vpop.eup %12290  ;;  %v1959_v22 = vmul.f32 %v12289_v58, %v12273_v27  ;;  %v11731_v58 = vld [vmem:[#allocation12 + $0x38] ss:$20 sps:$4 sm:$0xff]  }
 0x2c9   : > { %v12293_v24 = vpop.eup %12292  ;;  %v1960_v61 = vmul.f32 %v12291_v33, %v12275_v37  ;;  %1966 = vst [vmem:[#allocation3 + $0x8] sm:$0x1] %v1958_v0  ;;  %v2006_v40 = vpack.c.bf16 %v1958_v0, %v1958_v0  ;;  %v2069_v51 = vunpack.c.l.b16 %v2005_v5  ;;  %v11732_v0 = vld [vmem:[#allocation12 + $0x60] ss:$20 sps:$4 sm:$0xff]   ;;  %v11733_v33 = vld [vmem:[#allocation12 + $0x88] ss:$20 sps:$4 sm:$0xff]  }
 0x2ca   : > { %v12295_v19 = vpop.eup %12294  ;;  %v1961_v56 = vmul.f32 %v12293_v24, %v12277_v23  ;;  %1967 = vst [vmem:[#allocation3 + $0x10] sm:$0x1] %v1959_v22  ;;  %v2007_v59 = vpack.c.bf16 %v1959_v22, %v1959_v22  ;;  %v11734_v22 = vld [vmem:[#allocation12 + $0xb0] ss:$20 sps:$4 sm:$0xff]   ;;  %v11735_v5 = vld [vmem:[#allocation12 + $0xd8] ss:$20 sps:$4 sm:$0xff]  }
 0x2cb   : > { %v12297_v63 = vpop.eup %12296  ;;  %v1962_v3 = vmul.f32 %v12295_v19, %v12279_v31  ;;  %1968 = vst [vmem:[#allocation3 + $0x18] sm:$0x1] %v1960_v61  ;;  %v2008_v6 = vpack.c.bf16 %v1960_v61, %v1960_v61  ;;  %v2070_v39 = vunpack.c.l.b16 %v2006_v40  ;;  %v11736_v24 = vld [vmem:[#allocation12 + $0x100] ss:$20 sps:$4 sm:$0xff]   ;;  %v11737_v61 = vld [vmem:[#allocation12 + $0x128] ss:$20 sps:$4 sm:$0xff]  }
 0x2cc   : > { %v12299_v45 = vpop.eup %12298  ;;  %v1963_v48 = vmul.f32 %v12297_v63, %v12281_v47  ;;  %1969 = vst [vmem:[#allocation3 + $0x20] sm:$0x1] %v1961_v56  ;;  %v2009_v8 = vpack.c.bf16 %v1961_v56, %v1961_v56  ;;  %v2071_v11 = vunpack.c.l.b16 %v2007_v59  ;;  %v11738_v40 = vld [vmem:[%s15890_s5] sm:$0xff]   ;;  %v11739_v19 = vld [vmem:[%s15890_s5 + $0x8] sm:$0xff]   ;;  %v11740_v56 = vld [vmem:[%s15890_s5 + $0x10] sm:$0xff]  }
 0x2cd   : > { %v1964_v9 = vmul.f32 %v12299_v45, %v12283_v49  ;;  %1970 = vst [vmem:[#allocation3 + $0x28] sm:$0x1] %v1962_v3  ;;  %v2010_v54 = vpack.c.bf16 %v1962_v3, %v1962_v3  ;;  %v2072_v12 = vunpack.c.l.b16 %v2008_v6  ;;  %v2077_v13 = vrot.slane %v2070_v39, 7  ;;  %v11741_v59 = vld [vmem:[%s15890_s5 + $0x18] sm:$0xff]   ;;  %v11742_v63 = vld [vmem:[%s15890_s5 + $0x20] sm:$0xff]  }
 0x2ce   : > { %1971 = vst [vmem:[#allocation3 + $0x30] sm:$0x1] %v1963_v48  ;;  %v2011_v17 = vpack.c.bf16 %v1963_v48, %v1963_v48  ;;  %v2073_v10 = vunpack.c.l.b16 %v2009_v8  ;;  %v2079_v20 = vrot.slane %v2071_v11, 6 }
 0x2cf   : > { %1972 = vst [vmem:[#allocation3 + $0x38] sm:$0x1] %v1964_v9  ;;  %v2012_v21 = vpack.c.bf16 %v1964_v9, %v1964_v9  ;;  %v2074_v27 = vunpack.c.l.b16 %v2010_v54  ;;  %v2078_v29 = vsel %vm1772_vm3, %v2077_v13, %v2069_v51  ;;  %v2081_v32 = vrot.slane %v2072_v12, 5 }
 0x2d0   : > { %v2075_v35 = vunpack.c.l.b16 %v2011_v17  ;;  %v2080_v37 = vsel %vm1775_vm4, %v2079_v20, %v2078_v29  ;;  %v2083_v18 = vrot.slane %v2073_v10, 4  ;;  %v11743_v17 = vld [vmem:[%s15890_s5 + $0x28] sm:$0xff]  }
 0x2d1   : > { %v2076_v28 = vunpack.c.l.b16 %v2012_v21  ;;  %v2082_v15 = vsel %vm1778_vm5, %v2081_v32, %v2080_v37  ;;  %v2085_v23 = vrot.slane %v2074_v27, 3 }
 0x2d2   : > { %v2084_v25 = vsel %vm1781_vm6, %v2083_v18, %v2082_v15  ;;  %v2087_v31 = vrot.slane %v2075_v35, 2  ;;  %v11744_v18 = vld [vmem:[%s15890_s5 + $0x30] sm:$0xff]  }
 0x2d3   : > { %v2086_v43 = vsel %vm1784_vm7, %v2085_v23, %v2084_v25  ;;  %v2089_v47 = vrot.slane %v2076_v28, 1  ;;  %v11745_v28 = vld [vmem:[%s15890_s5 + $0x38] sm:$0xff]  }
 0x2d4   : > { %v2088_v49 = vsel %vm1787_vm8, %v2087_v31, %v2086_v43 }
 0x2d5   : > { %v2090_v50 = vsel %vm1790_vm9, %v2089_v47, %v2088_v49 }
 0x2d6   : > { %v2091_v53 = vpack.c.b16 %v2090_v50, %v2090_v50 }
 0x2d8   : > { %2334 = vmatmul.mubr.bf16.vlgmr.msra.gmra.mrb[24].mxu1 %v2091_v53  ;;  %2375 = vmatmul.mubr.bf16.vlgmr.msra.gmra.mrb[32].mxu0 %v2091_v53 }
 0x2d9   : > { %11213 = vmatpush3.bf16.msra.mxu1 %v11730_v52  ;;  %11228 = vmatprep.mubr.msk.bf16.mxu1 %vm13603_vm2, %v13602_v57 }
 0x2da   : > { %11214 = vmatprep.subr.bf16.mxu1 %v13602_v57  ;;  %11248 = vmatprep.mubr.msk.bf16.mxu0 %vm13603_vm2, %v13602_v57 }
 0x2db   : > { %11233 = vmatpush3.bf16.msra.mxu0 %v11738_v40 }
 0x2dc   : > { %11234 = vmatprep.subr.bf16.mxu0 %v13602_v57 }
 0x2dd   : > { %11215 = vmatpush3.bf16.msra.mxu1 %v11731_v58 }
 0x2de   : > { %11216 = vmatprep.subr.bf16.mxu1 %v13602_v57 }
 0x2df   : > { %11235 = vmatpush3.bf16.msra.mxu0 %v11739_v19 }
 0x2e0   : > { %11236 = vmatprep.subr.bf16.mxu0 %v13602_v57 }
 0x2e1   : > { %11217 = vmatpush3.bf16.msra.mxu1 %v11732_v0 }
 0x2e2   : > { %11218 = vmatprep.subr.bf16.mxu1 %v13602_v57 }
 0x2e3   : > { %11237 = vmatpush3.bf16.msra.mxu0 %v11740_v56 }
 0x2e4   : > { %11238 = vmatprep.subr.bf16.mxu0 %v13602_v57 }
 0x2e5   : > { %11219 = vmatpush3.bf16.msra.mxu1 %v11733_v33 }
 0x2e6   : > { %11220 = vmatprep.subr.bf16.mxu1 %v13602_v57 }
 0x2e7   : > { %11239 = vmatpush3.bf16.msra.mxu0 %v11741_v59 }
 0x2e8   : > { %11240 = vmatprep.subr.bf16.mxu0 %v13602_v57 }
 0x2e9   : > { %11221 = vmatpush3.bf16.msra.mxu1 %v11734_v22 }
 0x2ea   : > { %11222 = vmatprep.subr.bf16.mxu1 %v13602_v57 }
 0x2eb   : > { %11241 = vmatpush3.bf16.msra.mxu0 %v11742_v63 }
 0x2ec   : > { %11242 = vmatprep.subr.bf16.mxu0 %v13602_v57 }
 0x2ed   : > { %11223 = vmatpush3.bf16.msra.mxu1 %v11735_v5 }
 0x2ee   : > { %11224 = vmatprep.subr.bf16.mxu1 %v13602_v57 }
 0x2ef   : > { %11243 = vmatpush3.bf16.msra.mxu0 %v11743_v17  ;;  %v1991_v17 = vld [vmem:[#allocation2 + $0xa1] ss:$8 sm:$0x10] }
 0x2f0   : > { %11244 = vmatprep.subr.bf16.mxu0 %v13602_v57 }
 0x2f1   : > { %11225 = vmatpush3.bf16.msra.mxu1 %v11736_v24 }
 0x2f2   : > { %11226 = vmatprep.subr.bf16.mxu1 %v13602_v57 }
 0x2f3   : > { %11245 = vmatpush3.bf16.msra.mxu0 %v11744_v18 }
 0x2f4   : > { %11246 = vmatprep.subr.bf16.mxu0 %v13602_v57 }
 0x2f5   : > { %11227 = vmatpush3.bf16.msra.mxu1 %v11737_v61 }
 0x2f7   : > { %11247 = vmatpush3.bf16.msra.mxu0 %v11745_v28  ;;  %v1994_v28 = vld [vmem:[#allocation2 + $0xc9] ss:$8 sm:$0xf] }
 0x2f8   : > { %11229 = vmatmul.mubr.bf16.vlgmr.msra.gmra.mrb[28].mxu1 %v2091_v53 }
 0x2f9   : > { %3460 = vmatprep.mubr.bf16.mxu1 %v13601_v4 }
 0x3ab   : > { %v2335_v3 = vpop.f32.mrb[24].mxu1  ;;  %v2376_v6 = vpop.f32.mrb[32].mxu0 }
 0x3ac   : > { %v2337_v39 = vpop.f32.mrb[25].mxu1  ;;  %v2378_v45 = vpop.f32.mrb[33].mxu0 }
 0x3ad   : > { %v2428_v48 = vcombine.low %v2335_v3, %v2337_v39  ;;  %v2429_v8 = vcombine.high %v2335_v3, %v2337_v39  ;;  %v2430_v51 = vcombine.low %v2376_v6, %v2378_v45  ;;  %v2431_v11 = vcombine.high %v2376_v6, %v2378_v45  ;;  %v2339_v9 = vpop.f32.mrb[26].mxu1  ;;  %v2380_v54 = vpop.f32.mrb[34].mxu0  ;;  %v1975_v45 = vld [vmem:[#allocation2 + $0x1] ss:$8 sm:$0x10] }
 0x3ae   : > { %v2340_v12 = vpop.f32.mrb[27].mxu1  ;;  %v2381_v13 = vpop.f32.mrb[35].mxu0  ;;  %v1978_v9 = vld [vmem:[#allocation2 + $0x29] ss:$8 sm:$0xf] }
 0x3af   : > { %v2439_v10 = vrot.slane %v2428_v48, %v13993_v1  ;;  %v2446_v20 = vrot.slane %v2429_v8, %v13993_v1  ;;  %v2453_v21 = vrot.slane %v2430_v51, %v13993_v1  ;;  %v2460_v27 = vrot.slane %v2431_v11, %v13993_v1  ;;  %v1979_v48 = vld [vmem:[#allocation2 + $0x29] ss:$8 sm:$0x10]  ;;  %v1983_v51 = vld [vmem:[#allocation2 + $0x51] ss:$8 sm:$0x10] }
 0x3b0   : > { %v1974_v8 = vld [vmem:[#allocation2 + $0x1] ss:$8 sm:$0xf]  ;;  %v1980_v12 = vor.u32 %v1979_v48, %v1978_v9 }
 0x3b1   : > { %v2475_v29 = vcombine.low %v2439_v10, %v2453_v21  ;;  %v2476_v32 = vcombine.high %v2439_v10, %v2453_v21  ;;  %v2477_v35 = vcombine.low %v2446_v20, %v2460_v27  ;;  %v2478_v37 = vcombine.high %v2446_v20, %v2460_v27  ;;  %v1987_v54 = vld [vmem:[#allocation2 + $0x79] ss:$8 sm:$0x10]  ;;  %v1995_v21 = vld [vmem:[#allocation2 + $0xc9] ss:$8 sm:$0x10] }
 0x3b2   : > { %v1976_v11 = vor.u32 %v1975_v45, %v1974_v8  ;;  %v1982_v13 = vld [vmem:[#allocation2 + $0x51] ss:$8 sm:$0xf] }
 0x3b3   : > { %v2487_v50 = vrot.slane %v2475_v29, %v13993_v1  ;;  %v2494_v58 = vrot.slane %v2477_v35, %v13993_v1  ;;  %v2501_v0 = vrot.slane %v2476_v32, %v13993_v1  ;;  %v2508_v61 = vrot.slane %v2478_v37, %v13993_v1  ;;  %v1986_v20 = vld [vmem:[#allocation2 + $0x79] ss:$8 sm:$0xf] }
 0x3b4   : > { %v1984_v10 = vor.u32 %v1983_v51, %v1982_v13  ;;  %v1988_v29 = vor.u32 %v1987_v54, %v1986_v20  ;;  %v1990_v32 = vld [vmem:[#allocation2 + $0xa1] ss:$8 sm:$0xf] }
 0x3b5   : > { %v1999_v35 = vld [vmem:[#allocation2 + $0xf1] ss:$8 sm:$0x10]  ;;  %v1992_v18 = vor.u32 %v1991_v17, %v1990_v32 }
 0x3cb   : > { %v2417_v15 = vpop.f32.mrb[28].mxu1 }
 0x3cc   : > { %v2432_v23 = vcombine.high %v2417_v15, %v2417_v15  ;;  %v2467_v25 = vrot.slane %v2417_v15, %v13993_v1  ;;  %v11230_v31 = vpop.f32.mrb[29].mxu1  ;;  %v2003_v15 = vld [vmem:[#allocation2 + $0x119] ss:$8 sm:$0x10] }
 0x3cd   : > { %v2420_v43 = vpop.f32.mrb[30].mxu1  ;;  %v1998_v31 = vld [vmem:[#allocation2 + $0xf1] ss:$8 sm:$0xf] }
 0x3ce   : > { %v2474_v47 = vrot.slane %v2432_v23, %v13993_v1  ;;  %v2479_v49 = vcombine.high %v2467_v25, %v2467_v25  ;;  %v2515_v52 = vrot.slane %v2467_v25, %v13993_v1  ;;  %v11231_v53 = vpop.f32.mrb[31].mxu1  ;;  %v1996_v25 = vor.u32 %v1995_v21, %v1994_v28 }
 0x3d0   : > { %v2480_v33 = vcombine.high %v2474_v47, %v2474_v47  ;;  %v2522_v22 = vrot.slane %v2474_v47, %v13993_v1  ;;  %v2529_v5 = vrot.slane %v2479_v49, %v13993_v1  ;;  %v2537_v24 = vcombine.low %v2487_v50, %v2515_v52  ;;  %v2002_v49 = vld [vmem:[#allocation2 + $0x119] ss:$8 sm:$0xf] }
 0x3d1   : > { %v2538_v40 = vcombine.high %v2487_v50, %v2515_v52  ;;  %v2000_v47 = vor.u32 %v1999_v35, %v1998_v31  ;;  %v2004_v53 = vor.u32 %v2003_v15, %v2002_v49 }
 0x3d2   : > { %v2536_v19 = vrot.slane %v2480_v33, %v13993_v1  ;;  %v2539_v56 = vcombine.low %v2494_v58, %v2522_v22  ;;  %v2540_v59 = vcombine.high %v2494_v58, %v2522_v22  ;;  %v2541_v63 = vcombine.low %v2501_v0, %v2529_v5 }
 0x3d3   : > { %v2542_v3 = vcombine.high %v2501_v0, %v2529_v5  ;;  %v14252_v27 = vadd.f32 %v2537_v24, %v1976_v11  ;;  %v14256_v23 = vadd.f32 %v2538_v40, %v1984_v10 }
 0x3d4   : > { %v2543_v6 = vcombine.low %v2508_v61, %v2536_v19  ;;  %v2544_v39 = vcombine.high %v2508_v61, %v2536_v19  ;;  %v14254_v37 = vadd.f32 %v2541_v63, %v1980_v12  ;;  %v14260_v50 = vadd.f32 %v2539_v56, %v1992_v18 }
 0x3d5   : > { %v14258_v43 = vadd.f32 %v2542_v3, %v1988_v29  ;;  %v2769_v52 = vrot.slane %v14252_v27, 4  ;;  %v14266_v33 = vadd.f32 %v2540_v59, %v2000_v47  ;;  %v2771_v22 = vrot.slane %v14256_v23, 4 }
 0x3d6   : > { %v14263_v58 = vadd.f32 %v2543_v6, %v1996_v25  ;;  %v2770_v0 = vrot.slane %v14254_v37, 4  ;;  %v14269_v5 = vadd.f32 %v2544_v39, %v2004_v53  ;;  %v2773_v61 = vrot.slane %v14260_v50, 4 }
 0x3d7   : > { %v2772_v24 = vrot.slane %v14258_v43, 4  ;;  %v10486_v40 = vmul.f32 -1.442695, %v2769_v52  ;;  %v2775_v63 = vrot.slane %v14266_v33, 4  ;;  %v10488_v3 = vmul.f32 -1.442695, %v2771_v22 }
 0x3d8   : > { %v2774_v19 = vrot.slane %v14263_v58, 4  ;;  %v10487_v56 = vmul.f32 -1.442695, %v2770_v0  ;;  %v2776_v6 = vrot.slane %v14269_v5, 4  ;;  %v10490_v59 = vmul.f32 -1.442695, %v2773_v61 }
 0x3d9   : > { %v10489_v45 = vmul.f32 -1.442695, %v2772_v24  ;;  %12300 = vpow2.f32 %v10486_v40  ;;  %v10492_v39 = vmul.f32 -1.442695, %v2775_v63 }
 0x3da   : > { %12302 = vpow2.f32 %v10487_v56  ;;  %v10491_v48 = vmul.f32 -1.442695, %v2774_v19  ;;  %v10493_v8 = vmul.f32 -1.442695, %v2776_v6 }
 0x3db   : > { %12304 = vpow2.f32 %v10488_v3 }
 0x3dc   : > { %12306 = vpow2.f32 %v10489_v45 }
 0x3dd   : > { %12308 = vpow2.f32 %v10490_v59 }
 0x3de   : > { %12310 = vpow2.f32 %v10491_v48 }
 0x3df   : > { %12312 = vpow2.f32 %v10492_v39 }
 0x3e0   : > { %12314 = vpow2.f32 %v10493_v8 }
 0x3e3   : > { %v12301_v51 = vpop.eup %12300 }
 0x3e4   : > { %v12303_v11 = vpop.eup %12302  ;;  %v2809_v9 = vadd.f32 1.0, %v12301_v51 }
 0x3e5   : > { %v12305_v54 = vpop.eup %12304  ;;  %v2810_v12 = vadd.f32 1.0, %v12303_v11 }
 0x3e6   : > { %v12307_v13 = vpop.eup %12306  ;;  %v2811_v17 = vadd.f32 1.0, %v12305_v54  ;;  %12316 = vrcp.f32 %v2809_v9 }
 0x3e7   : > { %v12309_v10 = vpop.eup %12308  ;;  %v2812_v20 = vadd.f32 1.0, %v12307_v13  ;;  %12318 = vrcp.f32 %v2810_v12 }
 0x3e8   : > { %v12311_v21 = vpop.eup %12310  ;;  %v2813_v29 = vadd.f32 1.0, %v12309_v10  ;;  %12320 = vrcp.f32 %v2811_v17 }
 0x3e9   : > { %v12313_v32 = vpop.eup %12312  ;;  %v2814_v35 = vadd.f32 1.0, %v12311_v21  ;;  %12322 = vrcp.f32 %v2812_v20 }
 0x3ea   : > { %v12315_v18 = vpop.eup %12314  ;;  %v2815_v28 = vadd.f32 1.0, %v12313_v32  ;;  %12324 = vrcp.f32 %v2813_v29 }
 0x3eb   : > { %12326 = vrcp.f32 %v2814_v35  ;;  %v2816_v15 = vadd.f32 1.0, %v12315_v18 }
 0x3ec   : > { %12328 = vrcp.f32 %v2815_v28 }
 0x3ed   : > { %12330 = vrcp.f32 %v2816_v15 }
 0x3f0   : > { %v12317_v25 = vpop.eup %12316 }
 0x3f1   : > { %v12319_v31 = vpop.eup %12318  ;;  %v14277_v47 = vmul.f32 %v12317_v25, %v14039_v62 }
 0x3f2   : > { %v12321_v49 = vpop.eup %12320  ;;  %v14280_v52 = vmul.f32 %v12319_v31, %v14041_v2 }
 0x3f3   : > { %v12323_v53 = vpop.eup %12322  ;;  %v14283_v0 = vmul.f32 %v12321_v49, %v14043_v7  ;;  %v2865_v22 = vpack.c.bf16 %v14277_v47, %v14277_v47  ;;  %v11748_v49 = vld [vmem:[#allocation12 + $0x4] ss:$20 sps:$4 sm:$0xff]  }
 0x3f4   : > { %v12325_v24 = vpop.eup %12324  ;;  %v14288_v61 = vmul.f32 %v12323_v53, %v14047_v14  ;;  %v2866_v40 = vpack.c.bf16 %v14280_v52, %v14280_v52  ;;  %v11746_v53 = vld [vmem:[#allocation12] ss:$20 sps:$4 sm:$0xff]   ;;  %3428 = vmatprep.subr.bf16.mxu1 %v11748_v49  ;;  %v2617_v49 = vrot.slane %v14252_v27, 1 }
 0x3f5   : > { %v12327_v62 = vpop.eup %12326  ;;  %v14293_v19 = vmul.f32 %v12325_v24, %v14051_v16  ;;  %v2867_v2 = vpack.c.bf16 %v14283_v0, %v14283_v0  ;;  %v2897_v16 = vunpack.c.l.b16 %v2865_v22  ;;  %v11751_v22 = vld [vmem:[#allocation12 + $0xc] ss:$20 sps:$4 sm:$0xff]   ;;  %v11749_v24 = vld [vmem:[#allocation12 + $0x8] ss:$20 sps:$4 sm:$0xff]   ;;  %3429 = vmatpush1.bf16.msra.mxu1 %v11746_v53  ;;  %v10467_v53 = vmul.f32 -1.442695, %v14263_v58 }
 0x3f6   : > { %v12329_v56 = vpop.eup %12328  ;;  %v14298_v7 = vmul.f32 %v12327_v62, %v14055_v26  ;;  %v2868_v63 = vpack.c.bf16 %v14288_v61, %v14288_v61  ;;  %v2898_v3 = vunpack.c.l.b16 %v2866_v40  ;;  %3469 = vmatprep.subr.bf16.mxu0 %v11751_v22  ;;  %v11754_v40 = vld [vmem:[#allocation12 + $0x2c] ss:$20 sps:$4 sm:$0xff]   ;;  %v11752_v62 = vld [vmem:[#allocation12 + $0x28] ss:$20 sps:$4 sm:$0xff]   ;;  %v10468_v22 = vmul.f32 -1.442695, %v14266_v33 }
 0x3f7   : > { %v12331_v14 = vpop.eup %12330  ;;  %v14303_v6 = vmul.f32 %v12329_v56, %v14059_v30  ;;  %v2869_v45 = vpack.c.bf16 %v14293_v19, %v14293_v19  ;;  %v2899_v59 = vunpack.c.l.b16 %v2867_v2  ;;  %v11757_v2 = vld [vmem:[#allocation12 + $0x34] ss:$20 sps:$4 sm:$0xff]   ;;  %3430 = vmatprep.subr.bf16.mxu1 %v11754_v40  ;;  %v11755_v56 = vld [vmem:[#allocation12 + $0x30] ss:$20 sps:$4 sm:$0xff]   ;;  %v10469_v40 = vmul.f32 -1.442695, %v14269_v5 }
 0x3f8   : > { %v14308_v48 = vmul.f32 %v12331_v14, %v14063_v34  ;;  %v2870_v26 = vpack.c.bf16 %v14298_v7, %v14298_v7  ;;  %v2900_v39 = vunpack.c.l.b16 %v2868_v63  ;;  %v2905_v8 = vrot.slane %v2898_v3, 7  ;;  %v11760_v63 = vld [vmem:[#allocation12 + $0x54] ss:$20 sps:$4 sm:$0xff]   ;;  %v11758_v3 = vld [vmem:[#allocation12 + $0x50] ss:$20 sps:$4 sm:$0xff]  }
 0x3f9   : > { %v2871_v51 = vpack.c.bf16 %v14303_v6, %v14303_v6  ;;  %v2901_v11 = vunpack.c.l.b16 %v2869_v45  ;;  %v2907_v9 = vrot.slane %v2899_v59, 6  ;;  %3431 = vmatpush1.bf16.msra.mxu1 %v11752_v62  ;;  %v11761_v14 = vld [vmem:[#allocation12 + $0x58] ss:$20 sps:$4 sm:$0xff]   ;;  %v11763_v45 = vld [vmem:[#allocation12 + $0x5c] ss:$20 sps:$4 sm:$0xff]   ;;  %v2619_v62 = vrot.slane %v14256_v23, 1 }
 0x3fa   : > { %v2872_v30 = vpack.c.bf16 %v14308_v48, %v14308_v48  ;;  %v2902_v54 = vunpack.c.l.b16 %v2870_v26  ;;  %v2906_v12 = vsel %vm1772_vm3, %v2905_v8, %v2897_v16  ;;  %v2909_v13 = vrot.slane %v2900_v39, 5  ;;  %3432 = vmatprep.subr.bf16.mxu1 %v11760_v63  ;;  %v11766_v16 = vld [vmem:[#allocation12 + $0x7c] ss:$20 sps:$4 sm:$0xff]   ;;  %v11764_v59 = vld [vmem:[#allocation12 + $0x78] ss:$20 sps:$4 sm:$0xff]  }
 0x3fb   : > { %v2903_v17 = vunpack.c.l.b16 %v2871_v51  ;;  %v2908_v34 = vsel %vm1775_vm4, %v2907_v9, %v2906_v12  ;;  %v2911_v10 = vrot.slane %v2901_v11, 4  ;;  %v11769_v26 = vld [vmem:[#allocation12 + $0x84] ss:$20 sps:$4 sm:$0xff]   ;;  %v11767_v39 = vld [vmem:[#allocation12 + $0x80] ss:$20 sps:$4 sm:$0xff]   ;;  %v2621_v63 = vrot.slane %v14260_v50, 1 }
 0x3fc   : > { %v2904_v20 = vunpack.c.l.b16 %v2872_v30  ;;  %v2910_v21 = vsel %vm1778_vm5, %v2909_v13, %v2908_v34  ;;  %v2913_v29 = vrot.slane %v2902_v54, 3  ;;  %v11772_v8 = vld [vmem:[#allocation12 + $0xa4] ss:$20 sps:$4 sm:$0xff]   ;;  %v11775_v51 = vld [vmem:[#allocation12 + $0xac] ss:$20 sps:$4 sm:$0xff]  }
 0x3fd   : > { %v2912_v32 = vsel %vm1781_vm6, %v2911_v10, %v2910_v21  ;;  %v2915_v35 = vrot.slane %v2903_v17, 2  ;;  %3433 = vmatpush1.bf16.msra.mxu1 %v11758_v3  ;;  %v11770_v11 = vld [vmem:[#allocation12 + $0xa0] ss:$20 sps:$4 sm:$0xff]   ;;  %v11773_v9 = vld [vmem:[#allocation12 + $0xa8] ss:$20 sps:$4 sm:$0xff]  }
 0x3fe   : > { %v2914_v18 = vsel %vm1784_vm7, %v2913_v29, %v2912_v32  ;;  %v2917_v28 = vrot.slane %v2904_v20, 1  ;;  %3434 = vmatprep.subr.bf16.mxu1 %v11766_v16  ;;  %v11778_v30 = vld [vmem:[#allocation12 + $0xcc] ss:$20 sps:$4 sm:$0xff]   ;;  %v11781_v54 = vld [vmem:[#allocation12 + $0xd4] ss:$20 sps:$4 sm:$0xff]  }
 0x3ff   : > { %v2916_v15 = vsel %vm1787_vm8, %v2915_v35, %v2914_v18  ;;  %v11776_v12 = vld [vmem:[#allocation12 + $0xc8] ss:$20 sps:$4 sm:$0xff]   ;;  %v11779_v13 = vld [vmem:[#allocation12 + $0xd0] ss:$20 sps:$4 sm:$0xff]   ;;  %v11785_v20 = vld [vmem:[#allocation12 + $0xf8] ss:$20 sps:$4 sm:$0xff]  }
 0x400   : > { %v2918_v25 = vsel %vm1790_vm9, %v2917_v28, %v2916_v15  ;;  %v11784_v17 = vld [vmem:[#allocation12 + $0xf4] ss:$20 sps:$4 sm:$0xff]   ;;  %v11787_v34 = vld [vmem:[#allocation12 + $0xfc] ss:$20 sps:$4 sm:$0xff]   ;;  %v11793_v29 = vld [vmem:[#allocation12 + $0x124] ss:$20 sps:$4 sm:$0xff]  }
 0x401   : > { %v2919_v31 = vpack.c.b16 %v2918_v25, %v2918_v25  ;;  %3435 = vmatpush1.bf16.msra.mxu1 %v11764_v59  ;;  %v11782_v10 = vld [vmem:[#allocation12 + $0xf0] ss:$20 sps:$4 sm:$0xff]   ;;  %v11788_v32 = vld [vmem:[#allocation12 + $0x118] ss:$20 sps:$4 sm:$0xff]   ;;  %v11791_v35 = vld [vmem:[#allocation12 + $0x120] ss:$20 sps:$4 sm:$0xff]  }
 0x402   : > { %3436 = vmatprep.subr.bf16.mxu1 %v11772_v8  ;;  %v11790_v21 = vld [vmem:[#allocation12 + $0x11c] ss:$20 sps:$4 sm:$0xff]   ;;  %v10462_v18 = vmul.f32 -1.442695, %v14252_v27  ;;  %v10463_v28 = vmul.f32 -1.442695, %v14254_v37 }
 0x403   : > { %11249 = vmatmul.mubr.bf16.vlgmr.msra.gmra.mrb[36].mxu0 %v2919_v31  ;;  %v10464_v15 = vmul.f32 -1.442695, %v14256_v23  ;;  %v10465_v25 = vmul.f32 -1.442695, %v14258_v43  ;;  %v10466_v31 = vmul.f32 -1.442695, %v14260_v50 }
 0x404   : > { %3501 = vmatprep.mubr.bf16.mxu0 %v13601_v4  ;;  %3470 = vmatpush1.bf16.msra.mxu0 %v11749_v24  ;;  %12332 = vpow2.f32 %v10462_v18  ;;  %v2618_v24 = vrot.slane %v14254_v37, 1 }
 0x405   : > { %3471 = vmatprep.subr.bf16.mxu0 %v11757_v2  ;;  %3437 = vmatpush1.bf16.msra.mxu1 %v11770_v11  ;;  %12334 = vpow2.f32 %v10463_v28  ;;  %v2620_v2 = vrot.slane %v14258_v43, 1  ;;  %v2622_v11 = vrot.slane %v14263_v58, 1 }
 0x406   : > { %3438 = vmatprep.subr.bf16.mxu1 %v11778_v30  ;;  %12336 = vpow2.f32 %v10464_v15  ;;  %v10471_v3 = vmul.f32 -1.442695, %v2618_v24  ;;  %v2623_v30 = vrot.slane %v14266_v33, 1  ;;  %v2681_v15 = vrot.slane %v14252_v27, 2 }
 0x407   : > { %12338 = vpow2.f32 %v10465_v25  ;;  %v10473_v59 = vmul.f32 -1.442695, %v2620_v2 }
 0x408   : > { %3472 = vmatpush1.bf16.msra.mxu0 %v11755_v56  ;;  %12340 = vpow2.f32 %v10466_v31  ;;  %v10470_v56 = vmul.f32 -1.442695, %v2617_v49 }
 0x409   : > { %3473 = vmatprep.subr.bf16.mxu0 %v11763_v45  ;;  %3439 = vmatpush1.bf16.msra.mxu1 %v11776_v12  ;;  %12342 = vpow2.f32 %v10467_v53  ;;  %v10472_v45 = vmul.f32 -1.442695, %v2619_v62  ;;  %v2624_v12 = vrot.slane %v14269_v5, 1 }
 0x40a   : > { %3440 = vmatprep.subr.bf16.mxu1 %v11784_v17  ;;  %12344 = vpow2.f32 %v10468_v22 }
 0x40b   : > { %12346 = vpow2.f32 %v10469_v40  ;;  %v10478_v40 = vmul.f32 -1.442695, %v2681_v15 }
 0x40c   : > { %3474 = vmatpush1.bf16.msra.mxu0 %v11761_v14  ;;  %12348 = vpow2.f32 %v10470_v56  ;;  %v2682_v56 = vrot.slane %v14254_v37, 2 }
 0x40d   : > { %3475 = vmatprep.subr.bf16.mxu0 %v11769_v26  ;;  %3441 = vmatpush1.bf16.msra.mxu1 %v11782_v10  ;;  %12350 = vpow2.f32 %v10471_v3 }
 0x40e   : > { %3442 = vmatprep.subr.bf16.mxu1 %v11790_v21  ;;  %v12333_v14 = vpop.eup %12332  ;;  %12352 = vpow2.f32 %v10472_v45 }
 0x40f   : > { %v12335_v16 = vpop.eup %12334  ;;  %12354 = vpow2.f32 %v10473_v59  ;;  %v2684_v59 = vrot.slane %v14258_v43, 2 }
 0x410   : > { %3476 = vmatpush1.bf16.msra.mxu0 %v11767_v39  ;;  %v12337_v26 = vpop.eup %12336  ;;  %v10474_v39 = vmul.f32 -1.442695, %v2621_v63 }
 0x411   : > { %3477 = vmatprep.subr.bf16.mxu0 %v11775_v51  ;;  %3443 = vmatpush1.bf16.msra.mxu1 %v11788_v32  ;;  %v12339_v8 = vpop.eup %12338  ;;  %v2585_v51 = vadd.f32 1.0, %v12333_v14  ;;  %v2683_v14 = vrot.slane %v14256_v23, 2 }
 0x412   : > { %11252 = vmatprep.subr.bf16.mxu1 %v13602_v57  ;;  %12356 = vpow2.f32 %v10474_v39  ;;  %v12341_v17 = vpop.eup %12340 }
 0x413   : > { %12358 = vrcp.f32 %v2585_v51  ;;  %v12343_v10 = vpop.eup %12342 }
 0x414   : > { %3478 = vmatpush1.bf16.msra.mxu0 %v11773_v9  ;;  %v2586_v9 = vadd.f32 1.0, %v12335_v16  ;;  %v12345_v21 = vpop.eup %12344  ;;  %v2590_v28 = vadd.f32 1.0, %v12343_v10 }
 0x415   : > { %3479 = vmatprep.subr.bf16.mxu0 %v11781_v54  ;;  %v2587_v54 = vadd.f32 1.0, %v12337_v26  ;;  %v12347_v32 = vpop.eup %12346  ;;  %v2591_v25 = vadd.f32 1.0, %v12345_v21  ;;  %v2687_v21 = vrot.slane %v14266_v33, 2 }
 0x416   : > { %12360 = vrcp.f32 %v2586_v9  ;;  %v12349_v18 = vpop.eup %12348  ;;  %v2592_v49 = vadd.f32 1.0, %v12347_v32 }
 0x417   : > { %12362 = vrcp.f32 %v2587_v54  ;;  %v12351_v31 = vpop.eup %12350  ;;  %v2657_v22 = vadd.f32 1.0, %v12349_v18 }
 0x418   : > { %3480 = vmatpush1.bf16.msra.mxu0 %v11779_v13  ;;  %v2588_v13 = vadd.f32 1.0, %v12339_v8  ;;  %v12353_v53 = vpop.eup %12352  ;;  %v2658_v2 = vadd.f32 1.0, %v12351_v31  ;;  %v2685_v8 = vrot.slane %v14260_v50, 2 }
 0x419   : > { %3481 = vmatprep.subr.bf16.mxu0 %v11787_v34  ;;  %v10475_v34 = vmul.f32 -1.442695, %v2622_v11  ;;  %v12355_v24 = vpop.eup %12354  ;;  %v2659_v3 = vadd.f32 1.0, %v12353_v53  ;;  %v10479_v11 = vmul.f32 -1.442695, %v2682_v56 }
 0x41a   : > { %12364 = vrcp.f32 %v2588_v13  ;;  %v2660_v16 = vadd.f32 1.0, %v12355_v24 }
 0x41b   : > { %12366 = vpow2.f32 %v10475_v34  ;;  %v10482_v34 = vmul.f32 -1.442695, %v2685_v8 }
 0x41c   : > { %3482 = vmatpush1.bf16.msra.mxu0 %v11785_v20  ;;  %v10476_v20 = vmul.f32 -1.442695, %v2623_v30  ;;  %v12357_v62 = vpop.eup %12356  ;;  %v10480_v30 = vmul.f32 -1.442695, %v2683_v14 }
 0x41d   : > { %3483 = vmatprep.subr.bf16.mxu0 %v11793_v29  ;;  %v10477_v29 = vmul.f32 -1.442695, %v2624_v12  ;;  %v14344_v63 = vpop.eup %12358  ;;  %v2661_v39 = vadd.f32 1.0, %v12357_v62  ;;  %v10481_v12 = vmul.f32 -1.442695, %v2684_v59 }
 0x41e   : > { %12368 = vpow2.f32 %v10476_v20 }
 0x41f   : > { %12370 = vpow2.f32 %v10477_v29 }
 0x420   : > { %3484 = vmatpush1.bf16.msra.mxu0 %v11791_v35  ;;  %v2589_v35 = vadd.f32 1.0, %v12341_v17  ;;  %v14347_v45 = vpop.eup %12360  ;;  %v2686_v17 = vrot.slane %v14263_v58, 2 }
 0x421   : > { %11272 = vmatprep.subr.bf16.mxu0 %v13602_v57  ;;  %v14350_v26 = vpop.eup %12362 }
 0x422   : > { %12372 = vrcp.f32 %v2589_v35  ;;  %v2688_v35 = vrot.slane %v14269_v5, 2 }
 0x423   : > { %12374 = vrcp.f32 %v2590_v28 }
 0x424   : > { %12376 = vrcp.f32 %v2591_v25  ;;  %v14353_v51 = vpop.eup %12364  ;;  %v10483_v25 = vmul.f32 -1.442695, %v2686_v17 }
 0x425   : > { %12378 = vrcp.f32 %v2592_v49  ;;  %v12367_v9 = vpop.eup %12366  ;;  %v10484_v49 = vmul.f32 -1.442695, %v2687_v21 }
 0x426   : > { %12380 = vrcp.f32 %v2657_v22  ;;  %v2662_v20 = vadd.f32 1.0, %v12367_v9  ;;  %v10485_v22 = vmul.f32 -1.442695, %v2688_v35 }
 0x427   : > { %12382 = vpow2.f32 %v10478_v40  ;;  %v2745_v40 = vrot.slane %v14252_v27, 3  ;;  %v2749_v27 = vrot.slane %v14260_v50, 3 }
 0x428   : > { %12384 = vrcp.f32 %v2658_v2  ;;  %v12369_v54 = vpop.eup %12368  ;;  %v2746_v2 = vrot.slane %v14254_v37, 3  ;;  %v2750_v37 = vrot.slane %v14263_v58, 3 }
 0x429   : > { %12386 = vrcp.f32 %v2659_v3  ;;  %v12371_v13 = vpop.eup %12370  ;;  %v2663_v32 = vadd.f32 1.0, %v12369_v54  ;;  %v2751_v54 = vrot.slane %v14266_v33, 3 }
 0x42a   : > { %12388 = vrcp.f32 %v2660_v16  ;;  %v2664_v28 = vadd.f32 1.0, %v12371_v13  ;;  %v2747_v16 = vrot.slane %v14256_v23, 3 }
 0x42b   : > { %12390 = vrcp.f32 %v2661_v39  ;;  %v2748_v39 = vrot.slane %v14258_v43, 3 }
 0x42c   : > { %v14356_v10 = vpop.eup %12372  ;;  %12392 = vpow2.f32 %v10479_v11 }
 0x42d   : > { %v14359_v29 = vpop.eup %12374  ;;  %12394 = vpow2.f32 %v10480_v30 }
 0x42e   : > { %v14362_v18 = vpop.eup %12376  ;;  %12396 = vpow2.f32 %v10481_v12 }
 0x42f   : > { %v14364_v15 = vpop.eup %12378  ;;  %12398 = vpow2.f32 %v10482_v34  ;;  %v2752_v34 = vrot.slane %v14269_v5, 3 }
 0x430   : > { %v12381_v31 = vpop.eup %12380  ;;  %12400 = vrcp.f32 %v2662_v20 }
 0x431   : > { %v12383_v53 = vpop.eup %12382  ;;  %12402 = vrcp.f32 %v2663_v32 }
 0x432   : > { %v12385_v24 = vpop.eup %12384  ;;  %12404 = vrcp.f32 %v2664_v28  ;;  %v2721_v3 = vadd.f32 1.0, %v12383_v53 }
 0x433   : > { %v12387_v62 = vpop.eup %12386  ;;  %12406 = vpow2.f32 %v10483_v25 }
 0x434   : > { %v12389_v56 = vpop.eup %12388  ;;  %12408 = vpow2.f32 %v10484_v49 }
 0x435   : > { %v12391_v14 = vpop.eup %12390  ;;  %12410 = vpow2.f32 %v10485_v22 }
 0x436   : > { %v12393_v59 = vpop.eup %12392  ;;  %12412 = vtanh.f32 %v2745_v40  ;;  %v2841_v40 = vmul.f32 %v12381_v31, %v14162_v36 }
 0x437   : > { %v12395_v8 = vpop.eup %12394  ;;  %12414 = vtanh.f32 %v2746_v2  ;;  %v2722_v13 = vadd.f32 1.0, %v12393_v59  ;;  %v2842_v2 = vmul.f32 %v12385_v24, %v14165_v38  ;;  %v2844_v59 = vmul.f32 %v12389_v56, %v14172_v44 }
 0x438   : > { %v12397_v11 = vpop.eup %12396  ;;  %12416 = vrcp.f32 %v2721_v3  ;;  %v2723_v50 = vadd.f32 1.0, %v12395_v8 }
 0x439   : > { %v12399_v9 = vpop.eup %12398  ;;  %12418 = vtanh.f32 %v2747_v16  ;;  %v2724_v35 = vadd.f32 1.0, %v12397_v11  ;;  %v2843_v16 = vmul.f32 %v12387_v62, %v14167_v41 }
 0x43a   : > { %v12401_v30 = vpop.eup %12400  ;;  %12420 = vtanh.f32 %v2748_v39  ;;  %v2725_v33 = vadd.f32 1.0, %v12399_v9  ;;  %v2845_v39 = vmul.f32 %v12391_v14, %v14169_v42 }
 0x43b   : > { %v12403_v23 = vpop.eup %12402  ;;  %v2846_v11 = vmul.f32 %v12401_v30, %v14174_v55 }
 0x43c   : > { %v12405_v17 = vpop.eup %12404 }
 0x43d   : > { %v12407_v21 = vpop.eup %12406  ;;  %v2848_v9 = vmul.f32 %v12405_v17, %v14179_v60 }
 0x43e   : > { %v12409_v58 = vpop.eup %12408  ;;  %v2726_v49 = vadd.f32 1.0, %v12407_v21 }
 0x43f   : > { %v12411_v28 = vpop.eup %12410  ;;  %v2727_v5 = vadd.f32 1.0, %v12409_v58 }
 0x440   : > { %v12413_v25 = vpop.eup %12412  ;;  %v2728_v41 = vadd.f32 1.0, %v12411_v28 }
 0x441   : > { %v12415_v53 = vpop.eup %12414  ;;  %v2849_v36 = vmul.f32 %v12413_v25, %v14344_v63 }
 0x442   : > { %v14374_v22 = vpop.eup %12416  ;;  %v2850_v38 = vmul.f32 %v12415_v53, %v14347_v45 }
 0x443   : > { %v12419_v3 = vpop.eup %12418  ;;  %v2857_v56 = vadd.f32 %v2849_v36, %v2841_v40 }
 0x444   : > { %v12421_v8 = vpop.eup %12420  ;;  %v2851_v31 = vmul.f32 %v12419_v3, %v14350_v26  ;;  %v2858_v60 = vadd.f32 %v2850_v38, %v2842_v2 }
 0x445   : > { %v2852_v42 = vmul.f32 %v12421_v8, %v14353_v51 }
 0x446   : > { %v2859_v14 = vadd.f32 %v2851_v31, %v2843_v16 }
 0x447   : > { %v2860_v63 = vadd.f32 %v2852_v42, %v2844_v59 }
 0x4d6   : > { %v3003_v12 = vpop.f32.mrb[36].mxu0 }
 0x4d7   : > { %12422 = vtanh.f32 %v3003_v12  ;;  %v11250_v43 = vpop.f32.mrb[37].mxu0 }
 0x4d8   : > { %12424 = vtanh.f32 %v2749_v27  ;;  %v3006_v20 = vpop.f32.mrb[38].mxu0  ;;  %v2847_v27 = vmul.f32 %v12403_v23, %v14176_v46 }
 0x4d9   : > { %12426 = vtanh.f32 %v2750_v37  ;;  %v11251_v32 = vpop.f32.mrb[39].mxu0 }
 0x4da   : > { %12428 = vtanh.f32 %v2751_v54 }
 0x4db   : > { %12430 = vrcp.f32 %v2722_v13 }
 0x4dc   : > { %12432 = vtanh.f32 %v2752_v34 }
 0x4dd   : > { %12434 = vrcp.f32 %v2723_v50 }
 0x4de   : > { %12436 = vrcp.f32 %v2724_v35 }
 0x4df   : > { %12438 = vrcp.f32 %v2725_v33 }
 0x4e0   : > { %12440 = vrcp.f32 %v2726_v49 }
 0x4e1   : > { %v12423_v37 = vpop.eup %12422  ;;  %12442 = vrcp.f32 %v2727_v5 }
 0x4e2   : > { %v12425_v24 = vpop.eup %12424  ;;  %v3011_v44 = vcombine.high %v12423_v37, %v12423_v37  ;;  %v3018_v62 = vrot.slane %v12423_v37, %v13993_v1  ;;  %12444 = vrcp.f32 %v2728_v41 }
 0x4e3   : > { %v12427_v55 = vpop.eup %12426  ;;  %v2853_v46 = vmul.f32 %v12425_v24, %v14356_v10 }
 0x4e4   : > { %v12429_v30 = vpop.eup %12428  ;;  %v3025_v45 = vrot.slane %v3011_v44, %v13993_v1  ;;  %v3026_v54 = vcombine.high %v3018_v62, %v3018_v62  ;;  %v3034_v26 = vrot.slane %v3018_v62, %v13993_v1  ;;  %v2854_v23 = vmul.f32 %v12427_v55, %v14359_v29 }
 0x4e5   : > { %v12431_v12 = vpop.eup %12430  ;;  %v2855_v51 = vmul.f32 %v12429_v30, %v14362_v18  ;;  %v2861_v13 = vadd.f32 %v2853_v46, %v2845_v39 }
 0x4e6   : > { %v12433_v43 = vpop.eup %12432  ;;  %v3027_v17 = vcombine.high %v3025_v45, %v3025_v45  ;;  %v3041_v10 = vrot.slane %v3025_v45, %v13993_v1  ;;  %v3048_v34 = vrot.slane %v3026_v54, %v13993_v1  ;;  %v3056_v20 = vcombine.high %v3034_v26, %v3034_v26 }
 0x4e7   : > { %v12435_v21 = vpop.eup %12434  ;;  %v2856_v50 = vmul.f32 %v12433_v43, %v14364_v15  ;;  %v2862_v32 = vadd.f32 %v2854_v23, %v2846_v11  ;;  %v2863_v58 = vadd.f32 %v2855_v51, %v2847_v27  ;;  %v14397_v35 = vadd.f32 %v3034_v26, %v2857_v56 }
 0x4e8   : > { %v12437_v28 = vpop.eup %12436  ;;  %v3055_v29 = vrot.slane %v3027_v17, %v13993_v1  ;;  %v3057_v18 = vcombine.high %v3041_v10, %v3041_v10  ;;  %v3058_v33 = vcombine.high %v3048_v34, %v3048_v34  ;;  %v14400_v25 = vadd.f32 %v3048_v34, %v2858_v60 }
 0x4e9   : > { %v12439_v49 = vpop.eup %12438  ;;  %v2864_v53 = vadd.f32 %v2856_v50, %v2848_v9  ;;  %v14402_v5 = vadd.f32 %v3056_v20, %v2859_v14  ;;  %v14404_v40 = vadd.f32 %v3041_v10, %v2861_v13  ;;  %12446 = vtanh.f32 %v14397_v35 }
 0x4ea   : > { %v12441_v15 = vpop.eup %12440  ;;  %v3059_v2 = vcombine.high %v3055_v29, %v3055_v29  ;;  %v14407_v3 = vadd.f32 %v3058_v33, %v2860_v63  ;;  %v14409_v16 = vadd.f32 %v3055_v29, %v2862_v32  ;;  %v14411_v59 = vadd.f32 %v3057_v18, %v2863_v58 }
 0x4eb   : > { %12448 = vtanh.f32 %v14400_v25  ;;  %v12443_v39 = vpop.eup %12442 }
 0x4ec   : > { %v14414_v8 = vadd.f32 %v3059_v2, %v2864_v53  ;;  %12450 = vtanh.f32 %v14402_v5  ;;  %v12445_v11 = vpop.eup %12444 }
 0x4ed   : > { %12452 = vtanh.f32 %v14407_v3 }
 0x4ee   : > { %12454 = vtanh.f32 %v14404_v40 }
 0x4ef   : > { %12456 = vtanh.f32 %v14409_v16 }
 0x4f0   : > { %12458 = vtanh.f32 %v14411_v59 }
 0x4f1   : > { %12460 = vtanh.f32 %v14414_v8 }
 0x4f3   : > { %v12447_v27 = vpop.eup %12446 }
 0x4f4   : > { %v3084_v9 = vmul.f32 %v12447_v27, %v14374_v22 }
 0x4f5   : > { %v12449_v37 = vpop.eup %12448 }
 0x4f6   : > { %v12451_v36 = vpop.eup %12450  ;;  %v3085_v38 = vmul.f32 %v12449_v37, %v12431_v12  ;;  %3092 = vst [vmem:[#allocation3 + $0x1] sm:$0x1] %v3084_v9  ;;  %v3132_v24 = vpack.c.bf16 %v3084_v9, %v3084_v9  ;;  %v11794_v9 = vld [vmem:[#allocation12 + $0x10] ss:$20 sps:$4 sm:$0xff]  }
 0x4f7   : > { %v12453_v31 = vpop.eup %12452  ;;  %v3086_v41 = vmul.f32 %v12451_v36, %v12435_v21  ;;  %v11795_v36 = vld [vmem:[#allocation12 + $0x38] ss:$20 sps:$4 sm:$0xff]  }
 0x4f8   : > { %v12455_v42 = vpop.eup %12454  ;;  %v3087_v44 = vmul.f32 %v12453_v31, %v12437_v28  ;;  %3093 = vst [vmem:[#allocation3 + $0x9] sm:$0x1] %v3085_v38  ;;  %v3133_v62 = vpack.c.bf16 %v3085_v38, %v3085_v38  ;;  %v3196_v26 = vunpack.c.l.b16 %v3132_v24  ;;  %v11796_v38 = vld [vmem:[#allocation12 + $0x60] ss:$20 sps:$4 sm:$0xff]   ;;  %v11797_v31 = vld [vmem:[#allocation12 + $0x88] ss:$20 sps:$4 sm:$0xff]  }
 0x4f9   : > { %v12457_v55 = vpop.eup %12456  ;;  %v3088_v46 = vmul.f32 %v12455_v42, %v12439_v49  ;;  %3094 = vst [vmem:[#allocation3 + $0x11] sm:$0x1] %v3086_v41  ;;  %v3134_v56 = vpack.c.bf16 %v3086_v41, %v3086_v41  ;;  %v11798_v41 = vld [vmem:[#allocation12 + $0xb0] ss:$20 sps:$4 sm:$0xff]   ;;  %v11799_v24 = vld [vmem:[#allocation12 + $0xd8] ss:$20 sps:$4 sm:$0xff]  }
 0x4fa   : > { %v12459_v60 = vpop.eup %12458  ;;  %v3089_v14 = vmul.f32 %v12457_v55, %v12441_v15  ;;  %3095 = vst [vmem:[#allocation3 + $0x19] sm:$0x1] %v3087_v44  ;;  %v3135_v30 = vpack.c.bf16 %v3087_v44, %v3087_v44  ;;  %v3197_v22 = vunpack.c.l.b16 %v3133_v62  ;;  %v11800_v42 = vld [vmem:[#allocation12 + $0x100] ss:$20 sps:$4 sm:$0xff]   ;;  %v11801_v44 = vld [vmem:[#allocation12 + $0x128] ss:$20 sps:$4 sm:$0xff]  }
 0x4fb   : > { %v12461_v63 = vpop.eup %12460  ;;  %v3090_v45 = vmul.f32 %v12459_v60, %v12443_v39  ;;  %3096 = vst [vmem:[#allocation3 + $0x21] sm:$0x1] %v3088_v46  ;;  %v3136_v54 = vpack.c.bf16 %v3088_v46, %v3088_v46  ;;  %v3198_v12 = vunpack.c.l.b16 %v3134_v56  ;;  %v11802_v62 = vld [vmem:[%s15890_s5] sm:$0xff]   ;;  %v11803_v55 = vld [vmem:[%s15890_s5 + $0x8] sm:$0xff]   ;;  %v11804_v46 = vld [vmem:[%s15890_s5 + $0x10] sm:$0xff]  }
 0x4fc   : > { %v3091_v23 = vmul.f32 %v12461_v63, %v12445_v11  ;;  %3097 = vst [vmem:[#allocation3 + $0x29] sm:$0x1] %v3089_v14  ;;  %v3137_v51 = vpack.c.bf16 %v3089_v14, %v3089_v14  ;;  %v3199_v13 = vunpack.c.l.b16 %v3135_v30  ;;  %v3204_v43 = vrot.slane %v3197_v22, 7  ;;  %v11805_v56 = vld [vmem:[%s15890_s5 + $0x18] sm:$0xff]   ;;  %v11806_v60 = vld [vmem:[%s15890_s5 + $0x20] sm:$0xff]  }
 0x4fd   : > { %3098 = vst [vmem:[#allocation3 + $0x31] sm:$0x1] %v3090_v45  ;;  %v3138_v17 = vpack.c.bf16 %v3090_v45, %v3090_v45  ;;  %v3200_v10 = vunpack.c.l.b16 %v3136_v54  ;;  %v3206_v34 = vrot.slane %v3198_v12, 6 }
 0x4fe   : > { %3099 = vst [vmem:[#allocation3 + $0x39] sm:$0x1] %v3091_v23  ;;  %v3139_v20 = vpack.c.bf16 %v3091_v23, %v3091_v23  ;;  %v3201_v21 = vunpack.c.l.b16 %v3137_v51  ;;  %v3205_v50 = vsel %vm1772_vm3, %v3204_v43, %v3196_v26  ;;  %v3208_v32 = vrot.slane %v3199_v13, 5 }
 0x4ff   : > { %v3202_v58 = vunpack.c.l.b16 %v3138_v17  ;;  %v3207_v28 = vsel %vm1775_vm4, %v3206_v34, %v3205_v50  ;;  %v3210_v29 = vrot.slane %v3200_v10, 4  ;;  %v11807_v17 = vld [vmem:[%s15890_s5 + $0x28] sm:$0xff]  }
 0x500   : > { %v3203_v18 = vunpack.c.l.b16 %v3139_v20  ;;  %v3209_v33 = vsel %vm1778_vm5, %v3208_v32, %v3207_v28  ;;  %v3212_v49 = vrot.slane %v3201_v21, 3 }
 0x501   : > { %v3211_v53 = vsel %vm1781_vm6, %v3210_v29, %v3209_v33  ;;  %v3214_v15 = vrot.slane %v3202_v58, 2  ;;  %v11808_v29 = vld [vmem:[%s15890_s5 + $0x30] sm:$0xff]  }
 0x502   : > { %v3213_v2 = vsel %vm1784_vm7, %v3212_v49, %v3211_v53  ;;  %v3216_v39 = vrot.slane %v3203_v18, 1  ;;  %v11809_v18 = vld [vmem:[%s15890_s5 + $0x38] sm:$0xff]  }
 0x503   : > { %v3215_v11 = vsel %vm1787_vm8, %v3214_v15, %v3213_v2 }
 0x504   : > { %v3217_v27 = vsel %vm1790_vm9, %v3216_v39, %v3215_v11 }
 0x505   : > { %v3218_v37 = vpack.c.b16 %v3217_v27, %v3217_v27 }
 0x507   : > { %3461 = vmatmul.mubr.bf16.vlgmr.msra.gmra.mrb[32].mxu1 %v3218_v37  ;;  %3502 = vmatmul.mubr.bf16.vlgmr.msra.gmra.mrb[40].mxu0 %v3218_v37 }
 0x508   : > { %11253 = vmatpush3.bf16.msra.mxu1 %v11794_v9  ;;  %11268 = vmatprep.mubr.msk.bf16.mxu1 %vm13603_vm2, %v13602_v57 }
 0x509   : > { %11254 = vmatprep.subr.bf16.mxu1 %v13602_v57  ;;  %11288 = vmatprep.mubr.msk.bf16.mxu0 %vm13603_vm2, %v13602_v57 }
 0x50a   : > { %11273 = vmatpush3.bf16.msra.mxu0 %v11802_v62 }
 0x50b   : > { %11274 = vmatprep.subr.bf16.mxu0 %v13602_v57 }
 0x50c   : > { %11255 = vmatpush3.bf16.msra.mxu1 %v11795_v36 }
 0x50d   : > { %11256 = vmatprep.subr.bf16.mxu1 %v13602_v57 }
 0x50e   : > { %11275 = vmatpush3.bf16.msra.mxu0 %v11803_v55 }
 0x50f   : > { %11276 = vmatprep.subr.bf16.mxu0 %v13602_v57 }
 0x510   : > { %11257 = vmatpush3.bf16.msra.mxu1 %v11796_v38 }
 0x511   : > { %11258 = vmatprep.subr.bf16.mxu1 %v13602_v57 }
 0x512   : > { %11277 = vmatpush3.bf16.msra.mxu0 %v11804_v46 }
 0x513   : > { %11278 = vmatprep.subr.bf16.mxu0 %v13602_v57 }
 0x514   : > { %11259 = vmatpush3.bf16.msra.mxu1 %v11797_v31 }
 0x515   : > { %11260 = vmatprep.subr.bf16.mxu1 %v13602_v57 }
 0x516   : > { %11279 = vmatpush3.bf16.msra.mxu0 %v11805_v56 }
 0x517   : > { %11280 = vmatprep.subr.bf16.mxu0 %v13602_v57 }
 0x518   : > { %11261 = vmatpush3.bf16.msra.mxu1 %v11798_v41 }
 0x519   : > { %11262 = vmatprep.subr.bf16.mxu1 %v13602_v57 }
 0x51a   : > { %11281 = vmatpush3.bf16.msra.mxu0 %v11806_v60 }
 0x51b   : > { %11282 = vmatprep.subr.bf16.mxu0 %v13602_v57 }
 0x51c   : > { %11263 = vmatpush3.bf16.msra.mxu1 %v11799_v24 }
 0x51d   : > { %11264 = vmatprep.subr.bf16.mxu1 %v13602_v57 }
 0x51e   : > { %11283 = vmatpush3.bf16.msra.mxu0 %v11807_v17  ;;  %v3118_v17 = vld [vmem:[#allocation2 + $0xa2] ss:$8 sm:$0x10] }
 0x51f   : > { %11284 = vmatprep.subr.bf16.mxu0 %v13602_v57 }
 0x520   : > { %11265 = vmatpush3.bf16.msra.mxu1 %v11800_v42 }
 0x521   : > { %11266 = vmatprep.subr.bf16.mxu1 %v13602_v57 }
 0x522   : > { %11285 = vmatpush3.bf16.msra.mxu0 %v11808_v29 }
 0x523   : > { %11286 = vmatprep.subr.bf16.mxu0 %v13602_v57 }
 0x524   : > { %11267 = vmatpush3.bf16.msra.mxu1 %v11801_v44 }
 0x526   : > { %11287 = vmatpush3.bf16.msra.mxu0 %v11809_v18  ;;  %v3121_v18 = vld [vmem:[#allocation2 + $0xca] ss:$8 sm:$0xf] }
 0x527   : > { %11269 = vmatmul.mubr.bf16.vlgmr.msra.gmra.mrb[36].mxu1 %v3218_v37 }
 0x528   : > { %4587 = vmatprep.mubr.bf16.mxu1 %v13601_v4 }
 0x5da   : > { %v3462_v14 = vpop.f32.mrb[32].mxu1  ;;  %v3503_v30 = vpop.f32.mrb[40].mxu0 }
 0x5db   : > { %v3464_v22 = vpop.f32.mrb[33].mxu1  ;;  %v3505_v63 = vpop.f32.mrb[41].mxu0 }
 0x5dc   : > { %v3555_v45 = vcombine.low %v3462_v14, %v3464_v22  ;;  %v3556_v54 = vcombine.high %v3462_v14, %v3464_v22  ;;  %v3557_v26 = vcombine.low %v3503_v30, %v3505_v63  ;;  %v3558_v12 = vcombine.high %v3503_v30, %v3505_v63  ;;  %v3466_v23 = vpop.f32.mrb[34].mxu1  ;;  %v3507_v51 = vpop.f32.mrb[42].mxu0  ;;  %v3102_v63 = vld [vmem:[#allocation2 + $0x2] ss:$8 sm:$0x10] }
 0x5dd   : > { %v3467_v13 = vpop.f32.mrb[35].mxu1  ;;  %v3508_v43 = vpop.f32.mrb[43].mxu0  ;;  %v3105_v23 = vld [vmem:[#allocation2 + $0x2a] ss:$8 sm:$0xf] }
 0x5de   : > { %v3566_v10 = vrot.slane %v3555_v45, %v13993_v1  ;;  %v3573_v34 = vrot.slane %v3556_v54, %v13993_v1  ;;  %v3580_v20 = vrot.slane %v3557_v26, %v13993_v1  ;;  %v3587_v21 = vrot.slane %v3558_v12, %v13993_v1  ;;  %v3106_v45 = vld [vmem:[#allocation2 + $0x2a] ss:$8 sm:$0x10]  ;;  %v3110_v26 = vld [vmem:[#allocation2 + $0x52] ss:$8 sm:$0x10] }
 0x5df   : > { %v3101_v54 = vld [vmem:[#allocation2 + $0x2] ss:$8 sm:$0xf]  ;;  %v3107_v13 = vor.u32 %v3106_v45, %v3105_v23 }
 0x5e0   : > { %v3602_v50 = vcombine.low %v3566_v10, %v3580_v20  ;;  %v3603_v32 = vcombine.high %v3566_v10, %v3580_v20  ;;  %v3604_v58 = vcombine.low %v3573_v34, %v3587_v21  ;;  %v3605_v28 = vcombine.high %v3573_v34, %v3587_v21  ;;  %v3114_v51 = vld [vmem:[#allocation2 + $0x7a] ss:$8 sm:$0x10]  ;;  %v3122_v20 = vld [vmem:[#allocation2 + $0xca] ss:$8 sm:$0x10] }
 0x5e1   : > { %v3103_v12 = vor.u32 %v3102_v63, %v3101_v54  ;;  %v3109_v43 = vld [vmem:[#allocation2 + $0x52] ss:$8 sm:$0xf] }
 0x5e2   : > { %v3614_v27 = vrot.slane %v3602_v50, %v13993_v1  ;;  %v3621_v36 = vrot.slane %v3604_v58, %v13993_v1  ;;  %v3628_v38 = vrot.slane %v3603_v32, %v13993_v1  ;;  %v3635_v44 = vrot.slane %v3605_v28, %v13993_v1  ;;  %v3113_v34 = vld [vmem:[#allocation2 + $0x7a] ss:$8 sm:$0xf] }
 0x5e3   : > { %v3111_v10 = vor.u32 %v3110_v26, %v3109_v43  ;;  %v3115_v50 = vor.u32 %v3114_v51, %v3113_v34  ;;  %v3117_v32 = vld [vmem:[#allocation2 + $0xa2] ss:$8 sm:$0xf] }
 0x5e4   : > { %v3126_v58 = vld [vmem:[#allocation2 + $0xf2] ss:$8 sm:$0x10]  ;;  %v3119_v29 = vor.u32 %v3118_v17, %v3117_v32 }
 0x5fa   : > { %v3544_v33 = vpop.f32.mrb[36].mxu1 }
 0x5fb   : > { %v3559_v49 = vcombine.high %v3544_v33, %v3544_v33  ;;  %v3594_v53 = vrot.slane %v3544_v33, %v13993_v1  ;;  %v11270_v15 = vpop.f32.mrb[37].mxu1  ;;  %v3130_v33 = vld [vmem:[#allocation2 + $0x11a] ss:$8 sm:$0x10] }
 0x5fc   : > { %v3547_v2 = vpop.f32.mrb[38].mxu1  ;;  %v3125_v15 = vld [vmem:[#allocation2 + $0xf2] ss:$8 sm:$0xf] }
 0x5fd   : > { %v3601_v39 = vrot.slane %v3559_v49, %v13993_v1  ;;  %v3606_v11 = vcombine.high %v3594_v53, %v3594_v53  ;;  %v3642_v9 = vrot.slane %v3594_v53, %v13993_v1  ;;  %v11271_v37 = vpop.f32.mrb[39].mxu1  ;;  %v3123_v53 = vor.u32 %v3122_v20, %v3121_v18 }
 0x5ff   : > { %v3607_v31 = vcombine.high %v3601_v39, %v3601_v39  ;;  %v3649_v41 = vrot.slane %v3601_v39, %v13993_v1  ;;  %v3656_v24 = vrot.slane %v3606_v11, %v13993_v1  ;;  %v3664_v42 = vcombine.low %v3614_v27, %v3642_v9  ;;  %v3129_v11 = vld [vmem:[#allocation2 + $0x11a] ss:$8 sm:$0xf] }
 0x600   : > { %v3665_v62 = vcombine.high %v3614_v27, %v3642_v9  ;;  %v3127_v39 = vor.u32 %v3126_v58, %v3125_v15  ;;  %v3131_v37 = vor.u32 %v3130_v33, %v3129_v11 }
 0x601   : > { %v3663_v55 = vrot.slane %v3607_v31, %v13993_v1  ;;  %v3666_v46 = vcombine.low %v3621_v36, %v3649_v41  ;;  %v3667_v56 = vcombine.high %v3621_v36, %v3649_v41  ;;  %v3668_v60 = vcombine.low %v3628_v38, %v3656_v24 }
 0x602   : > { %v3669_v14 = vcombine.high %v3628_v38, %v3656_v24  ;;  %v14487_v21 = vadd.f32 %v3664_v42, %v3103_v12  ;;  %v14491_v49 = vadd.f32 %v3665_v62, %v3111_v10 }
 0x603   : > { %v3670_v30 = vcombine.low %v3635_v44, %v3663_v55  ;;  %v3671_v22 = vcombine.high %v3635_v44, %v3663_v55  ;;  %v14489_v28 = vadd.f32 %v3668_v60, %v3107_v13  ;;  %v14495_v27 = vadd.f32 %v3666_v46, %v3119_v29 }
 0x604   : > { %v14493_v2 = vadd.f32 %v3669_v14, %v3115_v50  ;;  %v3896_v9 = vrot.slane %v14487_v21, 4  ;;  %v14501_v31 = vadd.f32 %v3667_v56, %v3127_v39  ;;  %v3898_v41 = vrot.slane %v14491_v49, 4 }
 0x605   : > { %v14498_v36 = vadd.f32 %v3670_v30, %v3123_v53  ;;  %v3897_v38 = vrot.slane %v14489_v28, 4  ;;  %v14504_v24 = vadd.f32 %v3671_v22, %v3131_v37  ;;  %v3900_v44 = vrot.slane %v14495_v27, 4 }
 0x606   : > { %v3899_v42 = vrot.slane %v14493_v2, 4  ;;  %v10566_v62 = vmul.f32 -1.442695, %v3896_v9  ;;  %v3902_v60 = vrot.slane %v14501_v31, 4  ;;  %v10568_v14 = vmul.f32 -1.442695, %v3898_v41 }
 0x607   : > { %v3901_v55 = vrot.slane %v14498_v36, 4  ;;  %v10567_v46 = vmul.f32 -1.442695, %v3897_v38  ;;  %v3903_v30 = vrot.slane %v14504_v24, 4  ;;  %v10570_v56 = vmul.f32 -1.442695, %v3900_v44 }
 0x608   : > { %v10569_v63 = vmul.f32 -1.442695, %v3899_v42  ;;  %12462 = vpow2.f32 %v10566_v62  ;;  %v10572_v22 = vmul.f32 -1.442695, %v3902_v60 }
 0x609   : > { %12464 = vpow2.f32 %v10567_v46  ;;  %v10571_v45 = vmul.f32 -1.442695, %v3901_v55  ;;  %v10573_v54 = vmul.f32 -1.442695, %v3903_v30 }
 0x60a   : > { %12466 = vpow2.f32 %v10568_v14 }
 0x60b   : > { %12468 = vpow2.f32 %v10569_v63 }
 0x60c   : > { %12470 = vpow2.f32 %v10570_v56 }
 0x60d   : > { %12472 = vpow2.f32 %v10571_v45 }
 0x60e   : > { %12474 = vpow2.f32 %v10572_v22 }
 0x60f   : > { %12476 = vpow2.f32 %v10573_v54 }
 0x612   : > { %v12463_v26 = vpop.eup %12462 }
 0x613   : > { %v12465_v12 = vpop.eup %12464  ;;  %v3936_v23 = vadd.f32 1.0, %v12463_v26 }
 0x614   : > { %v12467_v51 = vpop.eup %12466  ;;  %v3937_v13 = vadd.f32 1.0, %v12465_v12 }
 0x615   : > { %v12469_v43 = vpop.eup %12468  ;;  %v3938_v17 = vadd.f32 1.0, %v12467_v51  ;;  %12478 = vrcp.f32 %v3936_v23 }
 0x616   : > { %v12471_v10 = vpop.eup %12470  ;;  %v3939_v34 = vadd.f32 1.0, %v12469_v43  ;;  %12480 = vrcp.f32 %v3937_v13 }
 0x617   : > { %v12473_v20 = vpop.eup %12472  ;;  %v3940_v50 = vadd.f32 1.0, %v12471_v10  ;;  %12482 = vrcp.f32 %v3938_v17 }
 0x618   : > { %v12475_v32 = vpop.eup %12474  ;;  %v3941_v58 = vadd.f32 1.0, %v12473_v20  ;;  %12484 = vrcp.f32 %v3939_v34 }
 0x619   : > { %v12477_v29 = vpop.eup %12476  ;;  %v3942_v18 = vadd.f32 1.0, %v12475_v32  ;;  %12486 = vrcp.f32 %v3940_v50 }
 0x61a   : > { %12488 = vrcp.f32 %v3941_v58  ;;  %v3943_v33 = vadd.f32 1.0, %v12477_v29 }
 0x61b   : > { %12490 = vrcp.f32 %v3942_v18 }
 0x61c   : > { %12492 = vrcp.f32 %v3943_v33 }
 0x61f   : > { %v12479_v53 = vpop.eup %12478 }
 0x620   : > { %v12481_v15 = vpop.eup %12480  ;;  %v14512_v39 = vmul.f32 %v12479_v53, %v14277_v47 }
 0x621   : > { %v12483_v11 = vpop.eup %12482  ;;  %v14515_v9 = vmul.f32 %v12481_v15, %v14280_v52 }
 0x622   : > { %v12485_v37 = vpop.eup %12484  ;;  %v14518_v38 = vmul.f32 %v12483_v11, %v14283_v0  ;;  %v3992_v41 = vpack.c.bf16 %v14512_v39, %v14512_v39  ;;  %v11812_v11 = vld [vmem:[#allocation12 + $0x4] ss:$20 sps:$4 sm:$0xff]  }
 0x623   : > { %v12487_v42 = vpop.eup %12486  ;;  %v14523_v44 = vmul.f32 %v12485_v37, %v14288_v61  ;;  %v3993_v62 = vpack.c.bf16 %v14515_v9, %v14515_v9  ;;  %v11810_v37 = vld [vmem:[#allocation12] ss:$20 sps:$4 sm:$0xff]   ;;  %4555 = vmatprep.subr.bf16.mxu1 %v11812_v11  ;;  %v3744_v11 = vrot.slane %v14487_v21, 1 }
 0x624   : > { %v12489_v47 = vpop.eup %12488  ;;  %v14528_v55 = vmul.f32 %v12487_v42, %v14293_v19  ;;  %v3994_v52 = vpack.c.bf16 %v14518_v38, %v14518_v38  ;;  %v4024_v19 = vunpack.c.l.b16 %v3992_v41  ;;  %v11815_v41 = vld [vmem:[#allocation12 + $0xc] ss:$20 sps:$4 sm:$0xff]   ;;  %v11813_v42 = vld [vmem:[#allocation12 + $0x8] ss:$20 sps:$4 sm:$0xff]   ;;  %4556 = vmatpush1.bf16.msra.mxu1 %v11810_v37  ;;  %v10547_v37 = vmul.f32 -1.442695, %v14498_v36 }
 0x625   : > { %v12491_v46 = vpop.eup %12490  ;;  %v14533_v0 = vmul.f32 %v12489_v47, %v14298_v7  ;;  %v3995_v60 = vpack.c.bf16 %v14523_v44, %v14523_v44  ;;  %v4025_v14 = vunpack.c.l.b16 %v3993_v62  ;;  %4596 = vmatprep.subr.bf16.mxu0 %v11815_v41  ;;  %v11818_v62 = vld [vmem:[#allocation12 + $0x2c] ss:$20 sps:$4 sm:$0xff]   ;;  %v11816_v47 = vld [vmem:[#allocation12 + $0x28] ss:$20 sps:$4 sm:$0xff]   ;;  %v10548_v41 = vmul.f32 -1.442695, %v14501_v31 }
 0x626   : > { %v12493_v61 = vpop.eup %12492  ;;  %v14538_v30 = vmul.f32 %v12491_v46, %v14303_v6  ;;  %v3996_v63 = vpack.c.bf16 %v14528_v55, %v14528_v55  ;;  %v4026_v56 = vunpack.c.l.b16 %v3994_v52  ;;  %v11821_v52 = vld [vmem:[#allocation12 + $0x34] ss:$20 sps:$4 sm:$0xff]   ;;  %4557 = vmatprep.subr.bf16.mxu1 %v11818_v62  ;;  %v11819_v46 = vld [vmem:[#allocation12 + $0x30] ss:$20 sps:$4 sm:$0xff]   ;;  %v10549_v62 = vmul.f32 -1.442695, %v14504_v24 }
 0x627   : > { %v14543_v45 = vmul.f32 %v12493_v61, %v14308_v48  ;;  %v3997_v7 = vpack.c.bf16 %v14533_v0, %v14533_v0  ;;  %v4027_v22 = vunpack.c.l.b16 %v3995_v60  ;;  %v4032_v54 = vrot.slane %v4025_v14, 7  ;;  %v11824_v60 = vld [vmem:[#allocation12 + $0x54] ss:$20 sps:$4 sm:$0xff]   ;;  %v11822_v14 = vld [vmem:[#allocation12 + $0x50] ss:$20 sps:$4 sm:$0xff]  }
 0x628   : > { %v3998_v26 = vpack.c.bf16 %v14538_v30, %v14538_v30  ;;  %v4028_v12 = vunpack.c.l.b16 %v3996_v63  ;;  %v4034_v23 = vrot.slane %v4026_v56, 6  ;;  %4558 = vmatpush1.bf16.msra.mxu1 %v11816_v47  ;;  %v11825_v61 = vld [vmem:[#allocation12 + $0x58] ss:$20 sps:$4 sm:$0xff]   ;;  %v11827_v63 = vld [vmem:[#allocation12 + $0x5c] ss:$20 sps:$4 sm:$0xff]   ;;  %v3746_v47 = vrot.slane %v14491_v49, 1 }
 0x629   : > { %v3999_v6 = vpack.c.bf16 %v14543_v45, %v14543_v45  ;;  %v4029_v51 = vunpack.c.l.b16 %v3997_v7  ;;  %v4033_v13 = vsel %vm1772_vm3, %v4032_v54, %v4024_v19  ;;  %v4036_v43 = vrot.slane %v4027_v22, 5  ;;  %4559 = vmatprep.subr.bf16.mxu1 %v11824_v60  ;;  %v11830_v19 = vld [vmem:[#allocation12 + $0x7c] ss:$20 sps:$4 sm:$0xff]   ;;  %v11828_v56 = vld [vmem:[#allocation12 + $0x78] ss:$20 sps:$4 sm:$0xff]  }
 0x62a   : > { %v4030_v17 = vunpack.c.l.b16 %v3998_v26  ;;  %v4035_v48 = vsel %vm1775_vm4, %v4034_v23, %v4033_v13  ;;  %v4038_v10 = vrot.slane %v4028_v12, 4  ;;  %v11833_v7 = vld [vmem:[#allocation12 + $0x84] ss:$20 sps:$4 sm:$0xff]   ;;  %v11831_v22 = vld [vmem:[#allocation12 + $0x80] ss:$20 sps:$4 sm:$0xff]   ;;  %v3748_v60 = vrot.slane %v14495_v27, 1 }
 0x62b   : > { %v4031_v34 = vunpack.c.l.b16 %v3999_v6  ;;  %v4037_v20 = vsel %vm1778_vm5, %v4036_v43, %v4035_v48  ;;  %v4040_v50 = vrot.slane %v4029_v51, 3  ;;  %v11836_v54 = vld [vmem:[#allocation12 + $0xa4] ss:$20 sps:$4 sm:$0xff]   ;;  %v11839_v26 = vld [vmem:[#allocation12 + $0xac] ss:$20 sps:$4 sm:$0xff]  }
 0x62c   : > { %v4039_v32 = vsel %vm1781_vm6, %v4038_v10, %v4037_v20  ;;  %v4042_v58 = vrot.slane %v4030_v17, 2  ;;  %4560 = vmatpush1.bf16.msra.mxu1 %v11822_v14  ;;  %v11834_v12 = vld [vmem:[#allocation12 + $0xa0] ss:$20 sps:$4 sm:$0xff]   ;;  %v11837_v23 = vld [vmem:[#allocation12 + $0xa8] ss:$20 sps:$4 sm:$0xff]  }
 0x62d   : > { %v4041_v29 = vsel %vm1784_vm7, %v4040_v50, %v4039_v32  ;;  %v4044_v18 = vrot.slane %v4031_v34, 1  ;;  %4561 = vmatprep.subr.bf16.mxu1 %v11830_v19  ;;  %v11842_v6 = vld [vmem:[#allocation12 + $0xcc] ss:$20 sps:$4 sm:$0xff]   ;;  %v11845_v51 = vld [vmem:[#allocation12 + $0xd4] ss:$20 sps:$4 sm:$0xff]  }
 0x62e   : > { %v4043_v33 = vsel %vm1787_vm8, %v4042_v58, %v4041_v29  ;;  %v11840_v13 = vld [vmem:[#allocation12 + $0xc8] ss:$20 sps:$4 sm:$0xff]   ;;  %v11843_v43 = vld [vmem:[#allocation12 + $0xd0] ss:$20 sps:$4 sm:$0xff]   ;;  %v11849_v34 = vld [vmem:[#allocation12 + $0xf8] ss:$20 sps:$4 sm:$0xff]  }
 0x62f   : > { %v4045_v53 = vsel %vm1790_vm9, %v4044_v18, %v4043_v33  ;;  %v11848_v17 = vld [vmem:[#allocation12 + $0xf4] ss:$20 sps:$4 sm:$0xff]   ;;  %v11851_v48 = vld [vmem:[#allocation12 + $0xfc] ss:$20 sps:$4 sm:$0xff]   ;;  %v11857_v50 = vld [vmem:[#allocation12 + $0x124] ss:$20 sps:$4 sm:$0xff]  }
 0x630   : > { %v4046_v15 = vpack.c.b16 %v4045_v53, %v4045_v53  ;;  %4562 = vmatpush1.bf16.msra.mxu1 %v11828_v56  ;;  %v11846_v10 = vld [vmem:[#allocation12 + $0xf0] ss:$20 sps:$4 sm:$0xff]   ;;  %v11852_v32 = vld [vmem:[#allocation12 + $0x118] ss:$20 sps:$4 sm:$0xff]   ;;  %v11855_v58 = vld [vmem:[#allocation12 + $0x120] ss:$20 sps:$4 sm:$0xff]  }
 0x631   : > { %4563 = vmatprep.subr.bf16.mxu1 %v11836_v54  ;;  %v11854_v20 = vld [vmem:[#allocation12 + $0x11c] ss:$20 sps:$4 sm:$0xff]   ;;  %v10542_v29 = vmul.f32 -1.442695, %v14487_v21  ;;  %v10543_v18 = vmul.f32 -1.442695, %v14489_v28 }
 0x632   : > { %11289 = vmatmul.mubr.bf16.vlgmr.msra.gmra.mrb[44].mxu0 %v4046_v15  ;;  %v10544_v33 = vmul.f32 -1.442695, %v14491_v49  ;;  %v10545_v53 = vmul.f32 -1.442695, %v14493_v2  ;;  %v10546_v15 = vmul.f32 -1.442695, %v14495_v27 }
 0x633   : > { %4628 = vmatprep.mubr.bf16.mxu0 %v13601_v4  ;;  %4597 = vmatpush1.bf16.msra.mxu0 %v11813_v42  ;;  %12494 = vpow2.f32 %v10542_v29  ;;  %v3745_v42 = vrot.slane %v14489_v28, 1 }
 0x634   : > { %4598 = vmatprep.subr.bf16.mxu0 %v11821_v52  ;;  %4564 = vmatpush1.bf16.msra.mxu1 %v11834_v12  ;;  %12496 = vpow2.f32 %v10543_v18  ;;  %v3747_v52 = vrot.slane %v14493_v2, 1  ;;  %v3749_v12 = vrot.slane %v14498_v36, 1 }
 0x635   : > { %4565 = vmatprep.subr.bf16.mxu1 %v11842_v6  ;;  %12498 = vpow2.f32 %v10544_v33  ;;  %v10551_v14 = vmul.f32 -1.442695, %v3745_v42  ;;  %v3750_v6 = vrot.slane %v14501_v31, 1  ;;  %v3808_v33 = vrot.slane %v14487_v21, 2 }
 0x636   : > { %12500 = vpow2.f32 %v10545_v53  ;;  %v10553_v56 = vmul.f32 -1.442695, %v3747_v52 }
 0x637   : > { %4599 = vmatpush1.bf16.msra.mxu0 %v11819_v46  ;;  %12502 = vpow2.f32 %v10546_v15  ;;  %v10550_v46 = vmul.f32 -1.442695, %v3744_v11 }
 0x638   : > { %4600 = vmatprep.subr.bf16.mxu0 %v11827_v63  ;;  %4566 = vmatpush1.bf16.msra.mxu1 %v11840_v13  ;;  %12504 = vpow2.f32 %v10547_v37  ;;  %v10552_v63 = vmul.f32 -1.442695, %v3746_v47  ;;  %v3751_v13 = vrot.slane %v14504_v24, 1 }
 0x639   : > { %4567 = vmatprep.subr.bf16.mxu1 %v11848_v17  ;;  %12506 = vpow2.f32 %v10548_v41 }
 0x63a   : > { %12508 = vpow2.f32 %v10549_v62  ;;  %v10558_v62 = vmul.f32 -1.442695, %v3808_v33 }
 0x63b   : > { %4601 = vmatpush1.bf16.msra.mxu0 %v11825_v61  ;;  %12510 = vpow2.f32 %v10550_v46  ;;  %v3809_v46 = vrot.slane %v14489_v28, 2 }
 0x63c   : > { %4602 = vmatprep.subr.bf16.mxu0 %v11833_v7  ;;  %4568 = vmatpush1.bf16.msra.mxu1 %v11846_v10  ;;  %12512 = vpow2.f32 %v10551_v14 }
 0x63d   : > { %4569 = vmatprep.subr.bf16.mxu1 %v11854_v20  ;;  %v12495_v61 = vpop.eup %12494  ;;  %12514 = vpow2.f32 %v10552_v63 }
 0x63e   : > { %v12497_v19 = vpop.eup %12496  ;;  %12516 = vpow2.f32 %v10553_v56  ;;  %v3811_v56 = vrot.slane %v14493_v2, 2 }
 0x63f   : > { %4603 = vmatpush1.bf16.msra.mxu0 %v11831_v22  ;;  %v12499_v7 = vpop.eup %12498  ;;  %v10554_v22 = vmul.f32 -1.442695, %v3748_v60 }
 0x640   : > { %4604 = vmatprep.subr.bf16.mxu0 %v11839_v26  ;;  %4570 = vmatpush1.bf16.msra.mxu1 %v11852_v32  ;;  %v12501_v54 = vpop.eup %12500  ;;  %v3712_v26 = vadd.f32 1.0, %v12495_v61  ;;  %v3810_v61 = vrot.slane %v14491_v49, 2 }
 0x641   : > { %11292 = vmatprep.subr.bf16.mxu1 %v13602_v57  ;;  %12518 = vpow2.f32 %v10554_v22  ;;  %v12503_v17 = vpop.eup %12502 }
 0x642   : > { %12520 = vrcp.f32 %v3712_v26  ;;  %v12505_v10 = vpop.eup %12504 }
 0x643   : > { %4605 = vmatpush1.bf16.msra.mxu0 %v11837_v23  ;;  %v3713_v23 = vadd.f32 1.0, %v12497_v19  ;;  %v12507_v20 = vpop.eup %12506  ;;  %v3717_v18 = vadd.f32 1.0, %v12505_v10 }
 0x644   : > { %4606 = vmatprep.subr.bf16.mxu0 %v11845_v51  ;;  %v3714_v51 = vadd.f32 1.0, %v12499_v7  ;;  %v12509_v32 = vpop.eup %12508  ;;  %v3718_v53 = vadd.f32 1.0, %v12507_v20  ;;  %v3814_v20 = vrot.slane %v14501_v31, 2 }
 0x645   : > { %12522 = vrcp.f32 %v3713_v23  ;;  %v12511_v29 = vpop.eup %12510  ;;  %v3719_v11 = vadd.f32 1.0, %v12509_v32 }
 0x646   : > { %12524 = vrcp.f32 %v3714_v51  ;;  %v12513_v15 = vpop.eup %12512  ;;  %v3784_v41 = vadd.f32 1.0, %v12511_v29 }
 0x647   : > { %4607 = vmatpush1.bf16.msra.mxu0 %v11843_v43  ;;  %v3715_v43 = vadd.f32 1.0, %v12501_v54  ;;  %v12515_v37 = vpop.eup %12514  ;;  %v3785_v52 = vadd.f32 1.0, %v12513_v15  ;;  %v3812_v54 = vrot.slane %v14495_v27, 2 }
 0x648   : > { %4608 = vmatprep.subr.bf16.mxu0 %v11851_v48  ;;  %v10555_v48 = vmul.f32 -1.442695, %v3749_v12  ;;  %v12517_v42 = vpop.eup %12516  ;;  %v3786_v14 = vadd.f32 1.0, %v12515_v37  ;;  %v10559_v12 = vmul.f32 -1.442695, %v3809_v46 }
 0x649   : > { %12526 = vrcp.f32 %v3715_v43  ;;  %v3787_v19 = vadd.f32 1.0, %v12517_v42 }
 0x64a   : > { %12528 = vpow2.f32 %v10555_v48  ;;  %v10562_v48 = vmul.f32 -1.442695, %v3812_v54 }
 0x64b   : > { %4609 = vmatpush1.bf16.msra.mxu0 %v11849_v34  ;;  %v10556_v34 = vmul.f32 -1.442695, %v3750_v6  ;;  %v12519_v47 = vpop.eup %12518  ;;  %v10560_v6 = vmul.f32 -1.442695, %v3810_v61 }
 0x64c   : > { %4610 = vmatprep.subr.bf16.mxu0 %v11857_v50  ;;  %v10557_v50 = vmul.f32 -1.442695, %v3751_v13  ;;  %v14579_v60 = vpop.eup %12520  ;;  %v3788_v22 = vadd.f32 1.0, %v12519_v47  ;;  %v10561_v13 = vmul.f32 -1.442695, %v3811_v56 }
 0x64d   : > { %12530 = vpow2.f32 %v10556_v34 }
 0x64e   : > { %12532 = vpow2.f32 %v10557_v50 }
 0x64f   : > { %4611 = vmatpush1.bf16.msra.mxu0 %v11855_v58  ;;  %v3716_v58 = vadd.f32 1.0, %v12503_v17  ;;  %v14582_v63 = vpop.eup %12522  ;;  %v3813_v17 = vrot.slane %v14498_v36, 2 }
 0x650   : > { %11312 = vmatprep.subr.bf16.mxu0 %v13602_v57  ;;  %v14585_v7 = vpop.eup %12524 }
 0x651   : > { %12534 = vrcp.f32 %v3716_v58  ;;  %v3815_v58 = vrot.slane %v14504_v24, 2 }
 0x652   : > { %12536 = vrcp.f32 %v3717_v18 }
 0x653   : > { %12538 = vrcp.f32 %v3718_v53  ;;  %v14588_v26 = vpop.eup %12526  ;;  %v10563_v53 = vmul.f32 -1.442695, %v3813_v17 }
 0x654   : > { %12540 = vrcp.f32 %v3719_v11  ;;  %v12529_v23 = vpop.eup %12528  ;;  %v10564_v11 = vmul.f32 -1.442695, %v3814_v20 }
 0x655   : > { %12542 = vrcp.f32 %v3784_v41  ;;  %v3789_v34 = vadd.f32 1.0, %v12529_v23  ;;  %v10565_v41 = vmul.f32 -1.442695, %v3815_v58 }
 0x656   : > { %12544 = vpow2.f32 %v10558_v62  ;;  %v3872_v62 = vrot.slane %v14487_v21, 3  ;;  %v3876_v21 = vrot.slane %v14495_v27, 3 }
 0x657   : > { %12546 = vrcp.f32 %v3785_v52  ;;  %v12531_v51 = vpop.eup %12530  ;;  %v3873_v52 = vrot.slane %v14489_v28, 3  ;;  %v3877_v28 = vrot.slane %v14498_v36, 3 }
 0x658   : > { %12548 = vrcp.f32 %v3786_v14  ;;  %v12533_v43 = vpop.eup %12532  ;;  %v3790_v32 = vadd.f32 1.0, %v12531_v51  ;;  %v3878_v51 = vrot.slane %v14501_v31, 3 }
 0x659   : > { %12550 = vrcp.f32 %v3787_v19  ;;  %v3791_v18 = vadd.f32 1.0, %v12533_v43  ;;  %v3874_v19 = vrot.slane %v14491_v49, 3 }
 0x65a   : > { %12552 = vrcp.f32 %v3788_v22  ;;  %v3875_v22 = vrot.slane %v14493_v2, 3 }
 0x65b   : > { %v14591_v10 = vpop.eup %12534  ;;  %12554 = vpow2.f32 %v10559_v12 }
 0x65c   : > { %v14594_v50 = vpop.eup %12536  ;;  %12556 = vpow2.f32 %v10560_v6 }
 0x65d   : > { %v14597_v29 = vpop.eup %12538  ;;  %12558 = vpow2.f32 %v10561_v13 }
 0x65e   : > { %v14599_v33 = vpop.eup %12540  ;;  %12560 = vpow2.f32 %v10562_v48  ;;  %v3879_v48 = vrot.slane %v14504_v24, 3 }
 0x65f   : > { %v12543_v15 = vpop.eup %12542  ;;  %12562 = vrcp.f32 %v3789_v34 }
 0x660   : > { %v12545_v37 = vpop.eup %12544  ;;  %12564 = vrcp.f32 %v3790_v32 }
 0x661   : > { %v12547_v42 = vpop.eup %12546  ;;  %12566 = vrcp.f32 %v3791_v18  ;;  %v3848_v14 = vadd.f32 1.0, %v12545_v37 }
 0x662   : > { %v12549_v47 = vpop.eup %12548  ;;  %12568 = vpow2.f32 %v10563_v53 }
 0x663   : > { %v12551_v46 = vpop.eup %12550  ;;  %12570 = vpow2.f32 %v10564_v11 }
 0x664   : > { %v12553_v61 = vpop.eup %12552  ;;  %12572 = vpow2.f32 %v10565_v41 }
 0x665   : > { %v12555_v56 = vpop.eup %12554  ;;  %12574 = vtanh.f32 %v3872_v62  ;;  %v3968_v62 = vmul.f32 %v12543_v15, %v14397_v35 }
 0x666   : > { %v12557_v54 = vpop.eup %12556  ;;  %12576 = vtanh.f32 %v3873_v52  ;;  %v3849_v43 = vadd.f32 1.0, %v12555_v56  ;;  %v3969_v52 = vmul.f32 %v12547_v42, %v14400_v25  ;;  %v3971_v56 = vmul.f32 %v12551_v46, %v14407_v3 }
 0x667   : > { %v12559_v12 = vpop.eup %12558  ;;  %12578 = vrcp.f32 %v3848_v14  ;;  %v3850_v27 = vadd.f32 1.0, %v12557_v54 }
 0x668   : > { %v12561_v23 = vpop.eup %12560  ;;  %12580 = vtanh.f32 %v3874_v19  ;;  %v3851_v58 = vadd.f32 1.0, %v12559_v12  ;;  %v3970_v19 = vmul.f32 %v12549_v47, %v14402_v5 }
 0x669   : > { %v12563_v6 = vpop.eup %12562  ;;  %12582 = vtanh.f32 %v3875_v22  ;;  %v3852_v31 = vadd.f32 1.0, %v12561_v23  ;;  %v3972_v22 = vmul.f32 %v12553_v61, %v14404_v40 }
 0x66a   : > { %v12565_v49 = vpop.eup %12564  ;;  %v3973_v12 = vmul.f32 %v12563_v6, %v14409_v16 }
 0x66b   : > { %v12567_v17 = vpop.eup %12566 }
 0x66c   : > { %v12569_v20 = vpop.eup %12568  ;;  %v3975_v23 = vmul.f32 %v12567_v17, %v14414_v8 }
 0x66d   : > { %v12571_v36 = vpop.eup %12570  ;;  %v3853_v11 = vadd.f32 1.0, %v12569_v20 }
 0x66e   : > { %v12573_v18 = vpop.eup %12572  ;;  %v3854_v24 = vadd.f32 1.0, %v12571_v36 }
 0x66f   : > { %v12575_v53 = vpop.eup %12574  ;;  %v3855_v5 = vadd.f32 1.0, %v12573_v18 }
 0x670   : > { %v12577_v37 = vpop.eup %12576  ;;  %v3976_v35 = vmul.f32 %v12575_v53, %v14579_v60 }
 0x671   : > { %v14609_v41 = vpop.eup %12578  ;;  %v3977_v25 = vmul.f32 %v12577_v37, %v14582_v63 }
 0x672   : > { %v12581_v14 = vpop.eup %12580  ;;  %v3984_v46 = vadd.f32 %v3976_v35, %v3968_v62 }
 0x673   : > { %v12583_v54 = vpop.eup %12582  ;;  %v3978_v15 = vmul.f32 %v12581_v14, %v14585_v7  ;;  %v3985_v8 = vadd.f32 %v3977_v25, %v3969_v52 }
 0x674   : > { %v3979_v40 = vmul.f32 %v12583_v54, %v14588_v26 }
 0x675   : > { %v3986_v61 = vadd.f32 %v3978_v15, %v3970_v19 }
 0x676   : > { %v3987_v60 = vadd.f32 %v3979_v40, %v3971_v56 }
 0x705   : > { %v4130_v13 = vpop.f32.mrb[44].mxu0 }
 0x706   : > { %12584 = vtanh.f32 %v4130_v13  ;;  %v11290_v2 = vpop.f32.mrb[45].mxu0 }
 0x707   : > { %12586 = vtanh.f32 %v3876_v21  ;;  %v4133_v34 = vpop.f32.mrb[46].mxu0  ;;  %v3974_v21 = vmul.f32 %v12565_v49, %v14411_v59 }
 0x708   : > { %12588 = vtanh.f32 %v3877_v28  ;;  %v11291_v32 = vpop.f32.mrb[47].mxu0 }
 0x709   : > { %12590 = vtanh.f32 %v3878_v51 }
 0x70a   : > { %12592 = vrcp.f32 %v3849_v43 }
 0x70b   : > { %12594 = vtanh.f32 %v3879_v48 }
 0x70c   : > { %12596 = vrcp.f32 %v3850_v27 }
 0x70d   : > { %12598 = vrcp.f32 %v3851_v58 }
 0x70e   : > { %12600 = vrcp.f32 %v3852_v31 }
 0x70f   : > { %12602 = vrcp.f32 %v3853_v11 }
 0x710   : > { %v12585_v28 = vpop.eup %12584  ;;  %12604 = vrcp.f32 %v3854_v24 }
 0x711   : > { %v12587_v42 = vpop.eup %12586  ;;  %v4138_v3 = vcombine.high %v12585_v28, %v12585_v28  ;;  %v4145_v47 = vrot.slane %v12585_v28, %v13993_v1  ;;  %12606 = vrcp.f32 %v3855_v5 }
 0x712   : > { %v12589_v16 = vpop.eup %12588  ;;  %v3980_v59 = vmul.f32 %v12587_v42, %v14591_v10 }
 0x713   : > { %v12591_v6 = vpop.eup %12590  ;;  %v4152_v63 = vrot.slane %v4138_v3, %v13993_v1  ;;  %v4153_v51 = vcombine.high %v4145_v47, %v4145_v47  ;;  %v4161_v7 = vrot.slane %v4145_v47, %v13993_v1  ;;  %v3981_v49 = vmul.f32 %v12589_v16, %v14594_v50 }
 0x714   : > { %v12593_v13 = vpop.eup %12592  ;;  %v3982_v26 = vmul.f32 %v12591_v6, %v14597_v29  ;;  %v3988_v43 = vadd.f32 %v3980_v59, %v3972_v22 }
 0x715   : > { %v12595_v2 = vpop.eup %12594  ;;  %v4154_v17 = vcombine.high %v4152_v63, %v4152_v63  ;;  %v4168_v10 = vrot.slane %v4152_v63, %v13993_v1  ;;  %v4175_v48 = vrot.slane %v4153_v51, %v13993_v1  ;;  %v4183_v34 = vcombine.high %v4161_v7, %v4161_v7 }
 0x716   : > { %v12597_v20 = vpop.eup %12596  ;;  %v3983_v27 = vmul.f32 %v12595_v2, %v14599_v33  ;;  %v3989_v32 = vadd.f32 %v3981_v49, %v3973_v12  ;;  %v3990_v36 = vadd.f32 %v3982_v26, %v3974_v21  ;;  %v14632_v58 = vadd.f32 %v4161_v7, %v3984_v46 }
 0x717   : > { %v12599_v18 = vpop.eup %12598  ;;  %v4182_v50 = vrot.slane %v4154_v17, %v13993_v1  ;;  %v4184_v29 = vcombine.high %v4168_v10, %v4168_v10  ;;  %v4185_v31 = vcombine.high %v4175_v48, %v4175_v48  ;;  %v14635_v53 = vadd.f32 %v4175_v48, %v3985_v8 }
 0x718   : > { %v12601_v11 = vpop.eup %12600  ;;  %v3991_v37 = vadd.f32 %v3983_v27, %v3975_v23  ;;  %v14637_v24 = vadd.f32 %v4183_v34, %v3986_v61  ;;  %v14639_v62 = vadd.f32 %v4168_v10, %v3988_v43  ;;  %12608 = vtanh.f32 %v14632_v58 }
 0x719   : > { %v12603_v33 = vpop.eup %12602  ;;  %v4186_v52 = vcombine.high %v4182_v50, %v4182_v50  ;;  %v14642_v14 = vadd.f32 %v4185_v31, %v3987_v60  ;;  %v14644_v19 = vadd.f32 %v4182_v50, %v3989_v32  ;;  %v14646_v56 = vadd.f32 %v4184_v29, %v3990_v36 }
 0x71a   : > { %12610 = vtanh.f32 %v14635_v53  ;;  %v12605_v22 = vpop.eup %12604 }
 0x71b   : > { %v14649_v54 = vadd.f32 %v4186_v52, %v3991_v37  ;;  %12612 = vtanh.f32 %v14637_v24  ;;  %v12607_v12 = vpop.eup %12606 }
 0x71c   : > { %12614 = vtanh.f32 %v14642_v14 }
 0x71d   : > { %12616 = vtanh.f32 %v14639_v62 }
 0x71e   : > { %12618 = vtanh.f32 %v14644_v19 }
 0x71f   : > { %12620 = vtanh.f32 %v14646_v56 }
 0x720   : > { %12622 = vtanh.f32 %v14649_v54 }
 0x722   : > { %v12609_v21 = vpop.eup %12608 }
 0x723   : > { %v4211_v23 = vmul.f32 %v12609_v21, %v14609_v41 }
 0x724   : > { %v12611_v28 = vpop.eup %12610 }
 0x725   : > { %v12613_v35 = vpop.eup %12612  ;;  %v4212_v25 = vmul.f32 %v12611_v28, %v12593_v13  ;;  %4219 = vst [vmem:[#allocation3 + $0x2] sm:$0x1] %v4211_v23  ;;  %v4259_v42 = vpack.c.bf16 %v4211_v23, %v4211_v23  ;;  %v11858_v23 = vld [vmem:[#allocation12 + $0x10] ss:$20 sps:$4 sm:$0xff]  }
 0x726   : > { %v12615_v15 = vpop.eup %12614  ;;  %v4213_v5 = vmul.f32 %v12613_v35, %v12597_v20  ;;  %v11859_v35 = vld [vmem:[#allocation12 + $0x38] ss:$20 sps:$4 sm:$0xff]  }
 0x727   : > { %v12617_v40 = vpop.eup %12616  ;;  %v4214_v3 = vmul.f32 %v12615_v15, %v12599_v18  ;;  %4220 = vst [vmem:[#allocation3 + $0xa] sm:$0x1] %v4212_v25  ;;  %v4260_v47 = vpack.c.bf16 %v4212_v25, %v4212_v25  ;;  %v4323_v7 = vunpack.c.l.b16 %v4259_v42  ;;  %v11860_v25 = vld [vmem:[#allocation12 + $0x60] ss:$20 sps:$4 sm:$0xff]   ;;  %v11861_v15 = vld [vmem:[#allocation12 + $0x88] ss:$20 sps:$4 sm:$0xff]  }
 0x728   : > { %v12619_v16 = vpop.eup %12618  ;;  %v4215_v59 = vmul.f32 %v12617_v40, %v12601_v11  ;;  %4221 = vst [vmem:[#allocation3 + $0x12] sm:$0x1] %v4213_v5  ;;  %v4261_v46 = vpack.c.bf16 %v4213_v5, %v4213_v5  ;;  %v11862_v5 = vld [vmem:[#allocation12 + $0xb0] ss:$20 sps:$4 sm:$0xff]   ;;  %v11863_v42 = vld [vmem:[#allocation12 + $0xd8] ss:$20 sps:$4 sm:$0xff]  }
 0x729   : > { %v12621_v8 = vpop.eup %12620  ;;  %v4216_v61 = vmul.f32 %v12619_v16, %v12603_v33  ;;  %4222 = vst [vmem:[#allocation3 + $0x1a] sm:$0x1] %v4214_v3  ;;  %v4262_v6 = vpack.c.bf16 %v4214_v3, %v4214_v3  ;;  %v4324_v41 = vunpack.c.l.b16 %v4260_v47  ;;  %v11864_v40 = vld [vmem:[#allocation12 + $0x100] ss:$20 sps:$4 sm:$0xff]   ;;  %v11865_v3 = vld [vmem:[#allocation12 + $0x128] ss:$20 sps:$4 sm:$0xff]  }
 0x72a   : > { %v12623_v60 = vpop.eup %12622  ;;  %v4217_v63 = vmul.f32 %v12621_v8, %v12605_v22  ;;  %4223 = vst [vmem:[#allocation3 + $0x22] sm:$0x1] %v4215_v59  ;;  %v4263_v51 = vpack.c.bf16 %v4215_v59, %v4215_v59  ;;  %v4325_v13 = vunpack.c.l.b16 %v4261_v46  ;;  %v11866_v47 = vld [vmem:[%s15890_s5] sm:$0xff]   ;;  %v11867_v16 = vld [vmem:[%s15890_s5 + $0x8] sm:$0xff]   ;;  %v11868_v59 = vld [vmem:[%s15890_s5 + $0x10] sm:$0xff]  }
 0x72b   : > { %v4218_v49 = vmul.f32 %v12623_v60, %v12607_v12  ;;  %4224 = vst [vmem:[#allocation3 + $0x2a] sm:$0x1] %v4216_v61  ;;  %v4264_v26 = vpack.c.bf16 %v4216_v61, %v4216_v61  ;;  %v4326_v43 = vunpack.c.l.b16 %v4262_v6  ;;  %v4331_v2 = vrot.slane %v4324_v41, 7  ;;  %v11869_v46 = vld [vmem:[%s15890_s5 + $0x18] sm:$0xff]   ;;  %v11870_v8 = vld [vmem:[%s15890_s5 + $0x20] sm:$0xff]  }
 0x72c   : > { %4225 = vst [vmem:[#allocation3 + $0x32] sm:$0x1] %v4217_v63  ;;  %v4265_v17 = vpack.c.bf16 %v4217_v63, %v4217_v63  ;;  %v4327_v10 = vunpack.c.l.b16 %v4263_v51  ;;  %v4333_v48 = vrot.slane %v4325_v13, 6 }
 0x72d   : > { %4226 = vst [vmem:[#allocation3 + $0x3a] sm:$0x1] %v4218_v49  ;;  %v4266_v34 = vpack.c.bf16 %v4218_v49, %v4218_v49  ;;  %v4328_v20 = vunpack.c.l.b16 %v4264_v26  ;;  %v4332_v27 = vsel %vm1772_vm3, %v4331_v2, %v4323_v7  ;;  %v4335_v32 = vrot.slane %v4326_v43, 5 }
 0x72e   : > { %v4329_v36 = vunpack.c.l.b16 %v4265_v17  ;;  %v4334_v18 = vsel %vm1775_vm4, %v4333_v48, %v4332_v27  ;;  %v4337_v50 = vrot.slane %v4327_v10, 4  ;;  %v11871_v17 = vld [vmem:[%s15890_s5 + $0x28] sm:$0xff]  }
 0x72f   : > { %v4330_v29 = vunpack.c.l.b16 %v4266_v34  ;;  %v4336_v31 = vsel %vm1778_vm5, %v4335_v32, %v4334_v18  ;;  %v4339_v11 = vrot.slane %v4328_v20, 3 }
 0x730   : > { %v4338_v37 = vsel %vm1781_vm6, %v4337_v50, %v4336_v31  ;;  %v4341_v33 = vrot.slane %v4329_v36, 2  ;;  %v11872_v50 = vld [vmem:[%s15890_s5 + $0x30] sm:$0xff]  }
 0x731   : > { %v4340_v52 = vsel %vm1784_vm7, %v4339_v11, %v4338_v37  ;;  %v4343_v22 = vrot.slane %v4330_v29, 1  ;;  %v11873_v29 = vld [vmem:[%s15890_s5 + $0x38] sm:$0xff]  }
 0x732   : > { %v4342_v12 = vsel %vm1787_vm8, %v4341_v33, %v4340_v52 }
 0x733   : > { %v4344_v21 = vsel %vm1790_vm9, %v4343_v22, %v4342_v12 }
 0x734   : > { %v4345_v28 = vpack.c.b16 %v4344_v21, %v4344_v21 }
 0x736   : > { %4588 = vmatmul.mubr.bf16.vlgmr.msra.gmra.mrb[40].mxu1 %v4345_v28  ;;  %4629 = vmatmul.mubr.bf16.vlgmr.msra.gmra.mrb[48].mxu0 %v4345_v28 }
 0x737   : > { %11293 = vmatpush3.bf16.msra.mxu1 %v11858_v23  ;;  %11308 = vmatprep.mubr.msk.bf16.mxu1 %vm13603_vm2, %v13602_v57 }
 0x738   : > { %11294 = vmatprep.subr.bf16.mxu1 %v13602_v57  ;;  %11328 = vmatprep.mubr.msk.bf16.mxu0 %vm13603_vm2, %v13602_v57 }
 0x739   : > { %11313 = vmatpush3.bf16.msra.mxu0 %v11866_v47 }
 0x73a   : > { %11314 = vmatprep.subr.bf16.mxu0 %v13602_v57 }
 0x73b   : > { %11295 = vmatpush3.bf16.msra.mxu1 %v11859_v35 }
 0x73c   : > { %11296 = vmatprep.subr.bf16.mxu1 %v13602_v57 }
 0x73d   : > { %11315 = vmatpush3.bf16.msra.mxu0 %v11867_v16 }
 0x73e   : > { %11316 = vmatprep.subr.bf16.mxu0 %v13602_v57 }
 0x73f   : > { %11297 = vmatpush3.bf16.msra.mxu1 %v11860_v25 }
 0x740   : > { %11298 = vmatprep.subr.bf16.mxu1 %v13602_v57 }
 0x741   : > { %11317 = vmatpush3.bf16.msra.mxu0 %v11868_v59 }
 0x742   : > { %11318 = vmatprep.subr.bf16.mxu0 %v13602_v57 }
 0x743   : > { %11299 = vmatpush3.bf16.msra.mxu1 %v11861_v15 }
 0x744   : > { %11300 = vmatprep.subr.bf16.mxu1 %v13602_v57 }
 0x745   : > { %11319 = vmatpush3.bf16.msra.mxu0 %v11869_v46 }
 0x746   : > { %11320 = vmatprep.subr.bf16.mxu0 %v13602_v57 }
 0x747   : > { %11301 = vmatpush3.bf16.msra.mxu1 %v11862_v5 }
 0x748   : > { %11302 = vmatprep.subr.bf16.mxu1 %v13602_v57 }
 0x749   : > { %11321 = vmatpush3.bf16.msra.mxu0 %v11870_v8 }
 0x74a   : > { %11322 = vmatprep.subr.bf16.mxu0 %v13602_v57 }
 0x74b   : > { %11303 = vmatpush3.bf16.msra.mxu1 %v11863_v42 }
 0x74c   : > { %11304 = vmatprep.subr.bf16.mxu1 %v13602_v57 }
 0x74d   : > { %11323 = vmatpush3.bf16.msra.mxu0 %v11871_v17  ;;  %v4245_v17 = vld [vmem:[#allocation2 + $0xa3] ss:$8 sm:$0x10] }
 0x74e   : > { %11324 = vmatprep.subr.bf16.mxu0 %v13602_v57 }
 0x74f   : > { %11305 = vmatpush3.bf16.msra.mxu1 %v11864_v40 }
 0x750   : > { %11306 = vmatprep.subr.bf16.mxu1 %v13602_v57 }
 0x751   : > { %11325 = vmatpush3.bf16.msra.mxu0 %v11872_v50 }
 0x752   : > { %11326 = vmatprep.subr.bf16.mxu0 %v13602_v57 }
 0x753   : > { %11307 = vmatpush3.bf16.msra.mxu1 %v11865_v3 }
 0x755   : > { %11327 = vmatpush3.bf16.msra.mxu0 %v11873_v29  ;;  %v4248_v29 = vld [vmem:[#allocation2 + $0xcb] ss:$8 sm:$0xf] }
 0x756   : > { %11309 = vmatmul.mubr.bf16.vlgmr.msra.gmra.mrb[44].mxu1 %v4345_v28 }
 0x757   : > { %5714 = vmatprep.mubr.bf16.mxu1 %v13601_v4 }
 0x809   : > { %v4589_v61 = vpop.f32.mrb[40].mxu1  ;;  %v4630_v6 = vpop.f32.mrb[48].mxu0 }
 0x80a   : > { %v4591_v41 = vpop.f32.mrb[41].mxu1  ;;  %v4632_v60 = vpop.f32.mrb[49].mxu0 }
 0x80b   : > { %v4682_v63 = vcombine.low %v4589_v61, %v4591_v41  ;;  %v4683_v51 = vcombine.high %v4589_v61, %v4591_v41  ;;  %v4684_v7 = vcombine.low %v4630_v6, %v4632_v60  ;;  %v4685_v13 = vcombine.high %v4630_v6, %v4632_v60  ;;  %v4593_v49 = vpop.f32.mrb[42].mxu1  ;;  %v4634_v26 = vpop.f32.mrb[50].mxu0  ;;  %v4229_v60 = vld [vmem:[#allocation2 + $0x3] ss:$8 sm:$0x10] }
 0x80c   : > { %v4594_v43 = vpop.f32.mrb[43].mxu1  ;;  %v4635_v2 = vpop.f32.mrb[51].mxu0  ;;  %v4232_v49 = vld [vmem:[#allocation2 + $0x2b] ss:$8 sm:$0xf] }
 0x80d   : > { %v4693_v10 = vrot.slane %v4682_v63, %v13993_v1  ;;  %v4700_v48 = vrot.slane %v4683_v51, %v13993_v1  ;;  %v4707_v34 = vrot.slane %v4684_v7, %v13993_v1  ;;  %v4714_v20 = vrot.slane %v4685_v13, %v13993_v1  ;;  %v4233_v63 = vld [vmem:[#allocation2 + $0x2b] ss:$8 sm:$0x10]  ;;  %v4237_v7 = vld [vmem:[#allocation2 + $0x53] ss:$8 sm:$0x10] }
 0x80e   : > { %v4228_v51 = vld [vmem:[#allocation2 + $0x3] ss:$8 sm:$0xf]  ;;  %v4234_v43 = vor.u32 %v4233_v63, %v4232_v49 }
 0x80f   : > { %v4729_v27 = vcombine.low %v4693_v10, %v4707_v34  ;;  %v4730_v32 = vcombine.high %v4693_v10, %v4707_v34  ;;  %v4731_v36 = vcombine.low %v4700_v48, %v4714_v20  ;;  %v4732_v18 = vcombine.high %v4700_v48, %v4714_v20  ;;  %v4241_v26 = vld [vmem:[#allocation2 + $0x7b] ss:$8 sm:$0x10]  ;;  %v4249_v34 = vld [vmem:[#allocation2 + $0xcb] ss:$8 sm:$0x10] }
 0x810   : > { %v4230_v13 = vor.u32 %v4229_v60, %v4228_v51  ;;  %v4236_v2 = vld [vmem:[#allocation2 + $0x53] ss:$8 sm:$0xf] }
 0x811   : > { %v4741_v21 = vrot.slane %v4729_v27, %v13993_v1  ;;  %v4748_v35 = vrot.slane %v4731_v36, %v13993_v1  ;;  %v4755_v25 = vrot.slane %v4730_v32, %v13993_v1  ;;  %v4762_v3 = vrot.slane %v4732_v18, %v13993_v1  ;;  %v4240_v48 = vld [vmem:[#allocation2 + $0x7b] ss:$8 sm:$0xf] }
 0x812   : > { %v4238_v10 = vor.u32 %v4237_v7, %v4236_v2  ;;  %v4242_v27 = vor.u32 %v4241_v26, %v4240_v48  ;;  %v4244_v32 = vld [vmem:[#allocation2 + $0xa3] ss:$8 sm:$0xf] }
 0x813   : > { %v4253_v36 = vld [vmem:[#allocation2 + $0xf3] ss:$8 sm:$0x10]  ;;  %v4246_v50 = vor.u32 %v4245_v17, %v4244_v32 }
 0x829   : > { %v4671_v31 = vpop.f32.mrb[44].mxu1 }
 0x82a   : > { %v4686_v11 = vcombine.high %v4671_v31, %v4671_v31  ;;  %v4721_v37 = vrot.slane %v4671_v31, %v13993_v1  ;;  %v11310_v33 = vpop.f32.mrb[45].mxu1  ;;  %v4257_v31 = vld [vmem:[#allocation2 + $0x11b] ss:$8 sm:$0x10] }
 0x82b   : > { %v4674_v52 = vpop.f32.mrb[46].mxu1  ;;  %v4252_v33 = vld [vmem:[#allocation2 + $0xf3] ss:$8 sm:$0xf] }
 0x82c   : > { %v4728_v22 = vrot.slane %v4686_v11, %v13993_v1  ;;  %v4733_v12 = vcombine.high %v4721_v37, %v4721_v37  ;;  %v4769_v23 = vrot.slane %v4721_v37, %v13993_v1  ;;  %v11311_v28 = vpop.f32.mrb[47].mxu1  ;;  %v4250_v37 = vor.u32 %v4249_v34, %v4248_v29 }
 0x82e   : > { %v4734_v15 = vcombine.high %v4728_v22, %v4728_v22  ;;  %v4776_v5 = vrot.slane %v4728_v22, %v13993_v1  ;;  %v4783_v42 = vrot.slane %v4733_v12, %v13993_v1  ;;  %v4791_v40 = vcombine.low %v4741_v21, %v4769_v23  ;;  %v4256_v12 = vld [vmem:[#allocation2 + $0x11b] ss:$8 sm:$0xf] }
 0x82f   : > { %v4792_v47 = vcombine.high %v4741_v21, %v4769_v23  ;;  %v4254_v22 = vor.u32 %v4253_v36, %v4252_v33  ;;  %v4258_v28 = vor.u32 %v4257_v31, %v4256_v12 }
 0x830   : > { %v4790_v16 = vrot.slane %v4734_v15, %v13993_v1  ;;  %v4793_v59 = vcombine.low %v4748_v35, %v4776_v5  ;;  %v4794_v46 = vcombine.high %v4748_v35, %v4776_v5  ;;  %v4795_v8 = vcombine.low %v4755_v25, %v4783_v42 }
 0x831   : > { %v4796_v61 = vcombine.high %v4755_v25, %v4783_v42  ;;  %v14722_v20 = vadd.f32 %v4791_v40, %v4230_v13  ;;  %v14726_v11 = vadd.f32 %v4792_v47, %v4238_v10 }
 0x832   : > { %v4797_v6 = vcombine.low %v4762_v3, %v4790_v16  ;;  %v4798_v41 = vcombine.high %v4762_v3, %v4790_v16  ;;  %v14724_v18 = vadd.f32 %v4795_v8, %v4234_v43  ;;  %v14730_v21 = vadd.f32 %v4793_v59, %v4246_v50 }
 0x833   : > { %v14728_v52 = vadd.f32 %v4796_v61, %v4242_v27  ;;  %v5023_v23 = vrot.slane %v14722_v20, 4  ;;  %v14736_v15 = vadd.f32 %v4794_v46, %v4254_v22  ;;  %v5025_v5 = vrot.slane %v14726_v11, 4 }
 0x834   : > { %v14733_v35 = vadd.f32 %v4797_v6, %v4250_v37  ;;  %v5024_v25 = vrot.slane %v14724_v18, 4  ;;  %v14739_v42 = vadd.f32 %v4798_v41, %v4258_v28  ;;  %v5027_v3 = vrot.slane %v14730_v21, 4 }
 0x835   : > { %v5026_v40 = vrot.slane %v14728_v52, 4  ;;  %v10646_v47 = vmul.f32 -1.442695, %v5023_v23  ;;  %v5029_v8 = vrot.slane %v14736_v15, 4  ;;  %v10648_v61 = vmul.f32 -1.442695, %v5025_v5 }
 0x836   : > { %v5028_v16 = vrot.slane %v14733_v35, 4  ;;  %v10647_v59 = vmul.f32 -1.442695, %v5024_v25  ;;  %v5030_v6 = vrot.slane %v14739_v42, 4  ;;  %v10650_v46 = vmul.f32 -1.442695, %v5027_v3 }
 0x837   : > { %v10649_v60 = vmul.f32 -1.442695, %v5026_v40  ;;  %12624 = vpow2.f32 %v10646_v47  ;;  %v10652_v41 = vmul.f32 -1.442695, %v5029_v8 }
 0x838   : > { %12626 = vpow2.f32 %v10647_v59  ;;  %v10651_v63 = vmul.f32 -1.442695, %v5028_v16  ;;  %v10653_v51 = vmul.f32 -1.442695, %v5030_v6 }
 0x839   : > { %12628 = vpow2.f32 %v10648_v61 }
 0x83a   : > { %12630 = vpow2.f32 %v10649_v60 }
 0x83b   : > { %12632 = vpow2.f32 %v10650_v46 }
 0x83c   : > { %12634 = vpow2.f32 %v10651_v63 }
 0x83d   : > { %12636 = vpow2.f32 %v10652_v41 }
 0x83e   : > { %12638 = vpow2.f32 %v10653_v51 }
 0x841   : > { %v12625_v7 = vpop.eup %12624 }
 0x842   : > { %v12627_v13 = vpop.eup %12626  ;;  %v5063_v49 = vadd.f32 1.0, %v12625_v7 }
 0x843   : > { %v12629_v26 = vpop.eup %12628  ;;  %v5064_v43 = vadd.f32 1.0, %v12627_v13 }
 0x844   : > { %v12631_v2 = vpop.eup %12630  ;;  %v5065_v17 = vadd.f32 1.0, %v12629_v26  ;;  %12640 = vrcp.f32 %v5063_v49 }
 0x845   : > { %v12633_v10 = vpop.eup %12632  ;;  %v5066_v48 = vadd.f32 1.0, %v12631_v2  ;;  %12642 = vrcp.f32 %v5064_v43 }
 0x846   : > { %v12635_v34 = vpop.eup %12634  ;;  %v5067_v27 = vadd.f32 1.0, %v12633_v10  ;;  %12644 = vrcp.f32 %v5065_v17 }
 0x847   : > { %v12637_v32 = vpop.eup %12636  ;;  %v5068_v36 = vadd.f32 1.0, %v12635_v34  ;;  %12646 = vrcp.f32 %v5066_v48 }
 0x848   : > { %v12639_v50 = vpop.eup %12638  ;;  %v5069_v29 = vadd.f32 1.0, %v12637_v32  ;;  %12648 = vrcp.f32 %v5067_v27 }
 0x849   : > { %12650 = vrcp.f32 %v5068_v36  ;;  %v5070_v31 = vadd.f32 1.0, %v12639_v50 }
 0x84a   : > { %12652 = vrcp.f32 %v5069_v29 }
 0x84b   : > { %12654 = vrcp.f32 %v5070_v31 }
 0x84e   : > { %v12641_v37 = vpop.eup %12640 }
 0x84f   : > { %v12643_v33 = vpop.eup %12642  ;;  %v14747_v22 = vmul.f32 %v12641_v37, %v14512_v39 }
 0x850   : > { %v12645_v12 = vpop.eup %12644  ;;  %v14750_v23 = vmul.f32 %v12643_v33, %v14515_v9 }
 0x851   : > { %v12647_v28 = vpop.eup %12646  ;;  %v14753_v25 = vmul.f32 %v12645_v12, %v14518_v38  ;;  %v5119_v5 = vpack.c.bf16 %v14747_v22, %v14747_v22  ;;  %v11876_v12 = vld [vmem:[#allocation12 + $0x4] ss:$20 sps:$4 sm:$0xff]  }
 0x852   : > { %v12649_v40 = vpop.eup %12648  ;;  %v14758_v3 = vmul.f32 %v12647_v28, %v14523_v44  ;;  %v5120_v47 = vpack.c.bf16 %v14750_v23, %v14750_v23  ;;  %v11874_v28 = vld [vmem:[#allocation12] ss:$20 sps:$4 sm:$0xff]   ;;  %5682 = vmatprep.subr.bf16.mxu1 %v11876_v12  ;;  %v4871_v12 = vrot.slane %v14722_v20, 1 }
 0x853   : > { %v12651_v39 = vpop.eup %12650  ;;  %v14763_v16 = vmul.f32 %v12649_v40, %v14528_v55  ;;  %v5121_v9 = vpack.c.bf16 %v14753_v25, %v14753_v25  ;;  %v5151_v55 = vunpack.c.l.b16 %v5119_v5  ;;  %v11879_v5 = vld [vmem:[#allocation12 + $0xc] ss:$20 sps:$4 sm:$0xff]   ;;  %v11877_v40 = vld [vmem:[#allocation12 + $0x8] ss:$20 sps:$4 sm:$0xff]   ;;  %5683 = vmatpush1.bf16.msra.mxu1 %v11874_v28  ;;  %v10627_v28 = vmul.f32 -1.442695, %v14733_v35 }
 0x854   : > { %v12653_v59 = vpop.eup %12652  ;;  %v14768_v38 = vmul.f32 %v12651_v39, %v14533_v0  ;;  %v5122_v8 = vpack.c.bf16 %v14758_v3, %v14758_v3  ;;  %v5152_v61 = vunpack.c.l.b16 %v5120_v47  ;;  %5723 = vmatprep.subr.bf16.mxu0 %v11879_v5  ;;  %v11882_v47 = vld [vmem:[#allocation12 + $0x2c] ss:$20 sps:$4 sm:$0xff]   ;;  %v11880_v39 = vld [vmem:[#allocation12 + $0x28] ss:$20 sps:$4 sm:$0xff]   ;;  %v10628_v5 = vmul.f32 -1.442695, %v14736_v15 }
 0x855   : > { %v12655_v44 = vpop.eup %12654  ;;  %v14773_v6 = vmul.f32 %v12653_v59, %v14538_v30  ;;  %v5123_v60 = vpack.c.bf16 %v14763_v16, %v14763_v16  ;;  %v5153_v46 = vunpack.c.l.b16 %v5121_v9  ;;  %v11885_v9 = vld [vmem:[#allocation12 + $0x34] ss:$20 sps:$4 sm:$0xff]   ;;  %5684 = vmatprep.subr.bf16.mxu1 %v11882_v47  ;;  %v11883_v59 = vld [vmem:[#allocation12 + $0x30] ss:$20 sps:$4 sm:$0xff]   ;;  %v10629_v47 = vmul.f32 -1.442695, %v14739_v42 }
 0x856   : > { %v14778_v63 = vmul.f32 %v12655_v44, %v14543_v45  ;;  %v5124_v0 = vpack.c.bf16 %v14768_v38, %v14768_v38  ;;  %v5154_v41 = vunpack.c.l.b16 %v5122_v8  ;;  %v5159_v51 = vrot.slane %v5152_v61, 7  ;;  %v11888_v8 = vld [vmem:[#allocation12 + $0x54] ss:$20 sps:$4 sm:$0xff]   ;;  %v11886_v61 = vld [vmem:[#allocation12 + $0x50] ss:$20 sps:$4 sm:$0xff]  }
 0x857   : > { %v5125_v7 = vpack.c.bf16 %v14773_v6, %v14773_v6  ;;  %v5155_v13 = vunpack.c.l.b16 %v5123_v60  ;;  %v5161_v49 = vrot.slane %v5153_v46, 6  ;;  %5685 = vmatpush1.bf16.msra.mxu1 %v11880_v39  ;;  %v11889_v44 = vld [vmem:[#allocation12 + $0x58] ss:$20 sps:$4 sm:$0xff]   ;;  %v11891_v60 = vld [vmem:[#allocation12 + $0x5c] ss:$20 sps:$4 sm:$0xff]   ;;  %v4873_v39 = vrot.slane %v14726_v11, 1 }
 0x858   : > { %v5126_v30 = vpack.c.bf16 %v14778_v63, %v14778_v63  ;;  %v5156_v26 = vunpack.c.l.b16 %v5124_v0  ;;  %v5160_v43 = vsel %vm1772_vm3, %v5159_v51, %v5151_v55  ;;  %v5163_v2 = vrot.slane %v5154_v41, 5  ;;  %5686 = vmatprep.subr.bf16.mxu1 %v11888_v8  ;;  %v11894_v55 = vld [vmem:[#allocation12 + $0x7c] ss:$20 sps:$4 sm:$0xff]   ;;  %v11892_v46 = vld [vmem:[#allocation12 + $0x78] ss:$20 sps:$4 sm:$0xff]  }
 0x859   : > { %v5157_v17 = vunpack.c.l.b16 %v5125_v7  ;;  %v5162_v45 = vsel %vm1775_vm4, %v5161_v49, %v5160_v43  ;;  %v5165_v10 = vrot.slane %v5155_v13, 4  ;;  %v11897_v0 = vld [vmem:[#allocation12 + $0x84] ss:$20 sps:$4 sm:$0xff]   ;;  %v11895_v41 = vld [vmem:[#allocation12 + $0x80] ss:$20 sps:$4 sm:$0xff]   ;;  %v4875_v8 = vrot.slane %v14730_v21, 1 }
 0x85a   : > { %v5158_v48 = vunpack.c.l.b16 %v5126_v30  ;;  %v5164_v34 = vsel %vm1778_vm5, %v5163_v2, %v5162_v45  ;;  %v5167_v27 = vrot.slane %v5156_v26, 3  ;;  %v11900_v51 = vld [vmem:[#allocation12 + $0xa4] ss:$20 sps:$4 sm:$0xff]   ;;  %v11903_v7 = vld [vmem:[#allocation12 + $0xac] ss:$20 sps:$4 sm:$0xff]  }
 0x85b   : > { %v5166_v32 = vsel %vm1781_vm6, %v5165_v10, %v5164_v34  ;;  %v5169_v36 = vrot.slane %v5157_v17, 2  ;;  %5687 = vmatpush1.bf16.msra.mxu1 %v11886_v61  ;;  %v11898_v13 = vld [vmem:[#allocation12 + $0xa0] ss:$20 sps:$4 sm:$0xff]   ;;  %v11901_v49 = vld [vmem:[#allocation12 + $0xa8] ss:$20 sps:$4 sm:$0xff]  }
 0x85c   : > { %v5168_v50 = vsel %vm1784_vm7, %v5167_v27, %v5166_v32  ;;  %v5171_v29 = vrot.slane %v5158_v48, 1  ;;  %5688 = vmatprep.subr.bf16.mxu1 %v11894_v55  ;;  %v11906_v30 = vld [vmem:[#allocation12 + $0xcc] ss:$20 sps:$4 sm:$0xff]   ;;  %v11909_v26 = vld [vmem:[#allocation12 + $0xd4] ss:$20 sps:$4 sm:$0xff]  }
 0x85d   : > { %v5170_v31 = vsel %vm1787_vm8, %v5169_v36, %v5168_v50  ;;  %v11904_v43 = vld [vmem:[#allocation12 + $0xc8] ss:$20 sps:$4 sm:$0xff]   ;;  %v11907_v2 = vld [vmem:[#allocation12 + $0xd0] ss:$20 sps:$4 sm:$0xff]   ;;  %v11913_v48 = vld [vmem:[#allocation12 + $0xf8] ss:$20 sps:$4 sm:$0xff]  }
 0x85e   : > { %v5172_v37 = vsel %vm1790_vm9, %v5171_v29, %v5170_v31  ;;  %v11912_v17 = vld [vmem:[#allocation12 + $0xf4] ss:$20 sps:$4 sm:$0xff]   ;;  %v11915_v45 = vld [vmem:[#allocation12 + $0xfc] ss:$20 sps:$4 sm:$0xff]   ;;  %v11921_v27 = vld [vmem:[#allocation12 + $0x124] ss:$20 sps:$4 sm:$0xff]  }
 0x85f   : > { %v5173_v33 = vpack.c.b16 %v5172_v37, %v5172_v37  ;;  %5689 = vmatpush1.bf16.msra.mxu1 %v11892_v46  ;;  %v11910_v10 = vld [vmem:[#allocation12 + $0xf0] ss:$20 sps:$4 sm:$0xff]   ;;  %v11916_v32 = vld [vmem:[#allocation12 + $0x118] ss:$20 sps:$4 sm:$0xff]   ;;  %v11919_v36 = vld [vmem:[#allocation12 + $0x120] ss:$20 sps:$4 sm:$0xff]  }
 0x860   : > { %5690 = vmatprep.subr.bf16.mxu1 %v11900_v51  ;;  %v11918_v34 = vld [vmem:[#allocation12 + $0x11c] ss:$20 sps:$4 sm:$0xff]   ;;  %v10622_v50 = vmul.f32 -1.442695, %v14722_v20  ;;  %v10623_v29 = vmul.f32 -1.442695, %v14724_v18 }
 0x861   : > { %11329 = vmatmul.mubr.bf16.vlgmr.msra.gmra.mrb[52].mxu0 %v5173_v33  ;;  %v10624_v31 = vmul.f32 -1.442695, %v14726_v11  ;;  %v10625_v37 = vmul.f32 -1.442695, %v14728_v52  ;;  %v10626_v33 = vmul.f32 -1.442695, %v14730_v21 }
 0x862   : > { %5755 = vmatprep.mubr.bf16.mxu0 %v13601_v4  ;;  %5724 = vmatpush1.bf16.msra.mxu0 %v11877_v40  ;;  %12656 = vpow2.f32 %v10622_v50  ;;  %v4872_v40 = vrot.slane %v14724_v18, 1 }
 0x863   : > { %5725 = vmatprep.subr.bf16.mxu0 %v11885_v9  ;;  %5691 = vmatpush1.bf16.msra.mxu1 %v11898_v13  ;;  %12658 = vpow2.f32 %v10623_v29  ;;  %v4874_v9 = vrot.slane %v14728_v52, 1  ;;  %v4876_v13 = vrot.slane %v14733_v35, 1 }
 0x864   : > { %5692 = vmatprep.subr.bf16.mxu1 %v11906_v30  ;;  %12660 = vpow2.f32 %v10624_v31  ;;  %v10631_v61 = vmul.f32 -1.442695, %v4872_v40  ;;  %v4877_v30 = vrot.slane %v14736_v15, 1  ;;  %v4935_v31 = vrot.slane %v14722_v20, 2 }
 0x865   : > { %12662 = vpow2.f32 %v10625_v37  ;;  %v10633_v46 = vmul.f32 -1.442695, %v4874_v9 }
 0x866   : > { %5726 = vmatpush1.bf16.msra.mxu0 %v11883_v59  ;;  %12664 = vpow2.f32 %v10626_v33  ;;  %v10630_v59 = vmul.f32 -1.442695, %v4871_v12 }
 0x867   : > { %5727 = vmatprep.subr.bf16.mxu0 %v11891_v60  ;;  %5693 = vmatpush1.bf16.msra.mxu1 %v11904_v43  ;;  %12666 = vpow2.f32 %v10627_v28  ;;  %v10632_v60 = vmul.f32 -1.442695, %v4873_v39  ;;  %v4878_v43 = vrot.slane %v14739_v42, 1 }
 0x868   : > { %5694 = vmatprep.subr.bf16.mxu1 %v11912_v17  ;;  %12668 = vpow2.f32 %v10628_v5 }
 0x869   : > { %12670 = vpow2.f32 %v10629_v47  ;;  %v10638_v47 = vmul.f32 -1.442695, %v4935_v31 }
 0x86a   : > { %5728 = vmatpush1.bf16.msra.mxu0 %v11889_v44  ;;  %12672 = vpow2.f32 %v10630_v59  ;;  %v4936_v59 = vrot.slane %v14724_v18, 2 }
 0x86b   : > { %5729 = vmatprep.subr.bf16.mxu0 %v11897_v0  ;;  %5695 = vmatpush1.bf16.msra.mxu1 %v11910_v10  ;;  %12674 = vpow2.f32 %v10631_v61 }
 0x86c   : > { %5696 = vmatprep.subr.bf16.mxu1 %v11918_v34  ;;  %v12657_v44 = vpop.eup %12656  ;;  %12676 = vpow2.f32 %v10632_v60 }
 0x86d   : > { %v12659_v55 = vpop.eup %12658  ;;  %12678 = vpow2.f32 %v10633_v46  ;;  %v4938_v46 = vrot.slane %v14728_v52, 2 }
 0x86e   : > { %5730 = vmatpush1.bf16.msra.mxu0 %v11895_v41  ;;  %v12661_v0 = vpop.eup %12660  ;;  %v10634_v41 = vmul.f32 -1.442695, %v4875_v8 }
 0x86f   : > { %5731 = vmatprep.subr.bf16.mxu0 %v11903_v7  ;;  %5697 = vmatpush1.bf16.msra.mxu1 %v11916_v32  ;;  %v12663_v51 = vpop.eup %12662  ;;  %v4839_v7 = vadd.f32 1.0, %v12657_v44  ;;  %v4937_v44 = vrot.slane %v14726_v11, 2 }
 0x870   : > { %11332 = vmatprep.subr.bf16.mxu1 %v13602_v57  ;;  %12680 = vpow2.f32 %v10634_v41  ;;  %v12665_v17 = vpop.eup %12664 }
 0x871   : > { %12682 = vrcp.f32 %v4839_v7  ;;  %v12667_v10 = vpop.eup %12666 }
 0x872   : > { %5732 = vmatpush1.bf16.msra.mxu0 %v11901_v49  ;;  %v4840_v49 = vadd.f32 1.0, %v12659_v55  ;;  %v12669_v34 = vpop.eup %12668  ;;  %v4844_v29 = vadd.f32 1.0, %v12667_v10 }
 0x873   : > { %5733 = vmatprep.subr.bf16.mxu0 %v11909_v26  ;;  %v4841_v26 = vadd.f32 1.0, %v12661_v0  ;;  %v12671_v32 = vpop.eup %12670  ;;  %v4845_v37 = vadd.f32 1.0, %v12669_v34  ;;  %v4941_v34 = vrot.slane %v14736_v15, 2 }
 0x874   : > { %12684 = vrcp.f32 %v4840_v49  ;;  %v12673_v50 = vpop.eup %12672  ;;  %v4846_v12 = vadd.f32 1.0, %v12671_v32 }
 0x875   : > { %12686 = vrcp.f32 %v4841_v26  ;;  %v12675_v33 = vpop.eup %12674  ;;  %v4911_v5 = vadd.f32 1.0, %v12673_v50 }
 0x876   : > { %5734 = vmatpush1.bf16.msra.mxu0 %v11907_v2  ;;  %v4842_v2 = vadd.f32 1.0, %v12663_v51  ;;  %v12677_v28 = vpop.eup %12676  ;;  %v4912_v9 = vadd.f32 1.0, %v12675_v33  ;;  %v4939_v51 = vrot.slane %v14730_v21, 2 }
 0x877   : > { %5735 = vmatprep.subr.bf16.mxu0 %v11915_v45  ;;  %v10635_v45 = vmul.f32 -1.442695, %v4876_v13  ;;  %v12679_v40 = vpop.eup %12678  ;;  %v4913_v61 = vadd.f32 1.0, %v12677_v28  ;;  %v10639_v13 = vmul.f32 -1.442695, %v4936_v59 }
 0x878   : > { %12688 = vrcp.f32 %v4842_v2  ;;  %v4914_v55 = vadd.f32 1.0, %v12679_v40 }
 0x879   : > { %12690 = vpow2.f32 %v10635_v45  ;;  %v10642_v45 = vmul.f32 -1.442695, %v4939_v51 }
 0x87a   : > { %5736 = vmatpush1.bf16.msra.mxu0 %v11913_v48  ;;  %v10636_v48 = vmul.f32 -1.442695, %v4877_v30  ;;  %v12681_v39 = vpop.eup %12680  ;;  %v10640_v30 = vmul.f32 -1.442695, %v4937_v44 }
 0x87b   : > { %5737 = vmatprep.subr.bf16.mxu0 %v11921_v27  ;;  %v10637_v27 = vmul.f32 -1.442695, %v4878_v43  ;;  %v14814_v8 = vpop.eup %12682  ;;  %v4915_v41 = vadd.f32 1.0, %v12681_v39  ;;  %v10641_v43 = vmul.f32 -1.442695, %v4938_v46 }
 0x87c   : > { %12692 = vpow2.f32 %v10636_v48 }
 0x87d   : > { %12694 = vpow2.f32 %v10637_v27 }
 0x87e   : > { %5738 = vmatpush1.bf16.msra.mxu0 %v11919_v36  ;;  %v4843_v36 = vadd.f32 1.0, %v12665_v17  ;;  %v14817_v60 = vpop.eup %12684  ;;  %v4940_v17 = vrot.slane %v14733_v35, 2 }
 0x87f   : > { %11352 = vmatprep.subr.bf16.mxu0 %v13602_v57  ;;  %v14820_v0 = vpop.eup %12686 }
 0x880   : > { %12696 = vrcp.f32 %v4843_v36  ;;  %v4942_v36 = vrot.slane %v14739_v42, 2 }
 0x881   : > { %12698 = vrcp.f32 %v4844_v29 }
 0x882   : > { %12700 = vrcp.f32 %v4845_v37  ;;  %v14823_v7 = vpop.eup %12688  ;;  %v10643_v37 = vmul.f32 -1.442695, %v4940_v17 }
 0x883   : > { %12702 = vrcp.f32 %v4846_v12  ;;  %v12691_v49 = vpop.eup %12690  ;;  %v10644_v12 = vmul.f32 -1.442695, %v4941_v34 }
 0x884   : > { %12704 = vrcp.f32 %v4911_v5  ;;  %v4916_v48 = vadd.f32 1.0, %v12691_v49  ;;  %v10645_v5 = vmul.f32 -1.442695, %v4942_v36 }
 0x885   : > { %12706 = vpow2.f32 %v10638_v47  ;;  %v4999_v47 = vrot.slane %v14722_v20, 3  ;;  %v5003_v20 = vrot.slane %v14730_v21, 3 }
 0x886   : > { %12708 = vrcp.f32 %v4912_v9  ;;  %v12693_v26 = vpop.eup %12692  ;;  %v5000_v9 = vrot.slane %v14724_v18, 3  ;;  %v5004_v18 = vrot.slane %v14733_v35, 3 }
 0x887   : > { %12710 = vrcp.f32 %v4913_v61  ;;  %v12695_v2 = vpop.eup %12694  ;;  %v4917_v32 = vadd.f32 1.0, %v12693_v26  ;;  %v5005_v26 = vrot.slane %v14736_v15, 3 }
 0x888   : > { %12712 = vrcp.f32 %v4914_v55  ;;  %v4918_v29 = vadd.f32 1.0, %v12695_v2  ;;  %v5001_v55 = vrot.slane %v14726_v11, 3 }
 0x889   : > { %12714 = vrcp.f32 %v4915_v41  ;;  %v5002_v41 = vrot.slane %v14728_v52, 3 }
 0x88a   : > { %v14826_v10 = vpop.eup %12696  ;;  %12716 = vpow2.f32 %v10639_v13 }
 0x88b   : > { %v14829_v27 = vpop.eup %12698  ;;  %12718 = vpow2.f32 %v10640_v30 }
 0x88c   : > { %v14832_v50 = vpop.eup %12700  ;;  %12720 = vpow2.f32 %v10641_v43 }
 0x88d   : > { %v14834_v31 = vpop.eup %12702  ;;  %12722 = vpow2.f32 %v10642_v45  ;;  %v5006_v45 = vrot.slane %v14739_v42, 3 }
 0x88e   : > { %v12705_v33 = vpop.eup %12704  ;;  %12724 = vrcp.f32 %v4916_v48 }
 0x88f   : > { %v12707_v28 = vpop.eup %12706  ;;  %12726 = vrcp.f32 %v4917_v32 }
 0x890   : > { %v12709_v40 = vpop.eup %12708  ;;  %12728 = vrcp.f32 %v4918_v29  ;;  %v4975_v61 = vadd.f32 1.0, %v12707_v28 }
 0x891   : > { %v12711_v39 = vpop.eup %12710  ;;  %12730 = vpow2.f32 %v10643_v37 }
 0x892   : > { %v12713_v59 = vpop.eup %12712  ;;  %12732 = vpow2.f32 %v10644_v12 }
 0x893   : > { %v12715_v44 = vpop.eup %12714  ;;  %12734 = vpow2.f32 %v10645_v5 }
 0x894   : > { %v12717_v46 = vpop.eup %12716  ;;  %12736 = vtanh.f32 %v4999_v47  ;;  %v5095_v47 = vmul.f32 %v12705_v33, %v14632_v58 }
 0x895   : > { %v12719_v51 = vpop.eup %12718  ;;  %12738 = vtanh.f32 %v5000_v9  ;;  %v4976_v2 = vadd.f32 1.0, %v12717_v46  ;;  %v5096_v9 = vmul.f32 %v12709_v40, %v14635_v53  ;;  %v5098_v46 = vmul.f32 %v12713_v59, %v14642_v14 }
 0x896   : > { %v12721_v13 = vpop.eup %12720  ;;  %12740 = vrcp.f32 %v4975_v61  ;;  %v4977_v21 = vadd.f32 1.0, %v12719_v51 }
 0x897   : > { %v12723_v49 = vpop.eup %12722  ;;  %12742 = vtanh.f32 %v5001_v55  ;;  %v4978_v36 = vadd.f32 1.0, %v12721_v13  ;;  %v5097_v55 = vmul.f32 %v12711_v39, %v14637_v24 }
 0x898   : > { %v12725_v30 = vpop.eup %12724  ;;  %12744 = vtanh.f32 %v5002_v41  ;;  %v4979_v15 = vadd.f32 1.0, %v12723_v49  ;;  %v5099_v41 = vmul.f32 %v12715_v44, %v14639_v62 }
 0x899   : > { %v12727_v11 = vpop.eup %12726  ;;  %v5100_v13 = vmul.f32 %v12725_v30, %v14644_v19 }
 0x89a   : > { %v12729_v17 = vpop.eup %12728 }
 0x89b   : > { %v12731_v34 = vpop.eup %12730  ;;  %v5102_v49 = vmul.f32 %v12729_v17, %v14649_v54 }
 0x89c   : > { %v12733_v35 = vpop.eup %12732  ;;  %v4980_v12 = vadd.f32 1.0, %v12731_v34 }
 0x89d   : > { %v12735_v29 = vpop.eup %12734  ;;  %v4981_v42 = vadd.f32 1.0, %v12733_v35 }
 0x89e   : > { %v12737_v37 = vpop.eup %12736  ;;  %v4982_v24 = vadd.f32 1.0, %v12735_v29 }
 0x89f   : > { %v12739_v28 = vpop.eup %12738  ;;  %v5103_v58 = vmul.f32 %v12737_v37, %v14814_v8 }
 0x8a0   : > { %v14844_v5 = vpop.eup %12740  ;;  %v5104_v53 = vmul.f32 %v12739_v28, %v14817_v60 }
 0x8a1   : > { %v12743_v61 = vpop.eup %12742  ;;  %v5111_v59 = vadd.f32 %v5103_v58, %v5095_v47 }
 0x8a2   : > { %v12745_v51 = vpop.eup %12744  ;;  %v5105_v33 = vmul.f32 %v12743_v61, %v14820_v0  ;;  %v5112_v54 = vadd.f32 %v5104_v53, %v5096_v9 }
 0x8a3   : > { %v5106_v62 = vmul.f32 %v12745_v51, %v14823_v7 }
 0x8a4   : > { %v5113_v44 = vadd.f32 %v5105_v33, %v5097_v55 }
 0x8a5   : > { %v5114_v8 = vadd.f32 %v5106_v62, %v5098_v46 }
 0x934   : > { %v5257_v43 = vpop.f32.mrb[52].mxu0 }
 0x935   : > { %12746 = vtanh.f32 %v5257_v43  ;;  %v11330_v52 = vpop.f32.mrb[53].mxu0 }
 0x936   : > { %12748 = vtanh.f32 %v5003_v20  ;;  %v5260_v48 = vpop.f32.mrb[54].mxu0  ;;  %v5101_v20 = vmul.f32 %v12727_v11, %v14646_v56 }
 0x937   : > { %12750 = vtanh.f32 %v5004_v18  ;;  %v11331_v32 = vpop.f32.mrb[55].mxu0 }
 0x938   : > { %12752 = vtanh.f32 %v5005_v26 }
 0x939   : > { %12754 = vrcp.f32 %v4976_v2 }
 0x93a   : > { %12756 = vtanh.f32 %v5006_v45 }
 0x93b   : > { %12758 = vrcp.f32 %v4977_v21 }
 0x93c   : > { %12760 = vrcp.f32 %v4978_v36 }
 0x93d   : > { %12762 = vrcp.f32 %v4979_v15 }
 0x93e   : > { %12764 = vrcp.f32 %v4980_v12 }
 0x93f   : > { %v12747_v18 = vpop.eup %12746  ;;  %12766 = vrcp.f32 %v4981_v42 }
 0x940   : > { %v12749_v40 = vpop.eup %12748  ;;  %v5265_v14 = vcombine.high %v12747_v18, %v12747_v18  ;;  %v5272_v39 = vrot.slane %v12747_v18, %v13993_v1  ;;  %12768 = vrcp.f32 %v4982_v24 }
 0x941   : > { %v12751_v19 = vpop.eup %12750  ;;  %v5107_v56 = vmul.f32 %v12749_v40, %v14826_v10 }
 0x942   : > { %v12753_v30 = vpop.eup %12752  ;;  %v5279_v60 = vrot.slane %v5265_v14, %v13993_v1  ;;  %v5280_v26 = vcombine.high %v5272_v39, %v5272_v39  ;;  %v5288_v0 = vrot.slane %v5272_v39, %v13993_v1  ;;  %v5108_v11 = vmul.f32 %v12751_v19, %v14829_v27 }
 0x943   : > { %v12755_v43 = vpop.eup %12754  ;;  %v5109_v7 = vmul.f32 %v12753_v30, %v14832_v50  ;;  %v5115_v2 = vadd.f32 %v5107_v56, %v5099_v41 }
 0x944   : > { %v12757_v52 = vpop.eup %12756  ;;  %v5281_v17 = vcombine.high %v5279_v60, %v5279_v60  ;;  %v5295_v10 = vrot.slane %v5279_v60, %v13993_v1  ;;  %v5302_v45 = vrot.slane %v5280_v26, %v13993_v1  ;;  %v5310_v48 = vcombine.high %v5288_v0, %v5288_v0 }
 0x945   : > { %v12759_v34 = vpop.eup %12758  ;;  %v5110_v21 = vmul.f32 %v12757_v52, %v14834_v31  ;;  %v5116_v32 = vadd.f32 %v5108_v11, %v5100_v13  ;;  %v5117_v35 = vadd.f32 %v5109_v7, %v5101_v20  ;;  %v14867_v36 = vadd.f32 %v5288_v0, %v5111_v59 }
 0x946   : > { %v12761_v29 = vpop.eup %12760  ;;  %v5309_v27 = vrot.slane %v5281_v17, %v13993_v1  ;;  %v5311_v50 = vcombine.high %v5295_v10, %v5295_v10  ;;  %v5312_v15 = vcombine.high %v5302_v45, %v5302_v45  ;;  %v14870_v37 = vadd.f32 %v5302_v45, %v5112_v54 }
 0x947   : > { %v12763_v12 = vpop.eup %12762  ;;  %v5118_v28 = vadd.f32 %v5110_v21, %v5102_v49  ;;  %v14872_v42 = vadd.f32 %v5310_v48, %v5113_v44  ;;  %v14874_v47 = vadd.f32 %v5295_v10, %v5115_v2  ;;  %12770 = vtanh.f32 %v14867_v36 }
 0x948   : > { %v12765_v31 = vpop.eup %12764  ;;  %v5313_v9 = vcombine.high %v5309_v27, %v5309_v27  ;;  %v14877_v61 = vadd.f32 %v5312_v15, %v5114_v8  ;;  %v14879_v55 = vadd.f32 %v5309_v27, %v5116_v32  ;;  %v14881_v46 = vadd.f32 %v5311_v50, %v5117_v35 }
 0x949   : > { %12772 = vtanh.f32 %v14870_v37  ;;  %v12767_v41 = vpop.eup %12766 }
 0x94a   : > { %v14884_v51 = vadd.f32 %v5313_v9, %v5118_v28  ;;  %12774 = vtanh.f32 %v14872_v42  ;;  %v12769_v13 = vpop.eup %12768 }
 0x94b   : > { %12776 = vtanh.f32 %v14877_v61 }
 0x94c   : > { %12778 = vtanh.f32 %v14874_v47 }
 0x94d   : > { %12780 = vtanh.f32 %v14879_v55 }
 0x94e   : > { %12782 = vtanh.f32 %v14881_v46 }
 0x94f   : > { %12784 = vtanh.f32 %v14884_v51 }
 0x951   : > { %v12771_v20 = vpop.eup %12770 }
 0x952   : > { %v5338_v49 = vmul.f32 %v12771_v20, %v14844_v5 }
 0x953   : > { %v12773_v18 = vpop.eup %12772 }
 0x954   : > { %v12775_v58 = vpop.eup %12774  ;;  %v5339_v53 = vmul.f32 %v12773_v18, %v12755_v43  ;;  %5346 = vst [vmem:[#allocation3 + $0x3] sm:$0x1] %v5338_v49  ;;  %v5386_v40 = vpack.c.bf16 %v5338_v49, %v5338_v49  ;;  %v11922_v49 = vld [vmem:[#allocation12 + $0x10] ss:$20 sps:$4 sm:$0xff]  }
 0x955   : > { %v12777_v33 = vpop.eup %12776  ;;  %v5340_v24 = vmul.f32 %v12775_v58, %v12759_v34  ;;  %v11923_v58 = vld [vmem:[#allocation12 + $0x38] ss:$20 sps:$4 sm:$0xff]  }
 0x956   : > { %v12779_v62 = vpop.eup %12778  ;;  %v5341_v14 = vmul.f32 %v12777_v33, %v12761_v29  ;;  %5347 = vst [vmem:[#allocation3 + $0xb] sm:$0x1] %v5339_v53  ;;  %v5387_v39 = vpack.c.bf16 %v5339_v53, %v5339_v53  ;;  %v5450_v0 = vunpack.c.l.b16 %v5386_v40  ;;  %v11924_v53 = vld [vmem:[#allocation12 + $0x60] ss:$20 sps:$4 sm:$0xff]   ;;  %v11925_v33 = vld [vmem:[#allocation12 + $0x88] ss:$20 sps:$4 sm:$0xff]  }
 0x957   : > { %v12781_v19 = vpop.eup %12780  ;;  %v5342_v56 = vmul.f32 %v12779_v62, %v12763_v12  ;;  %5348 = vst [vmem:[#allocation3 + $0x13] sm:$0x1] %v5340_v24  ;;  %v5388_v59 = vpack.c.bf16 %v5340_v24, %v5340_v24  ;;  %v11926_v24 = vld [vmem:[#allocation12 + $0xb0] ss:$20 sps:$4 sm:$0xff]   ;;  %v11927_v40 = vld [vmem:[#allocation12 + $0xd8] ss:$20 sps:$4 sm:$0xff]  }
 0x958   : > { %v12783_v54 = vpop.eup %12782  ;;  %v5343_v44 = vmul.f32 %v12781_v19, %v12765_v31  ;;  %5349 = vst [vmem:[#allocation3 + $0x1b] sm:$0x1] %v5341_v14  ;;  %v5389_v30 = vpack.c.bf16 %v5341_v14, %v5341_v14  ;;  %v5451_v5 = vunpack.c.l.b16 %v5387_v39  ;;  %v11928_v62 = vld [vmem:[#allocation12 + $0x100] ss:$20 sps:$4 sm:$0xff]   ;;  %v11929_v14 = vld [vmem:[#allocation12 + $0x128] ss:$20 sps:$4 sm:$0xff]  }
 0x959   : > { %v12785_v8 = vpop.eup %12784  ;;  %v5344_v60 = vmul.f32 %v12783_v54, %v12767_v41  ;;  %5350 = vst [vmem:[#allocation3 + $0x23] sm:$0x1] %v5342_v56  ;;  %v5390_v26 = vpack.c.bf16 %v5342_v56, %v5342_v56  ;;  %v5452_v43 = vunpack.c.l.b16 %v5388_v59  ;;  %v11930_v39 = vld [vmem:[%s15890_s5] sm:$0xff]   ;;  %v11931_v19 = vld [vmem:[%s15890_s5 + $0x8] sm:$0xff]   ;;  %v11932_v56 = vld [vmem:[%s15890_s5 + $0x10] sm:$0xff]  }
 0x95a   : > { %v5345_v11 = vmul.f32 %v12785_v8, %v12769_v13  ;;  %5351 = vst [vmem:[#allocation3 + $0x2b] sm:$0x1] %v5343_v44  ;;  %v5391_v7 = vpack.c.bf16 %v5343_v44, %v5343_v44  ;;  %v5453_v2 = vunpack.c.l.b16 %v5389_v30  ;;  %v5458_v52 = vrot.slane %v5451_v5, 7  ;;  %v11933_v59 = vld [vmem:[%s15890_s5 + $0x18] sm:$0xff]   ;;  %v11934_v54 = vld [vmem:[%s15890_s5 + $0x20] sm:$0xff]  }
 0x95b   : > { %5352 = vst [vmem:[#allocation3 + $0x33] sm:$0x1] %v5344_v60  ;;  %v5392_v17 = vpack.c.bf16 %v5344_v60, %v5344_v60  ;;  %v5454_v10 = vunpack.c.l.b16 %v5390_v26  ;;  %v5460_v45 = vrot.slane %v5452_v43, 6 }
 0x95c   : > { %5353 = vst [vmem:[#allocation3 + $0x3b] sm:$0x1] %v5345_v11  ;;  %v5393_v48 = vpack.c.bf16 %v5345_v11, %v5345_v11  ;;  %v5455_v34 = vunpack.c.l.b16 %v5391_v7  ;;  %v5459_v21 = vsel %vm1772_vm3, %v5458_v52, %v5450_v0  ;;  %v5462_v32 = vrot.slane %v5453_v2, 5 }
 0x95d   : > { %v5456_v35 = vunpack.c.l.b16 %v5392_v17  ;;  %v5461_v29 = vsel %vm1775_vm4, %v5460_v45, %v5459_v21  ;;  %v5464_v27 = vrot.slane %v5454_v10, 4  ;;  %v11935_v17 = vld [vmem:[%s15890_s5 + $0x28] sm:$0xff]  }
 0x95e   : > { %v5457_v50 = vunpack.c.l.b16 %v5393_v48  ;;  %v5463_v15 = vsel %vm1778_vm5, %v5462_v32, %v5461_v29  ;;  %v5466_v12 = vrot.slane %v5455_v34, 3 }
 0x95f   : > { %v5465_v28 = vsel %vm1781_vm6, %v5464_v27, %v5463_v15  ;;  %v5468_v31 = vrot.slane %v5456_v35, 2  ;;  %v11936_v27 = vld [vmem:[%s15890_s5 + $0x30] sm:$0xff]  }
 0x960   : > { %v5467_v9 = vsel %vm1784_vm7, %v5466_v12, %v5465_v28  ;;  %v5470_v41 = vrot.slane %v5457_v50, 1  ;;  %v11937_v50 = vld [vmem:[%s15890_s5 + $0x38] sm:$0xff]  }
 0x961   : > { %v5469_v13 = vsel %vm1787_vm8, %v5468_v31, %v5467_v9 }
 0x962   : > { %v5471_v20 = vsel %vm1790_vm9, %v5470_v41, %v5469_v13 }
 0x963   : > { %v5472_v18 = vpack.c.b16 %v5471_v20, %v5471_v20 }
 0x965   : > { %5715 = vmatmul.mubr.bf16.vlgmr.msra.gmra.mrb[48].mxu1 %v5472_v18  ;;  %5756 = vmatmul.mubr.bf16.vlgmr.msra.gmra.mrb[56].mxu0 %v5472_v18 }
 0x966   : > { %11333 = vmatpush3.bf16.msra.mxu1 %v11922_v49  ;;  %11348 = vmatprep.mubr.msk.bf16.mxu1 %vm13603_vm2, %v13602_v57 }
 0x967   : > { %11334 = vmatprep.subr.bf16.mxu1 %v13602_v57  ;;  %11368 = vmatprep.mubr.msk.bf16.mxu0 %vm13603_vm2, %v13602_v57 }
 0x968   : > { %11353 = vmatpush3.bf16.msra.mxu0 %v11930_v39 }
 0x969   : > { %11354 = vmatprep.subr.bf16.mxu0 %v13602_v57 }
 0x96a   : > { %11335 = vmatpush3.bf16.msra.mxu1 %v11923_v58 }
 0x96b   : > { %11336 = vmatprep.subr.bf16.mxu1 %v13602_v57 }
 0x96c   : > { %11355 = vmatpush3.bf16.msra.mxu0 %v11931_v19 }
 0x96d   : > { %11356 = vmatprep.subr.bf16.mxu0 %v13602_v57 }
 0x96e   : > { %11337 = vmatpush3.bf16.msra.mxu1 %v11924_v53 }
 0x96f   : > { %11338 = vmatprep.subr.bf16.mxu1 %v13602_v57 }
 0x970   : > { %11357 = vmatpush3.bf16.msra.mxu0 %v11932_v56 }
 0x971   : > { %11358 = vmatprep.subr.bf16.mxu0 %v13602_v57 }
 0x972   : > { %11339 = vmatpush3.bf16.msra.mxu1 %v11925_v33 }
 0x973   : > { %11340 = vmatprep.subr.bf16.mxu1 %v13602_v57 }
 0x974   : > { %11359 = vmatpush3.bf16.msra.mxu0 %v11933_v59 }
 0x975   : > { %11360 = vmatprep.subr.bf16.mxu0 %v13602_v57 }
 0x976   : > { %11341 = vmatpush3.bf16.msra.mxu1 %v11926_v24 }
 0x977   : > { %11342 = vmatprep.subr.bf16.mxu1 %v13602_v57 }
 0x978   : > { %11361 = vmatpush3.bf16.msra.mxu0 %v11934_v54 }
 0x979   : > { %11362 = vmatprep.subr.bf16.mxu0 %v13602_v57 }
 0x97a   : > { %11343 = vmatpush3.bf16.msra.mxu1 %v11927_v40 }
 0x97b   : > { %11344 = vmatprep.subr.bf16.mxu1 %v13602_v57 }
 0x97c   : > { %11363 = vmatpush3.bf16.msra.mxu0 %v11935_v17  ;;  %v5372_v17 = vld [vmem:[#allocation2 + $0xa4] ss:$8 sm:$0x10] }
 0x97d   : > { %11364 = vmatprep.subr.bf16.mxu0 %v13602_v57 }
 0x97e   : > { %11345 = vmatpush3.bf16.msra.mxu1 %v11928_v62 }
 0x97f   : > { %11346 = vmatprep.subr.bf16.mxu1 %v13602_v57 }
 0x980   : > { %11365 = vmatpush3.bf16.msra.mxu0 %v11936_v27 }
 0x981   : > { %11366 = vmatprep.subr.bf16.mxu0 %v13602_v57 }
 0x982   : > { %11347 = vmatpush3.bf16.msra.mxu1 %v11929_v14 }
 0x984   : > { %11367 = vmatpush3.bf16.msra.mxu0 %v11937_v50  ;;  %v5375_v50 = vld [vmem:[#allocation2 + $0xcc] ss:$8 sm:$0xf] }
 0x985   : > { %11349 = vmatmul.mubr.bf16.vlgmr.msra.gmra.mrb[52].mxu1 %v5472_v18 }
 0x986   : > { %6841 = vmatprep.mubr.bf16.mxu1 %v13601_v4 }
 0xa38   : > { %v5716_v44 = vpop.f32.mrb[48].mxu1  ;;  %v5757_v30 = vpop.f32.mrb[56].mxu0 }
 0xa39   : > { %v5718_v5 = vpop.f32.mrb[49].mxu1  ;;  %v5759_v8 = vpop.f32.mrb[57].mxu0 }
 0xa3a   : > { %v5809_v60 = vcombine.low %v5716_v44, %v5718_v5  ;;  %v5810_v26 = vcombine.high %v5716_v44, %v5718_v5  ;;  %v5811_v0 = vcombine.low %v5757_v30, %v5759_v8  ;;  %v5812_v43 = vcombine.high %v5757_v30, %v5759_v8  ;;  %v5720_v11 = vpop.f32.mrb[50].mxu1  ;;  %v5761_v7 = vpop.f32.mrb[58].mxu0  ;;  %v5356_v8 = vld [vmem:[#allocation2 + $0x4] ss:$8 sm:$0x10] }
 0xa3b   : > { %v5721_v2 = vpop.f32.mrb[51].mxu1  ;;  %v5762_v52 = vpop.f32.mrb[59].mxu0  ;;  %v5359_v11 = vld [vmem:[#allocation2 + $0x2c] ss:$8 sm:$0xf] }
 0xa3c   : > { %v5820_v10 = vrot.slane %v5809_v60, %v13993_v1  ;;  %v5827_v45 = vrot.slane %v5810_v26, %v13993_v1  ;;  %v5834_v48 = vrot.slane %v5811_v0, %v13993_v1  ;;  %v5841_v34 = vrot.slane %v5812_v43, %v13993_v1  ;;  %v5360_v60 = vld [vmem:[#allocation2 + $0x2c] ss:$8 sm:$0x10]  ;;  %v5364_v0 = vld [vmem:[#allocation2 + $0x54] ss:$8 sm:$0x10] }
 0xa3d   : > { %v5355_v26 = vld [vmem:[#allocation2 + $0x4] ss:$8 sm:$0xf]  ;;  %v5361_v2 = vor.u32 %v5360_v60, %v5359_v11 }
 0xa3e   : > { %v5856_v21 = vcombine.low %v5820_v10, %v5834_v48  ;;  %v5857_v32 = vcombine.high %v5820_v10, %v5834_v48  ;;  %v5858_v35 = vcombine.low %v5827_v45, %v5841_v34  ;;  %v5859_v29 = vcombine.high %v5827_v45, %v5841_v34  ;;  %v5368_v7 = vld [vmem:[#allocation2 + $0x7c] ss:$8 sm:$0x10]  ;;  %v5376_v48 = vld [vmem:[#allocation2 + $0xcc] ss:$8 sm:$0x10] }
 0xa3f   : > { %v5357_v43 = vor.u32 %v5356_v8, %v5355_v26  ;;  %v5363_v52 = vld [vmem:[#allocation2 + $0x54] ss:$8 sm:$0xf] }
 0xa40   : > { %v5868_v20 = vrot.slane %v5856_v21, %v13993_v1  ;;  %v5875_v58 = vrot.slane %v5858_v35, %v13993_v1  ;;  %v5882_v53 = vrot.slane %v5857_v32, %v13993_v1  ;;  %v5889_v14 = vrot.slane %v5859_v29, %v13993_v1  ;;  %v5367_v45 = vld [vmem:[#allocation2 + $0x7c] ss:$8 sm:$0xf] }
 0xa41   : > { %v5365_v10 = vor.u32 %v5364_v0, %v5363_v52  ;;  %v5369_v21 = vor.u32 %v5368_v7, %v5367_v45  ;;  %v5371_v32 = vld [vmem:[#allocation2 + $0xa4] ss:$8 sm:$0xf] }
 0xa42   : > { %v5380_v35 = vld [vmem:[#allocation2 + $0xf4] ss:$8 sm:$0x10]  ;;  %v5373_v27 = vor.u32 %v5372_v17, %v5371_v32 }
 0xa58   : > { %v5798_v15 = vpop.f32.mrb[52].mxu1 }
 0xa59   : > { %v5813_v12 = vcombine.high %v5798_v15, %v5798_v15  ;;  %v5848_v28 = vrot.slane %v5798_v15, %v13993_v1  ;;  %v11350_v31 = vpop.f32.mrb[53].mxu1  ;;  %v5384_v15 = vld [vmem:[#allocation2 + $0x11c] ss:$8 sm:$0x10] }
 0xa5a   : > { %v5801_v9 = vpop.f32.mrb[54].mxu1  ;;  %v5379_v31 = vld [vmem:[#allocation2 + $0xf4] ss:$8 sm:$0xf] }
 0xa5b   : > { %v5855_v41 = vrot.slane %v5813_v12, %v13993_v1  ;;  %v5860_v13 = vcombine.high %v5848_v28, %v5848_v28  ;;  %v5896_v49 = vrot.slane %v5848_v28, %v13993_v1  ;;  %v11351_v18 = vpop.f32.mrb[55].mxu1  ;;  %v5377_v28 = vor.u32 %v5376_v48, %v5375_v50 }
 0xa5d   : > { %v5861_v33 = vcombine.high %v5855_v41, %v5855_v41  ;;  %v5903_v24 = vrot.slane %v5855_v41, %v13993_v1  ;;  %v5910_v40 = vrot.slane %v5860_v13, %v13993_v1  ;;  %v5918_v62 = vcombine.low %v5868_v20, %v5896_v49  ;;  %v5383_v13 = vld [vmem:[#allocation2 + $0x11c] ss:$8 sm:$0xf] }
 0xa5e   : > { %v5919_v39 = vcombine.high %v5868_v20, %v5896_v49  ;;  %v5381_v41 = vor.u32 %v5380_v35, %v5379_v31  ;;  %v5385_v18 = vor.u32 %v5384_v15, %v5383_v13 }
 0xa5f   : > { %v5917_v19 = vrot.slane %v5861_v33, %v13993_v1  ;;  %v5920_v56 = vcombine.low %v5875_v58, %v5903_v24  ;;  %v5921_v59 = vcombine.high %v5875_v58, %v5903_v24  ;;  %v5922_v54 = vcombine.low %v5882_v53, %v5910_v40 }
 0xa60   : > { %v5923_v44 = vcombine.high %v5882_v53, %v5910_v40  ;;  %v14957_v34 = vadd.f32 %v5918_v62, %v5357_v43  ;;  %v14961_v12 = vadd.f32 %v5919_v39, %v5365_v10 }
 0xa61   : > { %v5924_v30 = vcombine.low %v5889_v14, %v5917_v19  ;;  %v5925_v5 = vcombine.high %v5889_v14, %v5917_v19  ;;  %v14959_v29 = vadd.f32 %v5922_v54, %v5361_v2  ;;  %v14965_v20 = vadd.f32 %v5920_v56, %v5373_v27 }
 0xa62   : > { %v14963_v9 = vadd.f32 %v5923_v44, %v5369_v21  ;;  %v6150_v49 = vrot.slane %v14957_v34, 4  ;;  %v14971_v33 = vadd.f32 %v5921_v59, %v5381_v41  ;;  %v6152_v24 = vrot.slane %v14961_v12, 4 }
 0xa63   : > { %v14968_v58 = vadd.f32 %v5924_v30, %v5377_v28  ;;  %v6151_v53 = vrot.slane %v14959_v29, 4  ;;  %v14974_v40 = vadd.f32 %v5925_v5, %v5385_v18  ;;  %v6154_v14 = vrot.slane %v14965_v20, 4 }
 0xa64   : > { %v6153_v62 = vrot.slane %v14963_v9, 4  ;;  %v10726_v39 = vmul.f32 -1.442695, %v6150_v49  ;;  %v6156_v54 = vrot.slane %v14971_v33, 4  ;;  %v10728_v44 = vmul.f32 -1.442695, %v6152_v24 }
 0xa65   : > { %v6155_v19 = vrot.slane %v14968_v58, 4  ;;  %v10727_v56 = vmul.f32 -1.442695, %v6151_v53  ;;  %v6157_v30 = vrot.slane %v14974_v40, 4  ;;  %v10730_v59 = vmul.f32 -1.442695, %v6154_v14 }
 0xa66   : > { %v10729_v8 = vmul.f32 -1.442695, %v6153_v62  ;;  %12786 = vpow2.f32 %v10726_v39  ;;  %v10732_v5 = vmul.f32 -1.442695, %v6156_v54 }
 0xa67   : > { %12788 = vpow2.f32 %v10727_v56  ;;  %v10731_v60 = vmul.f32 -1.442695, %v6155_v19  ;;  %v10733_v26 = vmul.f32 -1.442695, %v6157_v30 }
 0xa68   : > { %12790 = vpow2.f32 %v10728_v44 }
 0xa69   : > { %12792 = vpow2.f32 %v10729_v8 }
 0xa6a   : > { %12794 = vpow2.f32 %v10730_v59 }
 0xa6b   : > { %12796 = vpow2.f32 %v10731_v60 }
 0xa6c   : > { %12798 = vpow2.f32 %v10732_v5 }
 0xa6d   : > { %12800 = vpow2.f32 %v10733_v26 }
 0xa70   : > { %v12787_v0 = vpop.eup %12786 }
 0xa71   : > { %v12789_v43 = vpop.eup %12788  ;;  %v6190_v11 = vadd.f32 1.0, %v12787_v0 }
 0xa72   : > { %v12791_v7 = vpop.eup %12790  ;;  %v6191_v2 = vadd.f32 1.0, %v12789_v43 }
 0xa73   : > { %v12793_v52 = vpop.eup %12792  ;;  %v6192_v17 = vadd.f32 1.0, %v12791_v7  ;;  %12802 = vrcp.f32 %v6190_v11 }
 0xa74   : > { %v12795_v10 = vpop.eup %12794  ;;  %v6193_v45 = vadd.f32 1.0, %v12793_v52  ;;  %12804 = vrcp.f32 %v6191_v2 }
 0xa75   : > { %v12797_v48 = vpop.eup %12796  ;;  %v6194_v21 = vadd.f32 1.0, %v12795_v10  ;;  %12806 = vrcp.f32 %v6192_v17 }
 0xa76   : > { %v12799_v32 = vpop.eup %12798  ;;  %v6195_v35 = vadd.f32 1.0, %v12797_v48  ;;  %12808 = vrcp.f32 %v6193_v45 }
 0xa77   : > { %v12801_v27 = vpop.eup %12800  ;;  %v6196_v50 = vadd.f32 1.0, %v12799_v32  ;;  %12810 = vrcp.f32 %v6194_v21 }
 0xa78   : > { %12812 = vrcp.f32 %v6195_v35  ;;  %v6197_v15 = vadd.f32 1.0, %v12801_v27 }
 0xa79   : > { %12814 = vrcp.f32 %v6196_v50 }
 0xa7a   : > { %12816 = vrcp.f32 %v6197_v15 }
 0xa7d   : > { %v12803_v28 = vpop.eup %12802 }
 0xa7e   : > { %v12805_v31 = vpop.eup %12804  ;;  %v14982_v41 = vmul.f32 %v12803_v28, %v14747_v22 }
 0xa7f   : > { %v12807_v13 = vpop.eup %12806  ;;  %v14985_v49 = vmul.f32 %v12805_v31, %v14750_v23 }
 0xa80   : > { %v12809_v18 = vpop.eup %12808  ;;  %v14988_v53 = vmul.f32 %v12807_v13, %v14753_v25  ;;  %v6246_v24 = vpack.c.bf16 %v14982_v41, %v14982_v41  ;;  %v11940_v13 = vld [vmem:[#allocation12 + $0x4] ss:$20 sps:$4 sm:$0xff]  }
 0xa81   : > { %v12811_v62 = vpop.eup %12810  ;;  %v14993_v14 = vmul.f32 %v12809_v18, %v14758_v3  ;;  %v6247_v39 = vpack.c.bf16 %v14985_v49, %v14985_v49  ;;  %v11938_v18 = vld [vmem:[#allocation12] ss:$20 sps:$4 sm:$0xff]   ;;  %6809 = vmatprep.subr.bf16.mxu1 %v11940_v13  ;;  %v5998_v13 = vrot.slane %v14957_v34, 1 }
 0xa82   : > { %v12813_v22 = vpop.eup %12812  ;;  %v14998_v19 = vmul.f32 %v12811_v62, %v14763_v16  ;;  %v6248_v23 = vpack.c.bf16 %v14988_v53, %v14988_v53  ;;  %v6278_v16 = vunpack.c.l.b16 %v6246_v24  ;;  %v11943_v24 = vld [vmem:[#allocation12 + $0xc] ss:$20 sps:$4 sm:$0xff]   ;;  %v11941_v62 = vld [vmem:[#allocation12 + $0x8] ss:$20 sps:$4 sm:$0xff]   ;;  %6810 = vmatpush1.bf16.msra.mxu1 %v11938_v18  ;;  %v10707_v18 = vmul.f32 -1.442695, %v14968_v58 }
 0xa83   : > { %v12815_v56 = vpop.eup %12814  ;;  %v15003_v25 = vmul.f32 %v12813_v22, %v14768_v38  ;;  %v6249_v54 = vpack.c.bf16 %v14993_v14, %v14993_v14  ;;  %v6279_v44 = vunpack.c.l.b16 %v6247_v39  ;;  %6850 = vmatprep.subr.bf16.mxu0 %v11943_v24  ;;  %v11946_v39 = vld [vmem:[#allocation12 + $0x2c] ss:$20 sps:$4 sm:$0xff]   ;;  %v11944_v22 = vld [vmem:[#allocation12 + $0x28] ss:$20 sps:$4 sm:$0xff]   ;;  %v10708_v24 = vmul.f32 -1.442695, %v14971_v33 }
 0xa84   : > { %v12817_v3 = vpop.eup %12816  ;;  %v15008_v30 = vmul.f32 %v12815_v56, %v14773_v6  ;;  %v6250_v8 = vpack.c.bf16 %v14998_v19, %v14998_v19  ;;  %v6280_v59 = vunpack.c.l.b16 %v6248_v23  ;;  %v11949_v23 = vld [vmem:[#allocation12 + $0x34] ss:$20 sps:$4 sm:$0xff]   ;;  %6811 = vmatprep.subr.bf16.mxu1 %v11946_v39  ;;  %v11947_v56 = vld [vmem:[#allocation12 + $0x30] ss:$20 sps:$4 sm:$0xff]   ;;  %v10709_v39 = vmul.f32 -1.442695, %v14974_v40 }
 0xa85   : > { %v15013_v60 = vmul.f32 %v12817_v3, %v14778_v63  ;;  %v6251_v38 = vpack.c.bf16 %v15003_v25, %v15003_v25  ;;  %v6281_v5 = vunpack.c.l.b16 %v6249_v54  ;;  %v6286_v26 = vrot.slane %v6279_v44, 7  ;;  %v11952_v54 = vld [vmem:[#allocation12 + $0x54] ss:$20 sps:$4 sm:$0xff]   ;;  %v11950_v44 = vld [vmem:[#allocation12 + $0x50] ss:$20 sps:$4 sm:$0xff]  }
 0xa86   : > { %v6252_v0 = vpack.c.bf16 %v15008_v30, %v15008_v30  ;;  %v6282_v43 = vunpack.c.l.b16 %v6250_v8  ;;  %v6288_v11 = vrot.slane %v6280_v59, 6  ;;  %6812 = vmatpush1.bf16.msra.mxu1 %v11944_v22  ;;  %v11953_v3 = vld [vmem:[#allocation12 + $0x58] ss:$20 sps:$4 sm:$0xff]   ;;  %v11955_v8 = vld [vmem:[#allocation12 + $0x5c] ss:$20 sps:$4 sm:$0xff]   ;;  %v6000_v22 = vrot.slane %v14961_v12, 1 }
 0xa87   : > { %v6253_v6 = vpack.c.bf16 %v15013_v60, %v15013_v60  ;;  %v6283_v7 = vunpack.c.l.b16 %v6251_v38  ;;  %v6287_v2 = vsel %vm1772_vm3, %v6286_v26, %v6278_v16  ;;  %v6290_v52 = vrot.slane %v6281_v5, 5  ;;  %6813 = vmatprep.subr.bf16.mxu1 %v11952_v54  ;;  %v11958_v16 = vld [vmem:[#allocation12 + $0x7c] ss:$20 sps:$4 sm:$0xff]   ;;  %v11956_v59 = vld [vmem:[#allocation12 + $0x78] ss:$20 sps:$4 sm:$0xff]  }
 0xa88   : > { %v6284_v17 = vunpack.c.l.b16 %v6252_v0  ;;  %v6289_v63 = vsel %vm1775_vm4, %v6288_v11, %v6287_v2  ;;  %v6292_v10 = vrot.slane %v6282_v43, 4  ;;  %v11961_v38 = vld [vmem:[#allocation12 + $0x84] ss:$20 sps:$4 sm:$0xff]   ;;  %v11959_v5 = vld [vmem:[#allocation12 + $0x80] ss:$20 sps:$4 sm:$0xff]   ;;  %v6002_v54 = vrot.slane %v14965_v20, 1 }
 0xa89   : > { %v6285_v45 = vunpack.c.l.b16 %v6253_v6  ;;  %v6291_v48 = vsel %vm1778_vm5, %v6290_v52, %v6289_v63  ;;  %v6294_v21 = vrot.slane %v6283_v7, 3  ;;  %v11964_v26 = vld [vmem:[#allocation12 + $0xa4] ss:$20 sps:$4 sm:$0xff]   ;;  %v11967_v0 = vld [vmem:[#allocation12 + $0xac] ss:$20 sps:$4 sm:$0xff]  }
 0xa8a   : > { %v6293_v32 = vsel %vm1781_vm6, %v6292_v10, %v6291_v48  ;;  %v6296_v35 = vrot.slane %v6284_v17, 2  ;;  %6814 = vmatpush1.bf16.msra.mxu1 %v11950_v44  ;;  %v11962_v43 = vld [vmem:[#allocation12 + $0xa0] ss:$20 sps:$4 sm:$0xff]   ;;  %v11965_v11 = vld [vmem:[#allocation12 + $0xa8] ss:$20 sps:$4 sm:$0xff]  }
 0xa8b   : > { %v6295_v27 = vsel %vm1784_vm7, %v6294_v21, %v6293_v32  ;;  %v6298_v50 = vrot.slane %v6285_v45, 1  ;;  %6815 = vmatprep.subr.bf16.mxu1 %v11958_v16  ;;  %v11970_v6 = vld [vmem:[#allocation12 + $0xcc] ss:$20 sps:$4 sm:$0xff]   ;;  %v11973_v7 = vld [vmem:[#allocation12 + $0xd4] ss:$20 sps:$4 sm:$0xff]  }
 0xa8c   : > { %v6297_v15 = vsel %vm1787_vm8, %v6296_v35, %v6295_v27  ;;  %v11968_v2 = vld [vmem:[#allocation12 + $0xc8] ss:$20 sps:$4 sm:$0xff]   ;;  %v11971_v52 = vld [vmem:[#allocation12 + $0xd0] ss:$20 sps:$4 sm:$0xff]   ;;  %v11977_v45 = vld [vmem:[#allocation12 + $0xf8] ss:$20 sps:$4 sm:$0xff]  }
 0xa8d   : > { %v6299_v28 = vsel %vm1790_vm9, %v6298_v50, %v6297_v15  ;;  %v11976_v17 = vld [vmem:[#allocation12 + $0xf4] ss:$20 sps:$4 sm:$0xff]   ;;  %v11979_v63 = vld [vmem:[#allocation12 + $0xfc] ss:$20 sps:$4 sm:$0xff]   ;;  %v11985_v21 = vld [vmem:[#allocation12 + $0x124] ss:$20 sps:$4 sm:$0xff]  }
 0xa8e   : > { %v6300_v31 = vpack.c.b16 %v6299_v28, %v6299_v28  ;;  %6816 = vmatpush1.bf16.msra.mxu1 %v11956_v59  ;;  %v11974_v10 = vld [vmem:[#allocation12 + $0xf0] ss:$20 sps:$4 sm:$0xff]   ;;  %v11980_v32 = vld [vmem:[#allocation12 + $0x118] ss:$20 sps:$4 sm:$0xff]   ;;  %v11983_v35 = vld [vmem:[#allocation12 + $0x120] ss:$20 sps:$4 sm:$0xff]  }
 0xa8f   : > { %6817 = vmatprep.subr.bf16.mxu1 %v11964_v26  ;;  %v11982_v48 = vld [vmem:[#allocation12 + $0x11c] ss:$20 sps:$4 sm:$0xff]   ;;  %v10702_v27 = vmul.f32 -1.442695, %v14957_v34  ;;  %v10703_v50 = vmul.f32 -1.442695, %v14959_v29 }
 0xa90   : > { %11369 = vmatmul.mubr.bf16.vlgmr.msra.gmra.mrb[60].mxu0 %v6300_v31  ;;  %v10704_v15 = vmul.f32 -1.442695, %v14961_v12  ;;  %v10705_v28 = vmul.f32 -1.442695, %v14963_v9  ;;  %v10706_v31 = vmul.f32 -1.442695, %v14965_v20 }
 0xa91   : > { %6882 = vmatprep.mubr.bf16.mxu0 %v13601_v4  ;;  %6851 = vmatpush1.bf16.msra.mxu0 %v11941_v62  ;;  %12818 = vpow2.f32 %v10702_v27  ;;  %v5999_v62 = vrot.slane %v14959_v29, 1 }
 0xa92   : > { %6852 = vmatprep.subr.bf16.mxu0 %v11949_v23  ;;  %6818 = vmatpush1.bf16.msra.mxu1 %v11962_v43  ;;  %12820 = vpow2.f32 %v10703_v50  ;;  %v6001_v23 = vrot.slane %v14963_v9, 1  ;;  %v6003_v43 = vrot.slane %v14968_v58, 1 }
 0xa93   : > { %6819 = vmatprep.subr.bf16.mxu1 %v11970_v6  ;;  %12822 = vpow2.f32 %v10704_v15  ;;  %v10711_v44 = vmul.f32 -1.442695, %v5999_v62  ;;  %v6004_v6 = vrot.slane %v14971_v33, 1  ;;  %v6062_v15 = vrot.slane %v14957_v34, 2 }
 0xa94   : > { %12824 = vpow2.f32 %v10705_v28  ;;  %v10713_v59 = vmul.f32 -1.442695, %v6001_v23 }
 0xa95   : > { %6853 = vmatpush1.bf16.msra.mxu0 %v11947_v56  ;;  %12826 = vpow2.f32 %v10706_v31  ;;  %v10710_v56 = vmul.f32 -1.442695, %v5998_v13 }
 0xa96   : > { %6854 = vmatprep.subr.bf16.mxu0 %v11955_v8  ;;  %6820 = vmatpush1.bf16.msra.mxu1 %v11968_v2  ;;  %12828 = vpow2.f32 %v10707_v18  ;;  %v10712_v8 = vmul.f32 -1.442695, %v6000_v22  ;;  %v6005_v2 = vrot.slane %v14974_v40, 1 }
 0xa97   : > { %6821 = vmatprep.subr.bf16.mxu1 %v11976_v17  ;;  %12830 = vpow2.f32 %v10708_v24 }
 0xa98   : > { %12832 = vpow2.f32 %v10709_v39  ;;  %v10718_v39 = vmul.f32 -1.442695, %v6062_v15 }
 0xa99   : > { %6855 = vmatpush1.bf16.msra.mxu0 %v11953_v3  ;;  %12834 = vpow2.f32 %v10710_v56  ;;  %v6063_v56 = vrot.slane %v14959_v29, 2 }
 0xa9a   : > { %6856 = vmatprep.subr.bf16.mxu0 %v11961_v38  ;;  %6822 = vmatpush1.bf16.msra.mxu1 %v11974_v10  ;;  %12836 = vpow2.f32 %v10711_v44 }
 0xa9b   : > { %6823 = vmatprep.subr.bf16.mxu1 %v11982_v48  ;;  %v12819_v3 = vpop.eup %12818  ;;  %12838 = vpow2.f32 %v10712_v8 }
 0xa9c   : > { %v12821_v16 = vpop.eup %12820  ;;  %12840 = vpow2.f32 %v10713_v59  ;;  %v6065_v59 = vrot.slane %v14963_v9, 2 }
 0xa9d   : > { %6857 = vmatpush1.bf16.msra.mxu0 %v11959_v5  ;;  %v12823_v38 = vpop.eup %12822  ;;  %v10714_v5 = vmul.f32 -1.442695, %v6002_v54 }
 0xa9e   : > { %6858 = vmatprep.subr.bf16.mxu0 %v11967_v0  ;;  %6824 = vmatpush1.bf16.msra.mxu1 %v11980_v32  ;;  %v12825_v26 = vpop.eup %12824  ;;  %v5966_v0 = vadd.f32 1.0, %v12819_v3  ;;  %v6064_v3 = vrot.slane %v14961_v12, 2 }
 0xa9f   : > { %11372 = vmatprep.subr.bf16.mxu1 %v13602_v57  ;;  %12842 = vpow2.f32 %v10714_v5  ;;  %v12827_v17 = vpop.eup %12826 }
 0xaa0   : > { %12844 = vrcp.f32 %v5966_v0  ;;  %v12829_v10 = vpop.eup %12828 }
 0xaa1   : > { %6859 = vmatpush1.bf16.msra.mxu0 %v11965_v11  ;;  %v5967_v11 = vadd.f32 1.0, %v12821_v16  ;;  %v12831_v48 = vpop.eup %12830  ;;  %v5971_v50 = vadd.f32 1.0, %v12829_v10 }
 0xaa2   : > { %6860 = vmatprep.subr.bf16.mxu0 %v11973_v7  ;;  %v5968_v7 = vadd.f32 1.0, %v12823_v38  ;;  %v12833_v32 = vpop.eup %12832  ;;  %v5972_v28 = vadd.f32 1.0, %v12831_v48  ;;  %v6068_v48 = vrot.slane %v14971_v33, 2 }
 0xaa3   : > { %12846 = vrcp.f32 %v5967_v11  ;;  %v12835_v27 = vpop.eup %12834  ;;  %v5973_v13 = vadd.f32 1.0, %v12833_v32 }
 0xaa4   : > { %12848 = vrcp.f32 %v5968_v7  ;;  %v12837_v31 = vpop.eup %12836  ;;  %v6038_v24 = vadd.f32 1.0, %v12835_v27 }
 0xaa5   : > { %6861 = vmatpush1.bf16.msra.mxu0 %v11971_v52  ;;  %v5969_v52 = vadd.f32 1.0, %v12825_v26  ;;  %v12839_v18 = vpop.eup %12838  ;;  %v6039_v23 = vadd.f32 1.0, %v12837_v31  ;;  %v6066_v26 = vrot.slane %v14965_v20, 2 }
 0xaa6   : > { %6862 = vmatprep.subr.bf16.mxu0 %v11979_v63  ;;  %v10715_v63 = vmul.f32 -1.442695, %v6003_v43  ;;  %v12841_v62 = vpop.eup %12840  ;;  %v6040_v44 = vadd.f32 1.0, %v12839_v18  ;;  %v10719_v43 = vmul.f32 -1.442695, %v6063_v56 }
 0xaa7   : > { %12850 = vrcp.f32 %v5969_v52  ;;  %v6041_v16 = vadd.f32 1.0, %v12841_v62 }
 0xaa8   : > { %12852 = vpow2.f32 %v10715_v63  ;;  %v10722_v63 = vmul.f32 -1.442695, %v6066_v26 }
 0xaa9   : > { %6863 = vmatpush1.bf16.msra.mxu0 %v11977_v45  ;;  %v10716_v45 = vmul.f32 -1.442695, %v6004_v6  ;;  %v12843_v22 = vpop.eup %12842  ;;  %v10720_v6 = vmul.f32 -1.442695, %v6064_v3 }
 0xaaa   : > { %6864 = vmatprep.subr.bf16.mxu0 %v11985_v21  ;;  %v10717_v21 = vmul.f32 -1.442695, %v6005_v2  ;;  %v15049_v54 = vpop.eup %12844  ;;  %v6042_v5 = vadd.f32 1.0, %v12843_v22  ;;  %v10721_v2 = vmul.f32 -1.442695, %v6065_v59 }
 0xaab   : > { %12854 = vpow2.f32 %v10716_v45 }
 0xaac   : > { %12856 = vpow2.f32 %v10717_v21 }
 0xaad   : > { %6865 = vmatpush1.bf16.msra.mxu0 %v11983_v35  ;;  %v5970_v35 = vadd.f32 1.0, %v12827_v17  ;;  %v15052_v8 = vpop.eup %12846  ;;  %v6067_v17 = vrot.slane %v14968_v58, 2 }
 0xaae   : > { %11392 = vmatprep.subr.bf16.mxu0 %v13602_v57  ;;  %v15055_v38 = vpop.eup %12848 }
 0xaaf   : > { %12858 = vrcp.f32 %v5970_v35  ;;  %v6069_v35 = vrot.slane %v14974_v40, 2 }
 0xab0   : > { %12860 = vrcp.f32 %v5971_v50 }
 0xab1   : > { %12862 = vrcp.f32 %v5972_v28  ;;  %v15058_v0 = vpop.eup %12850  ;;  %v10723_v28 = vmul.f32 -1.442695, %v6067_v17 }
 0xab2   : > { %12864 = vrcp.f32 %v5973_v13  ;;  %v12853_v11 = vpop.eup %12852  ;;  %v10724_v13 = vmul.f32 -1.442695, %v6068_v48 }
 0xab3   : > { %12866 = vrcp.f32 %v6038_v24  ;;  %v6043_v45 = vadd.f32 1.0, %v12853_v11  ;;  %v10725_v24 = vmul.f32 -1.442695, %v6069_v35 }
 0xab4   : > { %12868 = vpow2.f32 %v10718_v39  ;;  %v6126_v39 = vrot.slane %v14957_v34, 3  ;;  %v6130_v34 = vrot.slane %v14965_v20, 3 }
 0xab5   : > { %12870 = vrcp.f32 %v6039_v23  ;;  %v12855_v7 = vpop.eup %12854  ;;  %v6127_v23 = vrot.slane %v14959_v29, 3  ;;  %v6131_v29 = vrot.slane %v14968_v58, 3 }
 0xab6   : > { %12872 = vrcp.f32 %v6040_v44  ;;  %v12857_v52 = vpop.eup %12856  ;;  %v6044_v32 = vadd.f32 1.0, %v12855_v7  ;;  %v6132_v7 = vrot.slane %v14971_v33, 3 }
 0xab7   : > { %12874 = vrcp.f32 %v6041_v16  ;;  %v6045_v50 = vadd.f32 1.0, %v12857_v52  ;;  %v6128_v16 = vrot.slane %v14961_v12, 3 }
 0xab8   : > { %12876 = vrcp.f32 %v6042_v5  ;;  %v6129_v5 = vrot.slane %v14963_v9, 3 }
 0xab9   : > { %v15061_v10 = vpop.eup %12858  ;;  %12878 = vpow2.f32 %v10719_v43 }
 0xaba   : > { %v15064_v21 = vpop.eup %12860  ;;  %12880 = vpow2.f32 %v10720_v6 }
 0xabb   : > { %v15067_v27 = vpop.eup %12862  ;;  %12882 = vpow2.f32 %v10721_v2 }
 0xabc   : > { %v15069_v15 = vpop.eup %12864  ;;  %12884 = vpow2.f32 %v10722_v63  ;;  %v6133_v63 = vrot.slane %v14974_v40, 3 }
 0xabd   : > { %v12867_v31 = vpop.eup %12866  ;;  %12886 = vrcp.f32 %v6043_v45 }
 0xabe   : > { %v12869_v18 = vpop.eup %12868  ;;  %12888 = vrcp.f32 %v6044_v32 }
 0xabf   : > { %v12871_v62 = vpop.eup %12870  ;;  %12890 = vrcp.f32 %v6045_v50  ;;  %v6102_v44 = vadd.f32 1.0, %v12869_v18 }
 0xac0   : > { %v12873_v22 = vpop.eup %12872  ;;  %12892 = vpow2.f32 %v10723_v28 }
 0xac1   : > { %v12875_v56 = vpop.eup %12874  ;;  %12894 = vpow2.f32 %v10724_v13 }
 0xac2   : > { %v12877_v3 = vpop.eup %12876  ;;  %12896 = vpow2.f32 %v10725_v24 }
 0xac3   : > { %v12879_v59 = vpop.eup %12878  ;;  %12898 = vtanh.f32 %v6126_v39  ;;  %v6222_v39 = vmul.f32 %v12867_v31, %v14867_v36 }
 0xac4   : > { %v12881_v26 = vpop.eup %12880  ;;  %12900 = vtanh.f32 %v6127_v23  ;;  %v6103_v52 = vadd.f32 1.0, %v12879_v59  ;;  %v6223_v23 = vmul.f32 %v12871_v62, %v14870_v37  ;;  %v6225_v59 = vmul.f32 %v12875_v56, %v14877_v61 }
 0xac5   : > { %v12883_v43 = vpop.eup %12882  ;;  %12902 = vrcp.f32 %v6102_v44  ;;  %v6104_v20 = vadd.f32 1.0, %v12881_v26 }
 0xac6   : > { %v12885_v11 = vpop.eup %12884  ;;  %12904 = vtanh.f32 %v6128_v16  ;;  %v6105_v35 = vadd.f32 1.0, %v12883_v43  ;;  %v6224_v16 = vmul.f32 %v12873_v22, %v14872_v42 }
 0xac7   : > { %v12887_v6 = vpop.eup %12886  ;;  %12906 = vtanh.f32 %v6129_v5  ;;  %v6106_v33 = vadd.f32 1.0, %v12885_v11  ;;  %v6226_v5 = vmul.f32 %v12877_v3, %v14874_v47 }
 0xac8   : > { %v12889_v12 = vpop.eup %12888  ;;  %v6227_v43 = vmul.f32 %v12887_v6, %v14879_v55 }
 0xac9   : > { %v12891_v17 = vpop.eup %12890 }
 0xaca   : > { %v12893_v48 = vpop.eup %12892  ;;  %v6229_v11 = vmul.f32 %v12891_v17, %v14884_v51 }
 0xacb   : > { %v12895_v58 = vpop.eup %12894  ;;  %v6107_v13 = vadd.f32 1.0, %v12893_v48 }
 0xacc   : > { %v12897_v50 = vpop.eup %12896  ;;  %v6108_v40 = vadd.f32 1.0, %v12895_v58 }
 0xacd   : > { %v12899_v28 = vpop.eup %12898  ;;  %v6109_v42 = vadd.f32 1.0, %v12897_v50 }
 0xace   : > { %v12901_v18 = vpop.eup %12900  ;;  %v6230_v36 = vmul.f32 %v12899_v28, %v15049_v54 }
 0xacf   : > { %v15079_v24 = vpop.eup %12902  ;;  %v6231_v37 = vmul.f32 %v12901_v18, %v15052_v8 }
 0xad0   : > { %v12905_v44 = vpop.eup %12904  ;;  %v6238_v56 = vadd.f32 %v6230_v36, %v6222_v39 }
 0xad1   : > { %v12907_v26 = vpop.eup %12906  ;;  %v6232_v31 = vmul.f32 %v12905_v44, %v15055_v38  ;;  %v6239_v51 = vadd.f32 %v6231_v37, %v6223_v23 }
 0xad2   : > { %v6233_v47 = vmul.f32 %v12907_v26, %v15058_v0 }
 0xad3   : > { %v6240_v3 = vadd.f32 %v6232_v31, %v6224_v16 }
 0xad4   : > { %v6241_v54 = vadd.f32 %v6233_v47, %v6225_v59 }
 0xb63   : > { %v6384_v2 = vpop.f32.mrb[60].mxu0 }
 0xb64   : > { %12908 = vtanh.f32 %v6384_v2  ;;  %v11370_v9 = vpop.f32.mrb[61].mxu0 }
 0xb65   : > { %12910 = vtanh.f32 %v6130_v34  ;;  %v6387_v45 = vpop.f32.mrb[62].mxu0  ;;  %v6228_v34 = vmul.f32 %v12889_v12, %v14881_v46 }
 0xb66   : > { %12912 = vtanh.f32 %v6131_v29  ;;  %v11371_v32 = vpop.f32.mrb[63].mxu0 }
 0xb67   : > { %12914 = vtanh.f32 %v6132_v7 }
 0xb68   : > { %12916 = vrcp.f32 %v6103_v52 }
 0xb69   : > { %12918 = vtanh.f32 %v6133_v63 }
 0xb6a   : > { %12920 = vrcp.f32 %v6104_v20 }
 0xb6b   : > { %12922 = vrcp.f32 %v6105_v35 }
 0xb6c   : > { %12924 = vrcp.f32 %v6106_v33 }
 0xb6d   : > { %12926 = vrcp.f32 %v6107_v13 }
 0xb6e   : > { %v12909_v29 = vpop.eup %12908  ;;  %12928 = vrcp.f32 %v6108_v40 }
 0xb6f   : > { %v12911_v62 = vpop.eup %12910  ;;  %v6392_v61 = vcombine.high %v12909_v29, %v12909_v29  ;;  %v6399_v22 = vrot.slane %v12909_v29, %v13993_v1  ;;  %12930 = vrcp.f32 %v6109_v42 }
 0xb70   : > { %v12913_v55 = vpop.eup %12912  ;;  %v6234_v46 = vmul.f32 %v12911_v62, %v15061_v10 }
 0xb71   : > { %v12915_v6 = vpop.eup %12914  ;;  %v6406_v8 = vrot.slane %v6392_v61, %v13993_v1  ;;  %v6407_v7 = vcombine.high %v6399_v22, %v6399_v22  ;;  %v6415_v38 = vrot.slane %v6399_v22, %v13993_v1  ;;  %v6235_v12 = vmul.f32 %v12913_v55, %v15064_v21 }
 0xb72   : > { %v12917_v2 = vpop.eup %12916  ;;  %v6236_v0 = vmul.f32 %v12915_v6, %v15067_v27  ;;  %v6242_v52 = vadd.f32 %v6234_v46, %v6226_v5 }
 0xb73   : > { %v12919_v9 = vpop.eup %12918  ;;  %v6408_v17 = vcombine.high %v6406_v8, %v6406_v8  ;;  %v6422_v10 = vrot.slane %v6406_v8, %v13993_v1  ;;  %v6429_v63 = vrot.slane %v6407_v7, %v13993_v1  ;;  %v6437_v45 = vcombine.high %v6415_v38, %v6415_v38 }
 0xb74   : > { %v12921_v48 = vpop.eup %12920  ;;  %v6237_v20 = vmul.f32 %v12919_v9, %v15069_v15  ;;  %v6243_v32 = vadd.f32 %v6235_v12, %v6227_v43  ;;  %v6244_v58 = vadd.f32 %v6236_v0, %v6228_v34  ;;  %v15102_v35 = vadd.f32 %v6415_v38, %v6238_v56 }
 0xb75   : > { %v12923_v50 = vpop.eup %12922  ;;  %v6436_v21 = vrot.slane %v6408_v17, %v13993_v1  ;;  %v6438_v27 = vcombine.high %v6422_v10, %v6422_v10  ;;  %v6439_v33 = vcombine.high %v6429_v63, %v6429_v63  ;;  %v15105_v28 = vadd.f32 %v6429_v63, %v6239_v51 }
 0xb76   : > { %v12925_v13 = vpop.eup %12924  ;;  %v6245_v18 = vadd.f32 %v6237_v20, %v6229_v11  ;;  %v15107_v40 = vadd.f32 %v6437_v45, %v6240_v3  ;;  %v15109_v39 = vadd.f32 %v6422_v10, %v6242_v52  ;;  %12932 = vtanh.f32 %v15102_v35 }
 0xb77   : > { %v12927_v15 = vpop.eup %12926  ;;  %v6440_v23 = vcombine.high %v6436_v21, %v6436_v21  ;;  %v15112_v44 = vadd.f32 %v6439_v33, %v6241_v54  ;;  %v15114_v16 = vadd.f32 %v6436_v21, %v6243_v32  ;;  %v15116_v59 = vadd.f32 %v6438_v27, %v6244_v58 }
 0xb78   : > { %12934 = vtanh.f32 %v15105_v28  ;;  %v12929_v5 = vpop.eup %12928 }
 0xb79   : > { %v15119_v26 = vadd.f32 %v6440_v23, %v6245_v18  ;;  %12936 = vtanh.f32 %v15107_v40  ;;  %v12931_v43 = vpop.eup %12930 }
 0xb7a   : > { %12938 = vtanh.f32 %v15112_v44 }
 0xb7b   : > { %12940 = vtanh.f32 %v15109_v39 }
 0xb7c   : > { %12942 = vtanh.f32 %v15114_v16 }
 0xb7d   : > { %12944 = vtanh.f32 %v15116_v59 }
 0xb7e   : > { %12946 = vtanh.f32 %v15119_v26 }
 0xb80   : > { %v12933_v34 = vpop.eup %12932 }
 0xb81   : > { %v6465_v11 = vmul.f32 %v12933_v34, %v15079_v24 }
 0xb82   : > { %v12935_v29 = vpop.eup %12934 }
 0xb83   : > { %v12937_v36 = vpop.eup %12936  ;;  %v6466_v37 = vmul.f32 %v12935_v29, %v12917_v2  ;;  %6473 = vst [vmem:[#allocation3 + $0x4] sm:$0x1] %v6465_v11  ;;  %v6513_v62 = vpack.c.bf16 %v6465_v11, %v6465_v11  ;;  %v11986_v11 = vld [vmem:[#allocation12 + $0x10] ss:$20 sps:$4 sm:$0xff]  }
 0xb84   : > { %v12939_v31 = vpop.eup %12938  ;;  %v6467_v42 = vmul.f32 %v12937_v36, %v12921_v48  ;;  %v11987_v36 = vld [vmem:[#allocation12 + $0x38] ss:$20 sps:$4 sm:$0xff]  }
 0xb85   : > { %v12941_v47 = vpop.eup %12940  ;;  %v6468_v61 = vmul.f32 %v12939_v31, %v12923_v50  ;;  %6474 = vst [vmem:[#allocation3 + $0xc] sm:$0x1] %v6466_v37  ;;  %v6514_v22 = vpack.c.bf16 %v6466_v37, %v6466_v37  ;;  %v6577_v38 = vunpack.c.l.b16 %v6513_v62  ;;  %v11988_v37 = vld [vmem:[#allocation12 + $0x60] ss:$20 sps:$4 sm:$0xff]   ;;  %v11989_v31 = vld [vmem:[#allocation12 + $0x88] ss:$20 sps:$4 sm:$0xff]  }
 0xb86   : > { %v12943_v55 = vpop.eup %12942  ;;  %v6469_v46 = vmul.f32 %v12941_v47, %v12925_v13  ;;  %6475 = vst [vmem:[#allocation3 + $0x14] sm:$0x1] %v6467_v42  ;;  %v6515_v56 = vpack.c.bf16 %v6467_v42, %v6467_v42  ;;  %v11990_v42 = vld [vmem:[#allocation12 + $0xb0] ss:$20 sps:$4 sm:$0xff]   ;;  %v11991_v62 = vld [vmem:[#allocation12 + $0xd8] ss:$20 sps:$4 sm:$0xff]  }
 0xb87   : > { %v12945_v51 = vpop.eup %12944  ;;  %v6470_v3 = vmul.f32 %v12943_v55, %v12927_v15  ;;  %6476 = vst [vmem:[#allocation3 + $0x1c] sm:$0x1] %v6468_v61  ;;  %v6516_v6 = vpack.c.bf16 %v6468_v61, %v6468_v61  ;;  %v6578_v24 = vunpack.c.l.b16 %v6514_v22  ;;  %v11992_v47 = vld [vmem:[#allocation12 + $0x100] ss:$20 sps:$4 sm:$0xff]   ;;  %v11993_v61 = vld [vmem:[#allocation12 + $0x128] ss:$20 sps:$4 sm:$0xff]  }
 0xb88   : > { %v12947_v54 = vpop.eup %12946  ;;  %v6471_v8 = vmul.f32 %v12945_v51, %v12929_v5  ;;  %6477 = vst [vmem:[#allocation3 + $0x24] sm:$0x1] %v6469_v46  ;;  %v6517_v7 = vpack.c.bf16 %v6469_v46, %v6469_v46  ;;  %v6579_v2 = vunpack.c.l.b16 %v6515_v56  ;;  %v11994_v22 = vld [vmem:[%s15890_s5] sm:$0xff]   ;;  %v11995_v55 = vld [vmem:[%s15890_s5 + $0x8] sm:$0xff]   ;;  %v11996_v46 = vld [vmem:[%s15890_s5 + $0x10] sm:$0xff]  }
 0xb89   : > { %v6472_v12 = vmul.f32 %v12947_v54, %v12931_v43  ;;  %6478 = vst [vmem:[#allocation3 + $0x2c] sm:$0x1] %v6470_v3  ;;  %v6518_v0 = vpack.c.bf16 %v6470_v3, %v6470_v3  ;;  %v6580_v52 = vunpack.c.l.b16 %v6516_v6  ;;  %v6585_v9 = vrot.slane %v6578_v24, 7  ;;  %v11997_v56 = vld [vmem:[%s15890_s5 + $0x18] sm:$0xff]   ;;  %v11998_v51 = vld [vmem:[%s15890_s5 + $0x20] sm:$0xff]  }
 0xb8a   : > { %6479 = vst [vmem:[#allocation3 + $0x34] sm:$0x1] %v6471_v8  ;;  %v6519_v17 = vpack.c.bf16 %v6471_v8, %v6471_v8  ;;  %v6581_v10 = vunpack.c.l.b16 %v6517_v7  ;;  %v6587_v63 = vrot.slane %v6579_v2, 6 }
 0xb8b   : > { %6480 = vst [vmem:[#allocation3 + $0x3c] sm:$0x1] %v6472_v12  ;;  %v6520_v45 = vpack.c.bf16 %v6472_v12, %v6472_v12  ;;  %v6582_v48 = vunpack.c.l.b16 %v6518_v0  ;;  %v6586_v20 = vsel %vm1772_vm3, %v6585_v9, %v6577_v38  ;;  %v6589_v32 = vrot.slane %v6580_v52, 5 }
 0xb8c   : > { %v6583_v58 = vunpack.c.l.b16 %v6519_v17  ;;  %v6588_v50 = vsel %vm1775_vm4, %v6587_v63, %v6586_v20  ;;  %v6591_v21 = vrot.slane %v6581_v10, 4  ;;  %v11999_v17 = vld [vmem:[%s15890_s5 + $0x28] sm:$0xff]  }
 0xb8d   : > { %v6584_v27 = vunpack.c.l.b16 %v6520_v45  ;;  %v6590_v33 = vsel %vm1778_vm5, %v6589_v32, %v6588_v50  ;;  %v6593_v13 = vrot.slane %v6582_v48, 3 }
 0xb8e   : > { %v6592_v18 = vsel %vm1781_vm6, %v6591_v21, %v6590_v33  ;;  %v6595_v15 = vrot.slane %v6583_v58, 2  ;;  %v12000_v21 = vld [vmem:[%s15890_s5 + $0x30] sm:$0xff]  }
 0xb8f   : > { %v6594_v23 = vsel %vm1784_vm7, %v6593_v13, %v6592_v18  ;;  %v6597_v5 = vrot.slane %v6584_v27, 1  ;;  %v12001_v27 = vld [vmem:[%s15890_s5 + $0x38] sm:$0xff]  }
 0xb90   : > { %v6596_v43 = vsel %vm1787_vm8, %v6595_v15, %v6594_v23 }
 0xb91   : > { %v6598_v34 = vsel %vm1790_vm9, %v6597_v5, %v6596_v43 }
 0xb92   : > { %v6599_v29 = vpack.c.b16 %v6598_v34, %v6598_v34 }
 0xb94   : > { %6842 = vmatmul.mubr.bf16.vlgmr.msra.gmra.mrb[56].mxu1 %v6599_v29  ;;  %6883 = vmatmul.mubr.bf16.vlgmr.msra.gmra.mrb[64].mxu0 %v6599_v29 }
 0xb95   : > { %11373 = vmatpush3.bf16.msra.mxu1 %v11986_v11  ;;  %11388 = vmatprep.mubr.msk.bf16.mxu1 %vm13603_vm2, %v13602_v57 }
 0xb96   : > { %11374 = vmatprep.subr.bf16.mxu1 %v13602_v57  ;;  %11408 = vmatprep.mubr.msk.bf16.mxu0 %vm13603_vm2, %v13602_v57 }
 0xb97   : > { %11393 = vmatpush3.bf16.msra.mxu0 %v11994_v22 }
 0xb98   : > { %11394 = vmatprep.subr.bf16.mxu0 %v13602_v57 }
 0xb99   : > { %11375 = vmatpush3.bf16.msra.mxu1 %v11987_v36 }
 0xb9a   : > { %11376 = vmatprep.subr.bf16.mxu1 %v13602_v57 }
 0xb9b   : > { %11395 = vmatpush3.bf16.msra.mxu0 %v11995_v55 }
 0xb9c   : > { %11396 = vmatprep.subr.bf16.mxu0 %v13602_v57 }
 0xb9d   : > { %11377 = vmatpush3.bf16.msra.mxu1 %v11988_v37 }
 0xb9e   : > { %11378 = vmatprep.subr.bf16.mxu1 %v13602_v57 }
 0xb9f   : > { %11397 = vmatpush3.bf16.msra.mxu0 %v11996_v46 }
 0xba0   : > { %11398 = vmatprep.subr.bf16.mxu0 %v13602_v57 }
 0xba1   : > { %11379 = vmatpush3.bf16.msra.mxu1 %v11989_v31 }
 0xba2   : > { %11380 = vmatprep.subr.bf16.mxu1 %v13602_v57 }
 0xba3   : > { %11399 = vmatpush3.bf16.msra.mxu0 %v11997_v56 }
 0xba4   : > { %11400 = vmatprep.subr.bf16.mxu0 %v13602_v57 }
 0xba5   : > { %11381 = vmatpush3.bf16.msra.mxu1 %v11990_v42 }
 0xba6   : > { %11382 = vmatprep.subr.bf16.mxu1 %v13602_v57 }
 0xba7   : > { %11401 = vmatpush3.bf16.msra.mxu0 %v11998_v51 }
 0xba8   : > { %11402 = vmatprep.subr.bf16.mxu0 %v13602_v57 }
 0xba9   : > { %11383 = vmatpush3.bf16.msra.mxu1 %v11991_v62 }
 0xbaa   : > { %11384 = vmatprep.subr.bf16.mxu1 %v13602_v57 }
 0xbab   : > { %11403 = vmatpush3.bf16.msra.mxu0 %v11999_v17  ;;  %v6499_v17 = vld [vmem:[#allocation2 + $0xa5] ss:$8 sm:$0x10] }
 0xbac   : > { %11404 = vmatprep.subr.bf16.mxu0 %v13602_v57 }
 0xbad   : > { %11385 = vmatpush3.bf16.msra.mxu1 %v11992_v47 }
 0xbae   : > { %11386 = vmatprep.subr.bf16.mxu1 %v13602_v57 }
 0xbaf   : > { %11405 = vmatpush3.bf16.msra.mxu0 %v12000_v21 }
 0xbb0   : > { %11406 = vmatprep.subr.bf16.mxu0 %v13602_v57 }
 0xbb1   : > { %11387 = vmatpush3.bf16.msra.mxu1 %v11993_v61 }
 0xbb3   : > { %11407 = vmatpush3.bf16.msra.mxu0 %v12001_v27  ;;  %v6502_v27 = vld [vmem:[#allocation2 + $0xcd] ss:$8 sm:$0xf] }
 0xbb4   : > { %11389 = vmatmul.mubr.bf16.vlgmr.msra.gmra.mrb[60].mxu1 %v6599_v29 }
 0xbb5   : > { %7968 = vmatprep.mubr.bf16.mxu1 %v13601_v4 }
 0xc67   : > { %v6843_v3 = vpop.f32.mrb[56].mxu1  ;;  %v6884_v6 = vpop.f32.mrb[64].mxu0 }
 0xc68   : > { %v6845_v24 = vpop.f32.mrb[57].mxu1  ;;  %v6886_v54 = vpop.f32.mrb[65].mxu0 }
 0xc69   : > { %v6936_v8 = vcombine.low %v6843_v3, %v6845_v24  ;;  %v6937_v7 = vcombine.high %v6843_v3, %v6845_v24  ;;  %v6938_v38 = vcombine.low %v6884_v6, %v6886_v54  ;;  %v6939_v2 = vcombine.high %v6884_v6, %v6886_v54  ;;  %v6847_v12 = vpop.f32.mrb[58].mxu1  ;;  %v6888_v0 = vpop.f32.mrb[66].mxu0  ;;  %v6483_v54 = vld [vmem:[#allocation2 + $0x5] ss:$8 sm:$0x10] }
 0xc6a   : > { %v6848_v52 = vpop.f32.mrb[59].mxu1  ;;  %v6889_v9 = vpop.f32.mrb[67].mxu0  ;;  %v6486_v12 = vld [vmem:[#allocation2 + $0x2d] ss:$8 sm:$0xf] }
 0xc6b   : > { %v6947_v10 = vrot.slane %v6936_v8, %v13993_v1  ;;  %v6954_v63 = vrot.slane %v6937_v7, %v13993_v1  ;;  %v6961_v45 = vrot.slane %v6938_v38, %v13993_v1  ;;  %v6968_v48 = vrot.slane %v6939_v2, %v13993_v1  ;;  %v6487_v8 = vld [vmem:[#allocation2 + $0x2d] ss:$8 sm:$0x10]  ;;  %v6491_v38 = vld [vmem:[#allocation2 + $0x55] ss:$8 sm:$0x10] }
 0xc6c   : > { %v6482_v7 = vld [vmem:[#allocation2 + $0x5] ss:$8 sm:$0xf]  ;;  %v6488_v52 = vor.u32 %v6487_v8, %v6486_v12 }
 0xc6d   : > { %v6983_v20 = vcombine.low %v6947_v10, %v6961_v45  ;;  %v6984_v32 = vcombine.high %v6947_v10, %v6961_v45  ;;  %v6985_v58 = vcombine.low %v6954_v63, %v6968_v48  ;;  %v6986_v50 = vcombine.high %v6954_v63, %v6968_v48  ;;  %v6495_v0 = vld [vmem:[#allocation2 + $0x7d] ss:$8 sm:$0x10]  ;;  %v6503_v45 = vld [vmem:[#allocation2 + $0xcd] ss:$8 sm:$0x10] }
 0xc6e   : > { %v6484_v2 = vor.u32 %v6483_v54, %v6482_v7  ;;  %v6490_v9 = vld [vmem:[#allocation2 + $0x55] ss:$8 sm:$0xf] }
 0xc6f   : > { %v6995_v34 = vrot.slane %v6983_v20, %v13993_v1  ;;  %v7002_v36 = vrot.slane %v6985_v58, %v13993_v1  ;;  %v7009_v37 = vrot.slane %v6984_v32, %v13993_v1  ;;  %v7016_v61 = vrot.slane %v6986_v50, %v13993_v1  ;;  %v6494_v63 = vld [vmem:[#allocation2 + $0x7d] ss:$8 sm:$0xf] }
 0xc70   : > { %v6492_v10 = vor.u32 %v6491_v38, %v6490_v9  ;;  %v6496_v20 = vor.u32 %v6495_v0, %v6494_v63  ;;  %v6498_v32 = vld [vmem:[#allocation2 + $0xa5] ss:$8 sm:$0xf] }
 0xc71   : > { %v6507_v58 = vld [vmem:[#allocation2 + $0xf5] ss:$8 sm:$0x10]  ;;  %v6500_v21 = vor.u32 %v6499_v17, %v6498_v32 }
 0xc87   : > { %v6925_v33 = vpop.f32.mrb[60].mxu1 }
 0xc88   : > { %v6940_v13 = vcombine.high %v6925_v33, %v6925_v33  ;;  %v6975_v18 = vrot.slane %v6925_v33, %v13993_v1  ;;  %v11390_v15 = vpop.f32.mrb[61].mxu1  ;;  %v6511_v33 = vld [vmem:[#allocation2 + $0x11d] ss:$8 sm:$0x10] }
 0xc89   : > { %v6928_v23 = vpop.f32.mrb[62].mxu1  ;;  %v6506_v15 = vld [vmem:[#allocation2 + $0xf5] ss:$8 sm:$0xf] }
 0xc8a   : > { %v6982_v5 = vrot.slane %v6940_v13, %v13993_v1  ;;  %v6987_v43 = vcombine.high %v6975_v18, %v6975_v18  ;;  %v7023_v11 = vrot.slane %v6975_v18, %v13993_v1  ;;  %v11391_v29 = vpop.f32.mrb[63].mxu1  ;;  %v6504_v18 = vor.u32 %v6503_v45, %v6502_v27 }
 0xc8c   : > { %v6988_v31 = vcombine.high %v6982_v5, %v6982_v5  ;;  %v7030_v42 = vrot.slane %v6982_v5, %v13993_v1  ;;  %v7037_v62 = vrot.slane %v6987_v43, %v13993_v1  ;;  %v7045_v47 = vcombine.low %v6995_v34, %v7023_v11  ;;  %v6510_v43 = vld [vmem:[#allocation2 + $0x11d] ss:$8 sm:$0xf] }
 0xc8d   : > { %v7046_v22 = vcombine.high %v6995_v34, %v7023_v11  ;;  %v6508_v5 = vor.u32 %v6507_v58, %v6506_v15  ;;  %v6512_v29 = vor.u32 %v6511_v33, %v6510_v43 }
 0xc8e   : > { %v7044_v55 = vrot.slane %v6988_v31, %v13993_v1  ;;  %v7047_v46 = vcombine.low %v7002_v36, %v7030_v42  ;;  %v7048_v56 = vcombine.high %v7002_v36, %v7030_v42  ;;  %v7049_v51 = vcombine.low %v7009_v37, %v7037_v62 }
 0xc8f   : > { %v7050_v3 = vcombine.high %v7009_v37, %v7037_v62  ;;  %v15192_v48 = vadd.f32 %v7045_v47, %v6484_v2  ;;  %v15196_v13 = vadd.f32 %v7046_v22, %v6492_v10 }
 0xc90   : > { %v7051_v6 = vcombine.low %v7016_v61, %v7044_v55  ;;  %v7052_v24 = vcombine.high %v7016_v61, %v7044_v55  ;;  %v15194_v50 = vadd.f32 %v7049_v51, %v6488_v52  ;;  %v15200_v34 = vadd.f32 %v7047_v46, %v6500_v21 }
 0xc91   : > { %v15198_v23 = vadd.f32 %v7050_v3, %v6496_v20  ;;  %v7277_v11 = vrot.slane %v15192_v48, 4  ;;  %v15206_v31 = vadd.f32 %v7048_v56, %v6508_v5  ;;  %v7279_v42 = vrot.slane %v15196_v13, 4 }
 0xc92   : > { %v15203_v36 = vadd.f32 %v7051_v6, %v6504_v18  ;;  %v7278_v37 = vrot.slane %v15194_v50, 4  ;;  %v15209_v62 = vadd.f32 %v7052_v24, %v6512_v29  ;;  %v7281_v61 = vrot.slane %v15200_v34, 4 }
 0xc93   : > { %v7280_v47 = vrot.slane %v15198_v23, 4  ;;  %v10806_v22 = vmul.f32 -1.442695, %v7277_v11  ;;  %v7283_v51 = vrot.slane %v15206_v31, 4  ;;  %v10808_v3 = vmul.f32 -1.442695, %v7279_v42 }
 0xc94   : > { %v7282_v55 = vrot.slane %v15203_v36, 4  ;;  %v10807_v46 = vmul.f32 -1.442695, %v7278_v37  ;;  %v7284_v6 = vrot.slane %v15209_v62, 4  ;;  %v10810_v56 = vmul.f32 -1.442695, %v7281_v61 }
 0xc95   : > { %v10809_v54 = vmul.f32 -1.442695, %v7280_v47  ;;  %12948 = vpow2.f32 %v10806_v22  ;;  %v10812_v24 = vmul.f32 -1.442695, %v7283_v51 }
 0xc96   : > { %12950 = vpow2.f32 %v10807_v46  ;;  %v10811_v8 = vmul.f32 -1.442695, %v7282_v55  ;;  %v10813_v7 = vmul.f32 -1.442695, %v7284_v6 }
 0xc97   : > { %12952 = vpow2.f32 %v10808_v3 }
 0xc98   : > { %12954 = vpow2.f32 %v10809_v54 }
 0xc99   : > { %12956 = vpow2.f32 %v10810_v56 }
 0xc9a   : > { %12958 = vpow2.f32 %v10811_v8 }
 0xc9b   : > { %12960 = vpow2.f32 %v10812_v24 }
 0xc9c   : > { %12962 = vpow2.f32 %v10813_v7 }
 0xc9f   : > { %v12949_v38 = vpop.eup %12948 }
 0xca0   : > { %v12951_v2 = vpop.eup %12950  ;;  %v7317_v12 = vadd.f32 1.0, %v12949_v38 }
 0xca1   : > { %v12953_v0 = vpop.eup %12952  ;;  %v7318_v52 = vadd.f32 1.0, %v12951_v2 }
 0xca2   : > { %v12955_v9 = vpop.eup %12954  ;;  %v7319_v17 = vadd.f32 1.0, %v12953_v0  ;;  %12964 = vrcp.f32 %v7317_v12 }
 0xca3   : > { %v12957_v10 = vpop.eup %12956  ;;  %v7320_v63 = vadd.f32 1.0, %v12955_v9  ;;  %12966 = vrcp.f32 %v7318_v52 }
 0xca4   : > { %v12959_v45 = vpop.eup %12958  ;;  %v7321_v20 = vadd.f32 1.0, %v12957_v10  ;;  %12968 = vrcp.f32 %v7319_v17 }
 0xca5   : > { %v12961_v32 = vpop.eup %12960  ;;  %v7322_v58 = vadd.f32 1.0, %v12959_v45  ;;  %12970 = vrcp.f32 %v7320_v63 }
 0xca6   : > { %v12963_v21 = vpop.eup %12962  ;;  %v7323_v27 = vadd.f32 1.0, %v12961_v32  ;;  %12972 = vrcp.f32 %v7321_v20 }
 0xca7   : > { %12974 = vrcp.f32 %v7322_v58  ;;  %v7324_v33 = vadd.f32 1.0, %v12963_v21 }
 0xca8   : > { %12976 = vrcp.f32 %v7323_v27 }
 0xca9   : > { %12978 = vrcp.f32 %v7324_v33 }
 0xcac   : > { %v12965_v18 = vpop.eup %12964 }
 0xcad   : > { %v12967_v15 = vpop.eup %12966  ;;  %v15217_v5 = vmul.f32 %v12965_v18, %v14982_v41 }
 0xcae   : > { %v12969_v43 = vpop.eup %12968  ;;  %v15220_v11 = vmul.f32 %v12967_v15, %v14985_v49 }
 0xcaf   : > { %v12971_v29 = vpop.eup %12970  ;;  %v15223_v37 = vmul.f32 %v12969_v43, %v14988_v53  ;;  %v7373_v42 = vpack.c.bf16 %v15217_v5, %v15217_v5  ;;  %v12004_v43 = vld [vmem:[#allocation12 + $0x4] ss:$20 sps:$4 sm:$0xff]  }
 0xcb0   : > { %v12973_v47 = vpop.eup %12972  ;;  %v15228_v61 = vmul.f32 %v12971_v29, %v14993_v14  ;;  %v7374_v22 = vpack.c.bf16 %v15220_v11, %v15220_v11  ;;  %v12002_v29 = vld [vmem:[#allocation12] ss:$20 sps:$4 sm:$0xff]   ;;  %7936 = vmatprep.subr.bf16.mxu1 %v12004_v43  ;;  %v7125_v43 = vrot.slane %v15192_v48, 1 }
 0xcb1   : > { %v12975_v41 = vpop.eup %12974  ;;  %v15233_v55 = vmul.f32 %v12973_v47, %v14998_v19  ;;  %v7375_v49 = vpack.c.bf16 %v15223_v37, %v15223_v37  ;;  %v7405_v19 = vunpack.c.l.b16 %v7373_v42  ;;  %v12007_v42 = vld [vmem:[#allocation12 + $0xc] ss:$20 sps:$4 sm:$0xff]   ;;  %v12005_v47 = vld [vmem:[#allocation12 + $0x8] ss:$20 sps:$4 sm:$0xff]   ;;  %7937 = vmatpush1.bf16.msra.mxu1 %v12002_v29  ;;  %v10787_v29 = vmul.f32 -1.442695, %v15203_v36 }
 0xcb2   : > { %v12977_v46 = vpop.eup %12976  ;;  %v15238_v53 = vmul.f32 %v12975_v41, %v15003_v25  ;;  %v7376_v51 = vpack.c.bf16 %v15228_v61, %v15228_v61  ;;  %v7406_v3 = vunpack.c.l.b16 %v7374_v22  ;;  %7977 = vmatprep.subr.bf16.mxu0 %v12007_v42  ;;  %v12010_v22 = vld [vmem:[#allocation12 + $0x2c] ss:$20 sps:$4 sm:$0xff]   ;;  %v12008_v41 = vld [vmem:[#allocation12 + $0x28] ss:$20 sps:$4 sm:$0xff]   ;;  %v10788_v42 = vmul.f32 -1.442695, %v15206_v31 }
 0xcb3   : > { %v12979_v14 = vpop.eup %12978  ;;  %v15243_v6 = vmul.f32 %v12977_v46, %v15008_v30  ;;  %v7377_v54 = vpack.c.bf16 %v15233_v55, %v15233_v55  ;;  %v7407_v56 = vunpack.c.l.b16 %v7375_v49  ;;  %v12013_v49 = vld [vmem:[#allocation12 + $0x34] ss:$20 sps:$4 sm:$0xff]   ;;  %7938 = vmatprep.subr.bf16.mxu1 %v12010_v22  ;;  %v12011_v46 = vld [vmem:[#allocation12 + $0x30] ss:$20 sps:$4 sm:$0xff]   ;;  %v10789_v22 = vmul.f32 -1.442695, %v15209_v62 }
 0xcb4   : > { %v15248_v8 = vmul.f32 %v12979_v14, %v15013_v60  ;;  %v7378_v25 = vpack.c.bf16 %v15238_v53, %v15238_v53  ;;  %v7408_v24 = vunpack.c.l.b16 %v7376_v51  ;;  %v7413_v7 = vrot.slane %v7406_v3, 7  ;;  %v12016_v51 = vld [vmem:[#allocation12 + $0x54] ss:$20 sps:$4 sm:$0xff]   ;;  %v12014_v3 = vld [vmem:[#allocation12 + $0x50] ss:$20 sps:$4 sm:$0xff]  }
 0xcb5   : > { %v7379_v38 = vpack.c.bf16 %v15243_v6, %v15243_v6  ;;  %v7409_v2 = vunpack.c.l.b16 %v7377_v54  ;;  %v7415_v12 = vrot.slane %v7407_v56, 6  ;;  %7939 = vmatpush1.bf16.msra.mxu1 %v12008_v41  ;;  %v12017_v14 = vld [vmem:[#allocation12 + $0x58] ss:$20 sps:$4 sm:$0xff]   ;;  %v12019_v54 = vld [vmem:[#allocation12 + $0x5c] ss:$20 sps:$4 sm:$0xff]   ;;  %v7127_v41 = vrot.slane %v15196_v13, 1 }
 0xcb6   : > { %v7380_v30 = vpack.c.bf16 %v15248_v8, %v15248_v8  ;;  %v7410_v0 = vunpack.c.l.b16 %v7378_v25  ;;  %v7414_v52 = vsel %vm1772_vm3, %v7413_v7, %v7405_v19  ;;  %v7417_v9 = vrot.slane %v7408_v24, 5  ;;  %7940 = vmatprep.subr.bf16.mxu1 %v12016_v51  ;;  %v12022_v19 = vld [vmem:[#allocation12 + $0x7c] ss:$20 sps:$4 sm:$0xff]   ;;  %v12020_v56 = vld [vmem:[#allocation12 + $0x78] ss:$20 sps:$4 sm:$0xff]  }
 0xcb7   : > { %v7411_v17 = vunpack.c.l.b16 %v7379_v38  ;;  %v7416_v60 = vsel %vm1775_vm4, %v7415_v12, %v7414_v52  ;;  %v7419_v10 = vrot.slane %v7409_v2, 4  ;;  %v12025_v25 = vld [vmem:[#allocation12 + $0x84] ss:$20 sps:$4 sm:$0xff]   ;;  %v12023_v24 = vld [vmem:[#allocation12 + $0x80] ss:$20 sps:$4 sm:$0xff]   ;;  %v7129_v51 = vrot.slane %v15200_v34, 1 }
 0xcb8   : > { %v7412_v63 = vunpack.c.l.b16 %v7380_v30  ;;  %v7418_v45 = vsel %vm1778_vm5, %v7417_v9, %v7416_v60  ;;  %v7421_v20 = vrot.slane %v7410_v0, 3  ;;  %v12028_v7 = vld [vmem:[#allocation12 + $0xa4] ss:$20 sps:$4 sm:$0xff]   ;;  %v12031_v38 = vld [vmem:[#allocation12 + $0xac] ss:$20 sps:$4 sm:$0xff]  }
 0xcb9   : > { %v7420_v32 = vsel %vm1781_vm6, %v7419_v10, %v7418_v45  ;;  %v7423_v58 = vrot.slane %v7411_v17, 2  ;;  %7941 = vmatpush1.bf16.msra.mxu1 %v12014_v3  ;;  %v12026_v2 = vld [vmem:[#allocation12 + $0xa0] ss:$20 sps:$4 sm:$0xff]   ;;  %v12029_v12 = vld [vmem:[#allocation12 + $0xa8] ss:$20 sps:$4 sm:$0xff]  }
 0xcba   : > { %v7422_v21 = vsel %vm1784_vm7, %v7421_v20, %v7420_v32  ;;  %v7425_v27 = vrot.slane %v7412_v63, 1  ;;  %7942 = vmatprep.subr.bf16.mxu1 %v12022_v19  ;;  %v12034_v30 = vld [vmem:[#allocation12 + $0xcc] ss:$20 sps:$4 sm:$0xff]   ;;  %v12037_v0 = vld [vmem:[#allocation12 + $0xd4] ss:$20 sps:$4 sm:$0xff]  }
 0xcbb   : > { %v7424_v33 = vsel %vm1787_vm8, %v7423_v58, %v7422_v21  ;;  %v12032_v52 = vld [vmem:[#allocation12 + $0xc8] ss:$20 sps:$4 sm:$0xff]   ;;  %v12035_v9 = vld [vmem:[#allocation12 + $0xd0] ss:$20 sps:$4 sm:$0xff]   ;;  %v12041_v63 = vld [vmem:[#allocation12 + $0xf8] ss:$20 sps:$4 sm:$0xff]  }
 0xcbc   : > { %v7426_v18 = vsel %vm1790_vm9, %v7425_v27, %v7424_v33  ;;  %v12040_v17 = vld [vmem:[#allocation12 + $0xf4] ss:$20 sps:$4 sm:$0xff]   ;;  %v12043_v60 = vld [vmem:[#allocation12 + $0xfc] ss:$20 sps:$4 sm:$0xff]   ;;  %v12049_v20 = vld [vmem:[#allocation12 + $0x124] ss:$20 sps:$4 sm:$0xff]  }
 0xcbd   : > { %v7427_v15 = vpack.c.b16 %v7426_v18, %v7426_v18  ;;  %7943 = vmatpush1.bf16.msra.mxu1 %v12020_v56  ;;  %v12038_v10 = vld [vmem:[#allocation12 + $0xf0] ss:$20 sps:$4 sm:$0xff]   ;;  %v12044_v32 = vld [vmem:[#allocation12 + $0x118] ss:$20 sps:$4 sm:$0xff]   ;;  %v12047_v58 = vld [vmem:[#allocation12 + $0x120] ss:$20 sps:$4 sm:$0xff]  }
 0xcbe   : > { %7944 = vmatprep.subr.bf16.mxu1 %v12028_v7  ;;  %v12046_v45 = vld [vmem:[#allocation12 + $0x11c] ss:$20 sps:$4 sm:$0xff]   ;;  %v10782_v21 = vmul.f32 -1.442695, %v15192_v48  ;;  %v10783_v27 = vmul.f32 -1.442695, %v15194_v50 }
 0xcbf   : > { %11409 = vmatmul.mubr.bf16.vlgmr.msra.gmra.mrb[68].mxu0 %v7427_v15  ;;  %v10784_v33 = vmul.f32 -1.442695, %v15196_v13  ;;  %v10785_v18 = vmul.f32 -1.442695, %v15198_v23  ;;  %v10786_v15 = vmul.f32 -1.442695, %v15200_v34 }
 0xcc0   : > { %8009 = vmatprep.mubr.bf16.mxu0 %v13601_v4  ;;  %7978 = vmatpush1.bf16.msra.mxu0 %v12005_v47  ;;  %12980 = vpow2.f32 %v10782_v21  ;;  %v7126_v47 = vrot.slane %v15194_v50, 1 }
 0xcc1   : > { %7979 = vmatprep.subr.bf16.mxu0 %v12013_v49  ;;  %7945 = vmatpush1.bf16.msra.mxu1 %v12026_v2  ;;  %12982 = vpow2.f32 %v10783_v27  ;;  %v7128_v49 = vrot.slane %v15198_v23, 1  ;;  %v7130_v2 = vrot.slane %v15203_v36, 1 }
 0xcc2   : > { %7946 = vmatprep.subr.bf16.mxu1 %v12034_v30  ;;  %12984 = vpow2.f32 %v10784_v33  ;;  %v10791_v3 = vmul.f32 -1.442695, %v7126_v47  ;;  %v7131_v30 = vrot.slane %v15206_v31, 1  ;;  %v7189_v33 = vrot.slane %v15192_v48, 2 }
 0xcc3   : > { %12986 = vpow2.f32 %v10785_v18  ;;  %v10793_v56 = vmul.f32 -1.442695, %v7128_v49 }
 0xcc4   : > { %7980 = vmatpush1.bf16.msra.mxu0 %v12011_v46  ;;  %12988 = vpow2.f32 %v10786_v15  ;;  %v10790_v46 = vmul.f32 -1.442695, %v7125_v43 }
 0xcc5   : > { %7981 = vmatprep.subr.bf16.mxu0 %v12019_v54  ;;  %7947 = vmatpush1.bf16.msra.mxu1 %v12032_v52  ;;  %12990 = vpow2.f32 %v10787_v29  ;;  %v10792_v54 = vmul.f32 -1.442695, %v7127_v41  ;;  %v7132_v52 = vrot.slane %v15209_v62, 1 }
 0xcc6   : > { %7948 = vmatprep.subr.bf16.mxu1 %v12040_v17  ;;  %12992 = vpow2.f32 %v10788_v42 }
 0xcc7   : > { %12994 = vpow2.f32 %v10789_v22  ;;  %v10798_v22 = vmul.f32 -1.442695, %v7189_v33 }
 0xcc8   : > { %7982 = vmatpush1.bf16.msra.mxu0 %v12017_v14  ;;  %12996 = vpow2.f32 %v10790_v46  ;;  %v7190_v46 = vrot.slane %v15194_v50, 2 }
 0xcc9   : > { %7983 = vmatprep.subr.bf16.mxu0 %v12025_v25  ;;  %7949 = vmatpush1.bf16.msra.mxu1 %v12038_v10  ;;  %12998 = vpow2.f32 %v10791_v3 }
 0xcca   : > { %7950 = vmatprep.subr.bf16.mxu1 %v12046_v45  ;;  %v12981_v14 = vpop.eup %12980  ;;  %13000 = vpow2.f32 %v10792_v54 }
 0xccb   : > { %v12983_v19 = vpop.eup %12982  ;;  %13002 = vpow2.f32 %v10793_v56  ;;  %v7192_v56 = vrot.slane %v15198_v23, 2 }
 0xccc   : > { %7984 = vmatpush1.bf16.msra.mxu0 %v12023_v24  ;;  %v12985_v25 = vpop.eup %12984  ;;  %v10794_v24 = vmul.f32 -1.442695, %v7129_v51 }
 0xccd   : > { %7985 = vmatprep.subr.bf16.mxu0 %v12031_v38  ;;  %7951 = vmatpush1.bf16.msra.mxu1 %v12044_v32  ;;  %v12987_v7 = vpop.eup %12986  ;;  %v7093_v38 = vadd.f32 1.0, %v12981_v14  ;;  %v7191_v14 = vrot.slane %v15196_v13, 2 }
 0xcce   : > { %11412 = vmatprep.subr.bf16.mxu1 %v13602_v57  ;;  %13004 = vpow2.f32 %v10794_v24  ;;  %v12989_v17 = vpop.eup %12988 }
 0xccf   : > { %13006 = vrcp.f32 %v7093_v38  ;;  %v12991_v10 = vpop.eup %12990 }
 0xcd0   : > { %7986 = vmatpush1.bf16.msra.mxu0 %v12029_v12  ;;  %v7094_v12 = vadd.f32 1.0, %v12983_v19  ;;  %v12993_v45 = vpop.eup %12992  ;;  %v7098_v27 = vadd.f32 1.0, %v12991_v10 }
 0xcd1   : > { %7987 = vmatprep.subr.bf16.mxu0 %v12037_v0  ;;  %v7095_v0 = vadd.f32 1.0, %v12985_v25  ;;  %v12995_v32 = vpop.eup %12994  ;;  %v7099_v18 = vadd.f32 1.0, %v12993_v45  ;;  %v7195_v45 = vrot.slane %v15206_v31, 2 }
 0xcd2   : > { %13008 = vrcp.f32 %v7094_v12  ;;  %v12997_v21 = vpop.eup %12996  ;;  %v7100_v43 = vadd.f32 1.0, %v12995_v32 }
 0xcd3   : > { %13010 = vrcp.f32 %v7095_v0  ;;  %v12999_v15 = vpop.eup %12998  ;;  %v7165_v42 = vadd.f32 1.0, %v12997_v21 }
 0xcd4   : > { %7988 = vmatpush1.bf16.msra.mxu0 %v12035_v9  ;;  %v7096_v9 = vadd.f32 1.0, %v12987_v7  ;;  %v13001_v29 = vpop.eup %13000  ;;  %v7166_v49 = vadd.f32 1.0, %v12999_v15  ;;  %v7193_v7 = vrot.slane %v15200_v34, 2 }
 0xcd5   : > { %7989 = vmatprep.subr.bf16.mxu0 %v12043_v60  ;;  %v10795_v60 = vmul.f32 -1.442695, %v7130_v2  ;;  %v13003_v47 = vpop.eup %13002  ;;  %v7167_v3 = vadd.f32 1.0, %v13001_v29  ;;  %v10799_v2 = vmul.f32 -1.442695, %v7190_v46 }
 0xcd6   : > { %13012 = vrcp.f32 %v7096_v9  ;;  %v7168_v19 = vadd.f32 1.0, %v13003_v47 }
 0xcd7   : > { %13014 = vpow2.f32 %v10795_v60  ;;  %v10802_v60 = vmul.f32 -1.442695, %v7193_v7 }
 0xcd8   : > { %7990 = vmatpush1.bf16.msra.mxu0 %v12041_v63  ;;  %v10796_v63 = vmul.f32 -1.442695, %v7131_v30  ;;  %v13005_v41 = vpop.eup %13004  ;;  %v10800_v30 = vmul.f32 -1.442695, %v7191_v14 }
 0xcd9   : > { %7991 = vmatprep.subr.bf16.mxu0 %v12049_v20  ;;  %v10797_v20 = vmul.f32 -1.442695, %v7132_v52  ;;  %v15284_v51 = vpop.eup %13006  ;;  %v7169_v24 = vadd.f32 1.0, %v13005_v41  ;;  %v10801_v52 = vmul.f32 -1.442695, %v7192_v56 }
 0xcda   : > { %13016 = vpow2.f32 %v10796_v63 }
 0xcdb   : > { %13018 = vpow2.f32 %v10797_v20 }
 0xcdc   : > { %7992 = vmatpush1.bf16.msra.mxu0 %v12047_v58  ;;  %v7097_v58 = vadd.f32 1.0, %v12989_v17  ;;  %v15287_v54 = vpop.eup %13008  ;;  %v7194_v17 = vrot.slane %v15203_v36, 2 }
 0xcdd   : > { %11432 = vmatprep.subr.bf16.mxu0 %v13602_v57  ;;  %v15290_v25 = vpop.eup %13010 }
 0xcde   : > { %13020 = vrcp.f32 %v7097_v58  ;;  %v7196_v58 = vrot.slane %v15209_v62, 2 }
 0xcdf   : > { %13022 = vrcp.f32 %v7098_v27 }
 0xce0   : > { %13024 = vrcp.f32 %v7099_v18  ;;  %v15293_v38 = vpop.eup %13012  ;;  %v10803_v18 = vmul.f32 -1.442695, %v7194_v17 }
 0xce1   : > { %13026 = vrcp.f32 %v7100_v43  ;;  %v13015_v12 = vpop.eup %13014  ;;  %v10804_v43 = vmul.f32 -1.442695, %v7195_v45 }
 0xce2   : > { %13028 = vrcp.f32 %v7165_v42  ;;  %v7170_v63 = vadd.f32 1.0, %v13015_v12  ;;  %v10805_v42 = vmul.f32 -1.442695, %v7196_v58 }
 0xce3   : > { %13030 = vpow2.f32 %v10798_v22  ;;  %v7253_v22 = vrot.slane %v15192_v48, 3  ;;  %v7257_v48 = vrot.slane %v15200_v34, 3 }
 0xce4   : > { %13032 = vrcp.f32 %v7166_v49  ;;  %v13017_v0 = vpop.eup %13016  ;;  %v7254_v49 = vrot.slane %v15194_v50, 3  ;;  %v7258_v50 = vrot.slane %v15203_v36, 3 }
 0xce5   : > { %13034 = vrcp.f32 %v7167_v3  ;;  %v13019_v9 = vpop.eup %13018  ;;  %v7171_v32 = vadd.f32 1.0, %v13017_v0  ;;  %v7259_v0 = vrot.slane %v15206_v31, 3 }
 0xce6   : > { %13036 = vrcp.f32 %v7168_v19  ;;  %v7172_v27 = vadd.f32 1.0, %v13019_v9  ;;  %v7255_v19 = vrot.slane %v15196_v13, 3 }
 0xce7   : > { %13038 = vrcp.f32 %v7169_v24  ;;  %v7256_v24 = vrot.slane %v15198_v23, 3 }
 0xce8   : > { %v15296_v10 = vpop.eup %13020  ;;  %13040 = vpow2.f32 %v10799_v2 }
 0xce9   : > { %v15299_v20 = vpop.eup %13022  ;;  %13042 = vpow2.f32 %v10800_v30 }
 0xcea   : > { %v15302_v21 = vpop.eup %13024  ;;  %13044 = vpow2.f32 %v10801_v52 }
 0xceb   : > { %v15304_v33 = vpop.eup %13026  ;;  %13046 = vpow2.f32 %v10802_v60  ;;  %v7260_v60 = vrot.slane %v15209_v62, 3 }
 0xcec   : > { %v13029_v15 = vpop.eup %13028  ;;  %13048 = vrcp.f32 %v7170_v63 }
 0xced   : > { %v13031_v29 = vpop.eup %13030  ;;  %13050 = vrcp.f32 %v7171_v32 }
 0xcee   : > { %v13033_v47 = vpop.eup %13032  ;;  %13052 = vrcp.f32 %v7172_v27  ;;  %v7229_v3 = vadd.f32 1.0, %v13031_v29 }
 0xcef   : > { %v13035_v41 = vpop.eup %13034  ;;  %13054 = vpow2.f32 %v10803_v18 }
 0xcf0   : > { %v13037_v46 = vpop.eup %13036  ;;  %13056 = vpow2.f32 %v10804_v43 }
 0xcf1   : > { %v13039_v14 = vpop.eup %13038  ;;  %13058 = vpow2.f32 %v10805_v42 }
 0xcf2   : > { %v13041_v56 = vpop.eup %13040  ;;  %13060 = vtanh.f32 %v7253_v22  ;;  %v7349_v22 = vmul.f32 %v13029_v15, %v15102_v35 }
 0xcf3   : > { %v13043_v7 = vpop.eup %13042  ;;  %13062 = vtanh.f32 %v7254_v49  ;;  %v7230_v9 = vadd.f32 1.0, %v13041_v56  ;;  %v7350_v49 = vmul.f32 %v13033_v47, %v15105_v28  ;;  %v7352_v56 = vmul.f32 %v13037_v46, %v15112_v44 }
 0xcf4   : > { %v13045_v2 = vpop.eup %13044  ;;  %13064 = vrcp.f32 %v7229_v3  ;;  %v7231_v34 = vadd.f32 1.0, %v13043_v7 }
 0xcf5   : > { %v13047_v12 = vpop.eup %13046  ;;  %13066 = vtanh.f32 %v7255_v19  ;;  %v7232_v58 = vadd.f32 1.0, %v13045_v2  ;;  %v7351_v19 = vmul.f32 %v13035_v41, %v15107_v40 }
 0xcf6   : > { %v13049_v30 = vpop.eup %13048  ;;  %13068 = vtanh.f32 %v7256_v24  ;;  %v7233_v31 = vadd.f32 1.0, %v13047_v12  ;;  %v7353_v24 = vmul.f32 %v13039_v14, %v15109_v39 }
 0xcf7   : > { %v13051_v13 = vpop.eup %13050  ;;  %v7354_v2 = vmul.f32 %v13049_v30, %v15114_v16 }
 0xcf8   : > { %v13053_v17 = vpop.eup %13052 }
 0xcf9   : > { %v13055_v45 = vpop.eup %13054  ;;  %v7356_v12 = vmul.f32 %v13053_v17, %v15119_v26 }
 0xcfa   : > { %v13057_v36 = vpop.eup %13056  ;;  %v7234_v43 = vadd.f32 1.0, %v13055_v45 }
 0xcfb   : > { %v13059_v27 = vpop.eup %13058  ;;  %v7235_v62 = vadd.f32 1.0, %v13057_v36 }
 0xcfc   : > { %v13061_v18 = vpop.eup %13060  ;;  %v7236_v40 = vadd.f32 1.0, %v13059_v27 }
 0xcfd   : > { %v13063_v29 = vpop.eup %13062  ;;  %v7357_v35 = vmul.f32 %v13061_v18, %v15284_v51 }
 0xcfe   : > { %v15314_v42 = vpop.eup %13064  ;;  %v7358_v28 = vmul.f32 %v13063_v29, %v15287_v54 }
 0xcff   : > { %v13067_v3 = vpop.eup %13066  ;;  %v7365_v46 = vadd.f32 %v7357_v35, %v7349_v22 }
 0xd00   : > { %v13069_v7 = vpop.eup %13068  ;;  %v7359_v15 = vmul.f32 %v13067_v3, %v15290_v25  ;;  %v7366_v26 = vadd.f32 %v7358_v28, %v7350_v49 }
 0xd01   : > { %v7360_v39 = vmul.f32 %v13069_v7, %v15293_v38 }
 0xd02   : > { %v7367_v14 = vadd.f32 %v7359_v15, %v7351_v19 }
 0xd03   : > { %v7368_v51 = vadd.f32 %v7360_v39, %v7352_v56 }
 0xd92   : > { %v7511_v52 = vpop.f32.mrb[68].mxu0 }
 0xd93   : > { %13070 = vtanh.f32 %v7511_v52  ;;  %v11410_v23 = vpop.f32.mrb[69].mxu0 }
 0xd94   : > { %13072 = vtanh.f32 %v7257_v48  ;;  %v7514_v63 = vpop.f32.mrb[70].mxu0  ;;  %v7355_v48 = vmul.f32 %v13051_v13, %v15116_v59 }
 0xd95   : > { %13074 = vtanh.f32 %v7258_v50  ;;  %v11411_v32 = vpop.f32.mrb[71].mxu0 }
 0xd96   : > { %13076 = vtanh.f32 %v7259_v0 }
 0xd97   : > { %13078 = vrcp.f32 %v7230_v9 }
 0xd98   : > { %13080 = vtanh.f32 %v7260_v60 }
 0xd99   : > { %13082 = vrcp.f32 %v7231_v34 }
 0xd9a   : > { %13084 = vrcp.f32 %v7232_v58 }
 0xd9b   : > { %13086 = vrcp.f32 %v7233_v31 }
 0xd9c   : > { %13088 = vrcp.f32 %v7234_v43 }
 0xd9d   : > { %v13071_v50 = vpop.eup %13070  ;;  %13090 = vrcp.f32 %v7235_v62 }
 0xd9e   : > { %v13073_v47 = vpop.eup %13072  ;;  %v7519_v44 = vcombine.high %v13071_v50, %v13071_v50  ;;  %v7526_v41 = vrot.slane %v13071_v50, %v13993_v1  ;;  %13092 = vrcp.f32 %v7236_v40 }
 0xd9f   : > { %v13075_v16 = vpop.eup %13074  ;;  %v7361_v59 = vmul.f32 %v13073_v47, %v15296_v10 }
 0xda0   : > { %v13077_v30 = vpop.eup %13076  ;;  %v7533_v54 = vrot.slane %v7519_v44, %v13993_v1  ;;  %v7534_v0 = vcombine.high %v7526_v41, %v7526_v41  ;;  %v7542_v25 = vrot.slane %v7526_v41, %v13993_v1  ;;  %v7362_v13 = vmul.f32 %v13075_v16, %v15299_v20 }
 0xda1   : > { %v13079_v52 = vpop.eup %13078  ;;  %v7363_v38 = vmul.f32 %v13077_v30, %v15302_v21  ;;  %v7369_v9 = vadd.f32 %v7361_v59, %v7353_v24 }
 0xda2   : > { %v13081_v23 = vpop.eup %13080  ;;  %v7535_v17 = vcombine.high %v7533_v54, %v7533_v54  ;;  %v7549_v10 = vrot.slane %v7533_v54, %v13993_v1  ;;  %v7556_v60 = vrot.slane %v7534_v0, %v13993_v1  ;;  %v7564_v63 = vcombine.high %v7542_v25, %v7542_v25 }
 0xda3   : > { %v13083_v45 = vpop.eup %13082  ;;  %v7364_v34 = vmul.f32 %v13081_v23, %v15304_v33  ;;  %v7370_v32 = vadd.f32 %v7362_v13, %v7354_v2  ;;  %v7371_v36 = vadd.f32 %v7363_v38, %v7355_v48  ;;  %v15337_v58 = vadd.f32 %v7542_v25, %v7365_v46 }
 0xda4   : > { %v13085_v27 = vpop.eup %13084  ;;  %v7563_v20 = vrot.slane %v7535_v17, %v13993_v1  ;;  %v7565_v21 = vcombine.high %v7549_v10, %v7549_v10  ;;  %v7566_v31 = vcombine.high %v7556_v60, %v7556_v60  ;;  %v15340_v18 = vadd.f32 %v7556_v60, %v7366_v26 }
 0xda5   : > { %v13087_v43 = vpop.eup %13086  ;;  %v7372_v29 = vadd.f32 %v7364_v34, %v7356_v12  ;;  %v15342_v62 = vadd.f32 %v7564_v63, %v7367_v14  ;;  %v15344_v22 = vadd.f32 %v7549_v10, %v7369_v9  ;;  %13094 = vtanh.f32 %v15337_v58 }
 0xda6   : > { %v13089_v33 = vpop.eup %13088  ;;  %v7567_v49 = vcombine.high %v7563_v20, %v7563_v20  ;;  %v15347_v3 = vadd.f32 %v7566_v31, %v7368_v51  ;;  %v15349_v19 = vadd.f32 %v7563_v20, %v7370_v32  ;;  %v15351_v56 = vadd.f32 %v7565_v21, %v7371_v36 }
 0xda7   : > { %13096 = vtanh.f32 %v15340_v18  ;;  %v13091_v24 = vpop.eup %13090 }
 0xda8   : > { %v15354_v7 = vadd.f32 %v7567_v49, %v7372_v29  ;;  %13098 = vtanh.f32 %v15342_v62  ;;  %v13093_v2 = vpop.eup %13092 }
 0xda9   : > { %13100 = vtanh.f32 %v15347_v3 }
 0xdaa   : > { %13102 = vtanh.f32 %v15344_v22 }
 0xdab   : > { %13104 = vtanh.f32 %v15349_v19 }
 0xdac   : > { %13106 = vtanh.f32 %v15351_v56 }
 0xdad   : > { %13108 = vtanh.f32 %v15354_v7 }
 0xdaf   : > { %v13095_v48 = vpop.eup %13094 }
 0xdb0   : > { %v7592_v12 = vmul.f32 %v13095_v48, %v15314_v42 }
 0xdb1   : > { %v13097_v50 = vpop.eup %13096 }
 0xdb2   : > { %v13099_v35 = vpop.eup %13098  ;;  %v7593_v28 = vmul.f32 %v13097_v50, %v13079_v52  ;;  %7600 = vst [vmem:[#allocation3 + $0x5] sm:$0x1] %v7592_v12  ;;  %v7640_v47 = vpack.c.bf16 %v7592_v12, %v7592_v12  ;;  %v12050_v12 = vld [vmem:[#allocation12 + $0x10] ss:$20 sps:$4 sm:$0xff]  }
 0xdb3   : > { %v13101_v15 = vpop.eup %13100  ;;  %v7594_v40 = vmul.f32 %v13099_v35, %v13083_v45  ;;  %v12051_v35 = vld [vmem:[#allocation12 + $0x38] ss:$20 sps:$4 sm:$0xff]  }
 0xdb4   : > { %v13103_v39 = vpop.eup %13102  ;;  %v7595_v44 = vmul.f32 %v13101_v15, %v13085_v27  ;;  %7601 = vst [vmem:[#allocation3 + $0xd] sm:$0x1] %v7593_v28  ;;  %v7641_v41 = vpack.c.bf16 %v7593_v28, %v7593_v28  ;;  %v7704_v25 = vunpack.c.l.b16 %v7640_v47  ;;  %v12052_v28 = vld [vmem:[#allocation12 + $0x60] ss:$20 sps:$4 sm:$0xff]   ;;  %v12053_v15 = vld [vmem:[#allocation12 + $0x88] ss:$20 sps:$4 sm:$0xff]  }
 0xdb5   : > { %v13105_v16 = vpop.eup %13104  ;;  %v7596_v59 = vmul.f32 %v13103_v39, %v13087_v43  ;;  %7602 = vst [vmem:[#allocation3 + $0x15] sm:$0x1] %v7594_v40  ;;  %v7642_v46 = vpack.c.bf16 %v7594_v40, %v7594_v40  ;;  %v12054_v40 = vld [vmem:[#allocation12 + $0xb0] ss:$20 sps:$4 sm:$0xff]   ;;  %v12055_v47 = vld [vmem:[#allocation12 + $0xd8] ss:$20 sps:$4 sm:$0xff]  }
 0xdb6   : > { %v13107_v26 = vpop.eup %13106  ;;  %v7597_v14 = vmul.f32 %v13105_v16, %v13089_v33  ;;  %7603 = vst [vmem:[#allocation3 + $0x1d] sm:$0x1] %v7595_v44  ;;  %v7643_v30 = vpack.c.bf16 %v7595_v44, %v7595_v44  ;;  %v7705_v42 = vunpack.c.l.b16 %v7641_v41  ;;  %v12056_v39 = vld [vmem:[#allocation12 + $0x100] ss:$20 sps:$4 sm:$0xff]   ;;  %v12057_v44 = vld [vmem:[#allocation12 + $0x128] ss:$20 sps:$4 sm:$0xff]  }
 0xdb7   : > { %v13109_v51 = vpop.eup %13108  ;;  %v7598_v54 = vmul.f32 %v13107_v26, %v13091_v24  ;;  %7604 = vst [vmem:[#allocation3 + $0x25] sm:$0x1] %v7596_v59  ;;  %v7644_v0 = vpack.c.bf16 %v7596_v59, %v7596_v59  ;;  %v7706_v52 = vunpack.c.l.b16 %v7642_v46  ;;  %v12058_v41 = vld [vmem:[%s15890_s5] sm:$0xff]   ;;  %v12059_v16 = vld [vmem:[%s15890_s5 + $0x8] sm:$0xff]   ;;  %v12060_v59 = vld [vmem:[%s15890_s5 + $0x10] sm:$0xff]  }
 0xdb8   : > { %v7599_v13 = vmul.f32 %v13109_v51, %v13093_v2  ;;  %7605 = vst [vmem:[#allocation3 + $0x2d] sm:$0x1] %v7597_v14  ;;  %v7645_v38 = vpack.c.bf16 %v7597_v14, %v7597_v14  ;;  %v7707_v9 = vunpack.c.l.b16 %v7643_v30  ;;  %v7712_v23 = vrot.slane %v7705_v42, 7  ;;  %v12061_v46 = vld [vmem:[%s15890_s5 + $0x18] sm:$0xff]   ;;  %v12062_v26 = vld [vmem:[%s15890_s5 + $0x20] sm:$0xff]  }
 0xdb9   : > { %7606 = vst [vmem:[#allocation3 + $0x35] sm:$0x1] %v7598_v54  ;;  %v7646_v17 = vpack.c.bf16 %v7598_v54, %v7598_v54  ;;  %v7708_v10 = vunpack.c.l.b16 %v7644_v0  ;;  %v7714_v60 = vrot.slane %v7706_v52, 6 }
 0xdba   : > { %7607 = vst [vmem:[#allocation3 + $0x3d] sm:$0x1] %v7599_v13  ;;  %v7647_v63 = vpack.c.bf16 %v7599_v13, %v7599_v13  ;;  %v7709_v45 = vunpack.c.l.b16 %v7645_v38  ;;  %v7713_v34 = vsel %vm1772_vm3, %v7712_v23, %v7704_v25  ;;  %v7716_v32 = vrot.slane %v7707_v9, 5 }
 0xdbb   : > { %v7710_v36 = vunpack.c.l.b16 %v7646_v17  ;;  %v7715_v27 = vsel %vm1775_vm4, %v7714_v60, %v7713_v34  ;;  %v7718_v20 = vrot.slane %v7708_v10, 4  ;;  %v12063_v17 = vld [vmem:[%s15890_s5 + $0x28] sm:$0xff]  }
 0xdbc   : > { %v7711_v21 = vunpack.c.l.b16 %v7647_v63  ;;  %v7717_v31 = vsel %vm1778_vm5, %v7716_v32, %v7715_v27  ;;  %v7720_v43 = vrot.slane %v7709_v45, 3 }
 0xdbd   : > { %v7719_v29 = vsel %vm1781_vm6, %v7718_v20, %v7717_v31  ;;  %v7722_v33 = vrot.slane %v7710_v36, 2  ;;  %v12064_v20 = vld [vmem:[%s15890_s5 + $0x30] sm:$0xff]  }
 0xdbe   : > { %v7721_v49 = vsel %vm1784_vm7, %v7720_v43, %v7719_v29  ;;  %v7724_v24 = vrot.slane %v7711_v21, 1  ;;  %v12065_v21 = vld [vmem:[%s15890_s5 + $0x38] sm:$0xff]  }
 0xdbf   : > { %v7723_v2 = vsel %vm1787_vm8, %v7722_v33, %v7721_v49 }
 0xdc0   : > { %v7725_v48 = vsel %vm1790_vm9, %v7724_v24, %v7723_v2 }
 0xdc1   : > { %v7726_v50 = vpack.c.b16 %v7725_v48, %v7725_v48 }
 0xdc3   : > { %7969 = vmatmul.mubr.bf16.vlgmr.msra.gmra.mrb[64].mxu1 %v7726_v50  ;;  %8010 = vmatmul.mubr.bf16.vlgmr.msra.gmra.mrb[72].mxu0 %v7726_v50 }
 0xdc4   : > { %11413 = vmatpush3.bf16.msra.mxu1 %v12050_v12  ;;  %11428 = vmatprep.mubr.msk.bf16.mxu1 %vm13603_vm2, %v13602_v57 }
 0xdc5   : > { %11414 = vmatprep.subr.bf16.mxu1 %v13602_v57  ;;  %11448 = vmatprep.mubr.msk.bf16.mxu0 %vm13603_vm2, %v13602_v57 }
 0xdc6   : > { %11433 = vmatpush3.bf16.msra.mxu0 %v12058_v41 }
 0xdc7   : > { %11434 = vmatprep.subr.bf16.mxu0 %v13602_v57 }
 0xdc8   : > { %11415 = vmatpush3.bf16.msra.mxu1 %v12051_v35 }
 0xdc9   : > { %11416 = vmatprep.subr.bf16.mxu1 %v13602_v57 }
 0xdca   : > { %11435 = vmatpush3.bf16.msra.mxu0 %v12059_v16 }
 0xdcb   : > { %11436 = vmatprep.subr.bf16.mxu0 %v13602_v57 }
 0xdcc   : > { %11417 = vmatpush3.bf16.msra.mxu1 %v12052_v28 }
 0xdcd   : > { %11418 = vmatprep.subr.bf16.mxu1 %v13602_v57 }
 0xdce   : > { %11437 = vmatpush3.bf16.msra.mxu0 %v12060_v59 }
 0xdcf   : > { %11438 = vmatprep.subr.bf16.mxu0 %v13602_v57 }
 0xdd0   : > { %11419 = vmatpush3.bf16.msra.mxu1 %v12053_v15 }
 0xdd1   : > { %11420 = vmatprep.subr.bf16.mxu1 %v13602_v57 }
 0xdd2   : > { %11439 = vmatpush3.bf16.msra.mxu0 %v12061_v46 }
 0xdd3   : > { %11440 = vmatprep.subr.bf16.mxu0 %v13602_v57 }
 0xdd4   : > { %11421 = vmatpush3.bf16.msra.mxu1 %v12054_v40 }
 0xdd5   : > { %11422 = vmatprep.subr.bf16.mxu1 %v13602_v57 }
 0xdd6   : > { %11441 = vmatpush3.bf16.msra.mxu0 %v12062_v26 }
 0xdd7   : > { %11442 = vmatprep.subr.bf16.mxu0 %v13602_v57 }
 0xdd8   : > { %11423 = vmatpush3.bf16.msra.mxu1 %v12055_v47 }
 0xdd9   : > { %11424 = vmatprep.subr.bf16.mxu1 %v13602_v57 }
 0xdda   : > { %11443 = vmatpush3.bf16.msra.mxu0 %v12063_v17  ;;  %v7626_v17 = vld [vmem:[#allocation2 + $0xa6] ss:$8 sm:$0x10] }
 0xddb   : > { %11444 = vmatprep.subr.bf16.mxu0 %v13602_v57 }
 0xddc   : > { %11425 = vmatpush3.bf16.msra.mxu1 %v12056_v39 }
 0xddd   : > { %11426 = vmatprep.subr.bf16.mxu1 %v13602_v57 }
 0xdde   : > { %11445 = vmatpush3.bf16.msra.mxu0 %v12064_v20 }
 0xddf   : > { %11446 = vmatprep.subr.bf16.mxu0 %v13602_v57 }
 0xde0   : > { %11427 = vmatpush3.bf16.msra.mxu1 %v12057_v44 }
 0xde2   : > { %11447 = vmatpush3.bf16.msra.mxu0 %v12065_v21  ;;  %v7629_v21 = vld [vmem:[#allocation2 + $0xce] ss:$8 sm:$0xf] }
 0xde3   : > { %11429 = vmatmul.mubr.bf16.vlgmr.msra.gmra.mrb[68].mxu1 %v7726_v50 }
 0xde4   : > { %9095 = vmatprep.mubr.bf16.mxu1 %v13601_v4 }
 0xe96   : > { %v7970_v14 = vpop.f32.mrb[64].mxu1  ;;  %v8011_v30 = vpop.f32.mrb[72].mxu0 }
 0xe97   : > { %v7972_v42 = vpop.f32.mrb[65].mxu1  ;;  %v8013_v51 = vpop.f32.mrb[73].mxu0 }
 0xe98   : > { %v8063_v54 = vcombine.low %v7970_v14, %v7972_v42  ;;  %v8064_v0 = vcombine.high %v7970_v14, %v7972_v42  ;;  %v8065_v25 = vcombine.low %v8011_v30, %v8013_v51  ;;  %v8066_v52 = vcombine.high %v8011_v30, %v8013_v51  ;;  %v7974_v13 = vpop.f32.mrb[66].mxu1  ;;  %v8015_v38 = vpop.f32.mrb[74].mxu0  ;;  %v7610_v51 = vld [vmem:[#allocation2 + $0x6] ss:$8 sm:$0x10] }
 0xe99   : > { %v7975_v9 = vpop.f32.mrb[67].mxu1  ;;  %v8016_v23 = vpop.f32.mrb[75].mxu0  ;;  %v7613_v13 = vld [vmem:[#allocation2 + $0x2e] ss:$8 sm:$0xf] }
 0xe9a   : > { %v8074_v10 = vrot.slane %v8063_v54, %v13993_v1  ;;  %v8081_v60 = vrot.slane %v8064_v0, %v13993_v1  ;;  %v8088_v63 = vrot.slane %v8065_v25, %v13993_v1  ;;  %v8095_v45 = vrot.slane %v8066_v52, %v13993_v1  ;;  %v7614_v54 = vld [vmem:[#allocation2 + $0x2e] ss:$8 sm:$0x10]  ;;  %v7618_v25 = vld [vmem:[#allocation2 + $0x56] ss:$8 sm:$0x10] }
 0xe9b   : > { %v7609_v0 = vld [vmem:[#allocation2 + $0x6] ss:$8 sm:$0xf]  ;;  %v7615_v9 = vor.u32 %v7614_v54, %v7613_v13 }
 0xe9c   : > { %v8110_v34 = vcombine.low %v8074_v10, %v8088_v63  ;;  %v8111_v32 = vcombine.high %v8074_v10, %v8088_v63  ;;  %v8112_v36 = vcombine.low %v8081_v60, %v8095_v45  ;;  %v8113_v27 = vcombine.high %v8081_v60, %v8095_v45  ;;  %v7622_v38 = vld [vmem:[#allocation2 + $0x7e] ss:$8 sm:$0x10]  ;;  %v7630_v63 = vld [vmem:[#allocation2 + $0xce] ss:$8 sm:$0x10] }
 0xe9d   : > { %v7611_v52 = vor.u32 %v7610_v51, %v7609_v0  ;;  %v7617_v23 = vld [vmem:[#allocation2 + $0x56] ss:$8 sm:$0xf] }
 0xe9e   : > { %v8122_v48 = vrot.slane %v8110_v34, %v13993_v1  ;;  %v8129_v35 = vrot.slane %v8112_v36, %v13993_v1  ;;  %v8136_v28 = vrot.slane %v8111_v32, %v13993_v1  ;;  %v8143_v44 = vrot.slane %v8113_v27, %v13993_v1  ;;  %v7621_v60 = vld [vmem:[#allocation2 + $0x7e] ss:$8 sm:$0xf] }
 0xe9f   : > { %v7619_v10 = vor.u32 %v7618_v25, %v7617_v23  ;;  %v7623_v34 = vor.u32 %v7622_v38, %v7621_v60  ;;  %v7625_v32 = vld [vmem:[#allocation2 + $0xa6] ss:$8 sm:$0xf] }
 0xea0   : > { %v7634_v36 = vld [vmem:[#allocation2 + $0xf6] ss:$8 sm:$0x10]  ;;  %v7627_v20 = vor.u32 %v7626_v17, %v7625_v32 }
 0xeb6   : > { %v8052_v31 = vpop.f32.mrb[68].mxu1 }
 0xeb7   : > { %v8067_v43 = vcombine.high %v8052_v31, %v8052_v31  ;;  %v8102_v29 = vrot.slane %v8052_v31, %v13993_v1  ;;  %v11430_v33 = vpop.f32.mrb[69].mxu1  ;;  %v7638_v31 = vld [vmem:[#allocation2 + $0x11e] ss:$8 sm:$0x10] }
 0xeb8   : > { %v8055_v49 = vpop.f32.mrb[70].mxu1  ;;  %v7633_v33 = vld [vmem:[#allocation2 + $0xf6] ss:$8 sm:$0xf] }
 0xeb9   : > { %v8109_v24 = vrot.slane %v8067_v43, %v13993_v1  ;;  %v8114_v2 = vcombine.high %v8102_v29, %v8102_v29  ;;  %v8150_v12 = vrot.slane %v8102_v29, %v13993_v1  ;;  %v11431_v50 = vpop.f32.mrb[71].mxu1  ;;  %v7631_v29 = vor.u32 %v7630_v63, %v7629_v21 }
 0xebb   : > { %v8115_v15 = vcombine.high %v8109_v24, %v8109_v24  ;;  %v8157_v40 = vrot.slane %v8109_v24, %v13993_v1  ;;  %v8164_v47 = vrot.slane %v8114_v2, %v13993_v1  ;;  %v8172_v39 = vcombine.low %v8122_v48, %v8150_v12  ;;  %v7637_v2 = vld [vmem:[#allocation2 + $0x11e] ss:$8 sm:$0xf] }
 0xebc   : > { %v8173_v41 = vcombine.high %v8122_v48, %v8150_v12  ;;  %v7635_v24 = vor.u32 %v7634_v36, %v7633_v33  ;;  %v7639_v50 = vor.u32 %v7638_v31, %v7637_v2 }
 0xebd   : > { %v8171_v16 = vrot.slane %v8115_v15, %v13993_v1  ;;  %v8174_v59 = vcombine.low %v8129_v35, %v8157_v40  ;;  %v8175_v46 = vcombine.high %v8129_v35, %v8157_v40  ;;  %v8176_v26 = vcombine.low %v8136_v28, %v8164_v47 }
 0xebe   : > { %v8177_v14 = vcombine.high %v8136_v28, %v8164_v47  ;;  %v15427_v45 = vadd.f32 %v8172_v39, %v7611_v52  ;;  %v15431_v43 = vadd.f32 %v8173_v41, %v7619_v10 }
 0xebf   : > { %v8178_v30 = vcombine.low %v8143_v44, %v8171_v16  ;;  %v8179_v42 = vcombine.high %v8143_v44, %v8171_v16  ;;  %v15429_v27 = vadd.f32 %v8176_v26, %v7615_v9  ;;  %v15435_v48 = vadd.f32 %v8174_v59, %v7627_v20 }
 0xec0   : > { %v15433_v49 = vadd.f32 %v8177_v14, %v7623_v34  ;;  %v8404_v12 = vrot.slane %v15427_v45, 4  ;;  %v15441_v15 = vadd.f32 %v8175_v46, %v7635_v24  ;;  %v8406_v40 = vrot.slane %v15431_v43, 4 }
 0xec1   : > { %v15438_v35 = vadd.f32 %v8178_v30, %v7631_v29  ;;  %v8405_v28 = vrot.slane %v15429_v27, 4  ;;  %v15444_v47 = vadd.f32 %v8179_v42, %v7639_v50  ;;  %v8408_v44 = vrot.slane %v15435_v48, 4 }
 0xec2   : > { %v8407_v39 = vrot.slane %v15433_v49, 4  ;;  %v10886_v41 = vmul.f32 -1.442695, %v8404_v12  ;;  %v8410_v26 = vrot.slane %v15441_v15, 4  ;;  %v10888_v14 = vmul.f32 -1.442695, %v8406_v40 }
 0xec3   : > { %v8409_v16 = vrot.slane %v15438_v35, 4  ;;  %v10887_v59 = vmul.f32 -1.442695, %v8405_v28  ;;  %v8411_v30 = vrot.slane %v15444_v47, 4  ;;  %v10890_v46 = vmul.f32 -1.442695, %v8408_v44 }
 0xec4   : > { %v10889_v51 = vmul.f32 -1.442695, %v8407_v39  ;;  %13110 = vpow2.f32 %v10886_v41  ;;  %v10892_v42 = vmul.f32 -1.442695, %v8410_v26 }
 0xec5   : > { %13112 = vpow2.f32 %v10887_v59  ;;  %v10891_v54 = vmul.f32 -1.442695, %v8409_v16  ;;  %v10893_v0 = vmul.f32 -1.442695, %v8411_v30 }
 0xec6   : > { %13114 = vpow2.f32 %v10888_v14 }
 0xec7   : > { %13116 = vpow2.f32 %v10889_v51 }
 0xec8   : > { %13118 = vpow2.f32 %v10890_v46 }
 0xec9   : > { %13120 = vpow2.f32 %v10891_v54 }
 0xeca   : > { %13122 = vpow2.f32 %v10892_v42 }
 0xecb   : > { %13124 = vpow2.f32 %v10893_v0 }
 0xece   : > { %v13111_v25 = vpop.eup %13110 }
 0xecf   : > { %v13113_v52 = vpop.eup %13112  ;;  %v8444_v13 = vadd.f32 1.0, %v13111_v25 }
 0xed0   : > { %v13115_v38 = vpop.eup %13114  ;;  %v8445_v9 = vadd.f32 1.0, %v13113_v52 }
 0xed1   : > { %v13117_v23 = vpop.eup %13116  ;;  %v8446_v17 = vadd.f32 1.0, %v13115_v38  ;;  %13126 = vrcp.f32 %v8444_v13 }
 0xed2   : > { %v13119_v10 = vpop.eup %13118  ;;  %v8447_v60 = vadd.f32 1.0, %v13117_v23  ;;  %13128 = vrcp.f32 %v8445_v9 }
 0xed3   : > { %v13121_v63 = vpop.eup %13120  ;;  %v8448_v34 = vadd.f32 1.0, %v13119_v10  ;;  %13130 = vrcp.f32 %v8446_v17 }
 0xed4   : > { %v13123_v32 = vpop.eup %13122  ;;  %v8449_v36 = vadd.f32 1.0, %v13121_v63  ;;  %13132 = vrcp.f32 %v8447_v60 }
 0xed5   : > { %v13125_v20 = vpop.eup %13124  ;;  %v8450_v21 = vadd.f32 1.0, %v13123_v32  ;;  %13134 = vrcp.f32 %v8448_v34 }
 0xed6   : > { %13136 = vrcp.f32 %v8449_v36  ;;  %v8451_v31 = vadd.f32 1.0, %v13125_v20 }
 0xed7   : > { %13138 = vrcp.f32 %v8450_v21 }
 0xed8   : > { %13140 = vrcp.f32 %v8451_v31 }
 0xedb   : > { %v13127_v29 = vpop.eup %13126 }
 0xedc   : > { %v13129_v33 = vpop.eup %13128  ;;  %v15452_v24 = vmul.f32 %v13127_v29, %v15217_v5 }
 0xedd   : > { %v13131_v2 = vpop.eup %13130  ;;  %v15455_v12 = vmul.f32 %v13129_v33, %v15220_v11 }
 0xede   : > { %v13133_v50 = vpop.eup %13132  ;;  %v15458_v28 = vmul.f32 %v13131_v2, %v15223_v37  ;;  %v8500_v40 = vpack.c.bf16 %v15452_v24, %v15452_v24  ;;  %v12068_v2 = vld [vmem:[#allocation12 + $0x4] ss:$20 sps:$4 sm:$0xff]  }
 0xedf   : > { %v13135_v39 = vpop.eup %13134  ;;  %v15463_v44 = vmul.f32 %v13133_v50, %v15228_v61  ;;  %v8501_v41 = vpack.c.bf16 %v15455_v12, %v15455_v12  ;;  %v12066_v50 = vld [vmem:[#allocation12] ss:$20 sps:$4 sm:$0xff]   ;;  %9063 = vmatprep.subr.bf16.mxu1 %v12068_v2  ;;  %v10867_v2 = vmul.f32 -1.442695, %v15438_v35 }
 0xee0   : > { %v13137_v5 = vpop.eup %13136  ;;  %v15468_v16 = vmul.f32 %v13135_v39, %v15233_v55  ;;  %v8502_v11 = vpack.c.bf16 %v15458_v28, %v15458_v28  ;;  %v8532_v55 = vunpack.c.l.b16 %v8500_v40  ;;  %v12071_v40 = vld [vmem:[#allocation12 + $0xc] ss:$20 sps:$4 sm:$0xff]   ;;  %v12069_v39 = vld [vmem:[#allocation12 + $0x8] ss:$20 sps:$4 sm:$0xff]   ;;  %9064 = vmatpush1.bf16.msra.mxu1 %v12066_v50  ;;  %v10868_v50 = vmul.f32 -1.442695, %v15441_v15 }
 0xee1   : > { %v13139_v59 = vpop.eup %13138  ;;  %v15473_v37 = vmul.f32 %v13137_v5, %v15238_v53  ;;  %v8503_v26 = vpack.c.bf16 %v15463_v44, %v15463_v44  ;;  %v8533_v14 = vunpack.c.l.b16 %v8501_v41  ;;  %9104 = vmatprep.subr.bf16.mxu0 %v12071_v40  ;;  %v12074_v41 = vld [vmem:[#allocation12 + $0x2c] ss:$20 sps:$4 sm:$0xff]   ;;  %v12072_v5 = vld [vmem:[#allocation12 + $0x28] ss:$20 sps:$4 sm:$0xff]   ;;  %v8253_v40 = vrot.slane %v15429_v27, 1 }
 0xee2   : > { %v13141_v61 = vpop.eup %13140  ;;  %v15478_v30 = vmul.f32 %v13139_v59, %v15243_v6  ;;  %v8504_v51 = vpack.c.bf16 %v15468_v16, %v15468_v16  ;;  %v8534_v46 = vunpack.c.l.b16 %v8502_v11  ;;  %v12077_v11 = vld [vmem:[#allocation12 + $0x34] ss:$20 sps:$4 sm:$0xff]   ;;  %9065 = vmatprep.subr.bf16.mxu1 %v12074_v41  ;;  %v12075_v59 = vld [vmem:[#allocation12 + $0x30] ss:$20 sps:$4 sm:$0xff]   ;;  %v8254_v41 = vrot.slane %v15431_v43, 1 }
 0xee3   : > { %v15483_v54 = vmul.f32 %v13141_v61, %v15248_v8  ;;  %v8505_v53 = vpack.c.bf16 %v15473_v37, %v15473_v37  ;;  %v8535_v42 = vunpack.c.l.b16 %v8503_v26  ;;  %v8540_v0 = vrot.slane %v8533_v14, 7  ;;  %v12080_v26 = vld [vmem:[#allocation12 + $0x54] ss:$20 sps:$4 sm:$0xff]   ;;  %v12078_v14 = vld [vmem:[#allocation12 + $0x50] ss:$20 sps:$4 sm:$0xff]  }
 0xee4   : > { %v8506_v25 = vpack.c.bf16 %v15478_v30, %v15478_v30  ;;  %v8536_v52 = vunpack.c.l.b16 %v8504_v51  ;;  %v8542_v13 = vrot.slane %v8534_v46, 6  ;;  %9066 = vmatpush1.bf16.msra.mxu1 %v12072_v5  ;;  %v12081_v61 = vld [vmem:[#allocation12 + $0x58] ss:$20 sps:$4 sm:$0xff]   ;;  %v12086_v51 = vld [vmem:[#allocation12 + $0x7c] ss:$20 sps:$4 sm:$0xff]   ;;  %v8255_v5 = vrot.slane %v15433_v49, 1 }
 0xee5   : > { %v8507_v6 = vpack.c.bf16 %v15483_v54, %v15483_v54  ;;  %v8537_v38 = vunpack.c.l.b16 %v8505_v53  ;;  %v8541_v9 = vsel %vm1772_vm3, %v8540_v0, %v8532_v55  ;;  %v8544_v23 = vrot.slane %v8535_v42, 5  ;;  %9067 = vmatprep.subr.bf16.mxu1 %v12080_v26  ;;  %v12084_v55 = vld [vmem:[#allocation12 + $0x78] ss:$20 sps:$4 sm:$0xff]   ;;  %v12087_v53 = vld [vmem:[#allocation12 + $0x80] ss:$20 sps:$4 sm:$0xff]  }
 0xee6   : > { %v8538_v17 = vunpack.c.l.b16 %v8506_v25  ;;  %v8543_v8 = vsel %vm1775_vm4, %v8542_v13, %v8541_v9  ;;  %v8546_v10 = vrot.slane %v8536_v52, 4  ;;  %v12089_v46 = vld [vmem:[#allocation12 + $0x84] ss:$20 sps:$4 sm:$0xff]   ;;  %v12095_v0 = vld [vmem:[#allocation12 + $0xac] ss:$20 sps:$4 sm:$0xff]  }
 0xee7   : > { %v8539_v60 = vunpack.c.l.b16 %v8507_v6  ;;  %v8545_v63 = vsel %vm1778_vm5, %v8544_v23, %v8543_v8  ;;  %v8548_v34 = vrot.slane %v8537_v38, 3  ;;  %v12092_v42 = vld [vmem:[#allocation12 + $0xa4] ss:$20 sps:$4 sm:$0xff]   ;;  %v12090_v25 = vld [vmem:[#allocation12 + $0xa0] ss:$20 sps:$4 sm:$0xff]  }
 0xee8   : > { %v8547_v32 = vsel %vm1781_vm6, %v8546_v10, %v8545_v63  ;;  %v8550_v36 = vrot.slane %v8538_v17, 2  ;;  %9068 = vmatpush1.bf16.msra.mxu1 %v12078_v14  ;;  %v12093_v52 = vld [vmem:[#allocation12 + $0xa8] ss:$20 sps:$4 sm:$0xff]   ;;  %v12098_v13 = vld [vmem:[#allocation12 + $0xcc] ss:$20 sps:$4 sm:$0xff]  }
 0xee9   : > { %v8549_v20 = vsel %vm1784_vm7, %v8548_v34, %v8547_v32  ;;  %v8552_v21 = vrot.slane %v8539_v60, 1  ;;  %9069 = vmatprep.subr.bf16.mxu1 %v12086_v51  ;;  %v12101_v6 = vld [vmem:[#allocation12 + $0xd4] ss:$20 sps:$4 sm:$0xff]   ;;  %v12099_v9 = vld [vmem:[#allocation12 + $0xd0] ss:$20 sps:$4 sm:$0xff]  }
 0xeea   : > { %v8551_v31 = vsel %vm1787_vm8, %v8550_v36, %v8549_v20  ;;  %v12096_v38 = vld [vmem:[#allocation12 + $0xc8] ss:$20 sps:$4 sm:$0xff]   ;;  %v12102_v8 = vld [vmem:[#allocation12 + $0xf0] ss:$20 sps:$4 sm:$0xff]   ;;  %v12105_v10 = vld [vmem:[#allocation12 + $0xf8] ss:$20 sps:$4 sm:$0xff]  }
 0xeeb   : > { %v8553_v29 = vsel %vm1790_vm9, %v8552_v21, %v8551_v31  ;;  %v12104_v23 = vld [vmem:[#allocation12 + $0xf4] ss:$20 sps:$4 sm:$0xff]   ;;  %v12107_v17 = vld [vmem:[#allocation12 + $0xfc] ss:$20 sps:$4 sm:$0xff]   ;;  %v12113_v63 = vld [vmem:[#allocation12 + $0x124] ss:$20 sps:$4 sm:$0xff]  }
 0xeec   : > { %v8554_v33 = vpack.c.b16 %v8553_v29, %v8553_v29  ;;  %9070 = vmatpush1.bf16.msra.mxu1 %v12084_v55  ;;  %v12110_v60 = vld [vmem:[#allocation12 + $0x11c] ss:$20 sps:$4 sm:$0xff]   ;;  %v12108_v34 = vld [vmem:[#allocation12 + $0x118] ss:$20 sps:$4 sm:$0xff]   ;;  %v12111_v32 = vld [vmem:[#allocation12 + $0x120] ss:$20 sps:$4 sm:$0xff]  }
 0xeed   : > { %9071 = vmatprep.subr.bf16.mxu1 %v12092_v42  ;;  %v10862_v36 = vmul.f32 -1.442695, %v15427_v45  ;;  %v10863_v20 = vmul.f32 -1.442695, %v15429_v27  ;;  %v10864_v21 = vmul.f32 -1.442695, %v15431_v43 }
 0xeee   : > { %11449 = vmatmul.mubr.bf16.vlgmr.msra.gmra.mrb[76].mxu0 %v8554_v33  ;;  %v10865_v31 = vmul.f32 -1.442695, %v15433_v49  ;;  %v10866_v29 = vmul.f32 -1.442695, %v15435_v48  ;;  %v8252_v33 = vrot.slane %v15427_v45, 1 }
 0xeef   : > { %9136 = vmatprep.mubr.bf16.mxu0 %v13601_v4  ;;  %9105 = vmatpush1.bf16.msra.mxu0 %v12069_v39  ;;  %v12083_v4 = vld [vmem:[#allocation12 + $0x5c] ss:$20 sps:$4 sm:$0xff]   ;;  %13142 = vpow2.f32 %v10862_v36  ;;  %v10869_v39 = vmul.f32 -1.442695, %v15444_v47  ;;  %v10871_v26 = vmul.f32 -1.442695, %v8253_v40 }
 0xef0   : > { %9106 = vmatprep.subr.bf16.mxu0 %v12077_v11  ;;  %9072 = vmatpush1.bf16.msra.mxu1 %v12090_v25  ;;  %13144 = vpow2.f32 %v10863_v20  ;;  %v10870_v11 = vmul.f32 -1.442695, %v8252_v33  ;;  %v10873_v51 = vmul.f32 -1.442695, %v8255_v5  ;;  %v8316_v20 = vrot.slane %v15427_v45, 2 }
 0xef1   : > { %9073 = vmatprep.subr.bf16.mxu1 %v12098_v13  ;;  %13146 = vpow2.f32 %v10864_v21  ;;  %v8317_v5 = vrot.slane %v15429_v27, 2 }
 0xef2   : > { %13148 = vpow2.f32 %v10865_v31  ;;  %v10878_v40 = vmul.f32 -1.442695, %v8316_v20 }
 0xef3   : > { %9107 = vmatpush1.bf16.msra.mxu0 %v12075_v59  ;;  %13150 = vpow2.f32 %v10866_v29  ;;  %v8256_v59 = vrot.slane %v15435_v48, 1 }
 0xef4   : > { %9108 = vmatprep.subr.bf16.mxu0 %v12083_v4  ;;  %9074 = vmatpush1.bf16.msra.mxu1 %v12096_v38  ;;  %13152 = vpow2.f32 %v10867_v2 }
 0xef5   : > { %9075 = vmatprep.subr.bf16.mxu1 %v12104_v23  ;;  %13154 = vpow2.f32 %v10868_v50 }
 0xef6   : > { %13156 = vpow2.f32 %v10869_v39 }
 0xef7   : > { %9109 = vmatpush1.bf16.msra.mxu0 %v12081_v61  ;;  %v10872_v61 = vmul.f32 -1.442695, %v8254_v41  ;;  %13158 = vpow2.f32 %v10870_v11 }
 0xef8   : > { %9110 = vmatprep.subr.bf16.mxu0 %v12089_v46  ;;  %9076 = vmatpush1.bf16.msra.mxu1 %v12102_v8  ;;  %v10874_v46 = vmul.f32 -1.442695, %v8256_v59  ;;  %13160 = vpow2.f32 %v10871_v26  ;;  %v8318_v26 = vrot.slane %v15431_v43, 2 }
 0xef9   : > { %9077 = vmatprep.subr.bf16.mxu1 %v12110_v60  ;;  %v13143_v14 = vpop.eup %13142  ;;  %13162 = vpow2.f32 %v10872_v61 }
 0xefa   : > { %v13145_v4 = vpop.eup %13144  ;;  %v8220_v42 = vadd.f32 1.0, %v13143_v14  ;;  %13164 = vpow2.f32 %v10873_v51 }
 0xefb   : > { %9111 = vmatpush1.bf16.msra.mxu0 %v12087_v53  ;;  %v13147_v55 = vpop.eup %13146  ;;  %v8221_v25 = vadd.f32 1.0, %v13145_v4  ;;  %13166 = vpow2.f32 %v10874_v46  ;;  %v8319_v4 = vrot.slane %v15433_v49, 2  ;;  %v8320_v46 = vrot.slane %v15435_v48, 2 }
 0xefc   : > { %9112 = vmatprep.subr.bf16.mxu0 %v12095_v0  ;;  %9078 = vmatpush1.bf16.msra.mxu1 %v12108_v34  ;;  %v13149_v53 = vpop.eup %13148  ;;  %v8257_v0 = vrot.slane %v15438_v35, 1  ;;  %v8222_v13 = vadd.f32 1.0, %v13147_v55  ;;  %13168 = vrcp.f32 %v8220_v42  ;;  %v10879_v42 = vmul.f32 -1.442695, %v8317_v5 }
 0xefd   : > { %11452 = vmatprep.subr.bf16.mxu1 %v13602_v57  ;;  %v8223_v38 = vadd.f32 1.0, %v13149_v53  ;;  %13170 = vrcp.f32 %v8221_v25  ;;  %v10880_v25 = vmul.f32 -1.442695, %v8318_v26  ;;  %v8382_v26 = vrot.slane %v15431_v43, 3 }
 0xefe   : > { %v10875_v23 = vmul.f32 -1.442695, %v8257_v0  ;;  %13172 = vrcp.f32 %v8222_v13  ;;  %v10881_v13 = vmul.f32 -1.442695, %v8319_v4  ;;  %v8383_v4 = vrot.slane %v15433_v49, 3 }
 0xeff   : > { %9113 = vmatpush1.bf16.msra.mxu0 %v12093_v52  ;;  %v8258_v52 = vrot.slane %v15441_v15, 1  ;;  %13174 = vrcp.f32 %v8223_v38  ;;  %v8321_v38 = vrot.slane %v15438_v35, 2 }
 0xf00   : > { %9114 = vmatprep.subr.bf16.mxu0 %v12101_v6  ;;  %v8259_v6 = vrot.slane %v15444_v47, 1  ;;  %13176 = vpow2.f32 %v10875_v23 }
 0xf01   : > { %v10876_v8 = vmul.f32 -1.442695, %v8258_v52  ;;  %v10883_v20 = vmul.f32 -1.442695, %v8321_v38  ;;  %v8387_v38 = vrot.slane %v15444_v47, 3 }
 0xf02   : > { %v10877_v60 = vmul.f32 -1.442695, %v8259_v6 }
 0xf03   : > { %9115 = vmatpush1.bf16.msra.mxu0 %v12099_v9  ;;  %v13151_v9 = vpop.eup %13150  ;;  %13178 = vpow2.f32 %v10876_v8  ;;  %v8322_v8 = vrot.slane %v15441_v15, 2 }
 0xf04   : > { %9116 = vmatprep.subr.bf16.mxu0 %v12107_v17  ;;  %v13153_v17 = vpop.eup %13152  ;;  %v8224_v34 = vadd.f32 1.0, %v13151_v9  ;;  %13180 = vpow2.f32 %v10877_v60  ;;  %v10882_v9 = vmul.f32 -1.442695, %v8320_v46 }
 0xf05   : > { %v8225_v36 = vadd.f32 1.0, %v13153_v17 }
 0xf06   : > { %13182 = vrcp.f32 %v8224_v34 }
 0xf07   : > { %9117 = vmatpush1.bf16.msra.mxu0 %v12105_v10  ;;  %v13155_v10 = vpop.eup %13154  ;;  %13184 = vrcp.f32 %v8225_v36 }
 0xf08   : > { %9118 = vmatprep.subr.bf16.mxu0 %v12113_v63  ;;  %v13157_v63 = vpop.eup %13156  ;;  %v8226_v21 = vadd.f32 1.0, %v13155_v10 }
 0xf09   : > { %v8227_v29 = vadd.f32 1.0, %v13157_v63  ;;  %v8323_v63 = vrot.slane %v15444_v47, 2 }
 0xf0a   : > { %13186 = vrcp.f32 %v8226_v21 }
 0xf0b   : > { %9119 = vmatpush1.bf16.msra.mxu0 %v12111_v32  ;;  %v13159_v32 = vpop.eup %13158  ;;  %13188 = vrcp.f32 %v8227_v29 }
 0xf0c   : > { %11472 = vmatprep.subr.bf16.mxu0 %v13602_v57  ;;  %v13161_v31 = vpop.eup %13160  ;;  %v8292_v2 = vadd.f32 1.0, %v13159_v32 }
 0xf0d   : > { %v13163_v33 = vpop.eup %13162  ;;  %v8293_v41 = vadd.f32 1.0, %v13161_v31  ;;  %v10884_v31 = vmul.f32 -1.442695, %v8322_v8 }
 0xf0e   : > { %v13165_v50 = vpop.eup %13164  ;;  %v8294_v59 = vadd.f32 1.0, %v13163_v33  ;;  %13190 = vrcp.f32 %v8292_v2  ;;  %v10885_v33 = vmul.f32 -1.442695, %v8323_v63 }
 0xf0f   : > { %v13167_v39 = vpop.eup %13166  ;;  %v8295_v61 = vadd.f32 1.0, %v13165_v50  ;;  %13192 = vpow2.f32 %v10878_v40  ;;  %v8380_v50 = vrot.slane %v15427_v45, 3  ;;  %v8384_v45 = vrot.slane %v15435_v48, 3 }
 0xf10   : > { %v15519_v11 = vpop.eup %13168  ;;  %v8296_v55 = vadd.f32 1.0, %v13167_v39  ;;  %13194 = vrcp.f32 %v8293_v41  ;;  %v8381_v39 = vrot.slane %v15429_v27, 3  ;;  %v8385_v27 = vrot.slane %v15438_v35, 3 }
 0xf11   : > { %v15522_v14 = vpop.eup %13170  ;;  %13196 = vrcp.f32 %v8294_v59 }
 0xf12   : > { %v15525_v51 = vpop.eup %13172  ;;  %13198 = vrcp.f32 %v8295_v61 }
 0xf13   : > { %v15528_v53 = vpop.eup %13174  ;;  %13200 = vrcp.f32 %v8296_v55 }
 0xf14   : > { %v13177_v0 = vpop.eup %13176  ;;  %13202 = vpow2.f32 %v10879_v42 }
 0xf15   : > { %v13179_v52 = vpop.eup %13178  ;;  %v8297_v17 = vadd.f32 1.0, %v13177_v0  ;;  %13204 = vpow2.f32 %v10880_v25  ;;  %v8386_v25 = vrot.slane %v15441_v15, 3 }
 0xf16   : > { %v13181_v6 = vpop.eup %13180  ;;  %v8298_v60 = vadd.f32 1.0, %v13179_v52  ;;  %13206 = vpow2.f32 %v10881_v13 }
 0xf17   : > { %v15531_v23 = vpop.eup %13182  ;;  %v8299_v32 = vadd.f32 1.0, %v13181_v6  ;;  %13208 = vpow2.f32 %v10882_v9 }
 0xf18   : > { %v15534_v10 = vpop.eup %13184  ;;  %13210 = vrcp.f32 %v8297_v17 }
 0xf19   : > { %v15537_v34 = vpop.eup %13186  ;;  %13212 = vrcp.f32 %v8298_v60 }
 0xf1a   : > { %v15539_v36 = vpop.eup %13188  ;;  %13214 = vrcp.f32 %v8299_v32 }
 0xf1b   : > { %v13191_v21 = vpop.eup %13190  ;;  %13216 = vpow2.f32 %v10883_v20 }
 0xf1c   : > { %v13193_v29 = vpop.eup %13192  ;;  %13218 = vpow2.f32 %v10884_v31 }
 0xf1d   : > { %v13195_v2 = vpop.eup %13194  ;;  %v8356_v5 = vadd.f32 1.0, %v13193_v29  ;;  %13220 = vpow2.f32 %v10885_v33  ;;  %v8476_v33 = vmul.f32 %v13191_v21, %v15337_v58 }
 0xf1e   : > { %v13197_v40 = vpop.eup %13196  ;;  %13222 = vtanh.f32 %v8380_v50  ;;  %v8477_v50 = vmul.f32 %v13195_v2, %v15340_v18 }
 0xf1f   : > { %v13199_v41 = vpop.eup %13198  ;;  %13224 = vtanh.f32 %v8381_v39 }
 0xf20   : > { %v13201_v59 = vpop.eup %13200  ;;  %13226 = vrcp.f32 %v8356_v5  ;;  %v8478_v5 = vmul.f32 %v13197_v40, %v15342_v62 }
 0xf21   : > { %v13203_v61 = vpop.eup %13202  ;;  %13228 = vtanh.f32 %v8382_v26  ;;  %v8479_v26 = vmul.f32 %v13199_v41, %v15347_v3 }
 0xf22   : > { %v13205_v55 = vpop.eup %13204  ;;  %13230 = vtanh.f32 %v8383_v4  ;;  %v8357_v13 = vadd.f32 1.0, %v13203_v61  ;;  %v8480_v61 = vmul.f32 %v13201_v59, %v15344_v22 }
 0xf23   : > { %v13207_v46 = vpop.eup %13206  ;;  %v8358_v48 = vadd.f32 1.0, %v13205_v55 }
 0xf24   : > { %v13209_v42 = vpop.eup %13208  ;;  %v8359_v60 = vadd.f32 1.0, %v13207_v46 }
 0xf25   : > { %v13211_v0 = vpop.eup %13210  ;;  %v8360_v15 = vadd.f32 1.0, %v13209_v42 }
 0xf26   : > { %v13213_v43 = vpop.eup %13212  ;;  %v8481_v55 = vmul.f32 %v13211_v0, %v15349_v19 }
 0xf27   : > { %v13215_v6 = vpop.eup %13214  ;;  %v8482_v46 = vmul.f32 %v13213_v43, %v15351_v56 }
 0xf28   : > { %v13217_v17 = vpop.eup %13216 }
 0xf29   : > { %v13219_v35 = vpop.eup %13218  ;;  %v8361_v20 = vadd.f32 1.0, %v13217_v17 }
 0xf2a   : > { %v13221_v63 = vpop.eup %13220  ;;  %v8362_v47 = vadd.f32 1.0, %v13219_v35 }
 0xf2b   : > { %v13223_v32 = vpop.eup %13222  ;;  %v8363_v62 = vadd.f32 1.0, %v13221_v63 }
 0xf2c   : > { %v13225_v31 = vpop.eup %13224  ;;  %v8484_v58 = vmul.f32 %v13223_v32, %v15519_v11 }
 0xf2d   : > { %v15549_v29 = vpop.eup %13226  ;;  %v8485_v18 = vmul.f32 %v13225_v31, %v15522_v14 }
 0xf2e   : > { %v13229_v39 = vpop.eup %13228  ;;  %v8492_v41 = vadd.f32 %v8484_v58, %v8476_v33 }
 0xf2f   : > { %v13231_v4 = vpop.eup %13230  ;;  %v8486_v21 = vmul.f32 %v13229_v39, %v15525_v51 }
 0xf30   : > { %v8487_v22 = vmul.f32 %v13231_v4, %v15528_v53 }
 0xf31   : > { %v8494_v59 = vadd.f32 %v8486_v21, %v8478_v5 }
 0xf32   : > { %v8495_v11 = vadd.f32 %v8487_v22, %v8479_v26 }
 0xfc1   : > { %v8638_v52 = vpop.f32.mrb[76].mxu0 }
 0xfc2   : > { %13232 = vtanh.f32 %v8638_v52  ;;  %v11450_v49 = vpop.f32.mrb[77].mxu0 }
 0xfc3   : > { %13234 = vtanh.f32 %v8384_v45  ;;  %v8641_v9 = vpop.f32.mrb[78].mxu0  ;;  %v8483_v45 = vmul.f32 %v13215_v6, %v15354_v7  ;;  %v8493_v7 = vadd.f32 %v8485_v18, %v8477_v50 }
 0xfc4   : > { %13236 = vtanh.f32 %v8385_v27  ;;  %v11451_v8 = vpop.f32.mrb[79].mxu0 }
 0xfc5   : > { %13238 = vtanh.f32 %v8386_v25 }
 0xfc6   : > { %13240 = vrcp.f32 %v8357_v13 }
 0xfc7   : > { %13242 = vtanh.f32 %v8387_v38 }
 0xfc8   : > { %13244 = vrcp.f32 %v8358_v48 }
 0xfc9   : > { %13246 = vrcp.f32 %v8359_v60 }
 0xfca   : > { %13248 = vrcp.f32 %v8360_v15 }
 0xfcb   : > { %13250 = vrcp.f32 %v8361_v20 }
 0xfcc   : > { %v13233_v42 = vpop.eup %13232  ;;  %13252 = vrcp.f32 %v8362_v47 }
 0xfcd   : > { %v13235_v2 = vpop.eup %13234  ;;  %v8646_v3 = vcombine.high %v13233_v42, %v13233_v42  ;;  %v8653_v40 = vrot.slane %v13233_v42, %v13993_v1  ;;  %13254 = vrcp.f32 %v8363_v62 }
 0xfce   : > { %v13237_v19 = vpop.eup %13236  ;;  %v8488_v56 = vmul.f32 %v13235_v2, %v15531_v23 }
 0xfcf   : > { %v13239_v27 = vpop.eup %13238  ;;  %v8660_v14 = vrot.slane %v8646_v3, %v13993_v1  ;;  %v8661_v0 = vcombine.high %v8653_v40, %v8653_v40  ;;  %v8669_v51 = vrot.slane %v8653_v40, %v13993_v1  ;;  %v8489_v52 = vmul.f32 %v13237_v19, %v15534_v10 }
 0xfd0   : > { %v13241_v25 = vpop.eup %13240  ;;  %v8490_v53 = vmul.f32 %v13239_v27, %v15537_v34  ;;  %v8496_v43 = vadd.f32 %v8488_v56, %v8480_v61 }
 0xfd1   : > { %v13243_v13 = vpop.eup %13242  ;;  %v8662_v49 = vcombine.high %v8660_v14, %v8660_v14  ;;  %v8676_v23 = vrot.slane %v8660_v14, %v13993_v1  ;;  %v8683_v6 = vrot.slane %v8661_v0, %v13993_v1  ;;  %v8691_v38 = vcombine.high %v8669_v51, %v8669_v51 }
 0xfd2   : > { %v13245_v9 = vpop.eup %13244  ;;  %v8491_v17 = vmul.f32 %v13243_v13, %v15539_v36  ;;  %v8497_v48 = vadd.f32 %v8489_v52, %v8481_v55  ;;  %v8498_v8 = vadd.f32 %v8490_v53, %v8482_v46  ;;  %v15572_v35 = vadd.f32 %v8669_v51, %v8492_v41 }
 0xfd3   : > { %v13247_v60 = vpop.eup %13246  ;;  %v8690_v10 = vrot.slane %v8662_v49, %v13993_v1  ;;  %v8692_v34 = vcombine.high %v8676_v23, %v8676_v23  ;;  %v8693_v63 = vcombine.high %v8683_v6, %v8683_v6  ;;  %v15575_v15 = vadd.f32 %v8683_v6, %v8493_v7 }
 0xfd4   : > { %v13249_v32 = vpop.eup %13248  ;;  %v8499_v20 = vadd.f32 %v8491_v17, %v8483_v45  ;;  %v15577_v31 = vadd.f32 %v8691_v38, %v8494_v59  ;;  %v15579_v47 = vadd.f32 %v8676_v23, %v8496_v43  ;;  %13256 = vtanh.f32 %v15572_v35 }
 0xfd5   : > { %v13251_v36 = vpop.eup %13250  ;;  %v8694_v33 = vcombine.high %v8690_v10, %v8690_v10  ;;  %v15582_v50 = vadd.f32 %v8693_v63, %v8495_v11  ;;  %v15584_v39 = vadd.f32 %v8690_v10, %v8497_v48  ;;  %v15586_v5 = vadd.f32 %v8692_v34, %v8498_v8 }
 0xfd6   : > { %13258 = vtanh.f32 %v15575_v15  ;;  %v13253_v26 = vpop.eup %13252 }
 0xfd7   : > { %v15589_v61 = vadd.f32 %v8694_v33, %v8499_v20  ;;  %13260 = vtanh.f32 %v15577_v31  ;;  %v13255_v4 = vpop.eup %13254 }
 0xfd8   : > { %13262 = vtanh.f32 %v15582_v50 }
 0xfd9   : > { %13264 = vtanh.f32 %v15579_v47 }
 0xfda   : > { %13266 = vtanh.f32 %v15584_v39 }
 0xfdb   : > { %13268 = vtanh.f32 %v15586_v5 }
 0xfdc   : > { %13270 = vtanh.f32 %v15589_v61 }
 0xfde   : > { %v13257_v55 = vpop.eup %13256 }
 0xfdf   : > { %v8719_v46 = vmul.f32 %v13257_v55, %v15549_v29  ;;  %v12114_v55 = vld [vmem:[#allocation12 + $0x10] ss:$20 sps:$4 sm:$0xff]  }
 0xfe0   : > { %v13259_v45 = vpop.eup %13258 }
 0xfe1   : > { %v13261_v42 = vpop.eup %13260  ;;  %v8720_v58 = vmul.f32 %v13259_v45, %v13241_v25  ;;  %8727 = vst [vmem:[#allocation3 + $0x6] sm:$0x1] %v8719_v46  ;;  %v8767_v62 = vpack.c.bf16 %v8719_v46, %v8719_v46  ;;  %v12115_v45 = vld [vmem:[#allocation12 + $0x38] ss:$20 sps:$4 sm:$0xff]  }
 0xfe2   : > { %v13263_v18 = vpop.eup %13262  ;;  %v8721_v21 = vmul.f32 %v13261_v42, %v13245_v9  ;;  %v12116_v42 = vld [vmem:[#allocation12 + $0x60] ss:$20 sps:$4 sm:$0xff]  }
 0xfe3   : > { %v13265_v2 = vpop.eup %13264  ;;  %v8722_v22 = vmul.f32 %v13263_v18, %v13247_v60  ;;  %8728 = vst [vmem:[#allocation3 + $0xe] sm:$0x1] %v8720_v58  ;;  %v8768_v3 = vpack.c.bf16 %v8720_v58, %v8720_v58  ;;  %v8831_v0 = vunpack.c.l.b16 %v8767_v62  ;;  %v12117_v58 = vld [vmem:[#allocation12 + $0x88] ss:$20 sps:$4 sm:$0xff]   ;;  %v12118_v18 = vld [vmem:[#allocation12 + $0xb0] ss:$20 sps:$4 sm:$0xff]  }
 0xfe4   : > { %v13267_v40 = vpop.eup %13266  ;;  %v8723_v19 = vmul.f32 %v13265_v2, %v13249_v32  ;;  %8729 = vst [vmem:[#allocation3 + $0x16] sm:$0x1] %v8721_v21  ;;  %v8769_v56 = vpack.c.bf16 %v8721_v21, %v8721_v21  ;;  %v12119_v21 = vld [vmem:[#allocation12 + $0xd8] ss:$20 sps:$4 sm:$0xff]   ;;  %v12120_v62 = vld [vmem:[#allocation12 + $0x100] ss:$20 sps:$4 sm:$0xff]  }
 0xfe5   : > { %v13269_v41 = vpop.eup %13268  ;;  %v8724_v7 = vmul.f32 %v13267_v40, %v13251_v36  ;;  %8730 = vst [vmem:[#allocation3 + $0x1e] sm:$0x1] %v8722_v22  ;;  %v8770_v59 = vpack.c.bf16 %v8722_v22, %v8722_v22  ;;  %v8832_v29 = vunpack.c.l.b16 %v8768_v3  ;;  %v12121_v2 = vld [vmem:[#allocation12 + $0x128] ss:$20 sps:$4 sm:$0xff]   ;;  %v12123_v3 = vld [vmem:[%s15890_s5 + $0x8] sm:$0xff]   ;;  %v12124_v40 = vld [vmem:[%s15890_s5 + $0x10] sm:$0xff]  }
 0xfe6   : > { %v13271_v27 = vpop.eup %13270  ;;  %v8725_v11 = vmul.f32 %v13269_v41, %v13253_v26  ;;  %8731 = vst [vmem:[#allocation3 + $0x26] sm:$0x1] %v8723_v19  ;;  %v8771_v14 = vpack.c.bf16 %v8723_v19, %v8723_v19  ;;  %v8833_v51 = vunpack.c.l.b16 %v8769_v56  ;;  %v12122_v22 = vld [vmem:[%s15890_s5] sm:$0xff]   ;;  %v12125_v19 = vld [vmem:[%s15890_s5 + $0x18] sm:$0xff]  }
 0xfe7   : > { %v8726_v25 = vmul.f32 %v13271_v27, %v13255_v4  ;;  %8732 = vst [vmem:[#allocation3 + $0x2e] sm:$0x1] %v8724_v7  ;;  %v8772_v52 = vpack.c.bf16 %v8724_v7, %v8724_v7  ;;  %v8834_v53 = vunpack.c.l.b16 %v8770_v59  ;;  %v8839_v43 = vrot.slane %v8832_v29, 7  ;;  %v12126_v7 = vld [vmem:[%s15890_s5 + $0x20] sm:$0xff]  }
 0xfe8   : > { %8733 = vst [vmem:[#allocation3 + $0x36] sm:$0x1] %v8725_v11  ;;  %v8773_v13 = vpack.c.bf16 %v8725_v11, %v8725_v11  ;;  %v8835_v49 = vunpack.c.l.b16 %v8771_v14  ;;  %v8841_v23 = vrot.slane %v8833_v51, 6 }
 0xfe9   : > { %8734 = vst [vmem:[#allocation3 + $0x3e] sm:$0x1] %v8726_v25  ;;  %v8774_v6 = vpack.c.bf16 %v8726_v25, %v8726_v25  ;;  %v8836_v38 = vunpack.c.l.b16 %v8772_v52  ;;  %v8840_v9 = vsel %vm1772_vm3, %v8839_v43, %v8831_v0  ;;  %v8843_v17 = vrot.slane %v8834_v53, 5 }
 0xfea   : > { %v8837_v48 = vunpack.c.l.b16 %v8773_v13  ;;  %v8842_v8 = vsel %vm1775_vm4, %v8841_v23, %v8840_v9  ;;  %v8845_v60 = vrot.slane %v8835_v49, 4 }
 0xfeb   : > { %v8838_v10 = vunpack.c.l.b16 %v8774_v6  ;;  %v8844_v34 = vsel %vm1778_vm5, %v8843_v17, %v8842_v8  ;;  %v8847_v63 = vrot.slane %v8836_v38, 3  ;;  %v12127_v6 = vld [vmem:[%s15890_s5 + $0x28] sm:$0xff]   ;;  %v12128_v8 = vld [vmem:[%s15890_s5 + $0x30] sm:$0xff]  }
 0xfec   : > { %v8846_v32 = vsel %vm1781_vm6, %v8845_v60, %v8844_v34  ;;  %v8849_v20 = vrot.slane %v8837_v48, 2  ;;  %v12129_v60 = vld [vmem:[%s15890_s5 + $0x38] sm:$0xff]  }
 0xfed   : > { %v8848_v36 = vsel %vm1784_vm7, %v8847_v63, %v8846_v32  ;;  %v8851_v33 = vrot.slane %v8838_v10, 1 }
 0xfee   : > { %v8850_v26 = vsel %vm1787_vm8, %v8849_v20, %v8848_v36 }
 0xfef   : > { %v8852_v4 = vsel %vm1790_vm9, %v8851_v33, %v8850_v26 }
 0xff0   : > { %v8853_v46 = vpack.c.b16 %v8852_v4, %v8852_v4 }
 0xff2   : > { %9096 = vmatmul.mubr.bf16.vlgmr.msra.gmra.mrb[72].mxu1 %v8853_v46  ;;  %9137 = vmatmul.mubr.bf16.vlgmr.msra.gmra.mrb[80].mxu0 %v8853_v46 }
 0xff3   : > { %11453 = vmatpush3.bf16.msra.mxu1 %v12114_v55  ;;  %11468 = vmatprep.mubr.msk.bf16.mxu1 %vm13603_vm2, %v13602_v57 }
 0xff4   : > { %11454 = vmatprep.subr.bf16.mxu1 %v13602_v57  ;;  %11488 = vmatprep.mubr.msk.bf16.mxu0 %vm13603_vm2, %v13602_v57 }
 0xff5   : > { %11473 = vmatpush3.bf16.msra.mxu0 %v12122_v22 }
 0xff6   : > { %11474 = vmatprep.subr.bf16.mxu0 %v13602_v57 }
 0xff7   : > { %11455 = vmatpush3.bf16.msra.mxu1 %v12115_v45 }
 0xff8   : > { %11456 = vmatprep.subr.bf16.mxu1 %v13602_v57 }
 0xff9   : > { %11475 = vmatpush3.bf16.msra.mxu0 %v12123_v3 }
 0xffa   : > { %11476 = vmatprep.subr.bf16.mxu0 %v13602_v57 }
 0xffb   : > { %11457 = vmatpush3.bf16.msra.mxu1 %v12116_v42 }
 0xffc   : > { %11458 = vmatprep.subr.bf16.mxu1 %v13602_v57 }
 0xffd   : > { %11477 = vmatpush3.bf16.msra.mxu0 %v12124_v40 }
 0xffe   : > { %11478 = vmatprep.subr.bf16.mxu0 %v13602_v57 }
 0xfff   : > { %11459 = vmatpush3.bf16.msra.mxu1 %v12117_v58 }
0x1000   : > { %11460 = vmatprep.subr.bf16.mxu1 %v13602_v57 }
0x1001   : > { %11479 = vmatpush3.bf16.msra.mxu0 %v12125_v19 }
0x1002   : > { %11480 = vmatprep.subr.bf16.mxu0 %v13602_v57 }
0x1003   : > { %11461 = vmatpush3.bf16.msra.mxu1 %v12118_v18 }
0x1004   : > { %11462 = vmatprep.subr.bf16.mxu1 %v13602_v57 }
0x1005   : > { %11481 = vmatpush3.bf16.msra.mxu0 %v12126_v7  ;;  %v8737_v7 = vld [vmem:[#allocation2 + $0x7] ss:$8 sm:$0x10] }
0x1006   : > { %11482 = vmatprep.subr.bf16.mxu0 %v13602_v57 }
0x1007   : > { %11463 = vmatpush3.bf16.msra.mxu1 %v12119_v21 }
0x1008   : > { %11464 = vmatprep.subr.bf16.mxu1 %v13602_v57 }
0x1009   : > { %11483 = vmatpush3.bf16.msra.mxu0 %v12127_v6  ;;  %v8752_v6 = vld [vmem:[#allocation2 + $0xa7] ss:$8 sm:$0xf] }
0x100a   : > { %11484 = vmatprep.subr.bf16.mxu0 %v13602_v57 }
0x100b   : > { %11465 = vmatpush3.bf16.msra.mxu1 %v12120_v62 }
0x100c   : > { %11466 = vmatprep.subr.bf16.mxu1 %v13602_v57 }
0x100d   : > { %11485 = vmatpush3.bf16.msra.mxu0 %v12128_v8  ;;  %v8765_v8 = vld [vmem:[#allocation2 + $0x11f] ss:$8 sm:$0x10] }
0x100e   : > { %11486 = vmatprep.subr.bf16.mxu0 %v13602_v57 }
0x100f   : > { %11467 = vmatpush3.bf16.msra.mxu1 %v12121_v2 }
0x1011   : > { %11487 = vmatpush3.bf16.msra.mxu0 %v12129_v60 }
0x1012   : > { %11469 = vmatmul.mubr.bf16.vlgmr.msra.gmra.mrb[76].mxu1 %v8853_v46 }
0x10c5   : > { %v9097_v56 = vpop.f32.mrb[72].mxu1  ;;  %v9138_v41 = vpop.f32.mrb[80].mxu0 }
0x10c6   : > { %v9099_v59 = vpop.f32.mrb[73].mxu1  ;;  %v9140_v29 = vpop.f32.mrb[81].mxu0 }
0x10c7   : > { %v9190_v27 = vcombine.low %v9097_v56, %v9099_v59  ;;  %v9191_v11 = vcombine.high %v9097_v56, %v9099_v59  ;;  %v9192_v14 = vcombine.low %v9138_v41, %v9140_v29  ;;  %v9193_v0 = vcombine.high %v9138_v41, %v9140_v29  ;;  %v9101_v51 = vpop.f32.mrb[74].mxu1  ;;  %v9142_v25 = vpop.f32.mrb[82].mxu0  ;;  %v8741_v59 = vld [vmem:[#allocation2 + $0x2f] ss:$8 sm:$0x10] }
0x10c8   : > { %v9102_v52 = vpop.f32.mrb[75].mxu1  ;;  %v9143_v53 = vpop.f32.mrb[83].mxu0  ;;  %v8736_v29 = vld [vmem:[#allocation2 + $0x7] ss:$8 sm:$0xf] }
0x10c9   : > { %v9201_v43 = vrot.slane %v9190_v27, %v13993_v1  ;;  %v9208_v13 = vrot.slane %v9191_v11, %v13993_v1  ;;  %v9215_v49 = vrot.slane %v9192_v14, %v13993_v1  ;;  %v9222_v23 = vrot.slane %v9193_v0, %v13993_v1  ;;  %v8745_v27 = vld [vmem:[#allocation2 + $0x57] ss:$8 sm:$0x10]  ;;  %v8749_v0 = vld [vmem:[#allocation2 + $0x7f] ss:$8 sm:$0x10] }
0x10ca   : > { %v8738_v11 = vor.u32 %v8737_v7, %v8736_v29  ;;  %v8740_v14 = vld [vmem:[#allocation2 + $0x2f] ss:$8 sm:$0xf] }
0x10cb   : > { %v9237_v38 = vcombine.low %v9201_v43, %v9215_v49  ;;  %v9238_v9 = vcombine.high %v9201_v43, %v9215_v49  ;;  %v9239_v17 = vcombine.low %v9208_v13, %v9222_v23  ;;  %v9240_v48 = vcombine.high %v9208_v13, %v9222_v23  ;;  %v8744_v25 = vld [vmem:[#allocation2 + $0x57] ss:$8 sm:$0xf] }
0x10cc   : > { %v8742_v51 = vor.u32 %v8741_v59, %v8740_v14  ;;  %v8753_v52 = vld [vmem:[#allocation2 + $0xa7] ss:$8 sm:$0x10]  ;;  %v8746_v53 = vor.u32 %v8745_v27, %v8744_v25  ;;  %v8757_v13 = vld [vmem:[#allocation2 + $0xcf] ss:$8 sm:$0x10] }
0x10cd   : > { %v9249_v26 = vrot.slane %v9237_v38, %v13993_v1  ;;  %v9256_v46 = vrot.slane %v9239_v17, %v13993_v1  ;;  %v9263_v45 = vrot.slane %v9238_v9, %v13993_v1  ;;  %v9270_v21 = vrot.slane %v9240_v48, %v13993_v1  ;;  %v8748_v43 = vld [vmem:[#allocation2 + $0x7f] ss:$8 sm:$0xf] }
0x10ce   : > { %v8750_v23 = vor.u32 %v8749_v0, %v8748_v43  ;;  %v8761_v38 = vld [vmem:[#allocation2 + $0xf7] ss:$8 sm:$0x10]  ;;  %v8754_v17 = vor.u32 %v8753_v52, %v8752_v6 }
0x10cf   : > { %v8756_v48 = vld [vmem:[#allocation2 + $0xcf] ss:$8 sm:$0xf] }
0x10e5   : > { %v9179_v10 = vpop.f32.mrb[76].mxu1 }
0x10e6   : > { %v9194_v34 = vcombine.high %v9179_v10, %v9179_v10  ;;  %v9229_v63 = vrot.slane %v9179_v10, %v13993_v1  ;;  %v11470_v32 = vpop.f32.mrb[77].mxu1  ;;  %v8758_v10 = vor.u32 %v8757_v13, %v8756_v48 }
0x10e7   : > { %v9182_v20 = vpop.f32.mrb[78].mxu1 }
0x10e8   : > { %v9236_v36 = vrot.slane %v9194_v34, %v13993_v1  ;;  %v9241_v33 = vcombine.high %v9229_v63, %v9229_v63  ;;  %v9277_v4 = vrot.slane %v9229_v63, %v13993_v1  ;;  %v11471_v55 = vpop.f32.mrb[79].mxu1  ;;  %v8760_v34 = vld [vmem:[#allocation2 + $0xf7] ss:$8 sm:$0xf] }
0x10e9   : > { %v8762_v32 = vor.u32 %v8761_v38, %v8760_v34  ;;  %v8764_v20 = vld [vmem:[#allocation2 + $0x11f] ss:$8 sm:$0xf] }
0x10ea   : > { %v9242_v57 = vcombine.high %v9236_v36, %v9236_v36  ;;  %v9284_v42 = vrot.slane %v9236_v36, %v13993_v1  ;;  %v9291_v58 = vrot.slane %v9241_v33, %v13993_v1  ;;  %v9299_v18 = vcombine.low %v9249_v26, %v9277_v4 }
0x10eb   : > { %v9300_v62 = vcombine.high %v9249_v26, %v9277_v4  ;;  %v8766_v26 = vor.u32 %v8765_v8, %v8764_v20 }
0x10ec   : > { %v9298_v2 = vrot.slane %v9242_v57, %v13993_v1  ;;  %v9301_v22 = vcombine.low %v9256_v46, %v9284_v42  ;;  %v9302_v3 = vcombine.high %v9256_v46, %v9284_v42  ;;  %v9303_v40 = vcombine.low %v9263_v45, %v9291_v58 }
0x10ed   : > { %v9304_v19 = vcombine.high %v9263_v45, %v9291_v58  ;;  %v15661_v49 = vadd.f32 %v9299_v18, %v8738_v11  ;;  %v15665_v60 = vadd.f32 %v9300_v62, %v8746_v53 }
0x10ee   : > { %v9305_v56 = vcombine.low %v9270_v21, %v9298_v2  ;;  %v9306_v41 = vcombine.high %v9270_v21, %v9298_v2  ;;  %v15663_v9 = vadd.f32 %v9303_v40, %v8742_v51  ;;  %v15669_v36 = vadd.f32 %v9301_v22, %v8754_v17 }
0x10ef   : > { %v15667_v63 = vadd.f32 %v9304_v19, %v8750_v23  ;;  %v9531_v33 = vrot.slane %v15661_v49, 4  ;;  %v15675_v46 = vadd.f32 %v9302_v3, %v8762_v32  ;;  %v9533_v45 = vrot.slane %v15665_v60, 4 }
0x10f0   : > { %v15672_v4 = vadd.f32 %v9305_v56, %v8758_v10  ;;  %v9532_v55 = vrot.slane %v15663_v9, 4  ;;  %v15678_v57 = vadd.f32 %v9306_v41, %v8766_v26  ;;  %v9535_v58 = vrot.slane %v15669_v36, 4 }
0x10f1   : > { %v9534_v42 = vrot.slane %v15667_v63, 4  ;;  %v10966_v18 = vmul.f32 -1.442695, %v9531_v33  ;;  %v9537_v2 = vrot.slane %v15675_v46, 4  ;;  %v10968_v22 = vmul.f32 -1.442695, %v9533_v45 }
0x10f2   : > { %v9536_v21 = vrot.slane %v15672_v4, 4  ;;  %v10967_v62 = vmul.f32 -1.442695, %v9532_v55  ;;  %v9538_v40 = vrot.slane %v15678_v57, 4  ;;  %v10970_v3 = vmul.f32 -1.442695, %v9535_v58 }
0x10f3   : > { %v10969_v19 = vmul.f32 -1.442695, %v9534_v42  ;;  %13272 = vpow2.f32 %v10966_v18  ;;  %v10972_v41 = vmul.f32 -1.442695, %v9537_v2 }
0x10f4   : > { %13274 = vpow2.f32 %v10967_v62  ;;  %v10971_v56 = vmul.f32 -1.442695, %v9536_v21  ;;  %v10973_v7 = vmul.f32 -1.442695, %v9538_v40 }
0x10f5   : > { %13276 = vpow2.f32 %v10968_v22 }
0x10f6   : > { %13278 = vpow2.f32 %v10969_v19 }
0x10f7   : > { %13280 = vpow2.f32 %v10970_v3 }
0x10f8   : > { %13282 = vpow2.f32 %v10971_v56 }
0x10f9   : > { %13284 = vpow2.f32 %v10972_v41 }
0x10fa   : > { %13286 = vpow2.f32 %v10973_v7 }
0x10fd   : > { %v13273_v59 = vpop.eup %13272 }
0x10fe   : > { %v13275_v29 = vpop.eup %13274  ;;  %v9571_v27 = vadd.f32 1.0, %v13273_v59 }
0x10ff   : > { %v13277_v11 = vpop.eup %13276  ;;  %v9572_v14 = vadd.f32 1.0, %v13275_v29 }
0x1100   : > { %v13279_v0 = vpop.eup %13278  ;;  %v9573_v51 = vadd.f32 1.0, %v13277_v11  ;;  %13288 = vrcp.f32 %v9571_v27 }
0x1101   : > { %v13281_v25 = vpop.eup %13280  ;;  %v9574_v52 = vadd.f32 1.0, %v13279_v0  ;;  %13290 = vrcp.f32 %v9572_v14 }
0x1102   : > { %v13283_v53 = vpop.eup %13282  ;;  %v9575_v43 = vadd.f32 1.0, %v13281_v25  ;;  %13292 = vrcp.f32 %v9573_v51 }
0x1103   : > { %v13285_v13 = vpop.eup %13284  ;;  %v9576_v23 = vadd.f32 1.0, %v13283_v53  ;;  %13294 = vrcp.f32 %v9574_v52 }
0x1104   : > { %v13287_v6 = vpop.eup %13286  ;;  %v9577_v38 = vadd.f32 1.0, %v13285_v13  ;;  %13296 = vrcp.f32 %v9575_v43 }
0x1105   : > { %13298 = vrcp.f32 %v9576_v23  ;;  %v9578_v17 = vadd.f32 1.0, %v13287_v6 }
0x1106   : > { %13300 = vrcp.f32 %v9577_v38 }
0x1107   : > { %13302 = vrcp.f32 %v9578_v17 }
0x110a   : > { %v13289_v48 = vpop.eup %13288 }
0x110b   : > { %v13291_v8 = vpop.eup %13290  ;;  %v9595_v10 = vmul.f32 %v13289_v48, %v15452_v24 }
0x110c   : > { %v13293_v34 = vpop.eup %13292  ;;  %v9596_v32 = vmul.f32 %v13291_v8, %v15455_v12 }
0x110d   : > { %v13295_v20 = vpop.eup %13294  ;;  %v9597_v33 = vmul.f32 %v13293_v34, %v15458_v28  ;;  %v9627_v26 = vpack.c.bf16 %v9595_v10, %v9595_v10 }
0x110e   : > { %v13297_v55 = vpop.eup %13296  ;;  %v9598_v45 = vmul.f32 %v13295_v20, %v15463_v44  ;;  %v9628_v42 = vpack.c.bf16 %v9596_v32, %v9596_v32  ;;  %v9988_v58 = vcombine.low %v9595_v10, %v9596_v32 }
0x110f   : > { %v13299_v18 = vpop.eup %13298  ;;  %v9599_v21 = vmul.f32 %v13297_v55, %v15468_v16  ;;  %v9629_v62 = vpack.c.bf16 %v9597_v33, %v9597_v33  ;;  %v9659_v2 = vunpack.c.l.b16 %v9627_v26 }
0x1110   : > { %v13301_v22 = vpop.eup %13300  ;;  %v9600_v24 = vmul.f32 %v13299_v18, %v15473_v37  ;;  %v9630_v40 = vpack.c.bf16 %v9598_v45, %v9598_v45  ;;  %v9660_v19 = vunpack.c.l.b16 %v9628_v42  ;;  %v9989_v12 = vcombine.low %v9597_v33, %v9598_v45 }
0x1111   : > { %v13303_v3 = vpop.eup %13302  ;;  %v9601_v28 = vmul.f32 %v13301_v22, %v15478_v30  ;;  %v9631_v56 = vpack.c.bf16 %v9599_v21, %v9599_v21  ;;  %v9661_v41 = vunpack.c.l.b16 %v9629_v62  ;;  %v9998_v44 = vrot.slane %v9988_v58, %v13993_v1  ;;  %v12131_v62 = vld [vmem:[%s15891_s6 + $0x8] sm:$0xff]   ;;  %v12133_v22 = vld [vmem:[%s15891_s6 + $0x18] sm:$0xff]  }
0x1112   : > { %v9602_v7 = vmul.f32 %v13303_v3, %v15483_v54  ;;  %v9632_v59 = vpack.c.bf16 %v9600_v24, %v9600_v24  ;;  %v9662_v29 = vunpack.c.l.b16 %v9630_v40  ;;  %v9667_v16 = vrot.slane %v9660_v19, 7  ;;  %v12135_v40 = vld [vmem:[%s15891_s6 + $0x28] sm:$0xff]   ;;  %v12136_v19 = vld [vmem:[%s15891_s6 + $0x30] sm:$0xff]  }
0x1113   : > { %v9633_v27 = vpack.c.bf16 %v9601_v28, %v9601_v28  ;;  %v9663_v11 = vunpack.c.l.b16 %v9631_v56  ;;  %v9669_v14 = vrot.slane %v9661_v41, 6  ;;  %v9990_v0 = vcombine.low %v9599_v21, %v9600_v24  ;;  %v12130_v21 = vld [vmem:[%s15891_s6] sm:$0xff]  }
0x1114   : > { %v9634_v37 = vpack.c.bf16 %v9602_v7, %v9602_v7  ;;  %v9664_v51 = vunpack.c.l.b16 %v9632_v59  ;;  %v9668_v25 = vsel %vm1772_vm3, %v9667_v16, %v9659_v2  ;;  %v9671_v52 = vrot.slane %v9662_v29, 5  ;;  %11492 = vmatprep.subr.bf16.mxu1 %v12130_v21  ;;  %v12132_v2 = vld [vmem:[%s15891_s6 + $0x10] sm:$0xff]   ;;  %v12134_v24 = vld [vmem:[%s15891_s6 + $0x20] sm:$0xff]  }
0x1115   : > { %v9665_v53 = vunpack.c.l.b16 %v9633_v27  ;;  %v9670_v30 = vsel %vm1775_vm4, %v9669_v14, %v9668_v25  ;;  %v9673_v43 = vrot.slane %v9663_v11, 4  ;;  %v9991_v13 = vcombine.low %v9601_v28, %v9602_v7  ;;  %11493 = vmatpush3.bf16.msra.mxu1 %v12130_v21 }
0x1116   : > { %v9666_v23 = vunpack.c.l.b16 %v9634_v37  ;;  %v9672_v54 = vsel %vm1778_vm5, %v9671_v52, %v9670_v30  ;;  %v9675_v6 = vrot.slane %v9664_v51, 3  ;;  %v10005_v38 = vrot.slane %v9989_v12, %v13993_v1  ;;  %11494 = vmatprep.subr.bf16.mxu1 %v12131_v62  ;;  %v12137_v12 = vld [vmem:[%s15891_s6 + $0x38] sm:$0xff]  }
0x1117   : > { %v9674_v17 = vsel %vm1781_vm6, %v9673_v43, %v9672_v54  ;;  %v9677_v48 = vrot.slane %v9665_v53, 2  ;;  %v10012_v8 = vrot.slane %v9990_v0, %v13993_v1  ;;  %v10019_v10 = vrot.slane %v9991_v13, %v13993_v1 }
0x1118   : > { %v9676_v34 = vsel %vm1784_vm7, %v9675_v6, %v9674_v17  ;;  %v9679_v32 = vrot.slane %v9666_v23, 1  ;;  %v10020_v20 = vcombine.low %v9998_v44, %v10005_v38  ;;  %v10942_v3 = vmul.f32 -1.442695, %v15661_v49 }
0x1119   : > { %v9678_v33 = vsel %vm1787_vm8, %v9677_v48, %v9676_v34  ;;  %v10021_v26 = vcombine.low %v10012_v8, %v10019_v10  ;;  %11495 = vmatpush3.bf16.msra.mxu1 %v12131_v62  ;;  %v10943_v28 = vmul.f32 -1.442695, %v15663_v9  ;;  %v10944_v56 = vmul.f32 -1.442695, %v15665_v60 }
0x111a   : > { %v9680_v55 = vsel %vm1790_vm9, %v9679_v32, %v9678_v33  ;;  %v10028_v42 = vrot.slane %v10020_v20, %v13993_v1  ;;  %11496 = vmatprep.subr.bf16.mxu1 %v12132_v2  ;;  %v10945_v41 = vmul.f32 -1.442695, %v15667_v63  ;;  %13304 = vpow2.f32 %v10942_v3 }
0x111b   : > { %v9681_v45 = vpack.c.b16 %v9680_v55, %v9680_v55  ;;  %v10035_v58 = vrot.slane %v10021_v26, %v13993_v1  ;;  %13306 = vpow2.f32 %v10943_v28  ;;  %v10946_v44 = vmul.f32 -1.442695, %v15669_v36 }
0x111c   : > { %13308 = vpow2.f32 %v10944_v56  ;;  %v9379_v7 = vrot.slane %v15661_v49, 1  ;;  %v10947_v59 = vmul.f32 -1.442695, %v15672_v4  ;;  %v10948_v29 = vmul.f32 -1.442695, %v15675_v46 }
0x111d   : > { %11489 = vmatmul.mubr.bf16.vlgmr.msra.gmra.mrb[84].mxu0 %v9681_v45  ;;  %v10036_v18 = vcombine.low %v10028_v42, %v10035_v58  ;;  %11497 = vmatpush3.bf16.msra.mxu1 %v12132_v2  ;;  %13310 = vpow2.f32 %v10945_v41  ;;  %v9380_v16 = vrot.slane %v15663_v9, 1  ;;  %v10949_v27 = vmul.f32 -1.442695, %v15678_v57 }
0x111e   : > { %11498 = vmatprep.subr.bf16.mxu1 %v12133_v22  ;;  %v9381_v11 = vrot.slane %v15665_v60, 1  ;;  %13312 = vpow2.f32 %v10946_v44  ;;  %v9382_v14 = vrot.slane %v15667_v63, 1  ;;  %v10950_v0 = vmul.f32 -1.442695, %v9379_v7 }
0x111f   : > { %10038 = vst [vmem:[#allocation6] sm:$0xff] %v10036_v18  ;;  %13314 = vpow2.f32 %v10947_v59  ;;  %v9383_v37 = vrot.slane %v15669_v36, 1  ;;  %v10951_v51 = vmul.f32 -1.442695, %v9380_v16  ;;  %v9384_v6 = vrot.slane %v15672_v4, 1 }
0x1120   : > { %13316 = vpow2.f32 %v10948_v29  ;;  %v10952_v52 = vmul.f32 -1.442695, %v9381_v11  ;;  %v10953_v30 = vmul.f32 -1.442695, %v9382_v14  ;;  %v9385_v17 = vrot.slane %v15675_v46, 1 }
0x1121   : > { %11499 = vmatpush3.bf16.msra.mxu1 %v12133_v22  ;;  %13318 = vpow2.f32 %v10949_v27  ;;  %v10954_v13 = vmul.f32 -1.442695, %v9383_v37  ;;  %v9386_v8 = vrot.slane %v15678_v57, 1  ;;  %v10955_v32 = vmul.f32 -1.442695, %v9384_v6 }
0x1122   : > { %11500 = vmatprep.subr.bf16.mxu1 %v12134_v24  ;;  %13320 = vpow2.f32 %v10950_v0  ;;  %v10956_v33 = vmul.f32 -1.442695, %v9385_v17  ;;  %v9443_v21 = vrot.slane %v15661_v49, 2  ;;  %v9444_v56 = vrot.slane %v15663_v9, 2 }
0x1123   : > { %13322 = vpow2.f32 %v10951_v51  ;;  %v10957_v55 = vmul.f32 -1.442695, %v9386_v8  ;;  %v9445_v7 = vrot.slane %v15665_v60, 2  ;;  %v9446_v16 = vrot.slane %v15667_v63, 2 }
0x1124   : > { %v13305_v25 = vpop.eup %13304  ;;  %13324 = vpow2.f32 %v10952_v52  ;;  %v9447_v14 = vrot.slane %v15669_v36, 2  ;;  %v10959_v37 = vmul.f32 -1.442695, %v9444_v56  ;;  %v9449_v6 = vrot.slane %v15675_v46, 2 }
0x1125   : > { %11501 = vmatpush3.bf16.msra.mxu1 %v12134_v24  ;;  %v13307_v53 = vpop.eup %13306  ;;  %v9347_v54 = vadd.f32 1.0, %v13305_v25  ;;  %13326 = vpow2.f32 %v10953_v30  ;;  %v10960_v25 = vmul.f32 -1.442695, %v9445_v7  ;;  %v9513_v56 = vrot.slane %v15675_v46, 3 }
0x1126   : > { %11502 = vmatprep.subr.bf16.mxu1 %v12135_v40  ;;  %v13309_v43 = vpop.eup %13308  ;;  %v9348_v38 = vadd.f32 1.0, %v13307_v53  ;;  %13328 = vpow2.f32 %v10954_v13  ;;  %v10961_v53 = vmul.f32 -1.442695, %v9446_v16  ;;  %v10962_v13 = vmul.f32 -1.442695, %v9447_v14 }
0x1127   : > { %v13311_v23 = vpop.eup %13310  ;;  %v9349_v48 = vadd.f32 1.0, %v13309_v43  ;;  %13330 = vrcp.f32 %v9347_v54  ;;  %v9448_v43 = vrot.slane %v15672_v4, 2  ;;  %v9514_v16 = vrot.slane %v15678_v57, 3 }
0x1128   : > { %v9350_v10 = vadd.f32 1.0, %v13311_v23  ;;  %v13313_v34 = vpop.eup %13312  ;;  %13332 = vrcp.f32 %v9348_v38 }
0x1129   : > { %11503 = vmatpush3.bf16.msra.mxu1 %v12135_v40  ;;  %v13315_v20 = vpop.eup %13314  ;;  %13334 = vrcp.f32 %v9349_v48  ;;  %v9351_v42 = vadd.f32 1.0, %v13313_v34  ;;  %v9450_v48 = vrot.slane %v15678_v57, 2 }
0x112a   : > { %11504 = vmatprep.subr.bf16.mxu1 %v12136_v19  ;;  %v13317_v26 = vpop.eup %13316  ;;  %13336 = vrcp.f32 %v9350_v10  ;;  %v9352_v18 = vadd.f32 1.0, %v13315_v20 }
0x112b   : > { %v13319_v45 = vpop.eup %13318  ;;  %13338 = vpow2.f32 %v10955_v32  ;;  %v9353_v62 = vadd.f32 1.0, %v13317_v26  ;;  %v10963_v32 = vmul.f32 -1.442695, %v9448_v43 }
0x112c   : > { %v13321_v58 = vpop.eup %13320  ;;  %13340 = vpow2.f32 %v10956_v33  ;;  %v9354_v22 = vadd.f32 1.0, %v13319_v45  ;;  %v10964_v33 = vmul.f32 -1.442695, %v9449_v6 }
0x112d   : > { %11505 = vmatpush3.bf16.msra.mxu1 %v12136_v19  ;;  %v13323_v2 = vpop.eup %13322  ;;  %13342 = vpow2.f32 %v10957_v55  ;;  %v9419_v40 = vadd.f32 1.0, %v13321_v58  ;;  %v10965_v55 = vmul.f32 -1.442695, %v9450_v48 }
0x112e   : > { %11506 = vmatprep.subr.bf16.mxu1 %v12137_v12  ;;  %v13325_v24 = vpop.eup %13324  ;;  %13344 = vrcp.f32 %v9351_v42  ;;  %v9420_v28 = vadd.f32 1.0, %v13323_v2  ;;  %v9507_v42 = vrot.slane %v15661_v49, 3  ;;  %v9511_v49 = vrot.slane %v15669_v36, 3 }
0x112f   : > { %v13327_v19 = vpop.eup %13326  ;;  %13346 = vrcp.f32 %v9352_v18  ;;  %v9421_v44 = vadd.f32 1.0, %v13325_v24  ;;  %v9508_v18 = vrot.slane %v15663_v9, 3  ;;  %v9512_v9 = vrot.slane %v15672_v4, 3 }
0x1130   : > { %v13329_v3 = vpop.eup %13328  ;;  %13348 = vrcp.f32 %v9353_v62  ;;  %v9422_v29 = vadd.f32 1.0, %v13327_v19 }
0x1131   : > { %11507 = vmatpush3.bf16.msra.mxu1 %v12137_v12  ;;  %v10958_v12 = vmul.f32 -1.442695, %v9443_v21  ;;  %v15748_v41 = vpop.eup %13330  ;;  %13350 = vrcp.f32 %v9354_v22  ;;  %v9423_v11 = vadd.f32 1.0, %v13329_v3  ;;  %v9509_v22 = vrot.slane %v15665_v60, 3 }
0x1132   : > { %v15751_v59 = vpop.eup %13332  ;;  %13352 = vrcp.f32 %v9419_v40  ;;  %v9510_v40 = vrot.slane %v15667_v63, 3 }
0x1133   : > { %v15754_v27 = vpop.eup %13334  ;;  %13354 = vpow2.f32 %v10958_v12 }
0x1134   : > { %v15757_v0 = vpop.eup %13336  ;;  %13356 = vrcp.f32 %v9420_v28 }
0x1135   : > { %v13339_v51 = vpop.eup %13338  ;;  %13358 = vrcp.f32 %v9421_v44 }
0x1136   : > { %v13341_v52 = vpop.eup %13340  ;;  %13360 = vrcp.f32 %v9422_v29  ;;  %v9424_v54 = vadd.f32 1.0, %v13339_v51 }
0x1137   : > { %v13343_v30 = vpop.eup %13342  ;;  %13362 = vrcp.f32 %v9423_v11  ;;  %v9425_v17 = vadd.f32 1.0, %v13341_v52 }
0x1138   : > { %v15760_v23 = vpop.eup %13344  ;;  %13364 = vpow2.f32 %v10959_v37  ;;  %v9426_v10 = vadd.f32 1.0, %v13343_v30 }
0x1139   : > { %v15763_v38 = vpop.eup %13346  ;;  %13366 = vpow2.f32 %v10960_v25 }
0x113a   : > { %v15766_v8 = vpop.eup %13348  ;;  %13368 = vpow2.f32 %v10961_v53 }
0x113b   : > { %v15768_v34 = vpop.eup %13350  ;;  %13370 = vpow2.f32 %v10962_v13 }
0x113c   : > { %v13353_v20 = vpop.eup %13352  ;;  %13372 = vrcp.f32 %v9424_v54 }
0x113d   : > { %v13355_v26 = vpop.eup %13354  ;;  %13374 = vrcp.f32 %v9425_v17  ;;  %v9603_v54 = vmul.f32 %v13353_v20, %v15572_v35 }
0x113e   : > { %v13357_v45 = vpop.eup %13356  ;;  %13376 = vrcp.f32 %v9426_v10  ;;  %v9483_v62 = vadd.f32 1.0, %v13355_v26 }
0x113f   : > { %v13359_v58 = vpop.eup %13358  ;;  %13378 = vpow2.f32 %v10963_v32  ;;  %v9604_v17 = vmul.f32 %v13357_v45, %v15575_v15 }
0x1140   : > { %v13361_v21 = vpop.eup %13360  ;;  %13380 = vpow2.f32 %v10964_v33  ;;  %v9605_v48 = vmul.f32 %v13359_v58, %v15577_v31 }
0x1141   : > { %v13363_v2 = vpop.eup %13362  ;;  %13382 = vpow2.f32 %v10965_v55  ;;  %v9606_v10 = vmul.f32 %v13361_v21, %v15582_v50 }
0x1142   : > { %v13365_v24 = vpop.eup %13364  ;;  %13384 = vtanh.f32 %v9507_v42  ;;  %v9607_v33 = vmul.f32 %v13363_v2, %v15579_v47 }
0x1143   : > { %v13367_v19 = vpop.eup %13366  ;;  %13386 = vtanh.f32 %v9508_v18  ;;  %v9484_v7 = vadd.f32 1.0, %v13365_v24 }
0x1144   : > { %v13369_v12 = vpop.eup %13368  ;;  %13388 = vrcp.f32 %v9483_v62  ;;  %v9485_v36 = vadd.f32 1.0, %v13367_v19 }
0x1145   : > { %v13371_v3 = vpop.eup %13370  ;;  %13390 = vtanh.f32 %v9509_v22  ;;  %v9486_v51 = vadd.f32 1.0, %v13369_v12 }
0x1146   : > { %v13373_v28 = vpop.eup %13372  ;;  %13392 = vtanh.f32 %v9510_v40  ;;  %v9487_v46 = vadd.f32 1.0, %v13371_v3 }
0x1147   : > { %v13375_v60 = vpop.eup %13374  ;;  %v9608_v26 = vmul.f32 %v13373_v28, %v15584_v39 }
0x1148   : > { %v13377_v29 = vpop.eup %13376  ;;  %v9609_v55 = vmul.f32 %v13375_v60, %v15586_v5 }
0x1149   : > { %v13379_v14 = vpop.eup %13378  ;;  %v9610_v35 = vmul.f32 %v13377_v29, %v15589_v61 }
0x114a   : > { %v13381_v4 = vpop.eup %13380  ;;  %v9488_v53 = vadd.f32 1.0, %v13379_v14 }
0x114b   : > { %v13383_v25 = vpop.eup %13382  ;;  %v9489_v43 = vadd.f32 1.0, %v13381_v4 }
0x114c   : > { %v13385_v52 = vpop.eup %13384  ;;  %v9490_v57 = vadd.f32 1.0, %v13383_v25 }
0x114d   : > { %v13387_v30 = vpop.eup %13386  ;;  %v9611_v20 = vmul.f32 %v13385_v52, %v15748_v41 }
0x114e   : > { %v15778_v13 = vpop.eup %13388  ;;  %v9612_v15 = vmul.f32 %v13387_v30, %v15751_v59 }
0x114f   : > { %v13391_v6 = vpop.eup %13390  ;;  %v9619_v18 = vadd.f32 %v9611_v20, %v9603_v54 }
0x1150   : > { %v13393_v32 = vpop.eup %13392  ;;  %v9613_v31 = vmul.f32 %v13391_v6, %v15754_v27  ;;  %v9620_v21 = vadd.f32 %v9612_v15, %v9604_v17 }
0x1151   : > { %v9614_v39 = vmul.f32 %v13393_v32, %v15757_v0 }
0x1152   : > { %v9621_v61 = vadd.f32 %v9613_v31, %v9605_v48 }
0x1153   : > { %v9622_v40 = vadd.f32 %v9614_v39, %v9606_v10 }
0x11f0   : > { %v9765_v44 = vpop.f32.mrb[84].mxu0 }
0x11f1   : > { %13394 = vtanh.f32 %v9765_v44  ;;  %v11490_v63 = vpop.f32.mrb[85].mxu0 }
0x11f2   : > { %13396 = vtanh.f32 %v9511_v49  ;;  %v9768_v11 = vpop.f32.mrb[86].mxu0 }
0x11f3   : > { %13398 = vtanh.f32 %v9512_v9  ;;  %v11491_v37 = vpop.f32.mrb[87].mxu0 }
0x11f4   : > { %13400 = vtanh.f32 %v9513_v56 }
0x11f5   : > { %13402 = vrcp.f32 %v9484_v7 }
0x11f6   : > { %13404 = vtanh.f32 %v9514_v16 }
0x11f7   : > { %13406 = vrcp.f32 %v9485_v36 }
0x11f8   : > { %13408 = vrcp.f32 %v9486_v51 }
0x11f9   : > { %13410 = vrcp.f32 %v9487_v46 }
0x11fa   : > { %13412 = vrcp.f32 %v9488_v53 }
0x11fb   : > { %v13395_v42 = vpop.eup %13394  ;;  %13414 = vrcp.f32 %v9489_v43 }
0x11fc   : > { %v13397_v45 = vpop.eup %13396  ;;  %13416 = vrcp.f32 %v9490_v57  ;;  %v9773_v50 = vcombine.high %v13395_v42, %v13395_v42  ;;  %v9780_v58 = vrot.slane %v13395_v42, %v13993_v1 }
0x11fd   : > { %v13399_v47 = vpop.eup %13398  ;;  %v9615_v5 = vmul.f32 %v13397_v45, %v15760_v23 }
0x11fe   : > { %v13401_v62 = vpop.eup %13400  ;;  %v9787_v41 = vrot.slane %v9773_v50, %v13993_v1  ;;  %v9788_v2 = vcombine.high %v9780_v58, %v9780_v58  ;;  %v9796_v59 = vrot.slane %v9780_v58, %v13993_v1  ;;  %v9616_v27 = vmul.f32 %v13399_v47, %v15763_v38 }
0x11ff   : > { %v13403_v22 = vpop.eup %13402  ;;  %v9617_v24 = vmul.f32 %v13401_v62, %v15766_v8  ;;  %v9623_v19 = vadd.f32 %v9615_v5, %v9607_v33 }
0x1200   : > { %v13405_v12 = vpop.eup %13404  ;;  %v9789_v0 = vcombine.high %v9787_v41, %v9787_v41  ;;  %v9803_v23 = vrot.slane %v9787_v41, %v13993_v1  ;;  %v9810_v49 = vrot.slane %v9788_v2, %v13993_v1  ;;  %v9818_v3 = vcombine.high %v9796_v59, %v9796_v59 }
0x1201   : > { %v13407_v9 = vpop.eup %13406  ;;  %v9618_v28 = vmul.f32 %v13405_v12, %v15768_v34  ;;  %v9624_v56 = vadd.f32 %v9616_v27, %v9608_v26  ;;  %v9625_v44 = vadd.f32 %v9617_v24, %v9609_v55  ;;  %v9830_v60 = vadd.f32 %v9796_v59, %v9619_v18 }
0x1202   : > { %v13409_v7 = vpop.eup %13408  ;;  %v9817_v38 = vrot.slane %v9789_v0, %v13993_v1  ;;  %v9819_v63 = vcombine.high %v9803_v23, %v9803_v23  ;;  %v9820_v8 = vcombine.high %v9810_v49, %v9810_v49  ;;  %v9831_v29 = vadd.f32 %v9810_v49, %v9620_v21 }
0x1203   : > { %v13411_v16 = vpop.eup %13410  ;;  %v9626_v11 = vadd.f32 %v9618_v28, %v9610_v35  ;;  %v9832_v14 = vadd.f32 %v9818_v3, %v9621_v61  ;;  %v9834_v36 = vadd.f32 %v9803_v23, %v9623_v19  ;;  %13418 = vtanh.f32 %v9830_v60 }
0x1204   : > { %v13413_v37 = vpop.eup %13412  ;;  %v9821_v4 = vcombine.high %v9817_v38, %v9817_v38  ;;  %v9833_v51 = vadd.f32 %v9820_v8, %v9622_v40  ;;  %v9835_v25 = vadd.f32 %v9817_v38, %v9624_v56  ;;  %v9836_v46 = vadd.f32 %v9819_v63, %v9625_v44 }
0x1205   : > { %v13415_v34 = vpop.eup %13414  ;;  %13420 = vtanh.f32 %v9831_v29  ;;  %v9929_v52 = vcombine.low %v9830_v60, %v9831_v29 }
0x1206   : > { %v13417_v53 = vpop.eup %13416  ;;  %v9837_v30 = vadd.f32 %v9821_v4, %v9626_v11  ;;  %13422 = vtanh.f32 %v9832_v14  ;;  %v9930_v43 = vcombine.low %v9832_v14, %v9833_v51  ;;  %v9931_v57 = vcombine.low %v9834_v36, %v9835_v25 }
0x1207   : > { %13424 = vtanh.f32 %v9833_v51  ;;  %v9939_v6 = vrot.slane %v9929_v52, %v13993_v1 }
0x1208   : > { %13426 = vtanh.f32 %v9834_v36  ;;  %v9932_v54 = vcombine.low %v9836_v46, %v9837_v30  ;;  %v9946_v17 = vrot.slane %v9930_v43, %v13993_v1  ;;  %v9953_v48 = vrot.slane %v9931_v57, %v13993_v1  ;;  %v10982_v36 = vld [vmem:[%s15892_s7] ss:$0 sm:$0xff] }
0x1209   : > { %13428 = vtanh.f32 %v9835_v25 }
0x120a   : > { %13430 = vtanh.f32 %v9836_v46  ;;  %v9960_v10 = vrot.slane %v9932_v54, %v13993_v1  ;;  %v9961_v32 = vcombine.low %v9939_v6, %v9946_v17 }
0x120b   : > { %13432 = vtanh.f32 %v9837_v30 }
0x120c   : > { %v9962_v33 = vcombine.low %v9953_v48, %v9960_v10  ;;  %v9969_v42 = vrot.slane %v9961_v32, %v13993_v1 }
0x120d   : > { %v13419_v26 = vpop.eup %13418 }
0x120e   : > { %v9846_v55 = vmul.f32 %v13419_v26, %v15778_v13  ;;  %v9976_v35 = vrot.slane %v9962_v33, %v13993_v1 }
0x120f   : > { %v13421_v20 = vpop.eup %13420 }
0x1210   : > { %v13423_v15 = vpop.eup %13422  ;;  %v9847_v45 = vmul.f32 %v13421_v20, %v13403_v22  ;;  %9854 = vst [vmem:[#allocation3 + $0x7] sm:$0x1] %v9846_v55  ;;  %v9977_v31 = vcombine.low %v9969_v42, %v9976_v35 }
0x1211   : > { %v13425_v50 = vpop.eup %13424  ;;  %v9848_v58 = vmul.f32 %v13423_v15, %v13407_v9 }
0x1212   : > { %v13427_v47 = vpop.eup %13426  ;;  %v9849_v39 = vmul.f32 %v13425_v50, %v13409_v7  ;;  %9855 = vst [vmem:[#allocation3 + $0xf] sm:$0x1] %v9847_v45  ;;  %v9870_v5 = vcombine.low %v9846_v55, %v9847_v45  ;;  %9979 = vst [vmem:[#allocation5] sm:$0xff] %v9977_v31 }
0x1213   : > { %v13429_v18 = vpop.eup %13428  ;;  %v9850_v21 = vmul.f32 %v13427_v47, %v13411_v16  ;;  %9856 = vst [vmem:[#allocation3 + $0x17] sm:$0x1] %v9848_v58 }
0x1214   : > { %v13431_v13 = vpop.eup %13430  ;;  %v9851_v62 = vmul.f32 %v13429_v18, %v13413_v37  ;;  %9857 = vst [vmem:[#allocation3 + $0x1f] sm:$0x1] %v9849_v39  ;;  %v9871_v61 = vcombine.low %v9848_v58, %v9849_v39  ;;  %v9880_v27 = vrot.slane %v9870_v5, %v13993_v1 }
0x1215   : > { %v13433_v41 = vpop.eup %13432  ;;  %v9852_v2 = vmul.f32 %v13431_v13, %v13415_v34  ;;  %9858 = vst [vmem:[#allocation3 + $0x27] sm:$0x1] %v9850_v21 }
0x1216   : > { %v9853_v59 = vmul.f32 %v13433_v41, %v13417_v53  ;;  %9859 = vst [vmem:[#allocation3 + $0x2f] sm:$0x1] %v9851_v62  ;;  %v9872_v22 = vcombine.low %v9850_v21, %v9851_v62  ;;  %v9887_v24 = vrot.slane %v9871_v61, %v13993_v1 }
0x1217   : > { %9860 = vst [vmem:[#allocation3 + $0x37] sm:$0x1] %v9852_v2  ;;  %v10039_v12 = vld [vmem:[#allocation3] sm:$0xff] }
0x1218   : > { %9861 = vst [vmem:[#allocation3 + $0x3f] sm:$0x1] %v9853_v59  ;;  %v9873_v40 = vcombine.low %v9852_v2, %v9853_v59  ;;  %v9902_v19 = vcombine.low %v9880_v27, %v9887_v24  ;;  %v9894_v23 = vrot.slane %v9872_v22, %v13993_v1 }
0x1219   : > { %v10040_v0 = vld [vmem:[#allocation3 + $0x8] sm:$0xff] }
0x121a   : > { %v9901_v49 = vrot.slane %v9873_v40, %v13993_v1  ;;  %v10047_v3 = vpack.c.bf16 %v10040_v0, %v10039_v12  ;;  %v10041_v9 = vld [vmem:[#allocation3 + $0x10] sm:$0xff]  ;;  %v9910_v38 = vrot.slane %v9902_v19, %v13993_v1 }
0x121b   : > { %v10042_v28 = vld [vmem:[#allocation3 + $0x18] sm:$0xff] }
0x121c   : > { %v9903_v56 = vcombine.low %v9894_v23, %v9901_v49  ;;  %11508 = vmatprep.mubr.bf16.mxu1 %v10047_v3  ;;  %v10048_v44 = vpack.c.bf16 %v10042_v28, %v10041_v9  ;;  %v10043_v60 = vld [vmem:[#allocation3 + $0x20] sm:$0xff] }
0x121d   : > { %v10044_v7 = vld [vmem:[#allocation3 + $0x28] sm:$0xff] }
0x121e   : > { %v9917_v63 = vrot.slane %v9903_v56, %v13993_v1  ;;  %11509 = vmatmul.mubr.bf16.vlgmr.msra.gmra.mrb[80].mxu1 %v10048_v44  ;;  %v10049_v8 = vpack.c.bf16 %v10044_v7, %v10043_v60  ;;  %v10045_v11 = vld [vmem:[#allocation3 + $0x30] sm:$0xff] }
0x121f   : > { %v10046_v16 = vld [vmem:[#allocation3 + $0x38] sm:$0xff] }
0x1220   : > { %v9918_v29 = vcombine.low %v9910_v38, %v9917_v63  ;;  %11512 = vmatprep.mubr.bf16.mxu1 %v10049_v8  ;;  %v10050_v14 = vpack.c.bf16 %v10046_v16, %v10045_v11 }
0x1222   : > { %9920 = vst [vmem:[#allocation4] sm:$0xff] %v9918_v29 }
0x1226   : > { %11513 = vmatmul.mubr.bf16.gmra.mrb[84].mxu1 %v10050_v14 }
0x12f1   : > { %v11510_v1 = vpop.f32.mrb[80].mxu1 }
0x12f2   : > { %v10165_v37 = vadd.f32 %v11510_v1, %v10982_v36  ;;  %v10156_v4 = vpop.f32.mrb[81].mxu1 }
0x12f3   : > { %v10157_v51 = vadd.f32 %v10982_v36, %v10156_v4  ;;  %v11511_v25 = vpop.f32.mrb[82].mxu1 }
0x12f4   : > { %10189 = vst.msk [vmem:[%s13833_s19 + $0x10] sm:$0xff] %vm480_vm1, %v10165_v37  ;;  %v10168_v46 = vadd.f32 %v11511_v25, %v10982_v36  ;;  %v10159_v34 = vpop.f32.mrb[83].mxu1 }
0x12f5   : > { %10187 = vst.msk [vmem:[%s13833_s19] sm:$0xff] %vm480_vm1, %v10157_v51  ;;  %v10160_v52 = vadd.f32 %v10982_v36, %v10159_v34 }
0x12f6   : > { %10190 = vst.msk [vmem:[%s13833_s19 + $0x18] sm:$0xff] %vm480_vm1, %v10168_v46 }
0x12f7   : > { %10188 = vst.msk [vmem:[%s13833_s19 + $0x8] sm:$0xff] %vm480_vm1, %v10160_v52 }
0x12f9   : > { %v11514_v53 = vpop.f32.mrb[84].mxu1 }
0x12fa   : > { %v10181_v30 = vadd.f32 %v11514_v53, %v10982_v36  ;;  %v10172_v43 = vpop.f32.mrb[85].mxu1 }
0x12fb   : > { %v10173_v57 = vadd.f32 %v10982_v36, %v10172_v43  ;;  %v11515_v54 = vpop.f32.mrb[86].mxu1 }
0x12fc   : > { %10193 = vst.msk [vmem:[%s13833_s19 + $0x30] sm:$0xff] %vm480_vm1, %v10181_v30  ;;  %v10184_v6 = vadd.f32 %v11515_v54, %v10982_v36  ;;  %v10175_v17 = vpop.f32.mrb[87].mxu1 }
0x12fd   : > { %10191 = vst.msk [vmem:[%s13833_s19 + $0x20] sm:$0xff] %vm480_vm1, %v10173_v57  ;;  %v10176_v48 = vadd.f32 %v10982_v36, %v10175_v17 }
0x12fe   : > { %10194 = vst.msk [vmem:[%s13833_s19 + $0x38] sm:$0xff] %vm480_vm1, %v10184_v6 }
0x12ff   : > { %10192 = vst.msk [vmem:[%s13833_s19 + $0x28] sm:$0xff] %vm480_vm1, %v10176_v48 }
0x1300   : > { %13533 = shalt.err (!%p13530_p11)
}
0x1301   : > { %s13534_s19 = scalar_lea.hbm %s15831_s12, 1024  ;;  %s13538_s22 = scalar_lea.hbm %s15893_s8, 2048 }
0x1302   : > { %p13535_p12 = scmp.ne.s32.totalorder %s15831_s12, %s13534_s19  ;;  %p13539_p9 = scmp.lt.u32.totalorder %s15831_s12, %s15893_s8 }
0x1303   : > { %p13540_p13 = scmp.lt.u32.totalorder %s13538_s22, %s13534_s19  ;;  %p13542_p8 = scmp.lt.u32.totalorder %s13534_s19, %s15831_s12 }
0x1304   : > { %p13536_p4 = pnand %p13535_p12, %p15920_p10 }
0x1305   : > { %p13541_p7 = por %p13540_p13, %p13539_p9 }
0x1306   : > { %p13537_p6 = pneg %p13536_p4 }
0x1307   : > { %p13543_p2 = por %p13542_p8, %p13541_p7 }
0x1309   : > { %p13544_p1 = pnand %p13543_p2, %p13537_p6 }
0x130b   : > { %13547 = shalt.err (!%p13544_p1)
}
0x130c   : > { %s13606_s25 = smov 128   ;;  %s13607_s23 = smov 256  }
0x130d   : > { %s13608_s10 = smov 8  }
0x130e   : > { %11527 = dma.vmem_to_hbm [thread:$0]  (%p15920_p10), %s15835_s20, 1024, %s15831_s12, %s10196_s9, %s13606_s25, %s13607_s23, %s13608_s10  }
0x130f PF: > { %s15921_s15 = sld [smem:[#allocation19_spill]]  ;;  %s10223_s16 = sand.u32 1, %s13578_s27  }
0x1310   : > { %p15923_p0 = scmp.ge.s32.totalorder %s13590_s30, 2  ;;  %s10224_s26 = scalar_lea.sflag [#allocation9], %s10223_s16 }
0x1315   : > { %p15922_p3 = scmp.ne.s32.totalorder %s15921_s15, 0 }
0x1317   : > { %p11541_p5 = pnand %p15923_p0, %p15922_p3 }
0x1319   : > { %13573 = dma.done.wait (!%p11541_p5), %s10224_s26, 1024  }
0x131a   : > { %13575 = vsyncadd (!%p11541_p5), %s10224_s26, 4294966272  ;;  %s15924_s30 = sld [smem:[#allocation17_spill]]  ;;  %s15925_s11 = sld [smem:[#allocation18_spill]] }
0x131b   : > { %s15926_s27 = smov %s13582_s28  ;;  %s15927_s28 = smov %s13586_s29 }
0x1320   : > { %p22_p11 = scmp.ge.s32.totalorder %s15924_s30, 4   ;;  %s15928_s29 = smov %s15925_s11 }
0x1322   :  { %24 = sbr.rel (!%p22_p11) target bundleno = 6 (0x6), region = 172 }
0x1329   :  { %10229 = vsyncpa [#allocation8], 1 }
0x132a   :  { %10231 = vsyncpa [#allocation8 + $0x1], 1 }
0x132b   :  { %10232 = vsyncpa [#allocation11], 1 }
0x132c   :  { %10233 = vsyncpa [#allocation9], 1 }
0x132d   :  { %10235 = vsyncpa [#allocation9 + $0x1], 1 }

</bundles_post_ra>
